<compile_context>
chip_gen: v6e
topology: v6e:2x2x1
jax: 0.10.0
libtpu: 0.0.40
codegen_flags: <defaults>
</compile_context>

<pallas_src>
import functools

import jax
import jax.numpy as jnp
from jax.experimental import pallas as pl
from jax.experimental.pallas import tpu as pltpu

EPS = 1e-5  # PyTorch InstanceNorm2d default eps


# ----------------------------- kernel helpers ------------------------------

def _inorm(v):
    # InstanceNorm2d (no affine): per channel over the lane (spatial) dim.
    # Two-pass variance (matches PyTorch; avoids E[x^2]-m^2 cancellation).
    m = jnp.mean(v, axis=1, keepdims=True)
    c = v - m
    var = jnp.mean(c * c, axis=1, keepdims=True)
    return c * jax.lax.rsqrt(var + EPS)


def _make_taps(HH, WW):
    # For each 3x3 tap: the lane-roll amount and the border mask (or None).
    # Layout is (C, HH*WW) with q = y*WW + x on lanes; shifting the source
    # pixel by (dy-1, dx-1) is a circular lane roll by -((dy-1)*WW + (dx-1));
    # the wrap-around only ever lands in positions the border mask zeroes.
    HW = HH * WW
    col = jax.lax.broadcasted_iota(jnp.int32, (1, HW), 1)
    xpos = col % WW
    taps = []
    for dy in range(3):
        for dx in range(3):
            d = (dy - 1) * WW + (dx - 1)
            conds = []
            if dy == 0:
                conds.append(col >= WW)            # needs row y-1
            if dy == 2:
                conds.append(col < HW - WW)        # needs row y+1
            if dx == 0:
                conds.append(xpos >= 1)            # needs col x-1
            if dx == 2:
                conds.append(xpos <= WW - 2)       # needs col x+1
            mask = None
            for c in conds:
                mask = c if mask is None else jnp.logical_and(mask, c)
            taps.append(((-d) % HW, mask))
    return taps


def _im2col(x, taps):
    # (C, HW) -> (9*C, HW); rows are tap-major / channel-minor, matching the
    # (Cout, 9*Cin) weight packing.  Rolls run on the XLU; the axis-0 concat
    # is a sublane stack with no cross-lane movement.
    rows = []
    for shift, mask in taps:
        v = x if shift == 0 else pltpu.roll(x, shift, axis=1)
        if mask is not None:
            v = jnp.where(mask, v, 0.0)
        rows.append(v)
    return jnp.concatenate(rows, axis=0)


def _level_kernel(HH, WW, x_ref, f_ref, s_ref, wup_ref, bup_ref,
                  w0_ref, b0_ref, w1_ref, b1_ref, ws_ref, bs_ref, o_ref):
    # One decoder level for one sample, fully VMEM resident, C-major layout.
    #   x_ref : (Cx, HW_lo)   low-res input of ConvTranspose2d(k=2, s=2)
    #   f_ref : (Cb, HW)      encoder feature at the upsampled resolution
    #   s_ref : (HW_lo, HW)   0/1 scatter matrix (low-res pixel -> even/even lane)
    #   o_ref : (Cout, HW)
    Ca = bup_ref.shape[0]

    # --- fused ConvTranspose2d(k=2, s=2): phase matmul + scatter + lane roll ---
    ph = jnp.dot(wup_ref[...], x_ref[...],
                 preferred_element_type=jnp.float32)           # (4*Ca, HW_lo)
    s00 = s_ref[...]
    parts = []
    for k, (ki, kj) in enumerate(((0, 0), (0, 1), (1, 0), (1, 1))):
        c = jnp.dot(ph[k * Ca:(k + 1) * Ca, :], s00,
                    preferred_element_type=jnp.float32)        # (Ca, HW)
        shift = ki * WW + kj
        if shift:
            c = pltpu.roll(c, shift, axis=1)
        parts.append(c)
    up = parts[0] + parts[1] + parts[2] + parts[3] + bup_ref[...]

    # --- channel concat (sublane dim, cheap) ------------------------------
    xcat = jnp.concatenate([up, f_ref[...]], axis=0)           # (Cin, HW)
    taps = _make_taps(HH, WW)

    # --- UNetConvBlock(depth=2): conv3x3 -> relu -> conv3x3, 1x1 skip ------
    z = jnp.dot(w0_ref[...], _im2col(_inorm(xcat), taps),
                preferred_element_type=jnp.float32) + b0_ref[...]
    z = jnp.maximum(z, 0.0)
    z = jnp.dot(w1_ref[...], _im2col(_inorm(z), taps),
                preferred_element_type=jnp.float32) + b1_ref[...]
    skip = jnp.dot(ws_ref[...], xcat,
                   preferred_element_type=jnp.float32) + bs_ref[...]
    o_ref[...] = jnp.maximum(skip + z, 0.0)


# ----------------------------- Pallas wrapper -------------------------------

def fused_level(x, f, up, blk, HH, WW):
    # x: (N, Cx, HW_lo)   f: (N, Cb, HH*WW)   ->   (N, Cout, HH*WW)
    N, Cx, HW_lo = x.shape
    Cb = f.shape[1]
    HW = HH * WW
    Ca = up['b'].shape[0]
    Cin = Ca + Cb
    Cout = blk['b0'].shape[0]
    W_lo = WW // 2

    # 0/1 scatter matrix placing low-res pixel (i, j) at lane 2i*WW + 2j
    # (constant under jit; tiny at these sizes).
    p = jnp.arange(HW_lo)
    q = (p // W_lo) * (2 * WW) + (p % W_lo) * 2
    s00 = jnp.zeros((HW_lo, HW), jnp.float32).at[p, q].set(1.0)

    kernel = functools.partial(_level_kernel, HH, WW)
    out = pl.pallas_call(
        kernel,
        grid=(N,),
        in_specs=[
            pl.BlockSpec((None, Cx, HW_lo), lambda n: (n, 0, 0)),
            pl.BlockSpec((None, Cb, HW), lambda n: (n, 0, 0)),
            pl.BlockSpec((HW_lo, HW), lambda n: (0, 0)),
            pl.BlockSpec((4 * Ca, Cx), lambda n: (0, 0)),
            pl.BlockSpec((Ca, 1), lambda n: (0, 0)),
            pl.BlockSpec((Cout, 9 * Cin), lambda n: (0, 0)),
            pl.BlockSpec((Cout, 1), lambda n: (0, 0)),
            pl.BlockSpec((Cout, 9 * Cout), lambda n: (0, 0)),
            pl.BlockSpec((Cout, 1), lambda n: (0, 0)),
            pl.BlockSpec((Cout, Cin), lambda n: (0, 0)),
            pl.BlockSpec((Cout, 1), lambda n: (0, 0)),
        ],
        out_specs=pl.BlockSpec((None, Cout, HW), lambda n: (n, 0, 0)),
        out_shape=jax.ShapeDtypeStruct((N, Cout, HW), jnp.float32),
        compiler_params=pltpu.CompilerParams(
            dimension_semantics=("parallel",),
            vmem_limit_bytes=32 * 1024 * 1024),
    )(x, f, s00,
      up['w_mat'], up['b'].reshape(Ca, 1),
      blk['w0_mat'], blk['b0'].reshape(Cout, 1),
      blk['w1_mat'], blk['b1'].reshape(Cout, 1),
      blk['skip_w'], blk['skip_b'].reshape(Cout, 1))
    return out


# ------------------------------ model glue ---------------------------------

@jax.jit
def unet_decoder_forward(x_nchw, encoder_features_nchw, params):
    # NCHW is already C-major: only free reshapes at the boundary.
    N, C, H, W = x_nchw.shape
    x = x_nchw.reshape(N, C, H * W)
    n_feat = len(encoder_features_nchw)
    HH, WW = H, W
    cout = C
    for i, (up, blk) in enumerate(zip(params['up'], params['blocks'])):
        HH, WW = 2 * HH, 2 * WW
        f = encoder_features_nchw[n_feat - 1 - i]
        f = f.reshape(f.shape[0], f.shape[1], -1)
        x = fused_level(x, f, up, blk, HH, WW)
        cout = x.shape[1]
    return x.reshape(N, cout, HH, WW)


# --------------------------- parameter init --------------------------------

def init_params(key, chs=(8, 16, 32)):
    ch_rev = tuple(reversed(chs))
    params = {'up': [], 'blocks': []}
    for i in range(len(chs) - 1):
        cin, cout = ch_rev[i], ch_rev[i + 1]
        key, k1, k2, k3, k4, k5, k6, k7, k8 = jax.random.split(key, 9)
        # PyTorch ConvTranspose2d weight layout: (Cin, Cout, kH, kW)
        w_up = jax.random.normal(k1, (cin, cout, 2, 2), jnp.float32) * 0.1
        params['up'].append({
            'w_torch': w_up,
            # (4*Cout, Cin): rows phase-major (ki, kj), channel-minor.
            'w_mat': jnp.transpose(w_up, (2, 3, 1, 0)).reshape(4 * cout, cin),
            'b': jax.random.normal(k2, (cout,), jnp.float32) * 0.1,
        })
        # PyTorch Conv2d weights (OIHW); packed to (Cout, 9*Cin) with column
        # index (dy*3 + dx)*Cin + cin — tap-major, channel-minor (matches the
        # in-kernel im2col row order).
        w0 = jax.random.normal(k3, (cout, cin, 3, 3), jnp.float32) * 0.1
        w1 = jax.random.normal(k5, (cout, cout, 3, 3), jnp.float32) * 0.1
        ws = jax.random.normal(k7, (cout, cin, 1, 1), jnp.float32) * 0.1
        params['blocks'].append({
            'w0_oihw': w0,
            'w0_mat': jnp.transpose(w0, (0, 2, 3, 1)).reshape(cout, 9 * cin),
            'b0': jax.random.normal(k4, (cout,), jnp.float32) * 0.1,
            'w1_oihw': w1,
            'w1_mat': jnp.transpose(w1, (0, 2, 3, 1)).reshape(cout, 9 * cout),
            'b1': jax.random.normal(k6, (cout,), jnp.float32) * 0.1,
            'skip_w': ws[:, :, 0, 0],                       # (Cout, Cin)
            'skip_b': jax.random.normal(k8, (cout,), jnp.float32) * 0.1,
        })
    return params


# --------------------------- pure-JAX reference -----------------------------

def _ref_decoder(x, feats, params):
    def inorm(v):
        m = jnp.mean(v, axis=(2, 3), keepdims=True)
        var = jnp.mean((v - m) ** 2, axis=(2, 3), keepdims=True)
        return (v - m) * jax.lax.rsqrt(var + EPS)

    def conv3x3(v, w_oihw, b):
        out = jax.lax.conv_general_dilated(
            v, w_oihw, (1, 1), 'SAME',
            dimension_numbers=('NCHW', 'OIHW', 'NCHW'))
        return out + b[None, :, None, None]

    n_feat = len(feats)
    for i, (up, blk) in enumerate(zip(params['up'], params['blocks'])):
        N, _, H, W = x.shape
        Ca = up['b'].shape[0]
        ph = jnp.einsum('nchw,cokl->noklhw', x, up['w_torch'])
        xup = jnp.transpose(ph, (0, 1, 4, 2, 5, 3)).reshape(N, Ca, 2 * H, 2 * W)
        xup = xup + up['b'][None, :, None, None]
        xcat = jnp.concatenate([xup, feats[n_feat - 1 - i]], axis=1)
        z = jnp.maximum(conv3x3(inorm(xcat), blk['w0_oihw'], blk['b0']), 0.0)
        z = conv3x3(inorm(z), blk['w1_oihw'], blk['b1'])
        skip = (jnp.einsum('nchw,oc->nohw', xcat, blk['skip_w'])
                + blk['skip_b'][None, :, None, None])
        x = jnp.maximum(skip + z, 0.0)
    return x


# --------------------------------- main -------------------------------------

if __name__ == "__main__":
    key = jax.random.PRNGKey(0)
    chs = (8, 16, 32)                 # UNetDecoder(chs) at small size
    N, H0 = 2, 8
    kx, kf0, kf1, kp = jax.random.split(key, 4)

    # bottleneck input (NCHW, like PyTorch)
    x = jax.random.normal(kx, (N, chs[-1], H0, H0), jnp.float32)
    # encoder features, shallowest first (as produced by a matching encoder)
    encoder_features = [
        jax.random.normal(kf0, (N, chs[0], 4 * H0, 4 * H0), jnp.float32),
        jax.random.normal(kf1, (N, chs[1], 2 * H0, 2 * H0), jnp.float32),
    ]
    params = init_params(kp, chs)

    out = unet_decoder_forward(x, encoder_features, params)
    out = jax.block_until_ready(out)

    ref = _ref_decoder(x, encoder_features, params)
    assert out.shape == (N, chs[0], 4 * H0, 4 * H0), out.shape
    assert bool(jnp.all(jnp.isfinite(out)))
    err = float(jnp.max(jnp.abs(out - ref)))
    assert bool(jnp.allclose(out, ref, atol=1e-4, rtol=1e-4)), err
    print("KERNEL_OK")
</pallas_src>

<mosaic_0001>
module attributes {stable_mosaic.version = 11 : i64} {
  func.func @_level_kernel(%arg0: i32, %arg1: memref<1x32x64xf32, #tpu.memory_space<vmem>>, %arg2: memref<1x16x256xf32, #tpu.memory_space<vmem>>, %arg3: memref<64x256xf32, #tpu.memory_space<vmem>>, %arg4: memref<64x32xf32, #tpu.memory_space<vmem>>, %arg5: memref<16x1xf32, #tpu.memory_space<vmem>>, %arg6: memref<16x288xf32, #tpu.memory_space<vmem>>, %arg7: memref<16x1xf32, #tpu.memory_space<vmem>>, %arg8: memref<16x144xf32, #tpu.memory_space<vmem>>, %arg9: memref<16x1xf32, #tpu.memory_space<vmem>>, %arg10: memref<16x32xf32, #tpu.memory_space<vmem>>, %arg11: memref<16x1xf32, #tpu.memory_space<vmem>>, %arg12: memref<1x16x256xf32, #tpu.memory_space<vmem>>) attributes {dimension_semantics = [#tpu.dimension_semantics<parallel>], iteration_bounds = array<i64: 2>, scalar_prefetch = 0 : i64, scratch_operands = 0 : i64, tpu.core_type = #tpu.core_type<tc>, window_params = [{transform_indices = @transform_0, window_bounds = array<i64: 1, 32, 64>}, {transform_indices = @transform_1, window_bounds = array<i64: 1, 16, 256>}, {pipeline_mode = #tpu.pipeline_mode<synchronous>, transform_indices = @transform_2, window_bounds = array<i64: 64, 256>}, {pipeline_mode = #tpu.pipeline_mode<synchronous>, transform_indices = @transform_3, window_bounds = array<i64: 64, 32>}, {pipeline_mode = #tpu.pipeline_mode<synchronous>, transform_indices = @transform_4, window_bounds = array<i64: 16, 1>}, {pipeline_mode = #tpu.pipeline_mode<synchronous>, transform_indices = @transform_5, window_bounds = array<i64: 16, 288>}, {pipeline_mode = #tpu.pipeline_mode<synchronous>, transform_indices = @transform_6, window_bounds = array<i64: 16, 1>}, {pipeline_mode = #tpu.pipeline_mode<synchronous>, transform_indices = @transform_7, window_bounds = array<i64: 16, 144>}, {pipeline_mode = #tpu.pipeline_mode<synchronous>, transform_indices = @transform_8, window_bounds = array<i64: 16, 1>}, {pipeline_mode = #tpu.pipeline_mode<synchronous>, transform_indices = @transform_9, window_bounds = array<i64: 16, 32>}, {pipeline_mode = #tpu.pipeline_mode<synchronous>, transform_indices = @transform_10, window_bounds = array<i64: 16, 1>}, {transform_indices = @transform_11, window_bounds = array<i64: 1, 16, 256>}]} {
    %c0 = arith.constant 0 : index
    %c0_0 = arith.constant 0 : index
    %0 = vector.load %arg4[%c0, %c0_0] : memref<64x32xf32, #tpu.memory_space<vmem>>, vector<64x32xf32>
    %c0_1 = arith.constant 0 : index
    %c0_2 = arith.constant 0 : index
    %c0_3 = arith.constant 0 : index
    %1 = vector.load %arg1[%c0_1, %c0_2, %c0_3] : memref<1x32x64xf32, #tpu.memory_space<vmem>>, vector<1x32x64xf32>
    %2 = vector.shape_cast %1 : vector<1x32x64xf32> to vector<32x64xf32>
    %cst = arith.constant dense<0.000000e+00> : vector<64x64xf32>
    %3 = tpu.matmul %0, %2, %cst {dimension_numbers = #tpu.dot_dimension_numbers<[1], [0], [0], [1], [0, 0, 1, 1], [], []>} : vector<64x32xf32>, vector<32x64xf32>, vector<64x64xf32> -> vector<64x64xf32>
    %c0_4 = arith.constant 0 : index
    %c0_5 = arith.constant 0 : index
    %4 = vector.load %arg3[%c0_4, %c0_5] : memref<64x256xf32, #tpu.memory_space<vmem>>, vector<64x256xf32>
    %5 = vector.extract_strided_slice %3 {offsets = [0, 0], sizes = [16, 64], strides = [1, 1]} : vector<64x64xf32> to vector<16x64xf32>
    %cst_6 = arith.constant dense<0.000000e+00> : vector<16x256xf32>
    %6 = tpu.matmul %5, %4, %cst_6 {dimension_numbers = #tpu.dot_dimension_numbers<[1], [0], [0], [1], [0, 0, 1, 1], [], []>} : vector<16x64xf32>, vector<64x256xf32>, vector<16x256xf32> -> vector<16x256xf32>
    %7 = vector.extract_strided_slice %3 {offsets = [16, 0], sizes = [16, 64], strides = [1, 1]} : vector<64x64xf32> to vector<16x64xf32>
    %cst_7 = arith.constant dense<0.000000e+00> : vector<16x256xf32>
    %8 = tpu.matmul %7, %4, %cst_7 {dimension_numbers = #tpu.dot_dimension_numbers<[1], [0], [0], [1], [0, 0, 1, 1], [], []>} : vector<16x64xf32>, vector<64x256xf32>, vector<16x256xf32> -> vector<16x256xf32>
    %c1_i32 = arith.constant 1 : i32
    %9 = tpu.dynamic_rotate %8 by %c1_i32 dim 1 : vector<16x256xf32>, i32 -> vector<16x256xf32>
    %10 = vector.extract_strided_slice %3 {offsets = [32, 0], sizes = [16, 64], strides = [1, 1]} : vector<64x64xf32> to vector<16x64xf32>
    %cst_8 = arith.constant dense<0.000000e+00> : vector<16x256xf32>
    %11 = tpu.matmul %10, %4, %cst_8 {dimension_numbers = #tpu.dot_dimension_numbers<[1], [0], [0], [1], [0, 0, 1, 1], [], []>} : vector<16x64xf32>, vector<64x256xf32>, vector<16x256xf32> -> vector<16x256xf32>
    %c16_i32 = arith.constant 16 : i32
    %12 = tpu.dynamic_rotate %11 by %c16_i32 dim 1 : vector<16x256xf32>, i32 -> vector<16x256xf32>
    %13 = vector.extract_strided_slice %3 {offsets = [48, 0], sizes = [16, 64], strides = [1, 1]} : vector<64x64xf32> to vector<16x64xf32>
    %cst_9 = arith.constant dense<0.000000e+00> : vector<16x256xf32>
    %14 = tpu.matmul %13, %4, %cst_9 {dimension_numbers = #tpu.dot_dimension_numbers<[1], [0], [0], [1], [0, 0, 1, 1], [], []>} : vector<16x64xf32>, vector<64x256xf32>, vector<16x256xf32> -> vector<16x256xf32>
    %c17_i32 = arith.constant 17 : i32
    %15 = tpu.dynamic_rotate %14 by %c17_i32 dim 1 : vector<16x256xf32>, i32 -> vector<16x256xf32>
    %16 = arith.addf %6, %9 : vector<16x256xf32>
    %17 = arith.addf %16, %12 : vector<16x256xf32>
    %18 = arith.addf %17, %15 : vector<16x256xf32>
    %c0_10 = arith.constant 0 : index
    %c0_11 = arith.constant 0 : index
    %19 = vector.load %arg5[%c0_10, %c0_11] : memref<16x1xf32, #tpu.memory_space<vmem>>, vector<16x1xf32>
    %20 = vector.broadcast %19 : vector<16x1xf32> to vector<16x256xf32>
    %21 = arith.addf %18, %20 : vector<16x256xf32>
    %c0_12 = arith.constant 0 : index
    %c0_13 = arith.constant 0 : index
    %c0_14 = arith.constant 0 : index
    %22 = vector.load %arg2[%c0_12, %c0_13, %c0_14] : memref<1x16x256xf32, #tpu.memory_space<vmem>>, vector<1x16x256xf32>
    %23 = vector.shape_cast %22 : vector<1x16x256xf32> to vector<16x256xf32>
    %24 = tpu.concatenate %21, %23 in 0 : vector<16x256xf32>, vector<16x256xf32> -> vector<32x256xf32>
    %25 = tpu.iota {dimensions = array<i32: 1>} : vector<1x256xi32>
    %c16_i32_15 = arith.constant 16 : i32
    %c0_i32 = arith.constant 0 : i32
    %26 = arith.cmpi eq, %c16_i32_15, %c0_i32 : i32
    %c1_i32_16 = arith.constant 1 : i32
    %27 = arith.select %26, %c1_i32_16, %c16_i32_15 : i32
    %28 = vector.broadcast %27 : i32 to vector<1x256xi32>
    %29 = arith.remsi %25, %28 : vector<1x256xi32>
    %c0_i32_17 = arith.constant 0 : i32
    %30 = vector.broadcast %c0_i32_17 : i32 to vector<1x256xi32>
    %31 = arith.cmpi ne, %29, %30 : vector<1x256xi32>
    %c0_i32_18 = arith.constant 0 : i32
    %32 = vector.broadcast %c0_i32_18 : i32 to vector<1x256xi32>
    %33 = arith.cmpi slt, %29, %32 : vector<1x256xi32>
    %c0_i32_19 = arith.constant 0 : i32
    %34 = arith.cmpi slt, %27, %c0_i32_19 : i32
    %35 = vector.broadcast %34 : i1 to vector<1x256xi1>
    %36 = vector.broadcast %35 : vector<1x256xi1> to vector<1x256xi1>
    %37 = arith.xori %33, %36 : vector<1x256xi1>
    %38 = arith.andi %37, %31 : vector<1x256xi1>
    %39 = vector.broadcast %27 : i32 to vector<1x256xi32>
    %40 = arith.addi %29, %39 : vector<1x256xi32>
    %41 = arith.select %38, %40, %29 : vector<1x256xi1>, vector<1x256xi32>
    %c16_i32_20 = arith.constant 16 : i32
    %42 = vector.broadcast %c16_i32_20 : i32 to vector<1x256xi32>
    %43 = arith.cmpi sge, %25, %42 : vector<1x256xi32>
    %c1_i32_21 = arith.constant 1 : i32
    %44 = vector.broadcast %c1_i32_21 : i32 to vector<1x256xi32>
    %45 = arith.cmpi sge, %41, %44 : vector<1x256xi32>
    %46 = arith.andi %43, %45 : vector<1x256xi1>
    %c16_i32_22 = arith.constant 16 : i32
    %47 = vector.broadcast %c16_i32_22 : i32 to vector<1x256xi32>
    %48 = arith.cmpi sge, %25, %47 : vector<1x256xi32>
    %c16_i32_23 = arith.constant 16 : i32
    %49 = vector.broadcast %c16_i32_23 : i32 to vector<1x256xi32>
    %50 = arith.cmpi sge, %25, %49 : vector<1x256xi32>
    %c14_i32 = arith.constant 14 : i32
    %51 = vector.broadcast %c14_i32 : i32 to vector<1x256xi32>
    %52 = arith.cmpi sle, %41, %51 : vector<1x256xi32>
    %53 = arith.andi %50, %52 : vector<1x256xi1>
    %c1_i32_24 = arith.constant 1 : i32
    %54 = vector.broadcast %c1_i32_24 : i32 to vector<1x256xi32>
    %55 = arith.cmpi sge, %41, %54 : vector<1x256xi32>
    %c14_i32_25 = arith.constant 14 : i32
    %56 = vector.broadcast %c14_i32_25 : i32 to vector<1x256xi32>
    %57 = arith.cmpi sle, %41, %56 : vector<1x256xi32>
    %c240_i32 = arith.constant 240 : i32
    %58 = vector.broadcast %c240_i32 : i32 to vector<1x256xi32>
    %59 = arith.cmpi slt, %25, %58 : vector<1x256xi32>
    %c1_i32_26 = arith.constant 1 : i32
    %60 = vector.broadcast %c1_i32_26 : i32 to vector<1x256xi32>
    %61 = arith.cmpi sge, %41, %60 : vector<1x256xi32>
    %62 = arith.andi %59, %61 : vector<1x256xi1>
    %c240_i32_27 = arith.constant 240 : i32
    %63 = vector.broadcast %c240_i32_27 : i32 to vector<1x256xi32>
    %64 = arith.cmpi slt, %25, %63 : vector<1x256xi32>
    %c240_i32_28 = arith.constant 240 : i32
    %65 = vector.broadcast %c240_i32_28 : i32 to vector<1x256xi32>
    %66 = arith.cmpi slt, %25, %65 : vector<1x256xi32>
    %c14_i32_29 = arith.constant 14 : i32
    %67 = vector.broadcast %c14_i32_29 : i32 to vector<1x256xi32>
    %68 = arith.cmpi sle, %41, %67 : vector<1x256xi32>
    %69 = arith.andi %66, %68 : vector<1x256xi1>
    %c0_30 = arith.constant 0 : index
    %c0_31 = arith.constant 0 : index
    %70 = vector.load %arg6[%c0_30, %c0_31] : memref<16x288xf32, #tpu.memory_space<vmem>>, vector<16x288xf32>
    %cst_32 = arith.constant dense<0.000000e+00> : vector<32xf32>
    %71 = vector.multi_reduction <add>, %24, %cst_32 [1] : vector<32x256xf32> to vector<32xf32>
    %72 = vector.shape_cast %71 : vector<32xf32> to vector<32x1xf32>
    %cst_33 = arith.constant 2.560000e+02 : f32
    %73 = vector.broadcast %cst_33 : f32 to vector<32x1xf32>
    %74 = arith.divf %72, %73 : vector<32x1xf32>
    %75 = vector.broadcast %74 : vector<32x1xf32> to vector<32x256xf32>
    %76 = arith.subf %24, %75 : vector<32x256xf32>
    %77 = arith.mulf %76, %76 : vector<32x256xf32>
    %cst_34 = arith.constant dense<0.000000e+00> : vector<32xf32>
    %78 = vector.multi_reduction <add>, %77, %cst_34 [1] : vector<32x256xf32> to vector<32xf32>
    %79 = vector.shape_cast %78 : vector<32xf32> to vector<32x1xf32>
    %cst_35 = arith.constant 2.560000e+02 : f32
    %80 = vector.broadcast %cst_35 : f32 to vector<32x1xf32>
    %81 = arith.divf %79, %80 : vector<32x1xf32>
    %cst_36 = arith.constant 9.99999974E-6 : f32
    %82 = vector.broadcast %cst_36 : f32 to vector<32x1xf32>
    %83 = arith.addf %81, %82 : vector<32x1xf32>
    %84 = math.rsqrt %83 : vector<32x1xf32>
    %85 = vector.broadcast %84 : vector<32x1xf32> to vector<32x256xf32>
    %86 = arith.mulf %76, %85 : vector<32x256xf32>
    %c17_i32_37 = arith.constant 17 : i32
    %87 = tpu.dynamic_rotate %86 by %c17_i32_37 dim 1 : vector<32x256xf32>, i32 -> vector<32x256xf32>
    %cst_38 = arith.constant 0.000000e+00 : f32
    %88 = vector.shape_cast %46 : vector<1x256xi1> to vector<1x256xi1>
    %89 = vector.broadcast %88 : vector<1x256xi1> to vector<32x256xi1>
    %90 = vector.broadcast %cst_38 : f32 to vector<32x256xf32>
    %91 = arith.select %89, %87, %90 : vector<32x256xi1>, vector<32x256xf32>
    %c16_i32_39 = arith.constant 16 : i32
    %92 = tpu.dynamic_rotate %86 by %c16_i32_39 dim 1 : vector<32x256xf32>, i32 -> vector<32x256xf32>
    %cst_40 = arith.constant 0.000000e+00 : f32
    %93 = vector.shape_cast %48 : vector<1x256xi1> to vector<1x256xi1>
    %94 = vector.broadcast %93 : vector<1x256xi1> to vector<32x256xi1>
    %95 = vector.broadcast %cst_40 : f32 to vector<32x256xf32>
    %96 = arith.select %94, %92, %95 : vector<32x256xi1>, vector<32x256xf32>
    %c15_i32 = arith.constant 15 : i32
    %97 = tpu.dynamic_rotate %86 by %c15_i32 dim 1 : vector<32x256xf32>, i32 -> vector<32x256xf32>
    %cst_41 = arith.constant 0.000000e+00 : f32
    %98 = vector.shape_cast %53 : vector<1x256xi1> to vector<1x256xi1>
    %99 = vector.broadcast %98 : vector<1x256xi1> to vector<32x256xi1>
    %100 = vector.broadcast %cst_41 : f32 to vector<32x256xf32>
    %101 = arith.select %99, %97, %100 : vector<32x256xi1>, vector<32x256xf32>
    %c1_i32_42 = arith.constant 1 : i32
    %102 = tpu.dynamic_rotate %86 by %c1_i32_42 dim 1 : vector<32x256xf32>, i32 -> vector<32x256xf32>
    %cst_43 = arith.constant 0.000000e+00 : f32
    %103 = vector.shape_cast %55 : vector<1x256xi1> to vector<1x256xi1>
    %104 = vector.broadcast %103 : vector<1x256xi1> to vector<32x256xi1>
    %105 = vector.broadcast %cst_43 : f32 to vector<32x256xf32>
    %106 = arith.select %104, %102, %105 : vector<32x256xi1>, vector<32x256xf32>
    %c255_i32 = arith.constant 255 : i32
    %107 = tpu.dynamic_rotate %86 by %c255_i32 dim 1 : vector<32x256xf32>, i32 -> vector<32x256xf32>
    %cst_44 = arith.constant 0.000000e+00 : f32
    %108 = vector.shape_cast %57 : vector<1x256xi1> to vector<1x256xi1>
    %109 = vector.broadcast %108 : vector<1x256xi1> to vector<32x256xi1>
    %110 = vector.broadcast %cst_44 : f32 to vector<32x256xf32>
    %111 = arith.select %109, %107, %110 : vector<32x256xi1>, vector<32x256xf32>
    %c241_i32 = arith.constant 241 : i32
    %112 = tpu.dynamic_rotate %86 by %c241_i32 dim 1 : vector<32x256xf32>, i32 -> vector<32x256xf32>
    %cst_45 = arith.constant 0.000000e+00 : f32
    %113 = vector.shape_cast %62 : vector<1x256xi1> to vector<1x256xi1>
    %114 = vector.broadcast %113 : vector<1x256xi1> to vector<32x256xi1>
    %115 = vector.broadcast %cst_45 : f32 to vector<32x256xf32>
    %116 = arith.select %114, %112, %115 : vector<32x256xi1>, vector<32x256xf32>
    %c240_i32_46 = arith.constant 240 : i32
    %117 = tpu.dynamic_rotate %86 by %c240_i32_46 dim 1 : vector<32x256xf32>, i32 -> vector<32x256xf32>
    %cst_47 = arith.constant 0.000000e+00 : f32
    %118 = vector.shape_cast %64 : vector<1x256xi1> to vector<1x256xi1>
    %119 = vector.broadcast %118 : vector<1x256xi1> to vector<32x256xi1>
    %120 = vector.broadcast %cst_47 : f32 to vector<32x256xf32>
    %121 = arith.select %119, %117, %120 : vector<32x256xi1>, vector<32x256xf32>
    %c239_i32 = arith.constant 239 : i32
    %122 = tpu.dynamic_rotate %86 by %c239_i32 dim 1 : vector<32x256xf32>, i32 -> vector<32x256xf32>
    %cst_48 = arith.constant 0.000000e+00 : f32
    %123 = vector.shape_cast %69 : vector<1x256xi1> to vector<1x256xi1>
    %124 = vector.broadcast %123 : vector<1x256xi1> to vector<32x256xi1>
    %125 = vector.broadcast %cst_48 : f32 to vector<32x256xf32>
    %126 = arith.select %124, %122, %125 : vector<32x256xi1>, vector<32x256xf32>
    %127 = tpu.concatenate %91, %96, %101, %106, %86, %111, %116, %121, %126 in 0 : vector<32x256xf32>, vector<32x256xf32>, vector<32x256xf32>, vector<32x256xf32>, vector<32x256xf32>, vector<32x256xf32>, vector<32x256xf32>, vector<32x256xf32>, vector<32x256xf32> -> vector<288x256xf32>
    %cst_49 = arith.constant dense<0.000000e+00> : vector<16x256xf32>
    %128 = tpu.matmul %70, %127, %cst_49 {dimension_numbers = #tpu.dot_dimension_numbers<[1], [0], [0], [1], [0, 0, 1, 1], [], []>} : vector<16x288xf32>, vector<288x256xf32>, vector<16x256xf32> -> vector<16x256xf32>
    %c0_50 = arith.constant 0 : index
    %c0_51 = arith.constant 0 : index
    %129 = vector.load %arg7[%c0_50, %c0_51] : memref<16x1xf32, #tpu.memory_space<vmem>>, vector<16x1xf32>
    %130 = vector.broadcast %129 : vector<16x1xf32> to vector<16x256xf32>
    %131 = arith.addf %128, %130 : vector<16x256xf32>
    %cst_52 = arith.constant 0.000000e+00 : f32
    %132 = vector.broadcast %cst_52 : f32 to vector<16x256xf32>
    %133 = arith.maximumf %131, %132 : vector<16x256xf32>
    %c0_53 = arith.constant 0 : index
    %c0_54 = arith.constant 0 : index
    %134 = vector.load %arg8[%c0_53, %c0_54] : memref<16x144xf32, #tpu.memory_space<vmem>>, vector<16x144xf32>
    %cst_55 = arith.constant dense<0.000000e+00> : vector<16xf32>
    %135 = vector.multi_reduction <add>, %133, %cst_55 [1] : vector<16x256xf32> to vector<16xf32>
    %136 = vector.shape_cast %135 : vector<16xf32> to vector<16x1xf32>
    %cst_56 = arith.constant 2.560000e+02 : f32
    %137 = vector.broadcast %cst_56 : f32 to vector<16x1xf32>
    %138 = arith.divf %136, %137 : vector<16x1xf32>
    %139 = vector.broadcast %138 : vector<16x1xf32> to vector<16x256xf32>
    %140 = arith.subf %133, %139 : vector<16x256xf32>
    %141 = arith.mulf %140, %140 : vector<16x256xf32>
    %cst_57 = arith.constant dense<0.000000e+00> : vector<16xf32>
    %142 = vector.multi_reduction <add>, %141, %cst_57 [1] : vector<16x256xf32> to vector<16xf32>
    %143 = vector.shape_cast %142 : vector<16xf32> to vector<16x1xf32>
    %cst_58 = arith.constant 2.560000e+02 : f32
    %144 = vector.broadcast %cst_58 : f32 to vector<16x1xf32>
    %145 = arith.divf %143, %144 : vector<16x1xf32>
    %cst_59 = arith.constant 9.99999974E-6 : f32
    %146 = vector.broadcast %cst_59 : f32 to vector<16x1xf32>
    %147 = arith.addf %145, %146 : vector<16x1xf32>
    %148 = math.rsqrt %147 : vector<16x1xf32>
    %149 = vector.broadcast %148 : vector<16x1xf32> to vector<16x256xf32>
    %150 = arith.mulf %140, %149 : vector<16x256xf32>
    %c17_i32_60 = arith.constant 17 : i32
    %151 = tpu.dynamic_rotate %150 by %c17_i32_60 dim 1 : vector<16x256xf32>, i32 -> vector<16x256xf32>
    %cst_61 = arith.constant 0.000000e+00 : f32
    %152 = vector.shape_cast %46 : vector<1x256xi1> to vector<1x256xi1>
    %153 = vector.broadcast %152 : vector<1x256xi1> to vector<16x256xi1>
    %154 = vector.broadcast %cst_61 : f32 to vector<16x256xf32>
    %155 = arith.select %153, %151, %154 : vector<16x256xi1>, vector<16x256xf32>
    %c16_i32_62 = arith.constant 16 : i32
    %156 = tpu.dynamic_rotate %150 by %c16_i32_62 dim 1 : vector<16x256xf32>, i32 -> vector<16x256xf32>
    %cst_63 = arith.constant 0.000000e+00 : f32
    %157 = vector.shape_cast %48 : vector<1x256xi1> to vector<1x256xi1>
    %158 = vector.broadcast %157 : vector<1x256xi1> to vector<16x256xi1>
    %159 = vector.broadcast %cst_63 : f32 to vector<16x256xf32>
    %160 = arith.select %158, %156, %159 : vector<16x256xi1>, vector<16x256xf32>
    %c15_i32_64 = arith.constant 15 : i32
    %161 = tpu.dynamic_rotate %150 by %c15_i32_64 dim 1 : vector<16x256xf32>, i32 -> vector<16x256xf32>
    %cst_65 = arith.constant 0.000000e+00 : f32
    %162 = vector.shape_cast %53 : vector<1x256xi1> to vector<1x256xi1>
    %163 = vector.broadcast %162 : vector<1x256xi1> to vector<16x256xi1>
    %164 = vector.broadcast %cst_65 : f32 to vector<16x256xf32>
    %165 = arith.select %163, %161, %164 : vector<16x256xi1>, vector<16x256xf32>
    %c1_i32_66 = arith.constant 1 : i32
    %166 = tpu.dynamic_rotate %150 by %c1_i32_66 dim 1 : vector<16x256xf32>, i32 -> vector<16x256xf32>
    %cst_67 = arith.constant 0.000000e+00 : f32
    %167 = vector.shape_cast %55 : vector<1x256xi1> to vector<1x256xi1>
    %168 = vector.broadcast %167 : vector<1x256xi1> to vector<16x256xi1>
    %169 = vector.broadcast %cst_67 : f32 to vector<16x256xf32>
    %170 = arith.select %168, %166, %169 : vector<16x256xi1>, vector<16x256xf32>
    %c255_i32_68 = arith.constant 255 : i32
    %171 = tpu.dynamic_rotate %150 by %c255_i32_68 dim 1 : vector<16x256xf32>, i32 -> vector<16x256xf32>
    %cst_69 = arith.constant 0.000000e+00 : f32
    %172 = vector.shape_cast %57 : vector<1x256xi1> to vector<1x256xi1>
    %173 = vector.broadcast %172 : vector<1x256xi1> to vector<16x256xi1>
    %174 = vector.broadcast %cst_69 : f32 to vector<16x256xf32>
    %175 = arith.select %173, %171, %174 : vector<16x256xi1>, vector<16x256xf32>
    %c241_i32_70 = arith.constant 241 : i32
    %176 = tpu.dynamic_rotate %150 by %c241_i32_70 dim 1 : vector<16x256xf32>, i32 -> vector<16x256xf32>
    %cst_71 = arith.constant 0.000000e+00 : f32
    %177 = vector.shape_cast %62 : vector<1x256xi1> to vector<1x256xi1>
    %178 = vector.broadcast %177 : vector<1x256xi1> to vector<16x256xi1>
    %179 = vector.broadcast %cst_71 : f32 to vector<16x256xf32>
    %180 = arith.select %178, %176, %179 : vector<16x256xi1>, vector<16x256xf32>
    %c240_i32_72 = arith.constant 240 : i32
    %181 = tpu.dynamic_rotate %150 by %c240_i32_72 dim 1 : vector<16x256xf32>, i32 -> vector<16x256xf32>
    %cst_73 = arith.constant 0.000000e+00 : f32
    %182 = vector.shape_cast %64 : vector<1x256xi1> to vector<1x256xi1>
    %183 = vector.broadcast %182 : vector<1x256xi1> to vector<16x256xi1>
    %184 = vector.broadcast %cst_73 : f32 to vector<16x256xf32>
    %185 = arith.select %183, %181, %184 : vector<16x256xi1>, vector<16x256xf32>
    %c239_i32_74 = arith.constant 239 : i32
    %186 = tpu.dynamic_rotate %150 by %c239_i32_74 dim 1 : vector<16x256xf32>, i32 -> vector<16x256xf32>
    %cst_75 = arith.constant 0.000000e+00 : f32
    %187 = vector.shape_cast %69 : vector<1x256xi1> to vector<1x256xi1>
    %188 = vector.broadcast %187 : vector<1x256xi1> to vector<16x256xi1>
    %189 = vector.broadcast %cst_75 : f32 to vector<16x256xf32>
    %190 = arith.select %188, %186, %189 : vector<16x256xi1>, vector<16x256xf32>
    %191 = tpu.concatenate %155, %160, %165, %170, %150, %175, %180, %185, %190 in 0 : vector<16x256xf32>, vector<16x256xf32>, vector<16x256xf32>, vector<16x256xf32>, vector<16x256xf32>, vector<16x256xf32>, vector<16x256xf32>, vector<16x256xf32>, vector<16x256xf32> -> vector<144x256xf32>
    %cst_76 = arith.constant dense<0.000000e+00> : vector<16x256xf32>
    %192 = tpu.matmul %134, %191, %cst_76 {dimension_numbers = #tpu.dot_dimension_numbers<[1], [0], [0], [1], [0, 0, 1, 1], [], []>} : vector<16x144xf32>, vector<144x256xf32>, vector<16x256xf32> -> vector<16x256xf32>
    %c0_77 = arith.constant 0 : index
    %c0_78 = arith.constant 0 : index
    %193 = vector.load %arg9[%c0_77, %c0_78] : memref<16x1xf32, #tpu.memory_space<vmem>>, vector<16x1xf32>
    %194 = vector.broadcast %193 : vector<16x1xf32> to vector<16x256xf32>
    %195 = arith.addf %192, %194 : vector<16x256xf32>
    %c0_79 = arith.constant 0 : index
    %c0_80 = arith.constant 0 : index
    %196 = vector.load %arg10[%c0_79, %c0_80] : memref<16x32xf32, #tpu.memory_space<vmem>>, vector<16x32xf32>
    %cst_81 = arith.constant dense<0.000000e+00> : vector<16x256xf32>
    %197 = tpu.matmul %196, %24, %cst_81 {dimension_numbers = #tpu.dot_dimension_numbers<[1], [0], [0], [1], [0, 0, 1, 1], [], []>} : vector<16x32xf32>, vector<32x256xf32>, vector<16x256xf32> -> vector<16x256xf32>
    %c0_82 = arith.constant 0 : index
    %c0_83 = arith.constant 0 : index
    %198 = vector.load %arg11[%c0_82, %c0_83] : memref<16x1xf32, #tpu.memory_space<vmem>>, vector<16x1xf32>
    %199 = vector.broadcast %198 : vector<16x1xf32> to vector<16x256xf32>
    %200 = arith.addf %197, %199 : vector<16x256xf32>
    %201 = arith.addf %200, %195 : vector<16x256xf32>
    %cst_84 = arith.constant 0.000000e+00 : f32
    %202 = vector.broadcast %cst_84 : f32 to vector<16x256xf32>
    %203 = arith.maximumf %201, %202 : vector<16x256xf32>
    %c0_85 = arith.constant 0 : index
    %c0_86 = arith.constant 0 : index
    %c0_87 = arith.constant 0 : index
    %204 = vector.load %arg12[%c0_85, %c0_86, %c0_87] : memref<1x16x256xf32, #tpu.memory_space<vmem>>, vector<1x16x256xf32>
    %205 = vector.shape_cast %204 : vector<1x16x256xf32> to vector<16x256xf32>
    %206 = vector.shape_cast %203 : vector<16x256xf32> to vector<1x16x256xf32>
    tpu.vector_store %arg12[%c0_85, %c0_86, %c0_87], %206 {strides = array<i32>} : memref<1x16x256xf32, #tpu.memory_space<vmem>>, vector<1x16x256xf32>,
    return
  }
  func.func @transform_0(%arg0: i32) -> (i32, i32, i32) {
    %c0_i32 = arith.constant 0 : i32
    %c0_i32_0 = arith.constant 0 : i32
    %c0_i32_1 = arith.constant 0 : i32
    return %arg0, %c0_i32, %c0_i32_0 : i32, i32, i32
  }
  func.func @transform_1(%arg0: i32) -> (i32, i32, i32) {
    %c0_i32 = arith.constant 0 : i32
    %c0_i32_0 = arith.constant 0 : i32
    %c0_i32_1 = arith.constant 0 : i32
    return %arg0, %c0_i32, %c0_i32_0 : i32, i32, i32
  }
  func.func @transform_2(%arg0: i32) -> (i32, i32) {
    %c0_i32 = arith.constant 0 : i32
    %c0_i32_0 = arith.constant 0 : i32
    %c0_i32_1 = arith.constant 0 : i32
    return %c0_i32, %c0_i32_0 : i32, i32
  }
  func.func @transform_3(%arg0: i32) -> (i32, i32) {
    %c0_i32 = arith.constant 0 : i32
    %c0_i32_0 = arith.constant 0 : i32
    %c0_i32_1 = arith.constant 0 : i32
    return %c0_i32, %c0_i32_0 : i32, i32
  }
  func.func @transform_4(%arg0: i32) -> (i32, i32) {
    %c0_i32 = arith.constant 0 : i32
    %c0_i32_0 = arith.constant 0 : i32
    %c0_i32_1 = arith.constant 0 : i32
    return %c0_i32, %c0_i32_0 : i32, i32
  }
  func.func @transform_5(%arg0: i32) -> (i32, i32) {
    %c0_i32 = arith.constant 0 : i32
    %c0_i32_0 = arith.constant 0 : i32
    %c0_i32_1 = arith.constant 0 : i32
    return %c0_i32, %c0_i32_0 : i32, i32
  }
  func.func @transform_6(%arg0: i32) -> (i32, i32) {
    %c0_i32 = arith.constant 0 : i32
    %c0_i32_0 = arith.constant 0 : i32
    %c0_i32_1 = arith.constant 0 : i32
    return %c0_i32, %c0_i32_0 : i32, i32
  }
  func.func @transform_7(%arg0: i32) -> (i32, i32) {
    %c0_i32 = arith.constant 0 : i32
    %c0_i32_0 = arith.constant 0 : i32
    %c0_i32_1 = arith.constant 0 : i32
    return %c0_i32, %c0_i32_0 : i32, i32
  }
  func.func @transform_8(%arg0: i32) -> (i32, i32) {
    %c0_i32 = arith.constant 0 : i32
    %c0_i32_0 = arith.constant 0 : i32
    %c0_i32_1 = arith.constant 0 : i32
    return %c0_i32, %c0_i32_0 : i32, i32
  }
  func.func @transform_9(%arg0: i32) -> (i32, i32) {
    %c0_i32 = arith.constant 0 : i32
    %c0_i32_0 = arith.constant 0 : i32
    %c0_i32_1 = arith.constant 0 : i32
    return %c0_i32, %c0_i32_0 : i32, i32
  }
  func.func @transform_10(%arg0: i32) -> (i32, i32) {
    %c0_i32 = arith.constant 0 : i32
    %c0_i32_0 = arith.constant 0 : i32
    %c0_i32_1 = arith.constant 0 : i32
    return %c0_i32, %c0_i32_0 : i32, i32
  }
  func.func @transform_11(%arg0: i32) -> (i32, i32, i32) {
    %c0_i32 = arith.constant 0 : i32
    %c0_i32_0 = arith.constant 0 : i32
    %c0_i32_1 = arith.constant 0 : i32
    return %arg0, %c0_i32, %c0_i32_0 : i32, i32, i32
  }
}

module attributes {stable_mosaic.version = 11 : i64} {
  func.func @_level_kernel(%arg0: i32, %arg1: memref<1x16x256xf32, #tpu.memory_space<vmem>>, %arg2: memref<1x8x1024xf32, #tpu.memory_space<vmem>>, %arg3: memref<256x1024xf32, #tpu.memory_space<vmem>>, %arg4: memref<32x16xf32, #tpu.memory_space<vmem>>, %arg5: memref<8x1xf32, #tpu.memory_space<vmem>>, %arg6: memref<8x144xf32, #tpu.memory_space<vmem>>, %arg7: memref<8x1xf32, #tpu.memory_space<vmem>>, %arg8: memref<8x72xf32, #tpu.memory_space<vmem>>, %arg9: memref<8x1xf32, #tpu.memory_space<vmem>>, %arg10: memref<8x16xf32, #tpu.memory_space<vmem>>, %arg11: memref<8x1xf32, #tpu.memory_space<vmem>>, %arg12: memref<1x8x1024xf32, #tpu.memory_space<vmem>>) attributes {dimension_semantics = [#tpu.dimension_semantics<parallel>], iteration_bounds = array<i64: 2>, scalar_prefetch = 0 : i64, scratch_operands = 0 : i64, tpu.core_type = #tpu.core_type<tc>, window_params = [{transform_indices = @transform_0, window_bounds = array<i64: 1, 16, 256>}, {transform_indices = @transform_1, window_bounds = array<i64: 1, 8, 1024>}, {pipeline_mode = #tpu.pipeline_mode<synchronous>, transform_indices = @transform_2, window_bounds = array<i64: 256, 1024>}, {pipeline_mode = #tpu.pipeline_mode<synchronous>, transform_indices = @transform_3, window_bounds = array<i64: 32, 16>}, {pipeline_mode = #tpu.pipeline_mode<synchronous>, transform_indices = @transform_4, window_bounds = array<i64: 8, 1>}, {pipeline_mode = #tpu.pipeline_mode<synchronous>, transform_indices = @transform_5, window_bounds = array<i64: 8, 144>}, {pipeline_mode = #tpu.pipeline_mode<synchronous>, transform_indices = @transform_6, window_bounds = array<i64: 8, 1>}, {pipeline_mode = #tpu.pipeline_mode<synchronous>, transform_indices = @transform_7, window_bounds = array<i64: 8, 72>}, {pipeline_mode = #tpu.pipeline_mode<synchronous>, transform_indices = @transform_8, window_bounds = array<i64: 8, 1>}, {pipeline_mode = #tpu.pipeline_mode<synchronous>, transform_indices = @transform_9, window_bounds = array<i64: 8, 16>}, {pipeline_mode = #tpu.pipeline_mode<synchronous>, transform_indices = @transform_10, window_bounds = array<i64: 8, 1>}, {transform_indices = @transform_11, window_bounds = array<i64: 1, 8, 1024>}]} {
    %c0 = arith.constant 0 : index
    %c0_0 = arith.constant 0 : index
    %0 = vector.load %arg4[%c0, %c0_0] : memref<32x16xf32, #tpu.memory_space<vmem>>, vector<32x16xf32>
    %c0_1 = arith.constant 0 : index
    %c0_2 = arith.constant 0 : index
    %c0_3 = arith.constant 0 : index
    %1 = vector.load %arg1[%c0_1, %c0_2, %c0_3] : memref<1x16x256xf32, #tpu.memory_space<vmem>>, vector<1x16x256xf32>
    %2 = vector.shape_cast %1 : vector<1x16x256xf32> to vector<16x256xf32>
    %cst = arith.constant dense<0.000000e+00> : vector<32x256xf32>
    %3 = tpu.matmul %0, %2, %cst {dimension_numbers = #tpu.dot_dimension_numbers<[1], [0], [0], [1], [0, 0, 1, 1], [], []>} : vector<32x16xf32>, vector<16x256xf32>, vector<32x256xf32> -> vector<32x256xf32>
    %c0_4 = arith.constant 0 : index
    %c0_5 = arith.constant 0 : index
    %4 = vector.load %arg3[%c0_4, %c0_5] : memref<256x1024xf32, #tpu.memory_space<vmem>>, vector<256x1024xf32>
    %5 = vector.extract_strided_slice %3 {offsets = [0, 0], sizes = [8, 256], strides = [1, 1]} : vector<32x256xf32> to vector<8x256xf32>
    %cst_6 = arith.constant dense<0.000000e+00> : vector<8x1024xf32>
    %6 = tpu.matmul %5, %4, %cst_6 {dimension_numbers = #tpu.dot_dimension_numbers<[1], [0], [0], [1], [0, 0, 1, 1], [], []>} : vector<8x256xf32>, vector<256x1024xf32>, vector<8x1024xf32> -> vector<8x1024xf32>
    %7 = vector.extract_strided_slice %3 {offsets = [8, 0], sizes = [8, 256], strides = [1, 1]} : vector<32x256xf32> to vector<8x256xf32>
    %cst_7 = arith.constant dense<0.000000e+00> : vector<8x1024xf32>
    %8 = tpu.matmul %7, %4, %cst_7 {dimension_numbers = #tpu.dot_dimension_numbers<[1], [0], [0], [1], [0, 0, 1, 1], [], []>} : vector<8x256xf32>, vector<256x1024xf32>, vector<8x1024xf32> -> vector<8x1024xf32>
    %c1_i32 = arith.constant 1 : i32
    %9 = tpu.dynamic_rotate %8 by %c1_i32 dim 1 : vector<8x1024xf32>, i32 -> vector<8x1024xf32>
    %10 = vector.extract_strided_slice %3 {offsets = [16, 0], sizes = [8, 256], strides = [1, 1]} : vector<32x256xf32> to vector<8x256xf32>
    %cst_8 = arith.constant dense<0.000000e+00> : vector<8x1024xf32>
    %11 = tpu.matmul %10, %4, %cst_8 {dimension_numbers = #tpu.dot_dimension_numbers<[1], [0], [0], [1], [0, 0, 1, 1], [], []>} : vector<8x256xf32>, vector<256x1024xf32>, vector<8x1024xf32> -> vector<8x1024xf32>
    %c32_i32 = arith.constant 32 : i32
    %12 = tpu.dynamic_rotate %11 by %c32_i32 dim 1 : vector<8x1024xf32>, i32 -> vector<8x1024xf32>
    %13 = vector.extract_strided_slice %3 {offsets = [24, 0], sizes = [8, 256], strides = [1, 1]} : vector<32x256xf32> to vector<8x256xf32>
    %cst_9 = arith.constant dense<0.000000e+00> : vector<8x1024xf32>
    %14 = tpu.matmul %13, %4, %cst_9 {dimension_numbers = #tpu.dot_dimension_numbers<[1], [0], [0], [1], [0, 0, 1, 1], [], []>} : vector<8x256xf32>, vector<256x1024xf32>, vector<8x1024xf32> -> vector<8x1024xf32>
    %c33_i32 = arith.constant 33 : i32
    %15 = tpu.dynamic_rotate %14 by %c33_i32 dim 1 : vector<8x1024xf32>, i32 -> vector<8x1024xf32>
    %16 = arith.addf %6, %9 : vector<8x1024xf32>
    %17 = arith.addf %16, %12 : vector<8x1024xf32>
    %18 = arith.addf %17, %15 : vector<8x1024xf32>
    %c0_10 = arith.constant 0 : index
    %c0_11 = arith.constant 0 : index
    %19 = vector.load %arg5[%c0_10, %c0_11] : memref<8x1xf32, #tpu.memory_space<vmem>>, vector<8x1xf32>
    %20 = vector.broadcast %19 : vector<8x1xf32> to vector<8x1024xf32>
    %21 = arith.addf %18, %20 : vector<8x1024xf32>
    %c0_12 = arith.constant 0 : index
    %c0_13 = arith.constant 0 : index
    %c0_14 = arith.constant 0 : index
    %22 = vector.load %arg2[%c0_12, %c0_13, %c0_14] : memref<1x8x1024xf32, #tpu.memory_space<vmem>>, vector<1x8x1024xf32>
    %23 = vector.shape_cast %22 : vector<1x8x1024xf32> to vector<8x1024xf32>
    %24 = tpu.concatenate %21, %23 in 0 : vector<8x1024xf32>, vector<8x1024xf32> -> vector<16x1024xf32>
    %25 = tpu.iota {dimensions = array<i32: 1>} : vector<1x1024xi32>
    %c32_i32_15 = arith.constant 32 : i32
    %c0_i32 = arith.constant 0 : i32
    %26 = arith.cmpi eq, %c32_i32_15, %c0_i32 : i32
    %c1_i32_16 = arith.constant 1 : i32
    %27 = arith.select %26, %c1_i32_16, %c32_i32_15 : i32
    %28 = vector.broadcast %27 : i32 to vector<1x1024xi32>
    %29 = arith.remsi %25, %28 : vector<1x1024xi32>
    %c0_i32_17 = arith.constant 0 : i32
    %30 = vector.broadcast %c0_i32_17 : i32 to vector<1x1024xi32>
    %31 = arith.cmpi ne, %29, %30 : vector<1x1024xi32>
    %c0_i32_18 = arith.constant 0 : i32
    %32 = vector.broadcast %c0_i32_18 : i32 to vector<1x1024xi32>
    %33 = arith.cmpi slt, %29, %32 : vector<1x1024xi32>
    %c0_i32_19 = arith.constant 0 : i32
    %34 = arith.cmpi slt, %27, %c0_i32_19 : i32
    %35 = vector.broadcast %34 : i1 to vector<1x1024xi1>
    %36 = vector.broadcast %35 : vector<1x1024xi1> to vector<1x1024xi1>
    %37 = arith.xori %33, %36 : vector<1x1024xi1>
    %38 = arith.andi %37, %31 : vector<1x1024xi1>
    %39 = vector.broadcast %27 : i32 to vector<1x1024xi32>
    %40 = arith.addi %29, %39 : vector<1x1024xi32>
    %41 = arith.select %38, %40, %29 : vector<1x1024xi1>, vector<1x1024xi32>
    %c32_i32_20 = arith.constant 32 : i32
    %42 = vector.broadcast %c32_i32_20 : i32 to vector<1x1024xi32>
    %43 = arith.cmpi sge, %25, %42 : vector<1x1024xi32>
    %c1_i32_21 = arith.constant 1 : i32
    %44 = vector.broadcast %c1_i32_21 : i32 to vector<1x1024xi32>
    %45 = arith.cmpi sge, %41, %44 : vector<1x1024xi32>
    %46 = arith.andi %43, %45 : vector<1x1024xi1>
    %c32_i32_22 = arith.constant 32 : i32
    %47 = vector.broadcast %c32_i32_22 : i32 to vector<1x1024xi32>
    %48 = arith.cmpi sge, %25, %47 : vector<1x1024xi32>
    %c32_i32_23 = arith.constant 32 : i32
    %49 = vector.broadcast %c32_i32_23 : i32 to vector<1x1024xi32>
    %50 = arith.cmpi sge, %25, %49 : vector<1x1024xi32>
    %c30_i32 = arith.constant 30 : i32
    %51 = vector.broadcast %c30_i32 : i32 to vector<1x1024xi32>
    %52 = arith.cmpi sle, %41, %51 : vector<1x1024xi32>
    %53 = arith.andi %50, %52 : vector<1x1024xi1>
    %c1_i32_24 = arith.constant 1 : i32
    %54 = vector.broadcast %c1_i32_24 : i32 to vector<1x1024xi32>
    %55 = arith.cmpi sge, %41, %54 : vector<1x1024xi32>
    %c30_i32_25 = arith.constant 30 : i32
    %56 = vector.broadcast %c30_i32_25 : i32 to vector<1x1024xi32>
    %57 = arith.cmpi sle, %41, %56 : vector<1x1024xi32>
    %c992_i32 = arith.constant 992 : i32
    %58 = vector.broadcast %c992_i32 : i32 to vector<1x1024xi32>
    %59 = arith.cmpi slt, %25, %58 : vector<1x1024xi32>
    %c1_i32_26 = arith.constant 1 : i32
    %60 = vector.broadcast %c1_i32_26 : i32 to vector<1x1024xi32>
    %61 = arith.cmpi sge, %41, %60 : vector<1x1024xi32>
    %62 = arith.andi %59, %61 : vector<1x1024xi1>
    %c992_i32_27 = arith.constant 992 : i32
    %63 = vector.broadcast %c992_i32_27 : i32 to vector<1x1024xi32>
    %64 = arith.cmpi slt, %25, %63 : vector<1x1024xi32>
    %c992_i32_28 = arith.constant 992 : i32
    %65 = vector.broadcast %c992_i32_28 : i32 to vector<1x1024xi32>
    %66 = arith.cmpi slt, %25, %65 : vector<1x1024xi32>
    %c30_i32_29 = arith.constant 30 : i32
    %67 = vector.broadcast %c30_i32_29 : i32 to vector<1x1024xi32>
    %68 = arith.cmpi sle, %41, %67 : vector<1x1024xi32>
    %69 = arith.andi %66, %68 : vector<1x1024xi1>
    %c0_30 = arith.constant 0 : index
    %c0_31 = arith.constant 0 : index
    %70 = vector.load %arg6[%c0_30, %c0_31] : memref<8x144xf32, #tpu.memory_space<vmem>>, vector<8x144xf32>
    %cst_32 = arith.constant dense<0.000000e+00> : vector<16xf32>
    %71 = vector.multi_reduction <add>, %24, %cst_32 [1] : vector<16x1024xf32> to vector<16xf32>
    %72 = vector.shape_cast %71 : vector<16xf32> to vector<16x1xf32>
    %cst_33 = arith.constant 1.024000e+03 : f32
    %73 = vector.broadcast %cst_33 : f32 to vector<16x1xf32>
    %74 = arith.divf %72, %73 : vector<16x1xf32>
    %75 = vector.broadcast %74 : vector<16x1xf32> to vector<16x1024xf32>
    %76 = arith.subf %24, %75 : vector<16x1024xf32>
    %77 = arith.mulf %76, %76 : vector<16x1024xf32>
    %cst_34 = arith.constant dense<0.000000e+00> : vector<16xf32>
    %78 = vector.multi_reduction <add>, %77, %cst_34 [1] : vector<16x1024xf32> to vector<16xf32>
    %79 = vector.shape_cast %78 : vector<16xf32> to vector<16x1xf32>
    %cst_35 = arith.constant 1.024000e+03 : f32
    %80 = vector.broadcast %cst_35 : f32 to vector<16x1xf32>
    %81 = arith.divf %79, %80 : vector<16x1xf32>
    %cst_36 = arith.constant 9.99999974E-6 : f32
    %82 = vector.broadcast %cst_36 : f32 to vector<16x1xf32>
    %83 = arith.addf %81, %82 : vector<16x1xf32>
    %84 = math.rsqrt %83 : vector<16x1xf32>
    %85 = vector.broadcast %84 : vector<16x1xf32> to vector<16x1024xf32>
    %86 = arith.mulf %76, %85 : vector<16x1024xf32>
    %c33_i32_37 = arith.constant 33 : i32
    %87 = tpu.dynamic_rotate %86 by %c33_i32_37 dim 1 : vector<16x1024xf32>, i32 -> vector<16x1024xf32>
    %cst_38 = arith.constant 0.000000e+00 : f32
    %88 = vector.shape_cast %46 : vector<1x1024xi1> to vector<1x1024xi1>
    %89 = vector.broadcast %88 : vector<1x1024xi1> to vector<16x1024xi1>
    %90 = vector.broadcast %cst_38 : f32 to vector<16x1024xf32>
    %91 = arith.select %89, %87, %90 : vector<16x1024xi1>, vector<16x1024xf32>
    %c32_i32_39 = arith.constant 32 : i32
    %92 = tpu.dynamic_rotate %86 by %c32_i32_39 dim 1 : vector<16x1024xf32>, i32 -> vector<16x1024xf32>
    %cst_40 = arith.constant 0.000000e+00 : f32
    %93 = vector.shape_cast %48 : vector<1x1024xi1> to vector<1x1024xi1>
    %94 = vector.broadcast %93 : vector<1x1024xi1> to vector<16x1024xi1>
    %95 = vector.broadcast %cst_40 : f32 to vector<16x1024xf32>
    %96 = arith.select %94, %92, %95 : vector<16x1024xi1>, vector<16x1024xf32>
    %c31_i32 = arith.constant 31 : i32
    %97 = tpu.dynamic_rotate %86 by %c31_i32 dim 1 : vector<16x1024xf32>, i32 -> vector<16x1024xf32>
    %cst_41 = arith.constant 0.000000e+00 : f32
    %98 = vector.shape_cast %53 : vector<1x1024xi1> to vector<1x1024xi1>
    %99 = vector.broadcast %98 : vector<1x1024xi1> to vector<16x1024xi1>
    %100 = vector.broadcast %cst_41 : f32 to vector<16x1024xf32>
    %101 = arith.select %99, %97, %100 : vector<16x1024xi1>, vector<16x1024xf32>
    %c1_i32_42 = arith.constant 1 : i32
    %102 = tpu.dynamic_rotate %86 by %c1_i32_42 dim 1 : vector<16x1024xf32>, i32 -> vector<16x1024xf32>
    %cst_43 = arith.constant 0.000000e+00 : f32
    %103 = vector.shape_cast %55 : vector<1x1024xi1> to vector<1x1024xi1>
    %104 = vector.broadcast %103 : vector<1x1024xi1> to vector<16x1024xi1>
    %105 = vector.broadcast %cst_43 : f32 to vector<16x1024xf32>
    %106 = arith.select %104, %102, %105 : vector<16x1024xi1>, vector<16x1024xf32>
    %c1023_i32 = arith.constant 1023 : i32
    %107 = tpu.dynamic_rotate %86 by %c1023_i32 dim 1 : vector<16x1024xf32>, i32 -> vector<16x1024xf32>
    %cst_44 = arith.constant 0.000000e+00 : f32
    %108 = vector.shape_cast %57 : vector<1x1024xi1> to vector<1x1024xi1>
    %109 = vector.broadcast %108 : vector<1x1024xi1> to vector<16x1024xi1>
    %110 = vector.broadcast %cst_44 : f32 to vector<16x1024xf32>
    %111 = arith.select %109, %107, %110 : vector<16x1024xi1>, vector<16x1024xf32>
    %c993_i32 = arith.constant 993 : i32
    %112 = tpu.dynamic_rotate %86 by %c993_i32 dim 1 : vector<16x1024xf32>, i32 -> vector<16x1024xf32>
    %cst_45 = arith.constant 0.000000e+00 : f32
    %113 = vector.shape_cast %62 : vector<1x1024xi1> to vector<1x1024xi1>
    %114 = vector.broadcast %113 : vector<1x1024xi1> to vector<16x1024xi1>
    %115 = vector.broadcast %cst_45 : f32 to vector<16x1024xf32>
    %116 = arith.select %114, %112, %115 : vector<16x1024xi1>, vector<16x1024xf32>
    %c992_i32_46 = arith.constant 992 : i32
    %117 = tpu.dynamic_rotate %86 by %c992_i32_46 dim 1 : vector<16x1024xf32>, i32 -> vector<16x1024xf32>
    %cst_47 = arith.constant 0.000000e+00 : f32
    %118 = vector.shape_cast %64 : vector<1x1024xi1> to vector<1x1024xi1>
    %119 = vector.broadcast %118 : vector<1x1024xi1> to vector<16x1024xi1>
    %120 = vector.broadcast %cst_47 : f32 to vector<16x1024xf32>
    %121 = arith.select %119, %117, %120 : vector<16x1024xi1>, vector<16x1024xf32>
    %c991_i32 = arith.constant 991 : i32
    %122 = tpu.dynamic_rotate %86 by %c991_i32 dim 1 : vector<16x1024xf32>, i32 -> vector<16x1024xf32>
    %cst_48 = arith.constant 0.000000e+00 : f32
    %123 = vector.shape_cast %69 : vector<1x1024xi1> to vector<1x1024xi1>
    %124 = vector.broadcast %123 : vector<1x1024xi1> to vector<16x1024xi1>
    %125 = vector.broadcast %cst_48 : f32 to vector<16x1024xf32>
    %126 = arith.select %124, %122, %125 : vector<16x1024xi1>, vector<16x1024xf32>
    %127 = tpu.concatenate %91, %96, %101, %106, %86, %111, %116, %121, %126 in 0 : vector<16x1024xf32>, vector<16x1024xf32>, vector<16x1024xf32>, vector<16x1024xf32>, vector<16x1024xf32>, vector<16x1024xf32>, vector<16x1024xf32>, vector<16x1024xf32>, vector<16x1024xf32> -> vector<144x1024xf32>
    %cst_49 = arith.constant dense<0.000000e+00> : vector<8x1024xf32>
    %128 = tpu.matmul %70, %127, %cst_49 {dimension_numbers = #tpu.dot_dimension_numbers<[1], [0], [0], [1], [0, 0, 1, 1], [], []>} : vector<8x144xf32>, vector<144x1024xf32>, vector<8x1024xf32> -> vector<8x1024xf32>
    %c0_50 = arith.constant 0 : index
    %c0_51 = arith.constant 0 : index
    %129 = vector.load %arg7[%c0_50, %c0_51] : memref<8x1xf32, #tpu.memory_space<vmem>>, vector<8x1xf32>
    %130 = vector.broadcast %129 : vector<8x1xf32> to vector<8x1024xf32>
    %131 = arith.addf %128, %130 : vector<8x1024xf32>
    %cst_52 = arith.constant 0.000000e+00 : f32
    %132 = vector.broadcast %cst_52 : f32 to vector<8x1024xf32>
    %133 = arith.maximumf %131, %132 : vector<8x1024xf32>
    %c0_53 = arith.constant 0 : index
    %c0_54 = arith.constant 0 : index
    %134 = vector.load %arg8[%c0_53, %c0_54] : memref<8x72xf32, #tpu.memory_space<vmem>>, vector<8x72xf32>
    %cst_55 = arith.constant dense<0.000000e+00> : vector<8xf32>
    %135 = vector.multi_reduction <add>, %133, %cst_55 [1] : vector<8x1024xf32> to vector<8xf32>
    %136 = vector.shape_cast %135 : vector<8xf32> to vector<8x1xf32>
    %cst_56 = arith.constant 1.024000e+03 : f32
    %137 = vector.broadcast %cst_56 : f32 to vector<8x1xf32>
    %138 = arith.divf %136, %137 : vector<8x1xf32>
    %139 = vector.broadcast %138 : vector<8x1xf32> to vector<8x1024xf32>
    %140 = arith.subf %133, %139 : vector<8x1024xf32>
    %141 = arith.mulf %140, %140 : vector<8x1024xf32>
    %cst_57 = arith.constant dense<0.000000e+00> : vector<8xf32>
    %142 = vector.multi_reduction <add>, %141, %cst_57 [1] : vector<8x1024xf32> to vector<8xf32>
    %143 = vector.shape_cast %142 : vector<8xf32> to vector<8x1xf32>
    %cst_58 = arith.constant 1.024000e+03 : f32
    %144 = vector.broadcast %cst_58 : f32 to vector<8x1xf32>
    %145 = arith.divf %143, %144 : vector<8x1xf32>
    %cst_59 = arith.constant 9.99999974E-6 : f32
    %146 = vector.broadcast %cst_59 : f32 to vector<8x1xf32>
    %147 = arith.addf %145, %146 : vector<8x1xf32>
    %148 = math.rsqrt %147 : vector<8x1xf32>
    %149 = vector.broadcast %148 : vector<8x1xf32> to vector<8x1024xf32>
    %150 = arith.mulf %140, %149 : vector<8x1024xf32>
    %c33_i32_60 = arith.constant 33 : i32
    %151 = tpu.dynamic_rotate %150 by %c33_i32_60 dim 1 : vector<8x1024xf32>, i32 -> vector<8x1024xf32>
    %cst_61 = arith.constant 0.000000e+00 : f32
    %152 = vector.shape_cast %46 : vector<1x1024xi1> to vector<1x1024xi1>
    %153 = vector.broadcast %152 : vector<1x1024xi1> to vector<8x1024xi1>
    %154 = vector.broadcast %cst_61 : f32 to vector<8x1024xf32>
    %155 = arith.select %153, %151, %154 : vector<8x1024xi1>, vector<8x1024xf32>
    %c32_i32_62 = arith.constant 32 : i32
    %156 = tpu.dynamic_rotate %150 by %c32_i32_62 dim 1 : vector<8x1024xf32>, i32 -> vector<8x1024xf32>
    %cst_63 = arith.constant 0.000000e+00 : f32
    %157 = vector.shape_cast %48 : vector<1x1024xi1> to vector<1x1024xi1>
    %158 = vector.broadcast %157 : vector<1x1024xi1> to vector<8x1024xi1>
    %159 = vector.broadcast %cst_63 : f32 to vector<8x1024xf32>
    %160 = arith.select %158, %156, %159 : vector<8x1024xi1>, vector<8x1024xf32>
    %c31_i32_64 = arith.constant 31 : i32
    %161 = tpu.dynamic_rotate %150 by %c31_i32_64 dim 1 : vector<8x1024xf32>, i32 -> vector<8x1024xf32>
    %cst_65 = arith.constant 0.000000e+00 : f32
    %162 = vector.shape_cast %53 : vector<1x1024xi1> to vector<1x1024xi1>
    %163 = vector.broadcast %162 : vector<1x1024xi1> to vector<8x1024xi1>
    %164 = vector.broadcast %cst_65 : f32 to vector<8x1024xf32>
    %165 = arith.select %163, %161, %164 : vector<8x1024xi1>, vector<8x1024xf32>
    %c1_i32_66 = arith.constant 1 : i32
    %166 = tpu.dynamic_rotate %150 by %c1_i32_66 dim 1 : vector<8x1024xf32>, i32 -> vector<8x1024xf32>
    %cst_67 = arith.constant 0.000000e+00 : f32
    %167 = vector.shape_cast %55 : vector<1x1024xi1> to vector<1x1024xi1>
    %168 = vector.broadcast %167 : vector<1x1024xi1> to vector<8x1024xi1>
    %169 = vector.broadcast %cst_67 : f32 to vector<8x1024xf32>
    %170 = arith.select %168, %166, %169 : vector<8x1024xi1>, vector<8x1024xf32>
    %c1023_i32_68 = arith.constant 1023 : i32
    %171 = tpu.dynamic_rotate %150 by %c1023_i32_68 dim 1 : vector<8x1024xf32>, i32 -> vector<8x1024xf32>
    %cst_69 = arith.constant 0.000000e+00 : f32
    %172 = vector.shape_cast %57 : vector<1x1024xi1> to vector<1x1024xi1>
    %173 = vector.broadcast %172 : vector<1x1024xi1> to vector<8x1024xi1>
    %174 = vector.broadcast %cst_69 : f32 to vector<8x1024xf32>
    %175 = arith.select %173, %171, %174 : vector<8x1024xi1>, vector<8x1024xf32>
    %c993_i32_70 = arith.constant 993 : i32
    %176 = tpu.dynamic_rotate %150 by %c993_i32_70 dim 1 : vector<8x1024xf32>, i32 -> vector<8x1024xf32>
    %cst_71 = arith.constant 0.000000e+00 : f32
    %177 = vector.shape_cast %62 : vector<1x1024xi1> to vector<1x1024xi1>
    %178 = vector.broadcast %177 : vector<1x1024xi1> to vector<8x1024xi1>
    %179 = vector.broadcast %cst_71 : f32 to vector<8x1024xf32>
    %180 = arith.select %178, %176, %179 : vector<8x1024xi1>, vector<8x1024xf32>
    %c992_i32_72 = arith.constant 992 : i32
    %181 = tpu.dynamic_rotate %150 by %c992_i32_72 dim 1 : vector<8x1024xf32>, i32 -> vector<8x1024xf32>
    %cst_73 = arith.constant 0.000000e+00 : f32
    %182 = vector.shape_cast %64 : vector<1x1024xi1> to vector<1x1024xi1>
    %183 = vector.broadcast %182 : vector<1x1024xi1> to vector<8x1024xi1>
    %184 = vector.broadcast %cst_73 : f32 to vector<8x1024xf32>
    %185 = arith.select %183, %181, %184 : vector<8x1024xi1>, vector<8x1024xf32>
    %c991_i32_74 = arith.constant 991 : i32
    %186 = tpu.dynamic_rotate %150 by %c991_i32_74 dim 1 : vector<8x1024xf32>, i32 -> vector<8x1024xf32>
    %cst_75 = arith.constant 0.000000e+00 : f32
    %187 = vector.shape_cast %69 : vector<1x1024xi1> to vector<1x1024xi1>
    %188 = vector.broadcast %187 : vector<1x1024xi1> to vector<8x1024xi1>
    %189 = vector.broadcast %cst_75 : f32 to vector<8x1024xf32>
    %190 = arith.select %188, %186, %189 : vector<8x1024xi1>, vector<8x1024xf32>
    %191 = tpu.concatenate %155, %160, %165, %170, %150, %175, %180, %185, %190 in 0 : vector<8x1024xf32>, vector<8x1024xf32>, vector<8x1024xf32>, vector<8x1024xf32>, vector<8x1024xf32>, vector<8x1024xf32>, vector<8x1024xf32>, vector<8x1024xf32>, vector<8x1024xf32> -> vector<72x1024xf32>
    %cst_76 = arith.constant dense<0.000000e+00> : vector<8x1024xf32>
    %192 = tpu.matmul %134, %191, %cst_76 {dimension_numbers = #tpu.dot_dimension_numbers<[1], [0], [0], [1], [0, 0, 1, 1], [], []>} : vector<8x72xf32>, vector<72x1024xf32>, vector<8x1024xf32> -> vector<8x1024xf32>
    %c0_77 = arith.constant 0 : index
    %c0_78 = arith.constant 0 : index
    %193 = vector.load %arg9[%c0_77, %c0_78] : memref<8x1xf32, #tpu.memory_space<vmem>>, vector<8x1xf32>
    %194 = vector.broadcast %193 : vector<8x1xf32> to vector<8x1024xf32>
    %195 = arith.addf %192, %194 : vector<8x1024xf32>
    %c0_79 = arith.constant 0 : index
    %c0_80 = arith.constant 0 : index
    %196 = vector.load %arg10[%c0_79, %c0_80] : memref<8x16xf32, #tpu.memory_space<vmem>>, vector<8x16xf32>
    %cst_81 = arith.constant dense<0.000000e+00> : vector<8x1024xf32>
    %197 = tpu.matmul %196, %24, %cst_81 {dimension_numbers = #tpu.dot_dimension_numbers<[1], [0], [0], [1], [0, 0, 1, 1], [], []>} : vector<8x16xf32>, vector<16x1024xf32>, vector<8x1024xf32> -> vector<8x1024xf32>
    %c0_82 = arith.constant 0 : index
    %c0_83 = arith.constant 0 : index
    %198 = vector.load %arg11[%c0_82, %c0_83] : memref<8x1xf32, #tpu.memory_space<vmem>>, vector<8x1xf32>
    %199 = vector.broadcast %198 : vector<8x1xf32> to vector<8x1024xf32>
    %200 = arith.addf %197, %199 : vector<8x1024xf32>
    %201 = arith.addf %200, %195 : vector<8x1024xf32>
    %cst_84 = arith.constant 0.000000e+00 : f32
    %202 = vector.broadcast %cst_84 : f32 to vector<8x1024xf32>
    %203 = arith.maximumf %201, %202 : vector<8x1024xf32>
    %c0_85 = arith.constant 0 : index
    %c0_86 = arith.constant 0 : index
    %c0_87 = arith.constant 0 : index
    %204 = vector.load %arg12[%c0_85, %c0_86, %c0_87] : memref<1x8x1024xf32, #tpu.memory_space<vmem>>, vector<1x8x1024xf32>
    %205 = vector.shape_cast %204 : vector<1x8x1024xf32> to vector<8x1024xf32>
    %206 = vector.shape_cast %203 : vector<8x1024xf32> to vector<1x8x1024xf32>
    tpu.vector_store %arg12[%c0_85, %c0_86, %c0_87], %206 {strides = array<i32>} : memref<1x8x1024xf32, #tpu.memory_space<vmem>>, vector<1x8x1024xf32>,
    return
  }
  func.func @transform_0(%arg0: i32) -> (i32, i32, i32) {
    %c0_i32 = arith.constant 0 : i32
    %c0_i32_0 = arith.constant 0 : i32
    %c0_i32_1 = arith.constant 0 : i32
    return %arg0, %c0_i32, %c0_i32_0 : i32, i32, i32
  }
  func.func @transform_1(%arg0: i32) -> (i32, i32, i32) {
    %c0_i32 = arith.constant 0 : i32
    %c0_i32_0 = arith.constant 0 : i32
    %c0_i32_1 = arith.constant 0 : i32
    return %arg0, %c0_i32, %c0_i32_0 : i32, i32, i32
  }
  func.func @transform_2(%arg0: i32) -> (i32, i32) {
    %c0_i32 = arith.constant 0 : i32
    %c0_i32_0 = arith.constant 0 : i32
    %c0_i32_1 = arith.constant 0 : i32
    return %c0_i32, %c0_i32_0 : i32, i32
  }
  func.func @transform_3(%arg0: i32) -> (i32, i32) {
    %c0_i32 = arith.constant 0 : i32
    %c0_i32_0 = arith.constant 0 : i32
    %c0_i32_1 = arith.constant 0 : i32
    return %c0_i32, %c0_i32_0 : i32, i32
  }
  func.func @transform_4(%arg0: i32) -> (i32, i32) {
    %c0_i32 = arith.constant 0 : i32
    %c0_i32_0 = arith.constant 0 : i32
    %c0_i32_1 = arith.constant 0 : i32
    return %c0_i32, %c0_i32_0 : i32, i32
  }
  func.func @transform_5(%arg0: i32) -> (i32, i32) {
    %c0_i32 = arith.constant 0 : i32
    %c0_i32_0 = arith.constant 0 : i32
    %c0_i32_1 = arith.constant 0 : i32
    return %c0_i32, %c0_i32_0 : i32, i32
  }
  func.func @transform_6(%arg0: i32) -> (i32, i32) {
    %c0_i32 = arith.constant 0 : i32
    %c0_i32_0 = arith.constant 0 : i32
    %c0_i32_1 = arith.constant 0 : i32
    return %c0_i32, %c0_i32_0 : i32, i32
  }
  func.func @transform_7(%arg0: i32) -> (i32, i32) {
    %c0_i32 = arith.constant 0 : i32
    %c0_i32_0 = arith.constant 0 : i32
    %c0_i32_1 = arith.constant 0 : i32
    return %c0_i32, %c0_i32_0 : i32, i32
  }
  func.func @transform_8(%arg0: i32) -> (i32, i32) {
    %c0_i32 = arith.constant 0 : i32
    %c0_i32_0 = arith.constant 0 : i32
    %c0_i32_1 = arith.constant 0 : i32
    return %c0_i32, %c0_i32_0 : i32, i32
  }
  func.func @transform_9(%arg0: i32) -> (i32, i32) {
    %c0_i32 = arith.constant 0 : i32
    %c0_i32_0 = arith.constant 0 : i32
    %c0_i32_1 = arith.constant 0 : i32
    return %c0_i32, %c0_i32_0 : i32, i32
  }
  func.func @transform_10(%arg0: i32) -> (i32, i32) {
    %c0_i32 = arith.constant 0 : i32
    %c0_i32_0 = arith.constant 0 : i32
    %c0_i32_1 = arith.constant 0 : i32
    return %c0_i32, %c0_i32_0 : i32, i32
  }
  func.func @transform_11(%arg0: i32) -> (i32, i32, i32) {
    %c0_i32 = arith.constant 0 : i32
    %c0_i32_0 = arith.constant 0 : i32
    %c0_i32_1 = arith.constant 0 : i32
    return %arg0, %c0_i32, %c0_i32_0 : i32, i32, i32
  }
}

</mosaic_0001>

<bundles_post_ra>
// kernel: unet_decoder_forward.2
= control target key start
LH: loop header
LB: loop body
LE: loop exit
PB: predicated region body
PF: predicated region fallthrough
CT: control target
= control target key end

     0   :  { %s2252_s17 = smov 0   ;;  %s3404_s0 = inlined_call_operand.vmem [shape: f32[2,32,64], index: 0, kind: input, shape index: {}]   ;;  %s3405_s1 = inlined_call_operand.vmem [shape: f32[2,16,256], index: 1, kind: input, shape index: {}]   ;;  %s3406_s2 = inlined_call_operand.vmem [shape: f32[64,256], index: 2, kind: input, shape index: {}]   ;;  %s3407_s3 = inlined_call_operand.vmem [shape: f32[64,32], index: 3, kind: input, shape index: {}]   ;;  %s3408_s4 = inlined_call_operand.vmem [shape: f32[16,1], index: 4, kind: input, shape index: {}]   ;;  %s3409_s5 = inlined_call_operand.vmem [shape: f32[16,288], index: 5, kind: input, shape index: {}]   ;;  %s3410_s6 = inlined_call_operand.vmem [shape: f32[16,1], index: 6, kind: input, shape index: {}]   ;;  %s3411_s7 = inlined_call_operand.vmem [shape: f32[16,144], index: 7, kind: input, shape index: {}]   ;;  %s3412_s8 = inlined_call_operand.vmem [shape: f32[16,1], index: 8, kind: input, shape index: {}]   ;;  %s3413_s9 = inlined_call_operand.vmem [shape: f32[16,32], index: 9, kind: input, shape index: {}]   ;;  %s3414_s10 = inlined_call_operand.vmem [shape: f32[16,1], index: 10, kind: input, shape index: {}]   ;;  %s3415_s11 = inlined_call_operand.vmem [shape: f32[2,16,256], index: 11, kind: output, shape index: {}]  }
   0x1 LB: > { %s1984_s18 = sadd.s32 4294967295, %s2180_s17   ;;  %p1988_p0 = scmp.ge.s32.totalorder %s2180_s17, 1  ;;  %s2180_s17 = sphi %s2252_s17, %s21_s17  }
   0x2   : > { %p347_p1 = scmp.lt.s32.totalorder %s2180_s17, 3 }
   0x4   : > { %p348_p2 = pnand %p1988_p0, %p347_p1 }
   0x5   : > { %p392_p3 = scmp.lt.s32.totalorder (!%p348_p2), %s1984_s18, 1  ;;  %s2184_s23 = smov (!%p348_p2), 1  }
   0x6   : > { %351 = sbr.rel (%p348_p2) target bundleno = 2076 (0x81c), region = 64  ;;  %s2185_s24 = smov (!%p348_p2), 16  }
   0x7   : > { %s2186_s25 = smov (!%p348_p2), 17   ;;  %s2187_s30 = smov (!%p348_p2), 15  }
   0x8   : > { %s2188_s12 = smov (!%p348_p2), 112   ;;  %s2189_s13 = smov (!%p348_p2), 113  }
   0x9   : > { %s2190_s14 = smov (!%p348_p2), 127  }
   0xb   : > { %v407_v0 = vld [vmem:[%s3407_s3] sm:$0xff]  ;;  %vm3419_vm0 = vcmask 261120   ;;  %s3449_s18 = smov (!%p392_p3, %s1984_s18), 1  ;;  %v2267_v1 = vld [vmem:[%s3406_s2 + $0x78] sm:$0xff]  ;;  %v2273_v2 = vld [vmem:[%s3406_s2 + $0x70] sm:$0xff]  ;;  %v2182_v28 = vmov 0.0  }
   0xc   : > { %2126 = vmatprep.mubr.msk.f32.mxu0 %vm3419_vm0, %v407_v0  ;;  %588 = vmatprep.subr.mxu1 %v2267_v1  ;;  %v2278_v3 = vld [vmem:[%s3406_s2 + $0x68] sm:$0xff]  ;;  %v2283_v4 = vld [vmem:[%s3406_s2 + $0x60] sm:$0xff]  ;;  %s2285_s29 = sshll.u32 %s3449_s18, 5  ;;  %v2291_v5 = vld [vmem:[%s3406_s2 + $0x58] sm:$0xff]  ;;  %v2183_v30 = vmov 0   ;;  %vm565_vm1 = vcmask 523264  }
   0xd   : > { %589 = vmatpush1.msra.mxu1 %v2273_v2  ;;  %s396_s15 = scalar_lea.vmem %s3404_s0, %s2285_s29  ;;  %v2301_v6 = vld [vmem:[%s3406_s2 + $0x50] sm:$0xff]  ;;  %v2307_v9 = vld [vmem:[%s3406_s2 + $0x48] sm:$0xff]  ;;  %v2313_v10 = vld [vmem:[%s3406_s2 + $0x40] sm:$0xff]  ;;  %636 = vmatprep.mubr.f32.mxu1 %v2182_v28  ;;  %s2481_s28 = scalar_lea.vmem %s3405_s1, %s2285_s29 }
   0xe   : > { %590 = vmatprep.subr.mxu1 %v2278_v3  ;;  %v418_v7 = vld [vmem:[%s396_s15 + $0x18] sm:$0xff]  ;;  %v417_v8 = vld [vmem:[%s396_s15 + $0x10] sm:$0xff]  ;;  %v416_v11 = vld [vmem:[%s396_s15 + $0x8] sm:$0xff]  ;;  %2156 = vset.pattern.permute.xlu0 %v2183_v30 }
   0xf   : > { %591 = vmatpush1.msra.mxu1 %v2283_v4  ;;  %2118 = vmatprep.subr.mxu0 %v418_v7  ;;  %v2319_v12 = vld [vmem:[%s3406_s2 + $0x38] sm:$0xff]  ;;  %v2325_v13 = vld [vmem:[%s3406_s2 + $0x30] sm:$0xff]  ;;  %v415_v14 = vld [vmem:[%s396_s15] sm:$0xff]  ;;  %s2191_s15 = smov 111  }
  0x10   : > { %592 = vmatprep.subr.mxu1 %v2291_v5  ;;  %2119 = vmatpush3.msra.mxu0 %v418_v7  ;;  %v408_v15 = vld [vmem:[%s3407_s3 + $0x8] sm:$0xff]  ;;  %v409_v16 = vld [vmem:[%s3407_s3 + $0x10] sm:$0xff]  ;;  %v410_v17 = vld [vmem:[%s3407_s3 + $0x18] sm:$0xff] }
  0x11   : > { %593 = vmatpush1.msra.mxu1 %v2301_v6  ;;  %2120 = vmatprep.subr.mxu0 %v417_v8  ;;  %v411_v18 = vld [vmem:[%s3407_s3 + $0x20] sm:$0xff]  ;;  %v412_v19 = vld [vmem:[%s3407_s3 + $0x28] sm:$0xff]  ;;  %v413_v20 = vld [vmem:[%s3407_s3 + $0x30] sm:$0xff] }
  0x12   : > { %594 = vmatprep.subr.mxu1 %v2307_v9  ;;  %2121 = vmatpush3.msra.mxu0 %v417_v8  ;;  %v414_v21 = vld [vmem:[%s3407_s3 + $0x38] sm:$0xff]  ;;  %v2371_v22 = vld [vmem:[%s3406_s2 + $0x28] sm:$0xff]  ;;  %v2377_v23 = vld [vmem:[%s3406_s2 + $0x20] sm:$0xff] }
  0x13   : > { %595 = vmatpush1.msra.mxu1 %v2313_v10  ;;  %2122 = vmatprep.subr.mxu0 %v416_v11  ;;  %v2384_v24 = vld [vmem:[%s3406_s2 + $0x18] sm:$0xff]  ;;  %v2391_v25 = vld [vmem:[%s3406_s2 + $0x10] sm:$0xff]  ;;  %v2398_v26 = vld [vmem:[%s3406_s2 + $0x8] sm:$0xff] }
  0x14   : > { %596 = vmatprep.subr.mxu1 %v2319_v12  ;;  %2123 = vmatpush3.msra.mxu0 %v416_v11  ;;  %v2405_v27 = vld [vmem:[%s3406_s2] sm:$0xff]  ;;  %v948_v29 = vld [vmem:[%s3408_s4 + $0x8] sm:$0xff]  ;;  %v2492_v55 = vld [vmem:[%s2481_s28 + $0x10] sm:$0xff] }
  0x15   : > { %597 = vmatpush1.msra.mxu1 %v2325_v13  ;;  %2124 = vmatprep.subr.mxu0 %v415_v14  ;;  %v947_v31 = vld [vmem:[%s3408_s4] sm:$0xff]  ;;  %v2487_v53 = vld [vmem:[%s2481_s28 + $0x8] sm:$0xff]  ;;  %v2495_v56 = vld [vmem:[%s2481_s28 + $0x18] sm:$0xff] }
  0x16   : > { %2125 = vmatpush3.msra.mxu0 %v415_v14  ;;  %598 = vmatprep.subr.mxu1 %v2371_v22  ;;  %v2484_v52 = vld [vmem:[%s2481_s28] sm:$0xff]  ;;  %v1023_v57 = vadd.f32 %v2495_v56, %v2492_v55 }
  0x17   : > { %2127 = vmatmul.mubr.msk.f32.vlgmr.msra.gmra.mxu0 %vm3419_vm0, %v408_v15  ;;  %686 = vmatprep.subr.mxu0 %v2267_v1  ;;  %v1020_v54 = vadd.f32 %v2487_v53, %v2484_v52 }
  0x18   : > { %2129 = vmatprep.mubr.msk.f32.mxu0 %vm3419_vm0, %v409_v16  ;;  %687 = vmatpush1.msra.mxu0 %v2273_v2 }
  0x19   : > { %688 = vmatprep.subr.mxu0 %v2278_v3  ;;  %599 = vmatpush1.msra.mxu1 %v2377_v23 }
  0x1a   : > { %689 = vmatpush1.msra.mxu0 %v2283_v4  ;;  %600 = vmatprep.subr.mxu1 %v2384_v24 }
  0x1b   : > { %2130 = vmatmul.mubr.msk.f32.gmra.mxu0 %vm3419_vm0, %v410_v17  ;;  %690 = vmatprep.subr.mxu0 %v2291_v5 }
  0x1c   : > { %2132 = vmatprep.mubr.msk.f32.mxu0 %vm3419_vm0, %v411_v18  ;;  %691 = vmatpush1.msra.mxu0 %v2301_v6 }
  0x1d   : > { %692 = vmatprep.subr.mxu0 %v2307_v9  ;;  %601 = vmatpush1.msra.mxu1 %v2391_v25 }
  0x1e   : > { %693 = vmatpush1.msra.mxu0 %v2313_v10  ;;  %602 = vmatprep.subr.mxu1 %v2398_v26 }
  0x1f   : > { %2133 = vmatmul.mubr.msk.f32.gmra.mxu0 %vm3419_vm0, %v412_v19  ;;  %694 = vmatprep.subr.mxu0 %v2319_v12 }
  0x20   : > { %2135 = vmatprep.mubr.msk.f32.mxu0 %vm3419_vm0, %v413_v20  ;;  %695 = vmatpush1.msra.mxu0 %v2325_v13 }
  0x21   : > { %696 = vmatprep.subr.mxu0 %v2371_v22  ;;  %603 = vmatpush1.msra.mxu1 %v2405_v27 }
  0x22   : > { %697 = vmatpush1.msra.mxu0 %v2377_v23  ;;  %782 = vmatprep.subr.mxu1 %v2267_v1 }
  0x23   : > { %2136 = vmatmul.mubr.msk.f32.gmra.mxu0 %vm3419_vm0, %v414_v21  ;;  %698 = vmatprep.subr.mxu0 %v2384_v24 }
  0x24   : > { %699 = vmatpush1.msra.mxu0 %v2391_v25  ;;  %734 = vmatprep.mubr.f32.mxu0 %v2182_v28 }
  0x25   : > { %700 = vmatprep.subr.mxu0 %v2398_v26  ;;  %2157 = vset.pattern.permute.xlu1 %v2183_v30 }
  0x26   : > { %701 = vmatpush1.msra.mxu0 %v2405_v27  ;;  %956 = vperm.xlu0 %2156, %v948_v29  }
  0x27   : > { %878 = vmatprep.subr.mxu0 %v2267_v1  ;;  %v657_v1 = vlaneseq }
  0x2a   : > { %951 = vperm.xlu0 %2156, %v947_v31  }
  0xa1   : > { %v957_v58 = vpop.permute.xlu0 %956 }
  0xa5   : > { %v952_v59 = vpop.permute.xlu0 %951 }
  0xd7   : > { %v2128_v32 = vpop.f32.mrf.mxu0 }
  0xd9   : > { %v510_v33 = vpop.f32.mrf.mxu0 }
  0xdb   : > { %v2131_v34 = vpop.f32.mrf.mxu0 }
  0xdd   : > { %v520_v35 = vpop.f32.mrf.mxu0 }
  0xde   : > { %2003 = vmatmul.mubr.msk.f32.vlgmr.msra.gmra.mxu1 %vm565_vm1, %v520_v35 }
  0xdf   : > { %783 = vmatpush1.msra.mxu1 %v2273_v2  ;;  %v2134_v36 = vpop.f32.mrf.mxu0  ;;  %642 = vmatprep.mubr.f32.mxu1 %v2182_v28 }
  0xe0   : > { %784 = vmatprep.subr.mxu1 %v2278_v3 }
  0xe1   : > { %785 = vmatpush1.msra.mxu1 %v2283_v4  ;;  %v530_v37 = vpop.f32.mrf.mxu0 }
  0xe2   : > { %786 = vmatprep.subr.mxu1 %v2291_v5  ;;  %2004 = vmatmul.mubr.msk.f32.gmra.mxu1 %vm565_vm1, %v2131_v34 }
  0xe3   : > { %2005 = vmatmul.mubr.msk.f32.vlgmr.msra.gmra.mxu0 %vm565_vm1, %v530_v37  ;;  %787 = vmatpush1.msra.mxu1 %v2301_v6  ;;  %v2137_v38 = vpop.f32.mrf.mxu0 }
  0xe4   : > { %879 = vmatpush1.msra.mxu0 %v2273_v2  ;;  %788 = vmatprep.subr.mxu1 %v2307_v9 }
  0xe5   : > { %880 = vmatprep.subr.mxu0 %v2278_v3  ;;  %789 = vmatpush1.msra.mxu1 %v2313_v10  ;;  %v540_v39 = vpop.f32.mrf.mxu0 }
  0xe6   : > { %881 = vmatpush1.msra.mxu0 %v2283_v4  ;;  %740 = vmatprep.mubr.f32.mxu0 %v2182_v28 }
  0xe7   : > { %790 = vmatprep.subr.mxu1 %v2319_v12  ;;  %882 = vmatprep.subr.mxu0 %v2291_v5  ;;  %v2499_v5 = vand.u32 127, %v657_v1 }
  0xe8   : > { %2006 = vmatmul.mubr.msk.f32.gmra.mxu0 %vm565_vm1, %v2134_v36  ;;  %791 = vmatpush1.msra.mxu1 %v2325_v13 }
  0xe9   : > { %883 = vmatpush1.msra.mxu0 %v2301_v6  ;;  %792 = vmatprep.subr.mxu1 %v2371_v22  ;;  %vm659_vm2 = vcmp.lt.s32.totalorder %v2499_v5, 1  ;;  %vm3418_vm3 = vcmp.lt.s32.totalorder %v2499_v5, 16  ;;  %vm3416_vm4 = vcmp.lt.s32.totalorder %v2499_v5, 17  ;;  %vm3417_vm8 = vcmp.ge.s32.totalorder %v2499_v5, 16 }
  0xea   : > { %884 = vmatprep.subr.mxu0 %v2307_v9  ;;  %793 = vmatpush1.msra.mxu1 %v2377_v23  ;;  %vm1167_vm9 = vcmp.lt.s32.totalorder %v2499_v5, 15  ;;  %vm1314_vm13 = vcmp.lt.s32.totalorder %v2499_v5, 112  ;;  %vm1277_vm15 = vcmp.lt.s32.totalorder %v2499_v5, 113 }
  0xeb   : > { %885 = vmatpush1.msra.mxu0 %v2313_v10  ;;  %794 = vmatprep.subr.mxu1 %v2384_v24 }
  0xec   : > { %886 = vmatprep.subr.mxu0 %v2319_v12  ;;  %795 = vmatpush1.msra.mxu1 %v2391_v25 }
  0xed   : > { %887 = vmatpush1.msra.mxu0 %v2325_v13  ;;  %796 = vmatprep.subr.mxu1 %v2398_v26 }
  0xee   : > { %888 = vmatprep.subr.mxu0 %v2371_v22  ;;  %797 = vmatpush1.msra.mxu1 %v2405_v27 }
  0xef   : > { %830 = vmatprep.mubr.f32.mxu1 %v2182_v28  ;;  %889 = vmatpush1.msra.mxu0 %v2377_v23 }
  0xf0   : > { %2007 = vmatmul.mubr.msk.f32.vlgmr.msra.gmra.mxu1 %vm565_vm1, %v540_v39  ;;  %890 = vmatprep.subr.mxu0 %v2384_v24 }
  0xf1   : > { %891 = vmatpush1.msra.mxu0 %v2391_v25  ;;  %836 = vmatprep.mubr.f32.mxu1 %v2182_v28 }
  0xf2   : > { %892 = vmatprep.subr.mxu0 %v2398_v26  ;;  %926 = vmatprep.mubr.f32.mxu0 %v2182_v28 }
  0xf3   : > { %893 = vmatpush1.msra.mxu0 %v2405_v27 }
  0xf4   : > { %2008 = vmatmul.mubr.msk.f32.gmra.mxu1 %vm565_vm1, %v2137_v38  ;;  %2009 = vmatmul.mubr.msk.f32.vlgmr.msra.gmra.mxu0 %vm565_vm1, %v510_v33 }
  0xf5   : > { %932 = vmatprep.mubr.f32.mxu0 %v2182_v28 }
  0xf8   : > { %2010 = vmatmul.mubr.msk.f32.gmra.mxu0 %vm565_vm1, %v2128_v32 }
  0xf9   : > { %1531 = vmatprep.mubr.f32.mxu0 %v2182_v28 }
 0x19e   : > { %v638_v40 = vpop.f32.mrf.mxu1 }
 0x19f   : > { %649 = vrot.lane.b32.xlu1 %v638_v40, %s2184_s23 }
 0x1a0   : > { %v640_v41 = vpop.f32.mrf.mxu1 }
 0x1a2   : > { %v644_v42 = vpop.f32.mrf.mxu1 }
 0x1a3   : > { %v736_v43 = vpop.f32.mrf.mxu0  ;;  %653 = vrot.lane.b32.xlu1 %v640_v41, %s2184_s23  ;;  %651 = vrot.lane.b32.xlu0 %v644_v42, %s2184_s23 }
 0x1a4   : > { %v646_v44 = vpop.f32.mrf.mxu1 }
 0x1a5   : > { %v738_v45 = vpop.f32.mrf.mxu0 }
 0x1a7   : > { %655 = vrot.lane.b32.xlu0 %v646_v44, %s2184_s23  ;;  %747 = vrot.lane.b32.xlu1 %v736_v43, %s2185_s24 }
 0x1a8   : > { %v742_v46 = vpop.f32.mrf.mxu0 }
 0x1aa   : > { %v744_v47 = vpop.f32.mrf.mxu0 }
 0x1ab   : > { %751 = vrot.lane.b32.xlu1 %v738_v45, %s2185_s24  ;;  %749 = vrot.lane.b32.xlu0 %v742_v46, %s2185_s24 }
 0x1af   : > { %753 = vrot.lane.b32.xlu1 %v744_v47, %s2185_s24 }
 0x1b0   : > { %v832_v48 = vpop.f32.mrf.mxu1 }
 0x1b2   : > { %v834_v49 = vpop.f32.mrf.mxu1 }
 0x1b4   : > { %v838_v50 = vpop.f32.mrf.mxu1  ;;  %v928_v0 = vpop.f32.mrf.mxu0 }
 0x1b5   : > { %845 = vrot.lane.b32.xlu0 %v838_v50, %s2186_s25 }
 0x1b6   : > { %v840_v51 = vpop.f32.mrf.mxu1  ;;  %v930_v4 = vpop.f32.mrf.mxu0 }
 0x1b7   : > { %849 = vrot.lane.b32.xlu1 %v840_v51, %s2186_s25 }
 0x1b8   : > { %v934_v6 = vpop.f32.mrf.mxu0 }
 0x1b9   : > { %847 = vrot.lane.b32.xlu0 %v834_v49, %s2186_s25 }
 0x1ba   : > { %v936_v11 = vpop.f32.mrf.mxu0 }
 0x1bb   : > { %843 = vrot.lane.b32.xlu1 %v832_v48, %s2186_s25 }
 0x1d8   : > { %1021 = vadd.xlane.f32.xlu0 %v1020_v54 }
 0x1df   : > { %1024 = vadd.xlane.f32.xlu1 %v1023_v57 }
 0x211   : > { %v650_v60 = vpop.permute.xlu1 %649 }
 0x215   : > { %v654_v61 = vpop.permute.xlu1 %653  ;;  %v652_v62 = vpop.permute.xlu0 %651 }
 0x216   : > { %v660_v17 = vsel %vm659_vm2, %v650_v60, %v654_v61  ;;  %v662_v18 = vsel %vm659_vm2, %v654_v61, %v650_v60 }
 0x217   : > { %v929_v26 = vadd.f32 %v928_v0, %v662_v18  ;;  %v931_v27 = vadd.f32 %v930_v4, %v660_v17 }
 0x219   : > { %v748_v63 = vpop.permute.xlu1 %747  ;;  %v656_v2 = vpop.permute.xlu0 %655 }
 0x21a   : > { %v661_v9 = vsel %vm659_vm2, %v652_v62, %v656_v2  ;;  %v663_v10 = vsel %vm659_vm2, %v656_v2, %v652_v62 }
 0x21b   : > { %v935_v14 = vadd.f32 %v934_v6, %v663_v10  ;;  %v937_v15 = vadd.f32 %v936_v11, %v661_v9 }
 0x21d   : > { %v752_v3 = vpop.permute.xlu1 %751  ;;  %v750_v7 = vpop.permute.xlu0 %749 }
 0x21e   : > { %v756_v22 = vsel %vm3418_vm3, %v748_v63, %v752_v3  ;;  %v758_v23 = vsel %vm3418_vm3, %v752_v3, %v748_v63 }
 0x21f   : > { %v939_v31 = vadd.f32 %v929_v26, %v758_v23  ;;  %v940_v32 = vadd.f32 %v931_v27, %v756_v22  ;;  %v2609_v22 = vadd.s32 128, %v2499_v5 }
 0x221   : > { %v754_v8 = vpop.permute.xlu1 %753  ;;  %v979_v23 = vand.u32 15, %v2609_v22  ;;  %vm1003_vm14 = vcmp.lt.s32.totalorder %v2609_v22, 240 }
 0x222   : > { %v757_v12 = vsel %vm3418_vm3, %v750_v7, %v754_v8  ;;  %v759_v13 = vsel %vm3418_vm3, %v754_v8, %v750_v7 }
 0x223   : > { %v941_v19 = vadd.f32 %v935_v14, %v759_v13  ;;  %v942_v20 = vadd.f32 %v937_v15, %v757_v12  ;;  %vm2615_vm5 = vcmp.ge.s32.totalorder %v979_v23, 1  ;;  %vm2804_vm10 = vcmp.le.s32.totalorder %v979_v23, 14 }
 0x224   : > { %vm2991_vm1 = vmand %vm1003_vm14, %vm2615_vm5 }
 0x227   : > { %v846_v16 = vpop.permute.xlu0 %845 }
 0x229   : > { %v850_v21 = vpop.permute.xlu1 %849 }
 0x22a   : > { %v853_v24 = vsel %vm3416_vm4, %v846_v16, %v850_v21  ;;  %v855_v25 = vsel %vm3416_vm4, %v850_v21, %v846_v16 }
 0x22b   : > { %v945_v29 = vadd.f32 %v941_v19, %v855_v25  ;;  %v946_v30 = vadd.f32 %v942_v20, %v853_v24  ;;  %v848_v33 = vpop.permute.xlu0 %847  ;;  %v972_v24 = vand.u32 15, %v2499_v5 }
 0x22d   : > { %v844_v34 = vpop.permute.xlu1 %843  ;;  %v2524_v35 = vadd.f32 %v957_v58, %v945_v29  ;;  %v2526_v36 = vadd.f32 %v957_v58, %v946_v30  ;;  %vm2621_vm6 = vcmp.ge.s32.totalorder %v972_v24, 1  ;;  %vm2786_vm7 = vcmp.le.s32.totalorder %v972_v24, 14 }
 0x22e   : > { %v852_v37 = vsel %vm3416_vm4, %v844_v34, %v848_v33  ;;  %v854_v38 = vsel %vm3416_vm4, %v848_v33, %v844_v34  ;;  %vm2820_vm11 = vmand %vm3417_vm8, %vm2786_vm7 }
 0x22f   : > { %v943_v39 = vadd.f32 %v939_v31, %v854_v38  ;;  %v944_v40 = vadd.f32 %v940_v32, %v852_v37  ;;  %v1017_v41 = vadd.f32 %v2526_v36, %v2524_v35  ;;  %vm2904_vm12 = vmand %vm3417_vm8, %vm2621_vm6 }
 0x231   : > { %1018 = vadd.xlane.f32.xlu0 %v1017_v41  ;;  %v2534_v42 = vadd.f32 %v952_v59, %v943_v39  ;;  %v2536_v43 = vadd.f32 %v952_v59, %v944_v40 }
 0x233   : > { %v1014_v44 = vadd.f32 %v2536_v43, %v2534_v42 }
 0x235   : > { %1015 = vadd.xlane.f32.xlu1 %v1014_v44 }
 0x261   : > { %v1022_v45 = vpop.xlane.xlu0 %1021 }
 0x262   : > { %v1029_v46 = vmul.f32 0.00390625, %v1022_v45 }
 0x264   : > { %v1035_v47 = vsub.f32 %v2484_v52, %v1029_v46  ;;  %v1036_v48 = vsub.f32 %v2487_v53, %v1029_v46 }
 0x266   : > { %v1043_v49 = vmul.f32 %v1035_v47, %v1035_v47  ;;  %v1044_v50 = vmul.f32 %v1036_v48, %v1036_v48 }
 0x268   : > { %v1025_v51 = vpop.xlane.xlu1 %1024  ;;  %v1053_v54 = vadd.f32 %v1044_v50, %v1043_v49 }
 0x269   : > { %v1030_v57 = vmul.f32 0.00390625, %v1025_v51 }
 0x26a   : > { %1054 = vadd.xlane.f32.xlu1 %v1053_v54 }
 0x26b   : > { %v1037_v58 = vsub.f32 %v2492_v55, %v1030_v57  ;;  %v1038_v59 = vsub.f32 %v2495_v56, %v1030_v57 }
 0x26d   : > { %v1045_v60 = vmul.f32 %v1037_v58, %v1037_v58  ;;  %v1046_v61 = vmul.f32 %v1038_v59, %v1038_v59 }
 0x26f   : > { %v1056_v62 = vadd.f32 %v1046_v61, %v1045_v60 }
 0x271   : > { %1057 = vadd.xlane.f32.xlu0 %v1056_v62 }
 0x2ba   : > { %v1019_v0 = vpop.xlane.xlu0 %1018 }
 0x2bb   : > { %v1028_v9 = vmul.f32 0.00390625, %v1019_v0 }
 0x2bd   : > { %v2557_v10 = vsub.f32 %v2524_v35, %v1028_v9  ;;  %v2560_v11 = vsub.f32 %v2526_v36, %v1028_v9 }
 0x2be   : > { %v1016_v63 = vpop.xlane.xlu1 %1015 }
 0x2bf   : > { %v1041_v12 = vmul.f32 %v2557_v10, %v2557_v10  ;;  %v1042_v13 = vmul.f32 %v2560_v11, %v2560_v11  ;;  %v1027_v14 = vmul.f32 0.00390625, %v1016_v63 }
 0x2c1   : > { %v1050_v15 = vadd.f32 %v1042_v13, %v1041_v12  ;;  %v1031_v16 = vsub.f32 %v2534_v42, %v1027_v14  ;;  %v1032_v17 = vsub.f32 %v2536_v43, %v1027_v14 }
 0x2c3   : > { %v1039_v18 = vmul.f32 %v1031_v16, %v1031_v16  ;;  %v1040_v19 = vmul.f32 %v1032_v17, %v1032_v17 }
 0x2c5   : > { %v1047_v20 = vadd.f32 %v1040_v19, %v1039_v18 }
 0x2f3   : > { %v1055_v1 = vpop.xlane.xlu1 %1054 }
 0x2f4   : > { %v1061_v52 = vmul.f32 0.00390625, %v1055_v1  ;;  %v1372_v1 = vld [vmem:[%s3410_s6] sm:$0xff] }
 0x2f6   : > { %v1065_v3 = vadd.f32 1e-05, %v1061_v52  ;;  %v1373_v52 = vld [vmem:[%s3410_s6 + $0x8] sm:$0xff] }
 0x2fa   : > { %v1058_v2 = vpop.xlane.xlu0 %1057 }
 0x2fb   : > { %v1062_v53 = vmul.f32 0.00390625, %v1058_v2 }
 0x2fd   : > { %v1066_v4 = vadd.f32 1e-05, %v1062_v53 }
 0x2ff   : > { %2158 = vrsqrt.f32 %v1066_v4 }
 0x300   : > { %2160 = vrsqrt.f32 %v1065_v3 }
 0x30c   : > { %v2159_v6 = vpop.eup %2158 }
 0x30d   : > { %v2544_v7 = vmul.f32 %v2159_v6, %v1037_v58  ;;  %v2546_v55 = vmul.f32 %v2159_v6, %v1038_v59  ;;  %v2161_v56 = vpop.eup %2160  ;;  %v1009_v58 = vld [vmem:[%s3409_s5 + $0x8] sm:$0xff] }
 0x30e   : > { %v2552_v8 = vmul.f32 %v2161_v56, %v1035_v47  ;;  %v2568_v21 = vmul.f32 %v2161_v56, %v1036_v48  ;;  %1454 = vmatprep.mubr.f32.mxu1 %v1009_v58 }
 0x30f   : > { %1194 = vrot.lane.b32.xlu0 %v2544_v7, %s2184_s23  ;;  %1202 = vrot.lane.b32.xlu1 %v2546_v55, %s2184_s23 }
 0x313   : > { %1192 = vrot.lane.b32.xlu1 %v2552_v8, %s2184_s23 }
 0x32e   : > { %1051 = vadd.xlane.f32.xlu0 %v1050_v15 }
 0x337   : > { %1048 = vadd.xlane.f32.xlu1 %v1047_v20 }
 0x344   : > { %1200 = vrot.lane.b32.xlu0 %v2568_v21, %s2184_s23 }
 0x348   : > { %1165 = vrot.lane.b32.xlu0 %v2546_v55, %s2187_s30  ;;  %1157 = vrot.lane.b32.xlu1 %v2544_v7, %s2187_s30 }
 0x34c   : > { %1163 = vrot.lane.b32.xlu0 %v2568_v21, %s2187_s30  ;;  %1155 = vrot.lane.b32.xlu1 %v2552_v8, %s2187_s30 }
 0x350   : > { %1129 = vrot.lane.b32.xlu0 %v2546_v55, %s2185_s24  ;;  %1121 = vrot.lane.b32.xlu1 %v2544_v7, %s2185_s24 }
 0x354   : > { %1127 = vrot.lane.b32.xlu0 %v2568_v21, %s2185_s24  ;;  %1119 = vrot.lane.b32.xlu1 %v2552_v8, %s2185_s24 }
 0x358   : > { %1093 = vrot.lane.b32.xlu0 %v2546_v55, %s2186_s25  ;;  %1085 = vrot.lane.b32.xlu1 %v2544_v7, %s2186_s25 }
 0x35c   : > { %1091 = vrot.lane.b32.xlu0 %v2568_v21, %s2186_s25  ;;  %1083 = vrot.lane.b32.xlu1 %v2552_v8, %s2186_s25 }
 0x360   : > { %1312 = vrot.lane.b32.xlu0 %v2546_v55, %s2188_s12  ;;  %1304 = vrot.lane.b32.xlu1 %v2544_v7, %s2188_s12 }
 0x364   : > { %1310 = vrot.lane.b32.xlu0 %v2568_v21, %s2188_s12  ;;  %1302 = vrot.lane.b32.xlu1 %v2552_v8, %s2188_s12 }
 0x368   : > { %1275 = vrot.lane.b32.xlu0 %v2546_v55, %s2189_s13  ;;  %1267 = vrot.lane.b32.xlu1 %v2544_v7, %s2189_s13 }
 0x381   : > { %v1195_v26 = vpop.permute.xlu0 %1194  ;;  %v1203_v27 = vpop.permute.xlu1 %1202 }
 0x382   : > { %v1211_v30 = vsel %vm659_vm2, %v1203_v27, %v1195_v26  ;;  %v1207_v31 = vsel %vm659_vm2, %v1195_v26, %v1203_v27 }
 0x383   : > { %2011 = vmatprep.subr.msk.mxu1 %vm2615_vm5, %v1207_v31 }
 0x384   : > { %2012 = vmatpush1.msk.msra.mxu1 %vm2621_vm6, %v1211_v30 }
 0x385   : > { %v1193_v33 = vpop.permute.xlu1 %1192 }
 0x3b7   : > { %v1052_v32 = vpop.xlane.xlu0 %1051 }
 0x3b8   : > { %v1060_v44 = vmul.f32 0.00390625, %v1052_v32  ;;  %v1808_v32 = vld [vmem:[%s3413_s9] sm:$0xff] }
 0x3ba   : > { %v1064_v46 = vadd.f32 1e-05, %v1060_v44 }
 0x3bb   : > { %v1201_v34 = vpop.permute.xlu0 %1200 }
 0x3bc   : > { %v1210_v37 = vsel %vm659_vm2, %v1201_v34, %v1193_v33  ;;  %v1206_v38 = vsel %vm659_vm2, %v1193_v33, %v1201_v34 }
 0x3bd   : > { %2013 = vmatprep.subr.msk.mxu1 %vm2615_vm5, %v1206_v38 }
 0x3be   : > { %2014 = vmatpush1.msk.msra.mxu1 %vm2621_vm6, %v1210_v37 }
 0x3bf   : > { %v2715_v54 = vpop.permute.xlu0 %1165 }
 0x3c0   : > { %v1049_v39 = vpop.xlane.xlu1 %1048 }
 0x3c1   : > { %v1059_v40 = vmul.f32 0.00390625, %v1049_v39 }
 0x3c3   : > { %v1063_v41 = vadd.f32 1e-05, %v1059_v40  ;;  %v1164_v59 = vpop.permute.xlu0 %1163 }
 0x3c4   : > { %v2717_v57 = vpop.permute.xlu1 %1157 }
 0x3c5   : > { %2162 = vrsqrt.f32 %v1063_v41  ;;  %v1171_v23 = vsel %vm1167_vm9, %v2717_v57, %v2715_v54  ;;  %v1175_v44 = vsel %vm1167_vm9, %v2715_v54, %v2717_v57 }
 0x3c6   : > { %2164 = vrsqrt.f32 %v1064_v46 }
 0x3c7   : > { %v2734_v61 = vpop.permute.xlu0 %1129 }
 0x3c8   : > { %v1156_v60 = vpop.permute.xlu1 %1155 }
 0x3c9   : > { %v1174_v46 = vsel %vm1167_vm9, %v1164_v59, %v1156_v60 }
 0x3cb   : > { %v2742_v63 = vpop.permute.xlu0 %1127 }
 0x3cc   : > { %v2736_v62 = vpop.permute.xlu1 %1121 }
 0x3cf   : > { %v2756_v2 = vpop.permute.xlu0 %1093 }
 0x3d0   : > { %v2744_v0 = vpop.permute.xlu1 %1119 }
 0x3d2   : > { %v2163_v45 = vpop.eup %2162 }
 0x3d3   : > { %v2641_v47 = vmul.f32 %v2163_v45, %v1031_v16  ;;  %v2643_v48 = vmul.f32 %v2163_v45, %v1032_v17  ;;  %v2165_v49 = vpop.eup %2164  ;;  %v2760_v3 = vpop.permute.xlu0 %1091  ;;  %v1170_v45 = vsel %vm1167_vm9, %v1156_v60, %v1164_v59 }
 0x3d4   : > { %v2666_v50 = vmul.f32 %v2165_v49, %v2557_v10  ;;  %v2669_v51 = vmul.f32 %v2165_v49, %v2560_v11  ;;  %v2758_v53 = vpop.permute.xlu1 %1085 }
 0x3d5   : > { %1196 = vrot.lane.b32.xlu0 %v2643_v48, %s2184_s23  ;;  %1188 = vrot.lane.b32.xlu1 %v2641_v47, %s2184_s23 }
 0x3d7   : > { %v2764_v6 = vpop.permute.xlu0 %1312 }
 0x3d8   : > { %v2762_v4 = vpop.permute.xlu1 %1083 }
 0x3d9   : > { %1159 = vrot.lane.b32.xlu0 %v2643_v48, %s2187_s30  ;;  %1151 = vrot.lane.b32.xlu1 %v2641_v47, %s2187_s30 }
 0x3db   : > { %v2768_v9 = vpop.permute.xlu0 %1310 }
 0x3dc   : > { %v2766_v56 = vpop.permute.xlu1 %1304 }
 0x3dd   : > { %1123 = vrot.lane.b32.xlu0 %v2643_v48, %s2185_s24  ;;  %1115 = vrot.lane.b32.xlu1 %v2641_v47, %s2185_s24 }
 0x3df   : > { %v2772_v11 = vpop.permute.xlu0 %1275 }
 0x3e0   : > { %v2770_v10 = vpop.permute.xlu1 %1302 }
 0x3e1   : > { %1087 = vrot.lane.b32.xlu0 %v2643_v48, %s2186_s25  ;;  %1079 = vrot.lane.b32.xlu1 %v2641_v47, %s2186_s25 }
 0x3e4   : > { %v2774_v12 = vpop.permute.xlu1 %1267 }
 0x3e5   : > { %1306 = vrot.lane.b32.xlu0 %v2643_v48, %s2188_s12  ;;  %1298 = vrot.lane.b32.xlu1 %v2641_v47, %s2188_s12 }
 0x3e9   : > { %1198 = vrot.lane.b32.xlu0 %v2669_v51, %s2184_s23  ;;  %1190 = vrot.lane.b32.xlu1 %v2666_v50, %s2184_s23 }
 0x3ed   : > { %1273 = vrot.lane.b32.xlu0 %v2568_v21, %s2189_s13  ;;  %1265 = vrot.lane.b32.xlu1 %v2552_v8, %s2189_s13 }
 0x3f1   : > { %1161 = vrot.lane.b32.xlu0 %v2669_v51, %s2187_s30  ;;  %1153 = vrot.lane.b32.xlu1 %v2666_v50, %s2187_s30 }
 0x3f5   : > { %1269 = vrot.lane.b32.xlu0 %v2643_v48, %s2189_s13  ;;  %1261 = vrot.lane.b32.xlu1 %v2641_v47, %s2189_s13 }
 0x3f9   : > { %1125 = vrot.lane.b32.xlu0 %v2669_v51, %s2185_s24  ;;  %1117 = vrot.lane.b32.xlu1 %v2666_v50, %s2185_s24 }
 0x3fd   : > { %1238 = vrot.lane.b32.xlu0 %v2546_v55, %s2190_s14  ;;  %1230 = vrot.lane.b32.xlu1 %v2544_v7, %s2190_s14 }
 0x401   : > { %1089 = vrot.lane.b32.xlu0 %v2669_v51, %s2186_s25  ;;  %1081 = vrot.lane.b32.xlu1 %v2666_v50, %s2186_s25 }
 0x405   : > { %1236 = vrot.lane.b32.xlu0 %v2568_v21, %s2190_s14  ;;  %1228 = vrot.lane.b32.xlu1 %v2552_v8, %s2190_s14 }
 0x409   : > { %1308 = vrot.lane.b32.xlu0 %v2669_v51, %s2188_s12  ;;  %1300 = vrot.lane.b32.xlu1 %v2666_v50, %s2188_s12 }
 0x40d   : > { %1232 = vrot.lane.b32.xlu0 %v2643_v48, %s2190_s14  ;;  %1224 = vrot.lane.b32.xlu1 %v2641_v47, %s2190_s14 }
 0x411   : > { %1271 = vrot.lane.b32.xlu0 %v2669_v51, %s2189_s13  ;;  %1263 = vrot.lane.b32.xlu1 %v2666_v50, %s2189_s13 }
 0x415   : > { %1349 = vrot.lane.b32.xlu0 %v2546_v55, %s2191_s15  ;;  %1341 = vrot.lane.b32.xlu1 %v2544_v7, %s2191_s15 }
 0x419   : > { %1234 = vrot.lane.b32.xlu0 %v2669_v51, %s2190_s14  ;;  %1226 = vrot.lane.b32.xlu1 %v2666_v50, %s2190_s14 }
 0x41d   : > { %1347 = vrot.lane.b32.xlu0 %v2568_v21, %s2191_s15  ;;  %1339 = vrot.lane.b32.xlu1 %v2552_v8, %s2191_s15 }
 0x421   : > { %1345 = vrot.lane.b32.xlu0 %v2669_v51, %s2191_s15  ;;  %1337 = vrot.lane.b32.xlu1 %v2666_v50, %s2191_s15 }
 0x425   : > { %1343 = vrot.lane.b32.xlu0 %v2643_v48, %s2191_s15  ;;  %1335 = vrot.lane.b32.xlu1 %v2641_v47, %s2191_s15 }
 0x429   : > { %1376 = vperm.xlu0 %2156, %v1372_v1   ;;  %1381 = vperm.xlu1 %2157, %v1373_v52  }
 0x447   : > { %v1197_v13 = vpop.permute.xlu0 %1196  ;;  %v1189_v14 = vpop.permute.xlu1 %1188 }
 0x448   : > { %v1204_v37 = vsel %vm659_vm2, %v1189_v14, %v1197_v13  ;;  %v1208_v38 = vsel %vm659_vm2, %v1197_v13, %v1189_v14  ;;  %v1134_v13 = vsel %vm3418_vm3, %v2736_v62, %v2734_v61  ;;  %v1138_v14 = vsel %vm3418_vm3, %v2734_v61, %v2736_v62 }
 0x44b   : > { %v1160_v15 = vpop.permute.xlu0 %1159  ;;  %v1152_v16 = vpop.permute.xlu1 %1151 }
 0x44c   : > { %v1168_v59 = vsel %vm1167_vm9, %v1152_v16, %v1160_v15  ;;  %v1172_v60 = vsel %vm1167_vm9, %v1160_v15, %v1152_v16  ;;  %v1133_v15 = vsel %vm3418_vm3, %v2744_v0, %v2742_v63  ;;  %v1137_v16 = vsel %vm3418_vm3, %v2742_v63, %v2744_v0 }
 0x44f   : > { %v1124_v17 = vpop.permute.xlu0 %1123  ;;  %v1116_v18 = vpop.permute.xlu1 %1115 }
 0x450   : > { %v1135_v63 = vsel %vm3418_vm3, %v1124_v17, %v1116_v18 }
 0x453   : > { %v2776_v19 = vpop.permute.xlu0 %1087  ;;  %v2778_v20 = vpop.permute.xlu1 %1079 }
 0x457   : > { %v2780_v26 = vpop.permute.xlu0 %1306  ;;  %v2782_v27 = vpop.permute.xlu1 %1298 }
 0x45b   : > { %v1199_v30 = vpop.permute.xlu0 %1198  ;;  %v1191_v31 = vpop.permute.xlu1 %1190 }
 0x45c   : > { %v1205_v33 = vsel %vm659_vm2, %v1191_v31, %v1199_v30  ;;  %v1209_v34 = vsel %vm659_vm2, %v1199_v30, %v1191_v31 }
 0x45d   : > { %2015 = vmatprep.subr.msk.mxu1 %vm2615_vm5, %v1205_v33  ;;  %v1131_v33 = vsel %vm3418_vm3, %v1116_v18, %v1124_v17  ;;  %v1102_v17 = vsel %vm3416_vm4, %v2756_v2, %v2758_v53  ;;  %v1097_v18 = vsel %vm3416_vm4, %v2762_v4, %v2760_v3 }
 0x45e   : > { %2016 = vmatpush1.msk.msra.mxu1 %vm2621_vm6, %v1209_v34 }
 0x45f   : > { %v2810_v39 = vpop.permute.xlu0 %1273  ;;  %2017 = vmatprep.subr.msk.mxu1 %vm2615_vm5, %v1204_v37  ;;  %v2814_v40 = vpop.permute.xlu1 %1265  ;;  %v1548_v37 = vld [vmem:[%s3411_s7] sm:$0xff] }
 0x460   : > { %2018 = vmatpush1.msk.msra.mxu1 %vm2621_vm6, %v1208_v38  ;;  %v1098_v38 = vsel %vm3416_vm4, %v2758_v53, %v2756_v2 }
 0x461   : > { %2019 = vmatprep.subr.msk.mxu1 %vm2804_vm10, %v1171_v23  ;;  %v1101_v23 = vsel %vm3416_vm4, %v2760_v3, %v2762_v4  ;;  %v1095_v3 = vsel %vm3416_vm4, %v2778_v20, %v2776_v19  ;;  %v1099_v4 = vsel %vm3416_vm4, %v2776_v19, %v2778_v20  ;;  %v1321_v19 = vsel %vm1314_vm13, %v2768_v9, %v2770_v10 }
 0x462   : > { %2020 = vmatpush1.msk.msra.mxu1 %vm2820_vm11, %v1175_v44  ;;  %v1317_v20 = vsel %vm1314_vm13, %v2770_v10, %v2768_v9  ;;  %v1319_v9 = vsel %vm1314_vm13, %v2780_v26, %v2782_v27 }
 0x463   : > { %v1162_v49 = vpop.permute.xlu0 %1161  ;;  %2021 = vmatprep.subr.msk.mxu1 %vm2804_vm10, %v1170_v45  ;;  %v1154_v58 = vpop.permute.xlu1 %1153 }
 0x464   : > { %v1169_v54 = vsel %vm1167_vm9, %v1154_v58, %v1162_v49  ;;  %v1173_v57 = vsel %vm1167_vm9, %v1162_v49, %v1154_v58  ;;  %2022 = vmatpush1.msk.msra.mxu1 %vm2820_vm11, %v1174_v46  ;;  %v1322_v58 = vsel %vm1314_vm13, %v2764_v6, %v2766_v56 }
 0x465   : > { %2023 = vmatprep.subr.msk.mxu1 %vm2804_vm10, %v1169_v54  ;;  %v1318_v54 = vsel %vm1314_vm13, %v2766_v56, %v2764_v6 }
 0x466   : > { %2024 = vmatpush1.msk.msra.mxu1 %vm2820_vm11, %v1173_v57 }
 0x467   : > { %v2858_v1 = vpop.permute.xlu0 %1269  ;;  %2025 = vmatprep.subr.msk.mxu1 %vm2804_vm10, %v1168_v59  ;;  %v2862_v52 = vpop.permute.xlu1 %1261 }
 0x468   : > { %2026 = vmatpush1.msk.msra.mxu1 %vm2820_vm11, %v1172_v60  ;;  %v1315_v60 = vsel %vm1314_vm13, %v2782_v27, %v2780_v26  ;;  %v1284_v26 = vsel %vm1277_vm15, %v2810_v39, %v2814_v40  ;;  %v1280_v27 = vsel %vm1277_vm15, %v2814_v40, %v2810_v39  ;;  %v1282_v39 = vsel %vm1277_vm15, %v2858_v1, %v2862_v52  ;;  %v2172_v40 = vld [vmem:[%s2481_s28 + $0x8] sm:$0xff] }
 0x469   : > { %1406 = vmatprep.subr.mxu1 %v1134_v13 }
 0x46a   : > { %2027 = vmatpush1.msk.msra.mxu1 %vm3417_vm8, %v1138_v14 }
 0x46b   : > { %v1126_v30 = vpop.permute.xlu0 %1125  ;;  %1408 = vmatprep.subr.mxu1 %v1133_v15  ;;  %v1118_v31 = vpop.permute.xlu1 %1117  ;;  %v1285_v15 = vsel %vm1277_vm15, %v2772_v11, %v2774_v12 }
 0x46c   : > { %v1136_v61 = vsel %vm3418_vm3, %v1126_v30, %v1118_v31  ;;  %2028 = vmatpush1.msk.msra.mxu1 %vm3417_vm8, %v1137_v16  ;;  %v1132_v62 = vsel %vm3418_vm3, %v1118_v31, %v1126_v30  ;;  %v1281_v16 = vsel %vm1277_vm15, %v2774_v12, %v2772_v11  ;;  %vm3043_vm3 = vmand %vm1003_vm14, %vm2804_vm10 }
 0x46d   : > { %1410 = vmatprep.subr.mxu1 %v1132_v62 }
 0x46e   : > { %2029 = vmatpush1.msk.msra.mxu1 %vm3417_vm8, %v1136_v61  ;;  %v1278_v61 = vsel %vm1277_vm15, %v2862_v52, %v2858_v1 }
 0x46f   : > { %v2896_v0 = vpop.permute.xlu0 %1238  ;;  %1412 = vmatprep.subr.mxu1 %v1131_v33  ;;  %v2898_v34 = vpop.permute.xlu1 %1230 }
 0x470   : > { %2030 = vmatpush1.msk.msra.mxu1 %vm3417_vm8, %v1135_v63  ;;  %vm1351_vm8 = vcmp.lt.s32.totalorder %v2499_v5, 111 }
 0x471   : > { %2031 = vmatprep.subr.msk.mxu1 %vm2615_vm5, %v1098_v38 }
 0x472   : > { %2032 = vmatpush1.msk.msra.mxu1 %vm2904_vm12, %v1102_v17 }
 0x473   : > { %v1090_v44 = vpop.permute.xlu0 %1089  ;;  %2033 = vmatprep.subr.msk.mxu1 %vm2615_vm5, %v1097_v18  ;;  %v1082_v2 = vpop.permute.xlu1 %1081 }
 0x474   : > { %v1096_v53 = vsel %vm3416_vm4, %v1082_v2, %v1090_v44  ;;  %v1100_v45 = vsel %vm3416_vm4, %v1090_v44, %v1082_v2  ;;  %2034 = vmatpush1.msk.msra.mxu1 %vm2904_vm12, %v1101_v23  ;;  %vm1240_vm4 = vcmp.lt.s32.totalorder %v2499_v5, 127 }
 0x475   : > { %2035 = vmatprep.subr.msk.mxu1 %vm2615_vm5, %v1096_v53  ;;  %v1248_v63 = vsel %vm1240_vm4, %v2896_v0, %v2898_v34  ;;  %v1244_v1 = vsel %vm1240_vm4, %v2898_v34, %v2896_v0 }
 0x476   : > { %2036 = vmatpush1.msk.msra.mxu1 %vm2904_vm12, %v1100_v45 }
 0x477   : > { %v1237_v46 = vpop.permute.xlu0 %1236  ;;  %2037 = vmatprep.subr.msk.mxu1 %vm2615_vm5, %v1095_v3  ;;  %v1229_v49 = vpop.permute.xlu1 %1228 }
 0x478   : > { %2038 = vmatpush1.msk.msra.mxu1 %vm2904_vm12, %v1099_v4  ;;  %v1247_v52 = vsel %vm1240_vm4, %v1237_v46, %v1229_v49  ;;  %v1243_v18 = vsel %vm1240_vm4, %v1229_v49, %v1237_v46 }
 0x479   : > { %2039 = vmatprep.subr.msk.mxu1 %vm1003_vm14, %v1322_v58 }
 0x47a   : > { %1423 = vmatpush2.msra.mxu1 %v1318_v54 }
 0x47b   : > { %v1309_v57 = vpop.permute.xlu0 %1308  ;;  %2040 = vmatprep.subr.msk.mxu1 %vm1003_vm14, %v1321_v19  ;;  %v1301_v59 = vpop.permute.xlu1 %1300 }
 0x47c   : > { %v1316_v6 = vsel %vm1314_vm13, %v1301_v59, %v1309_v57  ;;  %v1320_v56 = vsel %vm1314_vm13, %v1309_v57, %v1301_v59  ;;  %1425 = vmatpush2.msra.mxu1 %v1317_v20  ;;  %v1010_v20 = vld [vmem:[%s3409_s5 + $0x10] sm:$0xff] }
 0x47d   : > { %2041 = vmatprep.subr.msk.mxu1 %vm1003_vm14, %v1320_v56 }
 0x47e   : > { %1427 = vmatpush2.msra.mxu1 %v1316_v6 }
 0x47f   : > { %v1233_v13 = vpop.permute.xlu0 %1232  ;;  %2042 = vmatprep.subr.msk.mxu1 %vm1003_vm14, %v1319_v9  ;;  %v1225_v14 = vpop.permute.xlu1 %1224 }
 0x480   : > { %1429 = vmatpush2.msra.mxu1 %v1315_v60  ;;  %v1245_v2 = vsel %vm1240_vm4, %v1233_v13, %v1225_v14  ;;  %v1241_v53 = vsel %vm1240_vm4, %v1225_v14, %v1233_v13 }
 0x481   : > { %2043 = vmatprep.subr.msk.mxu1 %vm2991_vm1, %v1285_v15 }
 0x482   : > { %2044 = vmatpush2.msk.msra.mxu1 %vm2621_vm6, %v1281_v16 }
 0x483   : > { %v1272_v30 = vpop.permute.xlu0 %1271  ;;  %2045 = vmatprep.subr.msk.mxu1 %vm2991_vm1, %v1284_v26  ;;  %v1264_v11 = vpop.permute.xlu1 %1263 }
 0x484   : > { %v1279_v12 = vsel %vm1277_vm15, %v1264_v11, %v1272_v30  ;;  %v1283_v31 = vsel %vm1277_vm15, %v1272_v30, %v1264_v11  ;;  %2046 = vmatpush2.msk.msra.mxu1 %vm2621_vm6, %v1280_v27 }
 0x485   : > { %2047 = vmatprep.subr.msk.mxu1 %vm2991_vm1, %v1283_v31 }
 0x486   : > { %2048 = vmatpush2.msk.msra.mxu1 %vm2621_vm6, %v1279_v12 }
 0x487   : > { %v1350_v62 = vpop.permute.xlu0 %1349  ;;  %2049 = vmatprep.subr.msk.mxu1 %vm2991_vm1, %v1282_v39  ;;  %v1342_v33 = vpop.permute.xlu1 %1341 }
 0x488   : > { %v1355_v38 = vsel %vm1351_vm8, %v1342_v33, %v1350_v62  ;;  %v1359_v17 = vsel %vm1351_vm8, %v1350_v62, %v1342_v33  ;;  %2050 = vmatpush2.msk.msra.mxu1 %vm2621_vm6, %v1278_v61 }
 0x489   : > { %2051 = vmatprep.subr.msk.mxu1 %vm2804_vm10, %v1248_v63  ;;  %2059 = vmatprep.subr.msk.mxu0 %vm3043_vm3, %v1359_v17 }
 0x48a   : > { %2052 = vmatpush2.msk.msra.mxu1 %vm2786_vm7, %v1244_v1  ;;  %2060 = vmatpush1.msk.msra.mxu0 %vm2786_vm7, %v1355_v38 }
 0x48b   : > { %v1235_v23 = vpop.permute.xlu0 %1234  ;;  %2053 = vmatprep.subr.msk.mxu1 %vm2804_vm10, %v1247_v52  ;;  %v1227_v0 = vpop.permute.xlu1 %1226 }
 0x48c   : > { %v1242_v34 = vsel %vm1240_vm4, %v1227_v0, %v1235_v23  ;;  %v1246_v44 = vsel %vm1240_vm4, %v1235_v23, %v1227_v0  ;;  %2054 = vmatpush2.msk.msra.mxu1 %vm2786_vm7, %v1243_v18 }
 0x48d   : > { %2055 = vmatprep.subr.msk.mxu1 %vm2804_vm10, %v1246_v44 }
 0x48e   : > { %2056 = vmatpush2.msk.msra.mxu1 %vm2786_vm7, %v1242_v34 }
 0x48f   : > { %v1348_v45 = vpop.permute.xlu0 %1347  ;;  %2057 = vmatprep.subr.msk.mxu1 %vm2804_vm10, %v1245_v2  ;;  %v1340_v3 = vpop.permute.xlu1 %1339 }
 0x490   : > { %v1354_v4 = vsel %vm1351_vm8, %v1340_v3, %v1348_v45  ;;  %v1358_v46 = vsel %vm1351_vm8, %v1348_v45, %v1340_v3  ;;  %2058 = vmatpush2.msk.msra.mxu1 %vm2786_vm7, %v1241_v53 }
 0x491   : > { %1446 = vmatprep.subr.mxu1 %v2546_v55  ;;  %2061 = vmatprep.subr.msk.mxu0 %vm3043_vm3, %v1358_v46 }
 0x492   : > { %1447 = vmatpush2.msra.mxu1 %v2544_v7  ;;  %2062 = vmatpush1.msk.msra.mxu0 %vm2786_vm7, %v1354_v4  ;;  %v1008_v7 = vld [vmem:[%s3409_s5] sm:$0xff] }
 0x493   : > { %v1346_v49 = vpop.permute.xlu0 %1345  ;;  %1448 = vmatprep.subr.mxu1 %v2568_v21  ;;  %v1338_v58 = vpop.permute.xlu1 %1337 }
 0x494   : > { %v1353_v54 = vsel %vm1351_vm8, %v1338_v58, %v1346_v49  ;;  %v1357_v19 = vsel %vm1351_vm8, %v1346_v49, %v1338_v58  ;;  %1449 = vmatpush2.msra.mxu1 %v2552_v8  ;;  %v1012_v8 = vld [vmem:[%s3409_s5 + $0x20] sm:$0xff] }
 0x495   : > { %1450 = vmatprep.subr.mxu1 %v2669_v51  ;;  %2063 = vmatprep.subr.msk.mxu0 %vm3043_vm3, %v1357_v19 }
 0x496   : > { %1451 = vmatpush2.msra.mxu1 %v2666_v50  ;;  %2064 = vmatpush1.msk.msra.mxu0 %vm2786_vm7, %v1353_v54 }
 0x497   : > { %v1344_v55 = vpop.permute.xlu0 %1343  ;;  %1452 = vmatprep.subr.mxu1 %v2643_v48  ;;  %v1336_v21 = vpop.permute.xlu1 %1335  ;;  %v1011_v48 = vld [vmem:[%s3409_s5 + $0x18] sm:$0xff] }
 0x498   : > { %v1352_v51 = vsel %vm1351_vm8, %v1336_v21, %v1344_v55  ;;  %v1356_v50 = vsel %vm1351_vm8, %v1344_v55, %v1336_v21  ;;  %1453 = vmatpush2.msra.mxu1 %v2641_v47  ;;  %v1013_v47 = vld [vmem:[%s3409_s5 + $0x28] sm:$0xff] }
 0x499   : > { %1455 = vmatmul.mubr.f32.vlgmr.msra.gmra.mxu1 %v1008_v7  ;;  %2065 = vmatprep.subr.msk.mxu0 %vm3043_vm3, %v1356_v50 }
 0x49a   : > { %2066 = vmatpush1.msk.msra.mxu0 %vm2786_vm7, %v1352_v51  ;;  %1460 = vmatprep.mubr.f32.mxu1 %v1012_v8 }
 0x49b   : > { %2067 = vmatmul.mubr.msk.f32.vlgmr.msra.gmra.mxu0 %vm3419_vm0, %v1010_v20 }
 0x49c   : > { %1537 = vmatprep.mubr.f32.mxu0 %v2182_v28 }
 0x49d   : > { %1461 = vmatmul.mubr.f32.gmra.mxu1 %v1011_v48 }
 0x49f   : > { %2068 = vmatmul.mubr.msk.f32.gmra.mxu0 %vm3419_vm0, %v1013_v47  ;;  %vm1724_vm0 = vcmask 130048  }
 0x4a4   : > { %v1377_v57 = vpop.permute.xlu0 %1376  ;;  %v1382_v56 = vpop.permute.xlu1 %1381 }
 0x559   : > { %v1456_v59 = vpop.f32.mrf.mxu1 }
 0x55a   : > { %v1457_v6 = vadd.f32 %v1456_v59, %v1377_v57  ;;  %v1549_v59 = vld [vmem:[%s3411_s7 + $0x8] sm:$0xff] }
 0x55b   : > { %v1458_v9 = vpop.f32.mrf.mxu1  ;;  %v1533_v60 = vpop.f32.mrf.mxu0  ;;  %2097 = vmatprep.mubr.msk.f32.mxu0 %vm1724_vm0, %v1549_v59 }
 0x55c   : > { %v1459_v13 = vadd.f32 %v1458_v9, %v1377_v57  ;;  %v1534_v14 = vadd.f32 %v1533_v60, %v1457_v6  ;;  %v1713_v6 = vld [vmem:[%s3412_s8 + $0x8] sm:$0xff]  ;;  %v1810_v60 = vld [vmem:[%s3414_s10] sm:$0xff] }
 0x55d   : > { %v1462_v15 = vpop.f32.mrf.mxu1  ;;  %v1535_v16 = vpop.f32.mrf.mxu0  ;;  %v1811_v9 = vld [vmem:[%s3414_s10 + $0x8] sm:$0xff] }
 0x55e   : > { %v1536_v26 = vadd.f32 %v1535_v16, %v1459_v13  ;;  %v1463_v27 = vadd.f32 %v1462_v15, %v1382_v56  ;;  %v1544_v12 = vmax.f32 %v1534_v14, 0.0 }
 0x55f   : > { %v1464_v30 = vpop.f32.mrf.mxu1  ;;  %v1539_v11 = vpop.f32.mrf.mxu0 }
 0x560   : > { %v1545_v31 = vmax.f32 %v1536_v26, 0.0  ;;  %v1465_v39 = vadd.f32 %v1464_v30, %v1382_v56  ;;  %v1540_v61 = vadd.f32 %v1539_v11, %v1463_v27  ;;  %v1712_v56 = vld [vmem:[%s3412_s8] sm:$0xff] }
 0x561   : > { %v1541_v62 = vpop.f32.mrf.mxu0 }
 0x562   : > { %v1542_v33 = vadd.f32 %v1541_v62, %v1465_v39  ;;  %v1552_v63 = vadd.f32 %v1545_v31, %v1544_v12  ;;  %v1546_v38 = vmax.f32 %v1540_v61, 0.0 }
 0x564   : > { %v1547_v17 = vmax.f32 %v1542_v33, 0.0  ;;  %1553 = vadd.xlane.f32.xlu0 %v1552_v63 }
 0x566   : > { %v1555_v1 = vadd.f32 %v1547_v17, %v1546_v38 }
 0x568   : > { %1556 = vadd.xlane.f32.xlu1 %v1555_v1 }
 0x5ed   : > { %v1554_v52 = vpop.xlane.xlu0 %1553 }
 0x5ee   : > { %v1558_v18 = vmul.f32 0.00390625, %v1554_v52 }
 0x5f0   : > { %v1560_v23 = vsub.f32 %v1544_v12, %v1558_v18  ;;  %v1561_v0 = vsub.f32 %v1545_v31, %v1558_v18 }
 0x5f1   : > { %v1557_v34 = vpop.xlane.xlu1 %1556 }
 0x5f2   : > { %v1559_v44 = vmul.f32 0.00390625, %v1557_v34  ;;  %v1564_v2 = vmul.f32 %v1560_v23, %v1560_v23  ;;  %v1565_v53 = vmul.f32 %v1561_v0, %v1561_v0 }
 0x5f4   : > { %v1562_v45 = vsub.f32 %v1546_v38, %v1559_v44  ;;  %v1563_v3 = vsub.f32 %v1547_v17, %v1559_v44  ;;  %v1568_v4 = vadd.f32 %v1565_v53, %v1564_v2 }
 0x5f6   : > { %1569 = vadd.xlane.f32.xlu1 %v1568_v4  ;;  %v1566_v46 = vmul.f32 %v1562_v45, %v1562_v45  ;;  %v1567_v49 = vmul.f32 %v1563_v3, %v1563_v3 }
 0x5f8   : > { %v1571_v58 = vadd.f32 %v1567_v49, %v1566_v46 }
 0x5fa   : > { %1572 = vadd.xlane.f32.xlu0 %v1571_v58 }
 0x67f   : > { %v1570_v54 = vpop.xlane.xlu1 %1569 }
 0x680   : > { %v1574_v19 = vmul.f32 0.00390625, %v1570_v54 }
 0x682   : > { %v1576_v7 = vadd.f32 1e-05, %v1574_v19 }
 0x683   : > { %v1573_v55 = vpop.xlane.xlu0 %1572 }
 0x684   : > { %2166 = vrsqrt.f32 %v1576_v7  ;;  %v1575_v50 = vmul.f32 0.00390625, %v1573_v55 }
 0x686   : > { %v1577_v20 = vadd.f32 1e-05, %v1575_v50 }
 0x688   : > { %2168 = vrsqrt.f32 %v1577_v20 }
 0x691   : > { %v2167_v21 = vpop.eup %2166 }
 0x692   : > { %v3149_v8 = vmul.f32 %v2167_v21, %v1560_v23  ;;  %v3151_v51 = vmul.f32 %v2167_v21, %v1561_v0 }
 0x694   : > { %1684 = vrot.lane.b32.xlu0 %v3151_v51, %s2188_s12  ;;  %1680 = vrot.lane.b32.xlu1 %v3149_v8, %s2188_s12 }
 0x695   : > { %v2169_v48 = vpop.eup %2168 }
 0x696   : > { %v3177_v47 = vmul.f32 %v2169_v48, %v1562_v45  ;;  %v3179_v57 = vmul.f32 %v2169_v48, %v1563_v3 }
 0x698   : > { %1668 = vrot.lane.b32.xlu0 %v3151_v51, %s2189_s13  ;;  %1664 = vrot.lane.b32.xlu1 %v3149_v8, %s2189_s13 }
 0x69c   : > { %1652 = vrot.lane.b32.xlu0 %v3151_v51, %s2190_s14  ;;  %1648 = vrot.lane.b32.xlu1 %v3149_v8, %s2190_s14 }
 0x6a0   : > { %1636 = vrot.lane.b32.xlu0 %v3151_v51, %s2184_s23  ;;  %1632 = vrot.lane.b32.xlu1 %v3149_v8, %s2184_s23 }
 0x6a4   : > { %1620 = vrot.lane.b32.xlu0 %v3151_v51, %s2187_s30  ;;  %1616 = vrot.lane.b32.xlu1 %v3149_v8, %s2187_s30 }
 0x6a8   : > { %1604 = vrot.lane.b32.xlu0 %v3151_v51, %s2185_s24  ;;  %1600 = vrot.lane.b32.xlu1 %v3149_v8, %s2185_s24 }
 0x6ac   : > { %1682 = vrot.lane.b32.xlu0 %v3177_v47, %s2188_s12  ;;  %1686 = vrot.lane.b32.xlu1 %v3179_v57, %s2188_s12 }
 0x6b0   : > { %1670 = vrot.lane.b32.xlu0 %v3179_v57, %s2189_s13  ;;  %1666 = vrot.lane.b32.xlu1 %v3177_v47, %s2189_s13 }
 0x6b4   : > { %1654 = vrot.lane.b32.xlu0 %v3179_v57, %s2190_s14  ;;  %1650 = vrot.lane.b32.xlu1 %v3177_v47, %s2190_s14  ;;  %s406_s14 = scalar_lea.vmem %s3415_s11, %s2285_s29 }
 0x6b8   : > { %1588 = vrot.lane.b32.xlu0 %v3151_v51, %s2186_s25  ;;  %1584 = vrot.lane.b32.xlu1 %v3149_v8, %s2186_s25 }
 0x6bc   : > { %1638 = vrot.lane.b32.xlu0 %v3179_v57, %s2184_s23  ;;  %1634 = vrot.lane.b32.xlu1 %v3177_v47, %s2184_s23 }
 0x6c0   : > { %1622 = vrot.lane.b32.xlu0 %v3179_v57, %s2187_s30  ;;  %1618 = vrot.lane.b32.xlu1 %v3177_v47, %s2187_s30 }
 0x6c4   : > { %1606 = vrot.lane.b32.xlu0 %v3179_v57, %s2185_s24  ;;  %1602 = vrot.lane.b32.xlu1 %v3177_v47, %s2185_s24 }
 0x6c8   : > { %1590 = vrot.lane.b32.xlu0 %v3179_v57, %s2186_s25  ;;  %1586 = vrot.lane.b32.xlu1 %v3177_v47, %s2186_s25 }
 0x6cc   : > { %1702 = vrot.lane.b32.xlu0 %v3179_v57, %s2191_s15  ;;  %1698 = vrot.lane.b32.xlu1 %v3177_v47, %s2191_s15 }
 0x6d0   : > { %1700 = vrot.lane.b32.xlu0 %v3151_v51, %s2191_s15  ;;  %1696 = vrot.lane.b32.xlu1 %v3149_v8, %s2191_s15 }
 0x6d4   : > { %1721 = vperm.xlu0 %2156, %v1713_v6   ;;  %1716 = vperm.xlu1 %2157, %v1712_v56  }
 0x6d8   : > { %1819 = vperm.xlu0 %2156, %v1811_v9   ;;  %1814 = vperm.xlu1 %2157, %v1810_v60  }
 0x706   : > { %v1685_v13 = vpop.permute.xlu0 %1684  ;;  %v1681_v14 = vpop.permute.xlu1 %1680 }
 0x707   : > { %v1690_v17 = vsel %vm1314_vm13, %v1685_v13, %v1681_v14  ;;  %v1688_v1 = vsel %vm1314_vm13, %v1681_v14, %v1685_v13 }
 0x70a   : > { %v1669_v15 = vpop.permute.xlu0 %1668  ;;  %v1665_v16 = vpop.permute.xlu1 %1664 }
 0x70b   : > { %v1674_v34 = vsel %vm1277_vm15, %v1669_v15, %v1665_v16  ;;  %v1672_v22 = vsel %vm1277_vm15, %v1665_v16, %v1669_v15 }
 0x70e   : > { %v1653_v26 = vpop.permute.xlu0 %1652  ;;  %v1649_v27 = vpop.permute.xlu1 %1648 }
 0x70f   : > { %v1658_v3 = vsel %vm1240_vm4, %v1653_v26, %v1649_v27  ;;  %v1656_v10 = vsel %vm1240_vm4, %v1649_v27, %v1653_v26 }
 0x712   : > { %v1637_v30 = vpop.permute.xlu0 %1636  ;;  %v1633_v11 = vpop.permute.xlu1 %1632 }
 0x713   : > { %v1640_v7 = vsel %vm659_vm2, %v1633_v11, %v1637_v30  ;;  %v1642_v55 = vsel %vm659_vm2, %v1637_v30, %v1633_v11 }
 0x716   : > { %v1621_v12 = vpop.permute.xlu0 %1620  ;;  %v1617_v31 = vpop.permute.xlu1 %1616 }
 0x717   : > { %v1624_v20 = vsel %vm1167_vm9, %v1617_v31, %v1621_v12  ;;  %v1626_v48 = vsel %vm1167_vm9, %v1621_v12, %v1617_v31  ;;  %v1551_v31 = vld [vmem:[%s3411_s7 + $0x18] sm:$0xff] }
 0x71a   : > { %v3237_v39 = vpop.permute.xlu0 %1604  ;;  %v3239_v61 = vpop.permute.xlu1 %1600 }
 0x71e   : > { %v1683_v62 = vpop.permute.xlu0 %1682  ;;  %v1687_v33 = vpop.permute.xlu1 %1686 }
 0x71f   : > { %v1689_v63 = vsel %vm1314_vm13, %v1683_v62, %v1687_v33  ;;  %v1691_v38 = vsel %vm1314_vm13, %v1687_v33, %v1683_v62  ;;  %v2173_v62 = vld [vmem:[%s2481_s28] sm:$0xff] }
 0x720   : > { %2069 = vmatprep.subr.msk.mxu0 %vm1003_vm14, %v1691_v38 }
 0x721   : > { %1732 = vmatpush1.msra.mxu0 %v1689_v63 }
 0x722   : > { %v1671_v52 = vpop.permute.xlu0 %1670  ;;  %2070 = vmatprep.subr.msk.mxu0 %vm1003_vm14, %v1690_v17  ;;  %v1667_v18 = vpop.permute.xlu1 %1666 }
 0x723   : > { %v1673_v23 = vsel %vm1277_vm15, %v1667_v18, %v1671_v52  ;;  %v1675_v0 = vsel %vm1277_vm15, %v1671_v52, %v1667_v18  ;;  %1734 = vmatpush1.msra.mxu0 %v1688_v1 }
 0x724   : > { %2071 = vmatprep.subr.msk.mxu0 %vm2991_vm1, %v1675_v0 }
 0x725   : > { %2072 = vmatpush1.msk.msra.mxu0 %vm2621_vm6, %v1673_v23 }
 0x726   : > { %v1655_v44 = vpop.permute.xlu0 %1654  ;;  %2073 = vmatprep.subr.msk.mxu0 %vm2991_vm1, %v1674_v34  ;;  %v1651_v2 = vpop.permute.xlu1 %1650 }
 0x727   : > { %v1657_v53 = vsel %vm1240_vm4, %v1651_v2, %v1655_v44  ;;  %v1659_v45 = vsel %vm1240_vm4, %v1655_v44, %v1651_v2  ;;  %2074 = vmatpush1.msk.msra.mxu0 %vm2621_vm6, %v1672_v22 }
 0x728   : > { %2075 = vmatprep.subr.msk.mxu0 %vm2804_vm10, %v1659_v45 }
 0x729   : > { %2076 = vmatpush1.msk.msra.mxu0 %vm2786_vm7, %v1657_v53 }
 0x72a   : > { %v1589_v4 = vpop.permute.xlu0 %1588  ;;  %2077 = vmatprep.subr.msk.mxu0 %vm2804_vm10, %v1658_v3  ;;  %v1585_v46 = vpop.permute.xlu1 %1584 }
 0x72b   : > { %2078 = vmatpush1.msk.msra.mxu0 %vm2786_vm7, %v1656_v10 }
 0x72c   : > { %1743 = vmatprep.subr.mxu0 %v3179_v57 }
 0x72d   : > { %1744 = vmatpush1.msra.mxu0 %v3177_v47 }
 0x72e   : > { %v1639_v49 = vpop.permute.xlu0 %1638  ;;  %1745 = vmatprep.subr.mxu0 %v3151_v51  ;;  %v1635_v58 = vpop.permute.xlu1 %1634 }
 0x72f   : > { %v1641_v54 = vsel %vm659_vm2, %v1635_v58, %v1639_v49  ;;  %v1643_v19 = vsel %vm659_vm2, %v1639_v49, %v1635_v58  ;;  %1746 = vmatpush1.msra.mxu0 %v3149_v8  ;;  %vm3436_vm2 = vcmp.lt.s32.totalorder %v2499_v5, 16 }
 0x730   : > { %2079 = vmatprep.subr.msk.mxu0 %vm2615_vm5, %v1641_v54  ;;  %vm3437_vm4 = vmmov %vm3436_vm2 }
 0x731   : > { %2080 = vmatpush1.msk.msra.mxu0 %vm2621_vm6, %v1643_v19 }
 0x732   : > { %v1623_v21 = vpop.permute.xlu0 %1622  ;;  %2081 = vmatprep.subr.msk.mxu0 %vm2615_vm5, %v1640_v7  ;;  %v1619_v51 = vpop.permute.xlu1 %1618 }
 0x733   : > { %v1625_v8 = vsel %vm1167_vm9, %v1619_v51, %v1623_v21  ;;  %v1627_v50 = vsel %vm1167_vm9, %v1623_v21, %v1619_v51  ;;  %2082 = vmatpush1.msk.msra.mxu0 %vm2621_vm6, %v1642_v55  ;;  %vm3438_vm6 = vcmp.ge.s32.totalorder %v2499_v5, 16  ;;  %vm3439_vm9 = vmmov %vm3436_vm2 }
 0x734   : > { %2083 = vmatprep.subr.msk.mxu0 %vm2804_vm10, %v1625_v8  ;;  %v1608_v24 = vsel %vm3439_vm9, %v3239_v61, %v3237_v39  ;;  %vm3443_vm14 = vmmov %vm3438_vm6 }
 0x735   : > { %2084 = vmatpush1.msk.msra.mxu0 %vm2820_vm11, %v1627_v50 }
 0x736   : > { %v1607_v47 = vpop.permute.xlu0 %1606  ;;  %2085 = vmatprep.subr.msk.mxu0 %vm2804_vm10, %v1624_v20  ;;  %v1603_v57 = vpop.permute.xlu1 %1602  ;;  %vm3440_vm10 = vmmov %vm3436_vm2 }
 0x737   : > { %v1611_v29 = vsel %vm3436_vm2, %v1607_v47, %v1603_v57  ;;  %2086 = vmatpush1.msk.msra.mxu0 %vm2820_vm11, %v1626_v48  ;;  %v1609_v59 = vsel %vm3437_vm4, %v1603_v57, %v1607_v47  ;;  %v1610_v6 = vsel %vm3440_vm10, %v3237_v39, %v3239_v61  ;;  %vm3441_vm11 = vcmp.lt.s32.totalorder %v2499_v5, 17  ;;  %v2170_v39 = vld [vmem:[%s2481_s28 + $0x18] sm:$0xff]  ;;  %v2171_v61 = vld [vmem:[%s2481_s28 + $0x10] sm:$0xff] }
 0x738   : > { %1755 = vmatprep.subr.mxu0 %v1609_v59  ;;  %vm3442_vm13 = vmmov %vm3441_vm11  ;;  %v1550_v5 = vld [vmem:[%s3411_s7 + $0x10] sm:$0xff] }
 0x739   : > { %2087 = vmatpush1.msk.msra.mxu0 %vm3438_vm6, %v1611_v29  ;;  %vm3444_vm15 = vmmov %vm3441_vm11 }
 0x73a   : > { %v1591_v56 = vpop.permute.xlu0 %1590  ;;  %1757 = vmatprep.subr.mxu0 %v1608_v24  ;;  %v1587_v41 = vpop.permute.xlu1 %1586  ;;  %v1592_v13 = vsel %vm3444_vm15, %v1585_v46, %v1589_v4  ;;  %vm3445_vm1 = vmmov %vm3441_vm11 }
 0x73b   : > { %v1593_v9 = vsel %vm3441_vm11, %v1587_v41, %v1591_v56  ;;  %v1595_v60 = vsel %vm3442_vm13, %v1591_v56, %v1587_v41  ;;  %2088 = vmatpush1.msk.msra.mxu0 %vm3443_vm14, %v1610_v6  ;;  %v1594_v14 = vsel %vm3445_vm1, %v1589_v4, %v1585_v46 }
 0x73c   : > { %2089 = vmatprep.subr.msk.mxu0 %vm2615_vm5, %v1593_v9 }
 0x73d   : > { %2090 = vmatpush1.msk.msra.mxu0 %vm2904_vm12, %v1595_v60 }
 0x73e   : > { %v1703_v15 = vpop.permute.xlu0 %1702  ;;  %2091 = vmatprep.subr.msk.mxu0 %vm2615_vm5, %v1592_v13  ;;  %v1699_v16 = vpop.permute.xlu1 %1698 }
 0x73f   : > { %v1705_v26 = vsel %vm1351_vm8, %v1699_v16, %v1703_v15  ;;  %v1707_v27 = vsel %vm1351_vm8, %v1703_v15, %v1699_v16  ;;  %2092 = vmatpush1.msk.msra.mxu0 %vm2904_vm12, %v1594_v14 }
 0x740   : > { %2093 = vmatprep.subr.msk.mxu0 %vm3043_vm3, %v1707_v27 }
 0x741   : > { %2094 = vmatpush2.msk.msra.mxu0 %vm2786_vm7, %v1705_v26 }
 0x742   : > { %v1701_v25 = vpop.permute.xlu0 %1700  ;;  %v1697_v30 = vpop.permute.xlu1 %1696 }
 0x743   : > { %v1704_v11 = vsel %vm1351_vm8, %v1697_v30, %v1701_v25  ;;  %v1706_v12 = vsel %vm1351_vm8, %v1701_v25, %v1697_v30 }
 0x744   : > { %2095 = vmatprep.subr.msk.mxu0 %vm3043_vm3, %v1706_v12 }
 0x745   : > { %2096 = vmatpush2.msk.msra.mxu0 %vm2786_vm7, %v1704_v11 }
 0x746   : > { %1796 = vmatmul.mubr.f32.vlgmr.msra.gmra.mxu0 %v1548_v37  ;;  %1852 = vmatprep.subr.mxu0 %v2170_v39 }
 0x747   : > { %1853 = vmatpush1.msra.mxu0 %v2171_v61  ;;  %2098 = vmatprep.mubr.msk.f32.mxu0 %vm1724_vm0, %v1551_v31  ;;  %vm3446_vm0 = vcmask 261120  }
 0x748   : > { %1854 = vmatprep.subr.mxu0 %v2172_v40  ;;  %vm3447_vm3 = vmmov %vm3446_vm0 }
 0x749   : > { %1855 = vmatpush1.msra.mxu0 %v2173_v62 }
 0x74a   : > { %1802 = vmatmul.mubr.f32.gmra.mxu0 %v1550_v5  ;;  %1856 = vmatprep.subr.mxu0 %v2526_v36  ;;  %v1809_v36 = vld [vmem:[%s3413_s9 + $0x8] sm:$0xff] }
 0x74b   : > { %1857 = vmatpush1.msra.mxu0 %v2524_v35  ;;  %1892 = vmatprep.mubr.f32.mxu0 %v2182_v28 }
 0x74c   : > { %1858 = vmatprep.subr.mxu0 %v2536_v43 }
 0x74d   : > { %1859 = vmatpush1.msra.mxu0 %v2534_v42 }
 0x74e   : > { %2099 = vmatmul.mubr.msk.f32.vlgmr.msra.gmra.mxu0 %vm3446_vm0, %v1808_v32 }
 0x74f   : > { %1898 = vmatprep.mubr.f32.mxu0 %v2182_v28  ;;  %v1717_v33 = vpop.permute.xlu1 %1716  ;;  %v1722_v17 = vpop.permute.xlu0 %1721 }
 0x752   : > { %2100 = vmatmul.mubr.msk.f32.gmra.mxu0 %vm3447_vm3, %v1809_v36 }
 0x753   : > { %v1815_v43 = vpop.permute.xlu1 %1814  ;;  %v1820_v22 = vpop.permute.xlu0 %1819 }
 0x806   : > { %v1797_v35 = vpop.f32.mrf.mxu0 }
 0x807   : > { %v1798_v42 = vadd.f32 %v1797_v35, %v1717_v33 }
 0x808   : > { %v1799_v63 = vpop.f32.mrf.mxu0 }
 0x809   : > { %v1800_v0 = vadd.f32 %v1799_v63, %v1717_v33 }
 0x80a   : > { %v1803_v38 = vpop.f32.mrf.mxu0 }
 0x80b   : > { %v1804_v2 = vadd.f32 %v1803_v38, %v1722_v17 }
 0x80c   : > { %v1805_v1 = vpop.f32.mrf.mxu0 }
 0x80d   : > { %v1806_v4 = vadd.f32 %v1805_v1, %v1722_v17 }
 0x80e   : > { %v1894_v52 = vpop.f32.mrf.mxu0 }
 0x80f   : > { %v1895_v18 = vadd.f32 %v1894_v52, %v1815_v43 }
 0x810   : > { %v1896_v23 = vpop.f32.mrf.mxu0 }
 0x811   : > { %v1905_v28 = vadd.f32 %v1895_v18, %v1798_v42  ;;  %v1897_v34 = vadd.f32 %v1896_v23, %v1815_v43 }
 0x812   : > { %v1900_v44 = vpop.f32.mrf.mxu0 }
 0x813   : > { %v1909_v53 = vmax.f32 %v1905_v28, 0.0  ;;  %v1906_v45 = vadd.f32 %v1897_v34, %v1800_v0  ;;  %v1901_v3 = vadd.f32 %v1900_v44, %v1820_v22 }
 0x814   : > { %v1902_v10 = vpop.f32.mrf.mxu0 }
 0x815   : > { %1913 = vst [vmem:[%s406_s14] sm:$0xff] %v1909_v53  ;;  %v1910_v46 = vmax.f32 %v1906_v45, 0.0  ;;  %v1907_v49 = vadd.f32 %v1901_v3, %v1804_v2  ;;  %v1903_v58 = vadd.f32 %v1902_v10, %v1820_v22 }
 0x817   : > { %1914 = vst [vmem:[%s406_s14 + $0x8] sm:$0xff] %v1910_v46  ;;  %v1911_v54 = vmax.f32 %v1907_v49, 0.0  ;;  %v1908_v19 = vadd.f32 %v1903_v58, %v1806_v4 }
 0x819   : > { %1915 = vst [vmem:[%s406_s14 + $0x10] sm:$0xff] %v1911_v54  ;;  %v1912_v7 = vmax.f32 %v1908_v19, 0.0 }
 0x81b   : > { %1916 = vst [vmem:[%s406_s14 + $0x18] sm:$0xff] %v1912_v7 }
 0x81c PF: > { %s21_s17 = sadd.s32 1, %s2180_s17  }
 0x81d   : > { %p18_p4 = scmp.ge.s32.totalorder %s21_s17, 4  }
 0x81f   :  { %20 = sbr.rel (!%p18_p4) target bundleno = 1 (0x1), region = 97 }

// kernel: unet_decoder_forward.3
= control target key start
LH: loop header
LB: loop body
LE: loop exit
PB: predicated region body
PF: predicated region fallthrough
CT: control target
= control target key end

     0   :  { %s4785_s17 = smov 0   ;;  %s10413_s0 = inlined_call_operand.vmem [shape: f32[2,16,256], index: 0, kind: input, shape index: {}]   ;;  %s10414_s1 = inlined_call_operand.vmem [shape: f32[2,8,1024], index: 1, kind: input, shape index: {}]   ;;  %s10415_s2 = inlined_call_operand.vmem [shape: f32[256,1024], index: 2, kind: input, shape index: {}]   ;;  %s10416_s3 = inlined_call_operand.vmem [shape: f32[32,16], index: 3, kind: input, shape index: {}]   ;;  %s10417_s4 = inlined_call_operand.vmem [shape: f32[8,1], index: 4, kind: input, shape index: {}]   ;;  %s10418_s5 = inlined_call_operand.vmem [shape: f32[8,144], index: 5, kind: input, shape index: {}]   ;;  %s10419_s6 = inlined_call_operand.vmem [shape: f32[8,1], index: 6, kind: input, shape index: {}]   ;;  %s10420_s7 = inlined_call_operand.vmem [shape: f32[8,72], index: 7, kind: input, shape index: {}]   ;;  %s10421_s8 = inlined_call_operand.vmem [shape: f32[8,1], index: 8, kind: input, shape index: {}]   ;;  %s10422_s9 = inlined_call_operand.vmem [shape: f32[8,16], index: 9, kind: input, shape index: {}]   ;;  %s10423_s10 = inlined_call_operand.vmem [shape: f32[8,1], index: 10, kind: input, shape index: {}]   ;;  %s10424_s11 = inlined_call_operand.vmem [shape: f32[2,8,1024], index: 11, kind: output, shape index: {}]  }
   0x1 LB: > { %s4214_s18 = sadd.s32 4294967295, %s4713_s17   ;;  %p4218_p0 = scmp.ge.s32.totalorder %s4713_s17, 1  ;;  %s4713_s17 = sphi %s4785_s17, %s21_s17  }
   0x2   : > { %p347_p1 = scmp.lt.s32.totalorder %s4713_s17, 3 }
   0x4   : > { %p348_p2 = pnand %p4218_p0, %p347_p1 }
   0x6   : > { %351 = sbr.rel (%p348_p2) target bundleno = 2723 (0xaa3), region = 64 }
   0xb   : > { %p392_p3 = scmp.lt.s32.totalorder %s4214_s18, 1  ;;  %v10425_v0 = vmov 0.0   ;;  %v638_v1 = vld [vmem:[%s10415_s2 + $0x3c8] sm:$0xff]  ;;  %v637_v2 = vld [vmem:[%s10415_s2 + $0x3c0] sm:$0xff]  ;;  %vm10843_vm0 = vcmask 130048   ;;  %v640_v15 = vld [vmem:[%s10415_s2 + $0x3d8] sm:$0xff] }
   0xc   : > { %492 = vmatprep.mubr.f32.mxu0 %v10425_v0  ;;  %773 = vmatprep.subr.mxu1 %v638_v1  ;;  %v630_v3 = vld [vmem:[%s10415_s2 + $0x388] sm:$0xff]  ;;  %v629_v4 = vld [vmem:[%s10415_s2 + $0x380] sm:$0xff]  ;;  %v639_v16 = vld [vmem:[%s10415_s2 + $0x3d0] sm:$0xff]  ;;  %s4717_s26 = smov 1   ;;  %s4718_s24 = smov 32  }
   0xd   : > { %s11869_s18 = smov (!%p392_p3, %s4214_s18), 1  ;;  %774 = vmatpush1.msra.mxu1 %v637_v2  ;;  %v622_v5 = vld [vmem:[%s10415_s2 + $0x348] sm:$0xff]  ;;  %v621_v6 = vld [vmem:[%s10415_s2 + $0x340] sm:$0xff]  ;;  %v632_v17 = vld [vmem:[%s10415_s2 + $0x398] sm:$0xff]  ;;  %s4719_s30 = smov 33  }
   0xe   : > { %s4393_s29 = sshll.u32 %s11869_s18, 5  ;;  %775 = vmatprep.subr.mxu1 %v630_v3  ;;  %v614_v7 = vld [vmem:[%s10415_s2 + $0x308] sm:$0xff]  ;;  %v613_v8 = vld [vmem:[%s10415_s2 + $0x300] sm:$0xff]  ;;  %v631_v19 = vld [vmem:[%s10415_s2 + $0x390] sm:$0xff]  ;;  %s4394_s12 = sshll.u32 %s11869_s18, 6 }
   0xf   : > { %s396_s15 = scalar_lea.vmem %s10413_s0, %s4393_s29  ;;  %776 = vmatpush1.msra.mxu1 %v629_v4  ;;  %v606_v13 = vld [vmem:[%s10415_s2 + $0x2c8] sm:$0xff]  ;;  %v407_v14 = vld [vmem:[%s10416_s3] sm:$0xff]  ;;  %v624_v22 = vld [vmem:[%s10415_s2 + $0x358] sm:$0xff]  ;;  %s4720_s16 = smov 96  }
  0x10   : > { %v414_v9 = vld [vmem:[%s396_s15 + $0x18] sm:$0xff]  ;;  %v413_v10 = vld [vmem:[%s396_s15 + $0x10] sm:$0xff]  ;;  %v412_v11 = vld [vmem:[%s396_s15 + $0x8] sm:$0xff]  ;;  %777 = vmatprep.subr.mxu1 %v622_v5  ;;  %s4721_s19 = smov 97   ;;  %s4722_s20 = smov 127  }
  0x11   : > { %456 = vmatprep.subr.mxu0 %v414_v9  ;;  %v411_v12 = vld [vmem:[%s396_s15] sm:$0xff]  ;;  %778 = vmatpush1.msra.mxu1 %v621_v6  ;;  %v598_v20 = vld [vmem:[%s10415_s2 + $0x288] sm:$0xff]  ;;  %v623_v23 = vld [vmem:[%s10415_s2 + $0x350] sm:$0xff]  ;;  %s8453_s15 = scalar_lea.vmem %s10414_s1, %s4394_s12  ;;  %s4723_s21 = smov 31  }
  0x12   : > { %457 = vmatpush1.msra.mxu0 %v413_v10  ;;  %779 = vmatprep.subr.mxu1 %v614_v7  ;;  %v605_v18 = vld [vmem:[%s10415_s2 + $0x2c0] sm:$0xff]  ;;  %v408_v21 = vld [vmem:[%s10416_s3 + $0x8] sm:$0xff]  ;;  %v616_v24 = vld [vmem:[%s10415_s2 + $0x318] sm:$0xff]  ;;  %s4724_s22 = smov 95   ;;  %s10400_s23 = scalar_lea.vmem %s10424_s11, %s4394_s12 }
  0x13   : > { %458 = vmatprep.subr.mxu0 %v412_v11  ;;  %780 = vmatpush1.msra.mxu1 %v613_v8  ;;  %v597_v25 = vld [vmem:[%s10415_s2 + $0x280] sm:$0xff]  ;;  %v4869_v26 = vld [vmem:[%s10415_s2 + $0x310] sm:$0xff]  ;;  %v590_v27 = vld [vmem:[%s10415_s2 + $0x248] sm:$0xff] }
  0x14   : > { %459 = vmatpush1.msra.mxu0 %v411_v12  ;;  %781 = vmatprep.subr.mxu1 %v606_v13  ;;  %v409_v28 = vld [vmem:[%s10416_s3 + $0x10] sm:$0xff]  ;;  %v4881_v29 = vld [vmem:[%s10415_s2 + $0x2d8] sm:$0xff]  ;;  %v589_v31 = vld [vmem:[%s10415_s2 + $0x240] sm:$0xff] }
  0x15   : > { %4225 = vmatmul.mubr.msk.f32.vlgmr.msra.gmra.mxu0 %vm10843_vm0, %v407_v14  ;;  %844 = vmatprep.subr.mxu0 %v640_v15  ;;  %v4886_v30 = vld [vmem:[%s10415_s2 + $0x2d0] sm:$0xff]  ;;  %v4895_v32 = vld [vmem:[%s10415_s2 + $0x298] sm:$0xff]  ;;  %v4900_v33 = vld [vmem:[%s10415_s2 + $0x208] sm:$0xff] }
  0x16   : > { %498 = vmatprep.mubr.f32.mxu0 %v10425_v0  ;;  %845 = vmatpush1.msra.mxu0 %v639_v16  ;;  %v4907_v34 = vld [vmem:[%s10415_s2 + $0x290] sm:$0xff]  ;;  %v4912_v35 = vld [vmem:[%s10415_s2 + $0x200] sm:$0xff]  ;;  %v4918_v36 = vld [vmem:[%s10415_s2 + $0x258] sm:$0xff] }
  0x17   : > { %846 = vmatprep.subr.mxu0 %v632_v17  ;;  %782 = vmatpush1.msra.mxu1 %v605_v18  ;;  %v4923_v37 = vld [vmem:[%s10415_s2 + $0x1c8] sm:$0xff]  ;;  %v4929_v38 = vld [vmem:[%s10415_s2 + $0x250] sm:$0xff]  ;;  %v4935_v39 = vld [vmem:[%s10415_s2 + $0x1c0] sm:$0xff] }
  0x18   : > { %847 = vmatpush1.msra.mxu0 %v631_v19  ;;  %783 = vmatprep.subr.mxu1 %v598_v20  ;;  %v4941_v40 = vld [vmem:[%s10415_s2 + $0x218] sm:$0xff]  ;;  %v4947_v41 = vld [vmem:[%s10415_s2 + $0x188] sm:$0xff]  ;;  %v4953_v42 = vld [vmem:[%s10415_s2 + $0x210] sm:$0xff] }
  0x19   : > { %4226 = vmatmul.mubr.msk.f32.gmra.mxu0 %vm10843_vm0, %v408_v21  ;;  %848 = vmatprep.subr.mxu0 %v624_v22  ;;  %v4959_v43 = vld [vmem:[%s10415_s2 + $0x180] sm:$0xff]  ;;  %v4965_v44 = vld [vmem:[%s10415_s2 + $0x1d8] sm:$0xff]  ;;  %v4971_v45 = vld [vmem:[%s10415_s2 + $0x148] sm:$0xff] }
  0x1a   : > { %504 = vmatprep.mubr.f32.mxu0 %v10425_v0  ;;  %849 = vmatpush1.msra.mxu0 %v623_v23  ;;  %v4977_v46 = vld [vmem:[%s10415_s2 + $0x1d0] sm:$0xff]  ;;  %v4983_v47 = vld [vmem:[%s10415_s2 + $0x140] sm:$0xff]  ;;  %v4989_v48 = vld [vmem:[%s10415_s2 + $0x198] sm:$0xff] }
  0x1b   : > { %850 = vmatprep.subr.mxu0 %v616_v24  ;;  %784 = vmatpush1.msra.mxu1 %v597_v25  ;;  %v4995_v49 = vld [vmem:[%s10415_s2 + $0x108] sm:$0xff]  ;;  %v5001_v50 = vld [vmem:[%s10415_s2 + $0x190] sm:$0xff]  ;;  %v5007_v51 = vld [vmem:[%s10415_s2 + $0x100] sm:$0xff] }
  0x1c   : > { %851 = vmatpush1.msra.mxu0 %v4869_v26  ;;  %785 = vmatprep.subr.mxu1 %v590_v27  ;;  %v5013_v52 = vld [vmem:[%s10415_s2 + $0x158] sm:$0xff]  ;;  %v5019_v53 = vld [vmem:[%s10415_s2 + $0xc8] sm:$0xff]  ;;  %v5025_v54 = vld [vmem:[%s10415_s2 + $0x150] sm:$0xff] }
  0x1d   : > { %4227 = vmatmul.mubr.msk.f32.gmra.mxu0 %vm10843_vm0, %v409_v28  ;;  %852 = vmatprep.subr.mxu0 %v4881_v29  ;;  %v5031_v55 = vld [vmem:[%s10415_s2 + $0xc0] sm:$0xff]  ;;  %v5037_v56 = vld [vmem:[%s10415_s2 + $0x118] sm:$0xff]  ;;  %v5043_v57 = vld [vmem:[%s10415_s2 + $0x88] sm:$0xff] }
  0x1e   : > { %853 = vmatpush1.msra.mxu0 %v4886_v30  ;;  %786 = vmatpush1.msra.mxu1 %v589_v31  ;;  %v5049_v58 = vld [vmem:[%s10415_s2 + $0x110] sm:$0xff]  ;;  %v5055_v59 = vld [vmem:[%s10415_s2 + $0x80] sm:$0xff]  ;;  %v5061_v60 = vld [vmem:[%s10415_s2 + $0xd8] sm:$0xff] }
  0x1f   : > { %854 = vmatprep.subr.mxu0 %v4895_v32  ;;  %787 = vmatprep.subr.mxu1 %v4900_v33  ;;  %v5067_v61 = vld [vmem:[%s10415_s2 + $0x48] sm:$0xff]  ;;  %v5073_v62 = vld [vmem:[%s10415_s2 + $0xd0] sm:$0xff]  ;;  %v5079_v63 = vld [vmem:[%s10415_s2 + $0x40] sm:$0xff] }
  0x20   : > { %855 = vmatpush1.msra.mxu0 %v4907_v34  ;;  %788 = vmatpush1.msra.mxu1 %v4912_v35  ;;  %v5085_v1 = vld [vmem:[%s10415_s2 + $0x98] sm:$0xff]  ;;  %v5091_v2 = vld [vmem:[%s10415_s2 + $0x8] sm:$0xff]  ;;  %v5097_v3 = vld [vmem:[%s10415_s2 + $0x90] sm:$0xff] }
  0x21   : > { %856 = vmatprep.subr.mxu0 %v4918_v36  ;;  %789 = vmatprep.subr.mxu1 %v4923_v37  ;;  %v5103_v4 = vld [vmem:[%s10415_s2] sm:$0xff]  ;;  %v5109_v5 = vld [vmem:[%s10415_s2 + $0x58] sm:$0xff]  ;;  %v5115_v6 = vld [vmem:[%s10415_s2 + $0x7c8] sm:$0xff] }
  0x22   : > { %857 = vmatpush1.msra.mxu0 %v4929_v38  ;;  %790 = vmatpush1.msra.mxu1 %v4935_v39  ;;  %v5121_v7 = vld [vmem:[%s10415_s2 + $0x50] sm:$0xff]  ;;  %v5127_v8 = vld [vmem:[%s10415_s2 + $0x7c0] sm:$0xff]  ;;  %v5133_v9 = vld [vmem:[%s10415_s2 + $0x18] sm:$0xff] }
  0x23   : > { %858 = vmatprep.subr.mxu0 %v4941_v40  ;;  %791 = vmatprep.subr.mxu1 %v4947_v41  ;;  %v5139_v10 = vld [vmem:[%s10415_s2 + $0x788] sm:$0xff]  ;;  %v5145_v11 = vld [vmem:[%s10415_s2 + $0x10] sm:$0xff]  ;;  %v5151_v12 = vld [vmem:[%s10415_s2 + $0x780] sm:$0xff] }
  0x24   : > { %859 = vmatpush1.msra.mxu0 %v4953_v42  ;;  %792 = vmatpush1.msra.mxu1 %v4959_v43  ;;  %v5157_v13 = vld [vmem:[%s10415_s2 + $0x7d8] sm:$0xff]  ;;  %v5163_v14 = vld [vmem:[%s10415_s2 + $0x748] sm:$0xff]  ;;  %v5169_v15 = vld [vmem:[%s10415_s2 + $0x7d0] sm:$0xff] }
  0x25   : > { %860 = vmatprep.subr.mxu0 %v4965_v44  ;;  %793 = vmatprep.subr.mxu1 %v4971_v45  ;;  %v5175_v16 = vld [vmem:[%s10415_s2 + $0x740] sm:$0xff]  ;;  %v5181_v17 = vld [vmem:[%s10415_s2 + $0x798] sm:$0xff]  ;;  %v5187_v18 = vld [vmem:[%s10415_s2 + $0x708] sm:$0xff] }
  0x26   : > { %861 = vmatpush1.msra.mxu0 %v4977_v46  ;;  %794 = vmatpush1.msra.mxu1 %v4983_v47  ;;  %10868 = vst [vmem:[#allocation2_spill] sm:$0xff] %v5187_v18  ;;  %v5193_v19 = vld [vmem:[%s10415_s2 + $0x790] sm:$0xff]  ;;  %v5199_v20 = vld [vmem:[%s10415_s2 + $0x700] sm:$0xff]  ;;  %v5205_v21 = vld [vmem:[%s10415_s2 + $0x758] sm:$0xff] }
  0x27   : > { %862 = vmatprep.subr.mxu0 %v4989_v48  ;;  %795 = vmatprep.subr.mxu1 %v4995_v49  ;;  %10869 = vst [vmem:[#allocation3_spill] sm:$0xff] %v5199_v20  ;;  %v5211_v22 = vld [vmem:[%s10415_s2 + $0x6c8] sm:$0xff]  ;;  %v5217_v23 = vld [vmem:[%s10415_s2 + $0x750] sm:$0xff]  ;;  %v5223_v24 = vld [vmem:[%s10415_s2 + $0x6c0] sm:$0xff] }
  0x28   : > { %863 = vmatpush1.msra.mxu0 %v5001_v50  ;;  %796 = vmatpush1.msra.mxu1 %v5007_v51  ;;  %10870 = vst [vmem:[#allocation4_spill] sm:$0xff] %v5211_v22  ;;  %10871 = vst [vmem:[#allocation5_spill] sm:$0xff] %v5217_v23  ;;  %v5229_v25 = vld [vmem:[%s10415_s2 + $0x718] sm:$0xff]  ;;  %v5235_v27 = vld [vmem:[%s10415_s2 + $0x688] sm:$0xff] }
  0x29   : > { %864 = vmatprep.subr.mxu0 %v5013_v52  ;;  %797 = vmatprep.subr.mxu1 %v5019_v53  ;;  %10872 = vst [vmem:[#allocation6_spill] sm:$0xff] %v5223_v24  ;;  %10873 = vst [vmem:[#allocation7_spill] sm:$0xff] %v5229_v25  ;;  %v5241_v28 = vld [vmem:[%s10415_s2 + $0x710] sm:$0xff]  ;;  %v5247_v31 = vld [vmem:[%s10415_s2 + $0x680] sm:$0xff] }
  0x2a   : > { %865 = vmatpush1.msra.mxu0 %v5025_v54  ;;  %798 = vmatpush1.msra.mxu1 %v5031_v55  ;;  %10874 = vst [vmem:[#allocation8_spill] sm:$0xff] %v5235_v27  ;;  %10875 = vst [vmem:[#allocation9_spill] sm:$0xff] %v5241_v28  ;;  %v5253_v0 = vld [vmem:[%s10415_s2 + $0x6d8] sm:$0xff] }
  0x2b   : > { %866 = vmatprep.subr.mxu0 %v5037_v56  ;;  %799 = vmatprep.subr.mxu1 %v5043_v57  ;;  %10876 = vst [vmem:[#allocation10_spill] sm:$0xff] %v5247_v31  ;;  %10877 = vst [vmem:[#allocation11_spill] sm:$0xff] %v5253_v0 }
  0x2c   : > { %867 = vmatpush1.msra.mxu0 %v5049_v58  ;;  %800 = vmatpush1.msra.mxu1 %v5055_v59 }
  0x2d   : > { %868 = vmatprep.subr.mxu0 %v5061_v60  ;;  %801 = vmatprep.subr.mxu1 %v5067_v61 }
  0x2e   : > { %869 = vmatpush1.msra.mxu0 %v5073_v62  ;;  %802 = vmatpush1.msra.mxu1 %v5079_v63 }
  0x2f   : > { %870 = vmatprep.subr.mxu0 %v5085_v1  ;;  %803 = vmatprep.subr.mxu1 %v5091_v2 }
  0x30   : > { %871 = vmatpush1.msra.mxu0 %v5097_v3  ;;  %804 = vmatpush1.msra.mxu1 %v5103_v4 }
  0x31   : > { %872 = vmatprep.subr.mxu0 %v5109_v5  ;;  %805 = vmatprep.subr.mxu1 %v5115_v6 }
  0x32   : > { %873 = vmatpush1.msra.mxu0 %v5121_v7  ;;  %806 = vmatpush2.msra.mxu1 %v5127_v8 }
  0x33   : > { %874 = vmatprep.subr.mxu0 %v5133_v9  ;;  %807 = vmatprep.subr.mxu1 %v5139_v10 }
  0x34   : > { %875 = vmatpush1.msra.mxu0 %v5145_v11  ;;  %808 = vmatpush2.msra.mxu1 %v5151_v12 }
  0x35   : > { %876 = vmatprep.subr.mxu0 %v5157_v13  ;;  %809 = vmatprep.subr.mxu1 %v5163_v14 }
  0x36   : > { %877 = vmatpush2.msra.mxu0 %v5169_v15  ;;  %810 = vmatpush2.msra.mxu1 %v5175_v16 }
  0x37   : > { %878 = vmatprep.subr.mxu0 %v5181_v17  ;;  %811 = vmatprep.subr.mxu1 %v5187_v18  ;;  %v5271_v18 = vld [vmem:[%s10415_s2 + $0x640] sm:$0xff] }
  0x38   : > { %879 = vmatpush2.msra.mxu0 %v5193_v19  ;;  %812 = vmatpush2.msra.mxu1 %v5199_v20  ;;  %v5259_v20 = vld [vmem:[%s10415_s2 + $0x648] sm:$0xff]  ;;  %10880 = vst [vmem:[#allocation14_spill] sm:$0xff] %v5271_v18 }
  0x39   : > { %880 = vmatprep.subr.mxu0 %v5205_v21  ;;  %813 = vmatprep.subr.mxu1 %v5211_v22  ;;  %10878 = vst [vmem:[#allocation12_spill] sm:$0xff] %v5259_v20  ;;  %v5265_v22 = vld [vmem:[%s10415_s2 + $0x6d0] sm:$0xff] }
  0x3a   : > { %881 = vmatpush2.msra.mxu0 %v5217_v23  ;;  %814 = vmatpush2.msra.mxu1 %v5223_v24  ;;  %10879 = vst [vmem:[#allocation13_spill] sm:$0xff] %v5265_v22  ;;  %v5277_v24 = vld [vmem:[%s10415_s2 + $0x698] sm:$0xff]  ;;  %v5603_v23 = vld [vmem:[%s10415_s2 + $0x328] sm:$0xff] }
  0x3b   : > { %882 = vmatprep.subr.mxu0 %v5229_v25  ;;  %815 = vmatprep.subr.mxu1 %v5235_v27  ;;  %10881 = vst [vmem:[#allocation15_spill] sm:$0xff] %v5277_v24  ;;  %v5283_v25 = vld [vmem:[%s10415_s2 + $0x608] sm:$0xff]  ;;  %v5289_v27 = vld [vmem:[%s10415_s2 + $0x690] sm:$0xff]  ;;  %10935 = vst [vmem:[#allocation68_spill] sm:$0xff] %v5603_v23 }
  0x3c   : > { %883 = vmatpush2.msra.mxu0 %v5241_v28  ;;  %816 = vmatpush2.msra.mxu1 %v5247_v31  ;;  %10882 = vst [vmem:[#allocation16_spill] sm:$0xff] %v5283_v25  ;;  %10883 = vst [vmem:[#allocation17_spill] sm:$0xff] %v5289_v27  ;;  %v5295_v28 = vld [vmem:[%s10415_s2 + $0x600] sm:$0xff]  ;;  %v5301_v31 = vld [vmem:[%s10415_s2 + $0x658] sm:$0xff] }
  0x3d   : > { %884 = vmatprep.subr.mxu0 %v5253_v0  ;;  %817 = vmatprep.subr.mxu1 %v5259_v20  ;;  %10884 = vst [vmem:[#allocation18_spill] sm:$0xff] %v5295_v28  ;;  %10885 = vst [vmem:[#allocation19_spill] sm:$0xff] %v5301_v31  ;;  %v5307_v0 = vld [vmem:[%s10415_s2 + $0x5c8] sm:$0xff]  ;;  %v5313_v20 = vld [vmem:[%s10415_s2 + $0x650] sm:$0xff] }
  0x3e   : > { %885 = vmatpush2.msra.mxu0 %v5265_v22  ;;  %818 = vmatpush2.msra.mxu1 %v5271_v18  ;;  %10886 = vst [vmem:[#allocation20_spill] sm:$0xff] %v5307_v0  ;;  %10887 = vst [vmem:[#allocation21_spill] sm:$0xff] %v5313_v20  ;;  %v5319_v22 = vld [vmem:[%s10415_s2 + $0x5c0] sm:$0xff]  ;;  %v5325_v18 = vld [vmem:[%s10415_s2 + $0x618] sm:$0xff] }
  0x3f   : > { %886 = vmatprep.subr.mxu0 %v5277_v24  ;;  %819 = vmatprep.subr.mxu1 %v5283_v25  ;;  %10888 = vst [vmem:[#allocation22_spill] sm:$0xff] %v5319_v22  ;;  %10889 = vst [vmem:[#allocation23_spill] sm:$0xff] %v5325_v18  ;;  %v5331_v24 = vld [vmem:[%s10415_s2 + $0x588] sm:$0xff]  ;;  %v5337_v25 = vld [vmem:[%s10415_s2 + $0x610] sm:$0xff] }
  0x40   : > { %887 = vmatpush2.msra.mxu0 %v5289_v27  ;;  %820 = vmatpush2.msra.mxu1 %v5295_v28  ;;  %10890 = vst [vmem:[#allocation24_spill] sm:$0xff] %v5331_v24  ;;  %10891 = vst [vmem:[#allocation25_spill] sm:$0xff] %v5337_v25  ;;  %v5343_v27 = vld [vmem:[%s10415_s2 + $0x580] sm:$0xff]  ;;  %v5349_v28 = vld [vmem:[%s10415_s2 + $0x5d8] sm:$0xff] }
  0x41   : > { %888 = vmatprep.subr.mxu0 %v5301_v31  ;;  %821 = vmatprep.subr.mxu1 %v5307_v0  ;;  %10892 = vst [vmem:[#allocation26_spill] sm:$0xff] %v5343_v27  ;;  %10893 = vst [vmem:[#allocation27_spill] sm:$0xff] %v5349_v28  ;;  %v5355_v31 = vld [vmem:[%s10415_s2 + $0x548] sm:$0xff]  ;;  %v5361_v0 = vld [vmem:[%s10415_s2 + $0x5d0] sm:$0xff] }
  0x42   : > { %889 = vmatpush2.msra.mxu0 %v5313_v20  ;;  %822 = vmatpush2.msra.mxu1 %v5319_v22  ;;  %10894 = vst [vmem:[#allocation28_spill] sm:$0xff] %v5355_v31  ;;  %10895 = vst [vmem:[#allocation29_spill] sm:$0xff] %v5361_v0  ;;  %v5367_v20 = vld [vmem:[%s10415_s2 + $0x540] sm:$0xff]  ;;  %v5373_v22 = vld [vmem:[%s10415_s2 + $0x598] sm:$0xff] }
  0x43   : > { %890 = vmatprep.subr.mxu0 %v5325_v18  ;;  %823 = vmatprep.subr.mxu1 %v5331_v24  ;;  %10896 = vst [vmem:[#allocation30_spill] sm:$0xff] %v5367_v20  ;;  %10897 = vst [vmem:[#allocation31_spill] sm:$0xff] %v5373_v22  ;;  %v5379_v18 = vld [vmem:[%s10415_s2 + $0x508] sm:$0xff]  ;;  %v5385_v24 = vld [vmem:[%s10415_s2 + $0x590] sm:$0xff] }
  0x44   : > { %891 = vmatpush2.msra.mxu0 %v5337_v25  ;;  %824 = vmatpush2.msra.mxu1 %v5343_v27  ;;  %10898 = vst [vmem:[#allocation32_spill] sm:$0xff] %v5379_v18  ;;  %10899 = vst [vmem:[#allocation33_spill] sm:$0xff] %v5385_v24  ;;  %v5391_v25 = vld [vmem:[%s10415_s2 + $0x500] sm:$0xff]  ;;  %v5397_v27 = vld [vmem:[%s10415_s2 + $0x558] sm:$0xff] }
  0x45   : > { %892 = vmatprep.subr.mxu0 %v5349_v28  ;;  %825 = vmatprep.subr.mxu1 %v5355_v31  ;;  %10900 = vst [vmem:[#allocation34_spill] sm:$0xff] %v5391_v25  ;;  %10901 = vst [vmem:[#allocation35_spill] sm:$0xff] %v5397_v27  ;;  %v5403_v28 = vld [vmem:[%s10415_s2 + $0x4c8] sm:$0xff]  ;;  %v5409_v31 = vld [vmem:[%s10415_s2 + $0x550] sm:$0xff] }
  0x46   : > { %893 = vmatpush2.msra.mxu0 %v5361_v0  ;;  %826 = vmatpush2.msra.mxu1 %v5367_v20  ;;  %10902 = vst [vmem:[#allocation36_spill] sm:$0xff] %v5403_v28  ;;  %10903 = vst [vmem:[#allocation37_spill] sm:$0xff] %v5409_v31  ;;  %v5416_v20 = vld [vmem:[%s10415_s2 + $0x518] sm:$0xff]  ;;  %v5580_v0 = vld [vmem:[%s10415_s2 + $0x368] sm:$0xff] }
  0x47   : > { %894 = vmatprep.subr.mxu0 %v5373_v22  ;;  %827 = vmatprep.subr.mxu1 %v5379_v18  ;;  %10904 = vst [vmem:[#allocation38_spill] sm:$0xff] %v5416_v20  ;;  %v5423_v22 = vld [vmem:[%s10415_s2 + $0x510] sm:$0xff]  ;;  %v5430_v18 = vld [vmem:[%s10415_s2 + $0x4d8] sm:$0xff]  ;;  %10931 = vst [vmem:[#allocation64_spill] sm:$0xff] %v5580_v0 }
  0x48   : > { %895 = vmatpush2.msra.mxu0 %v5385_v24  ;;  %828 = vmatpush2.msra.mxu1 %v5391_v25  ;;  %10905 = vst [vmem:[#allocation39_spill] sm:$0xff] %v5423_v22  ;;  %10906 = vst [vmem:[#allocation40_spill] sm:$0xff] %v5430_v18  ;;  %v10907_v24 = vmov 0.0   ;;  %v5439_v25 = vld [vmem:[%s10415_s2 + $0x4c0] sm:$0xff] }
  0x49   : > { %896 = vmatprep.subr.mxu0 %v5397_v27  ;;  %829 = vmatprep.subr.mxu1 %v5403_v28  ;;  %10908 = vst [vmem:[#allocation41_spill] sm:$0xff] %v5439_v25  ;;  %v5444_v28 = vld [vmem:[%s10415_s2 + $0x4d0] sm:$0xff]  ;;  %v5545_v27 = vld [vmem:[%s10415_s2 + $0x3e0] sm:$0xff] }
  0x4a   : > { %897 = vmatpush2.msra.mxu0 %v5409_v31  ;;  %510 = vmatprep.mubr.f32.mxu0 %v10907_v24  ;;  %10909 = vst [vmem:[#allocation42_spill] sm:$0xff] %v5444_v28  ;;  %v5451_v24 = vld [vmem:[%s10415_s2 + $0x488] sm:$0xff]  ;;  %10926 = vst [vmem:[#allocation59_spill] sm:$0xff] %v5545_v27 }
  0x4b   : > { %898 = vmatprep.subr.mxu0 %v5416_v20  ;;  %830 = vmatpush2.msra.mxu1 %v5439_v25  ;;  %10910 = vst [vmem:[#allocation43_spill] sm:$0xff] %v5451_v24  ;;  %v5463_v25 = vld [vmem:[%s10415_s2 + $0x480] sm:$0xff] }
  0x4c   : > { %899 = vmatpush2.msra.mxu0 %v5423_v22  ;;  %831 = vmatprep.subr.mxu1 %v5451_v24  ;;  %10912 = vst [vmem:[#allocation45_spill] sm:$0xff] %v5463_v25  ;;  %v5475_v24 = vld [vmem:[%s10415_s2 + $0x448] sm:$0xff]  ;;  %v5495_v22 = vld [vmem:[%s10415_s2 + $0x450] sm:$0xff] }
  0x4d   : > { %900 = vmatprep.subr.mxu0 %v5430_v18  ;;  %v5456_v18 = vld [vmem:[%s10415_s2 + $0x498] sm:$0xff]  ;;  %832 = vmatpush2.msra.mxu1 %v5463_v25  ;;  %10914 = vst [vmem:[#allocation47_spill] sm:$0xff] %v5475_v24  ;;  %10917 = vst [vmem:[#allocation50_spill] sm:$0xff] %v5495_v22 }
  0x4e   : > { %901 = vmatpush2.msra.mxu0 %v5444_v28  ;;  %10911 = vst [vmem:[#allocation44_spill] sm:$0xff] %v5456_v18  ;;  %v5468_v28 = vld [vmem:[%s10415_s2 + $0x490] sm:$0xff]  ;;  %833 = vmatprep.subr.mxu1 %v5475_v24  ;;  %v410_v25 = vld [vmem:[%s10416_s3 + $0x18] sm:$0xff] }
  0x4f   : > { %902 = vmatprep.subr.mxu0 %v5456_v18  ;;  %10913 = vst [vmem:[#allocation46_spill] sm:$0xff] %v5468_v28  ;;  %v5480_v18 = vld [vmem:[%s10415_s2 + $0x458] sm:$0xff]  ;;  %4228 = vmatmul.mubr.msk.f32.gmra.mxu0 %vm10843_vm0, %v410_v25  ;;  %v5514_v25 = vld [vmem:[%s10415_s2 + $0x400] sm:$0xff] }
  0x50   : > { %903 = vmatpush2.msra.mxu0 %v5468_v28  ;;  %10915 = vst [vmem:[#allocation48_spill] sm:$0xff] %v5480_v18  ;;  %v5490_v28 = vld [vmem:[%s10415_s2 + $0x440] sm:$0xff]  ;;  %v5507_v24 = vld [vmem:[%s10415_s2 + $0x418] sm:$0xff]  ;;  %10920 = vst [vmem:[#allocation53_spill] sm:$0xff] %v5514_v25 }
  0x51   : > { %904 = vmatprep.subr.mxu0 %v5480_v18  ;;  %10916 = vst [vmem:[#allocation49_spill] sm:$0xff] %v5490_v28  ;;  %834 = vmatpush2.msra.mxu1 %v5490_v28  ;;  %v5502_v18 = vld [vmem:[%s10415_s2 + $0x408] sm:$0xff]  ;;  %10919 = vst [vmem:[#allocation52_spill] sm:$0xff] %v5507_v24  ;;  %v5519_v28 = vld [vmem:[%s10415_s2 + $0x410] sm:$0xff] }
  0x52   : > { %10918 = vst [vmem:[#allocation51_spill] sm:$0xff] %v5502_v18  ;;  %905 = vmatpush2.msra.mxu0 %v5495_v22  ;;  %835 = vmatprep.subr.mxu1 %v5502_v18  ;;  %10921 = vst [vmem:[#allocation54_spill] sm:$0xff] %v5519_v28  ;;  %v5526_v22 = vld [vmem:[%s10415_s2 + $0x3e8] sm:$0xff]  ;;  %v5531_v18 = vld [vmem:[%s10415_s2 + $0x3f8] sm:$0xff] }
  0x53   : > { %906 = vmatprep.subr.mxu0 %v5507_v24  ;;  %836 = vmatpush2.msra.mxu1 %v5514_v25  ;;  %10922 = vst [vmem:[#allocation55_spill] sm:$0xff] %v5526_v22  ;;  %10923 = vst [vmem:[#allocation56_spill] sm:$0xff] %v5531_v18 }
  0x54   : > { %907 = vmatpush2.msra.mxu0 %v5519_v28  ;;  %915 = vmatprep.subr.mxu1 %v5526_v22  ;;  %v5550_v28 = vld [vmem:[%s10415_s2 + $0x3f0] sm:$0xff] }
  0x55   : > { %986 = vmatprep.subr.mxu0 %v5531_v18  ;;  %10927 = vst [vmem:[#allocation60_spill] sm:$0xff] %v5550_v28  ;;  %v5569_v18 = vld [vmem:[%s10415_s2 + $0x3a0] sm:$0xff]  ;;  %v5574_v22 = vld [vmem:[%s10415_s2 + $0x3b0] sm:$0xff] }
  0x56   : > { %10929 = vst [vmem:[#allocation62_spill] sm:$0xff] %v5569_v18  ;;  %10930 = vst [vmem:[#allocation63_spill] sm:$0xff] %v5574_v22 }
  0xd5   : > { %v5536_v20 = vpop.f32.mrf.mxu0 }
  0xd6   : > { %10924 = vst [vmem:[#allocation57_spill] sm:$0xff] %v5536_v20  ;;  %v5555_v20 = vld [vmem:[%s10415_s2 + $0x3a8] sm:$0xff] }
  0xd7   : > { %v5538_v24 = vpop.f32.mrf.mxu0  ;;  %10928 = vst [vmem:[#allocation61_spill] sm:$0xff] %v5555_v20 }
  0xd8   : > { %10925 = vst [vmem:[#allocation58_spill] sm:$0xff] %v5538_v24  ;;  %v5562_v24 = vld [vmem:[%s10415_s2 + $0x3b8] sm:$0xff] }
  0xd9   : > { %v5540_v25 = vpop.f32.mrf.mxu0 }
  0xdb   : > { %v502_v31 = vpop.f32.mrf.mxu0 }
  0xdc   : > { %837 = vmatprep.mubr.f32.mxu1 %v502_v31  ;;  %908 = vmatprep.mubr.f32.mxu0 %v502_v31 }
  0xdd   : > { %838 = vmatmul.mubr.f32.vlgmr.msra.gmra.mxu1 %v5540_v25  ;;  %909 = vmatmul.mubr.f32.vlgmr.msra.gmra.mxu0 %v5540_v25 }
  0xde   : > { %916 = vmatpush1.msra.mxu1 %v5545_v27  ;;  %987 = vmatpush1.msra.mxu0 %v5550_v28  ;;  %v5585_v28 = vld [vmem:[%s10415_s2 + $0x378] sm:$0xff]  ;;  %v5591_v27 = vld [vmem:[%s10415_s2 + $0x360] sm:$0xff] }
  0xdf   : > { %917 = vmatprep.subr.mxu1 %v5555_v20  ;;  %979 = vmatprep.mubr.f32.mxu1 %v502_v31  ;;  %10932 = vst [vmem:[#allocation65_spill] sm:$0xff] %v5585_v28  ;;  %10933 = vst [vmem:[#allocation66_spill] sm:$0xff] %v5591_v27  ;;  %v5596_v20 = vld [vmem:[%s10415_s2 + $0x370] sm:$0xff] }
  0xe0   : > { %988 = vmatprep.subr.mxu0 %v5562_v24  ;;  %1050 = vmatprep.mubr.f32.mxu0 %v502_v31  ;;  %10934 = vst [vmem:[#allocation67_spill] sm:$0xff] %v5596_v20  ;;  %v5608_v31 = vld [vmem:[%s10415_s2 + $0x338] sm:$0xff] }
  0xe1   : > { %918 = vmatpush1.msra.mxu1 %v5569_v18  ;;  %989 = vmatpush1.msra.mxu0 %v5574_v22  ;;  %10936 = vst [vmem:[#allocation69_spill] sm:$0xff] %v5608_v31  ;;  %v5615_v18 = vld [vmem:[%s10415_s2 + $0x320] sm:$0xff]  ;;  %v5620_v22 = vld [vmem:[%s10415_s2 + $0x330] sm:$0xff] }
  0xe2   : > { %919 = vmatprep.subr.mxu1 %v5580_v0  ;;  %990 = vmatprep.subr.mxu0 %v5585_v28  ;;  %10937 = vst [vmem:[#allocation70_spill] sm:$0xff] %v5615_v18  ;;  %10938 = vst [vmem:[#allocation71_spill] sm:$0xff] %v5620_v22  ;;  %v5627_v0 = vld [vmem:[%s10415_s2 + $0x2e8] sm:$0xff]  ;;  %v5632_v28 = vld [vmem:[%s10415_s2 + $0x2f8] sm:$0xff] }
  0xe3   : > { %920 = vmatpush1.msra.mxu1 %v5591_v27  ;;  %991 = vmatpush1.msra.mxu0 %v5596_v20  ;;  %10939 = vst [vmem:[#allocation72_spill] sm:$0xff] %v5627_v0  ;;  %10940 = vst [vmem:[#allocation73_spill] sm:$0xff] %v5632_v28  ;;  %v5639_v27 = vld [vmem:[%s10415_s2 + $0x2e0] sm:$0xff]  ;;  %v5644_v20 = vld [vmem:[%s10415_s2 + $0x2f0] sm:$0xff] }
  0xe4   : > { %921 = vmatprep.subr.mxu1 %v5603_v23  ;;  %992 = vmatprep.subr.mxu0 %v5608_v31  ;;  %10941 = vst [vmem:[#allocation74_spill] sm:$0xff] %v5639_v27  ;;  %10942 = vst [vmem:[#allocation75_spill] sm:$0xff] %v5644_v20  ;;  %v5651_v23 = vld [vmem:[%s10415_s2 + $0x2a8] sm:$0xff]  ;;  %v5656_v31 = vld [vmem:[%s10415_s2 + $0x2b8] sm:$0xff] }
  0xe5   : > { %922 = vmatpush1.msra.mxu1 %v5615_v18  ;;  %993 = vmatpush1.msra.mxu0 %v5620_v22  ;;  %10943 = vst [vmem:[#allocation76_spill] sm:$0xff] %v5651_v23  ;;  %10944 = vst [vmem:[#allocation77_spill] sm:$0xff] %v5656_v31  ;;  %v5663_v18 = vld [vmem:[%s10415_s2 + $0x2a0] sm:$0xff]  ;;  %v5668_v22 = vld [vmem:[%s10415_s2 + $0x2b0] sm:$0xff] }
  0xe6   : > { %923 = vmatprep.subr.mxu1 %v5627_v0  ;;  %994 = vmatprep.subr.mxu0 %v5632_v28  ;;  %10945 = vst [vmem:[#allocation78_spill] sm:$0xff] %v5663_v18  ;;  %10946 = vst [vmem:[#allocation79_spill] sm:$0xff] %v5668_v22  ;;  %v5675_v0 = vld [vmem:[%s10415_s2 + $0x268] sm:$0xff]  ;;  %v5680_v28 = vld [vmem:[%s10415_s2 + $0x278] sm:$0xff] }
  0xe7   : > { %924 = vmatpush1.msra.mxu1 %v5639_v27  ;;  %995 = vmatpush1.msra.mxu0 %v5644_v20  ;;  %10947 = vst [vmem:[#allocation80_spill] sm:$0xff] %v5675_v0  ;;  %10948 = vst [vmem:[#allocation81_spill] sm:$0xff] %v5680_v28  ;;  %v5687_v27 = vld [vmem:[%s10415_s2 + $0x260] sm:$0xff]  ;;  %v5692_v20 = vld [vmem:[%s10415_s2 + $0x270] sm:$0xff] }
  0xe8   : > { %925 = vmatprep.subr.mxu1 %v5651_v23  ;;  %996 = vmatprep.subr.mxu0 %v5656_v31  ;;  %10949 = vst [vmem:[#allocation82_spill] sm:$0xff] %v5687_v27  ;;  %10950 = vst [vmem:[#allocation83_spill] sm:$0xff] %v5692_v20  ;;  %v5699_v23 = vld [vmem:[%s10415_s2 + $0x228] sm:$0xff]  ;;  %v5704_v31 = vld [vmem:[%s10415_s2 + $0x238] sm:$0xff] }
  0xe9   : > { %926 = vmatpush1.msra.mxu1 %v5663_v18  ;;  %997 = vmatpush1.msra.mxu0 %v5668_v22  ;;  %10951 = vst [vmem:[#allocation84_spill] sm:$0xff] %v5699_v23  ;;  %10952 = vst [vmem:[#allocation85_spill] sm:$0xff] %v5704_v31  ;;  %v5711_v18 = vld [vmem:[%s10415_s2 + $0x220] sm:$0xff]  ;;  %v5716_v22 = vld [vmem:[%s10415_s2 + $0x230] sm:$0xff] }
  0xea   : > { %927 = vmatprep.subr.mxu1 %v5675_v0  ;;  %998 = vmatprep.subr.mxu0 %v5680_v28  ;;  %10953 = vst [vmem:[#allocation86_spill] sm:$0xff] %v5711_v18  ;;  %10954 = vst [vmem:[#allocation87_spill] sm:$0xff] %v5716_v22  ;;  %v5723_v0 = vld [vmem:[%s10415_s2 + $0x1e8] sm:$0xff]  ;;  %v5728_v28 = vld [vmem:[%s10415_s2 + $0x1f8] sm:$0xff] }
  0xeb   : > { %928 = vmatpush1.msra.mxu1 %v5687_v27  ;;  %999 = vmatpush1.msra.mxu0 %v5692_v20  ;;  %10955 = vst [vmem:[#allocation88_spill] sm:$0xff] %v5723_v0  ;;  %10956 = vst [vmem:[#allocation89_spill] sm:$0xff] %v5728_v28  ;;  %v5735_v27 = vld [vmem:[%s10415_s2 + $0x1e0] sm:$0xff]  ;;  %v5740_v20 = vld [vmem:[%s10415_s2 + $0x1f0] sm:$0xff] }
  0xec   : > { %929 = vmatprep.subr.mxu1 %v5699_v23  ;;  %1000 = vmatprep.subr.mxu0 %v5704_v31  ;;  %10957 = vst [vmem:[#allocation90_spill] sm:$0xff] %v5735_v27  ;;  %10958 = vst [vmem:[#allocation91_spill] sm:$0xff] %v5740_v20  ;;  %v5747_v23 = vld [vmem:[%s10415_s2 + $0x1a8] sm:$0xff]  ;;  %v5752_v31 = vld [vmem:[%s10415_s2 + $0x1b8] sm:$0xff] }
  0xed   : > { %930 = vmatpush1.msra.mxu1 %v5711_v18  ;;  %1001 = vmatpush1.msra.mxu0 %v5716_v22  ;;  %10959 = vst [vmem:[#allocation92_spill] sm:$0xff] %v5747_v23  ;;  %10960 = vst [vmem:[#allocation93_spill] sm:$0xff] %v5752_v31  ;;  %v5759_v18 = vld [vmem:[%s10415_s2 + $0x1a0] sm:$0xff]  ;;  %v5764_v22 = vld [vmem:[%s10415_s2 + $0x1b0] sm:$0xff] }
  0xee   : > { %931 = vmatprep.subr.mxu1 %v5723_v0  ;;  %1002 = vmatprep.subr.mxu0 %v5728_v28  ;;  %10961 = vst [vmem:[#allocation94_spill] sm:$0xff] %v5759_v18  ;;  %10962 = vst [vmem:[#allocation95_spill] sm:$0xff] %v5764_v22  ;;  %v5771_v0 = vld [vmem:[%s10415_s2 + $0x168] sm:$0xff]  ;;  %v5776_v28 = vld [vmem:[%s10415_s2 + $0x178] sm:$0xff] }
  0xef   : > { %932 = vmatpush1.msra.mxu1 %v5735_v27  ;;  %1003 = vmatpush1.msra.mxu0 %v5740_v20  ;;  %10963 = vst [vmem:[#allocation96_spill] sm:$0xff] %v5771_v0  ;;  %10964 = vst [vmem:[#allocation97_spill] sm:$0xff] %v5776_v28  ;;  %v5783_v27 = vld [vmem:[%s10415_s2 + $0x160] sm:$0xff]  ;;  %v5788_v20 = vld [vmem:[%s10415_s2 + $0x170] sm:$0xff] }
  0xf0   : > { %933 = vmatprep.subr.mxu1 %v5747_v23  ;;  %1004 = vmatprep.subr.mxu0 %v5752_v31  ;;  %10965 = vst [vmem:[#allocation98_spill] sm:$0xff] %v5783_v27  ;;  %10966 = vst [vmem:[#allocation99_spill] sm:$0xff] %v5788_v20  ;;  %v5795_v23 = vld [vmem:[%s10415_s2 + $0x128] sm:$0xff]  ;;  %v5800_v31 = vld [vmem:[%s10415_s2 + $0x138] sm:$0xff] }
  0xf1   : > { %934 = vmatpush1.msra.mxu1 %v5759_v18  ;;  %1005 = vmatpush1.msra.mxu0 %v5764_v22  ;;  %10967 = vst [vmem:[#allocation100_spill] sm:$0xff] %v5795_v23  ;;  %10968 = vst [vmem:[#allocation101_spill] sm:$0xff] %v5800_v31  ;;  %v5807_v18 = vld [vmem:[%s10415_s2 + $0x120] sm:$0xff]  ;;  %v5812_v22 = vld [vmem:[%s10415_s2 + $0x130] sm:$0xff] }
  0xf2   : > { %935 = vmatprep.subr.mxu1 %v5771_v0  ;;  %1006 = vmatprep.subr.mxu0 %v5776_v28  ;;  %10969 = vst [vmem:[#allocation102_spill] sm:$0xff] %v5807_v18  ;;  %10970 = vst [vmem:[#allocation103_spill] sm:$0xff] %v5812_v22  ;;  %v5819_v0 = vld [vmem:[%s10415_s2 + $0xe8] sm:$0xff]  ;;  %v5824_v28 = vld [vmem:[%s10415_s2 + $0xf8] sm:$0xff] }
  0xf3   : > { %936 = vmatpush1.msra.mxu1 %v5783_v27  ;;  %1007 = vmatpush1.msra.mxu0 %v5788_v20  ;;  %10971 = vst [vmem:[#allocation104_spill] sm:$0xff] %v5819_v0  ;;  %10972 = vst [vmem:[#allocation105_spill] sm:$0xff] %v5824_v28  ;;  %v5831_v27 = vld [vmem:[%s10415_s2 + $0xe0] sm:$0xff]  ;;  %v5836_v20 = vld [vmem:[%s10415_s2 + $0xf0] sm:$0xff] }
  0xf4   : > { %937 = vmatprep.subr.mxu1 %v5795_v23  ;;  %1008 = vmatprep.subr.mxu0 %v5800_v31  ;;  %10973 = vst [vmem:[#allocation106_spill] sm:$0xff] %v5831_v27  ;;  %10974 = vst [vmem:[#allocation107_spill] sm:$0xff] %v5836_v20  ;;  %v5843_v23 = vld [vmem:[%s10415_s2 + $0xa8] sm:$0xff]  ;;  %v5848_v31 = vld [vmem:[%s10415_s2 + $0xb8] sm:$0xff] }
  0xf5   : > { %938 = vmatpush1.msra.mxu1 %v5807_v18  ;;  %1009 = vmatpush1.msra.mxu0 %v5812_v22  ;;  %10975 = vst [vmem:[#allocation108_spill] sm:$0xff] %v5843_v23  ;;  %10976 = vst [vmem:[#allocation109_spill] sm:$0xff] %v5848_v31  ;;  %v5855_v18 = vld [vmem:[%s10415_s2 + $0xa0] sm:$0xff]  ;;  %v5860_v22 = vld [vmem:[%s10415_s2 + $0xb0] sm:$0xff] }
  0xf6   : > { %939 = vmatprep.subr.mxu1 %v5819_v0  ;;  %1010 = vmatprep.subr.mxu0 %v5824_v28  ;;  %10977 = vst [vmem:[#allocation110_spill] sm:$0xff] %v5855_v18  ;;  %10978 = vst [vmem:[#allocation111_spill] sm:$0xff] %v5860_v22  ;;  %v5867_v0 = vld [vmem:[%s10415_s2 + $0x68] sm:$0xff]  ;;  %v5872_v28 = vld [vmem:[%s10415_s2 + $0x78] sm:$0xff] }
  0xf7   : > { %940 = vmatpush1.msra.mxu1 %v5831_v27  ;;  %1011 = vmatpush1.msra.mxu0 %v5836_v20  ;;  %10979 = vst [vmem:[#allocation112_spill] sm:$0xff] %v5867_v0  ;;  %10980 = vst [vmem:[#allocation113_spill] sm:$0xff] %v5872_v28  ;;  %v5879_v27 = vld [vmem:[%s10415_s2 + $0x60] sm:$0xff]  ;;  %v5884_v20 = vld [vmem:[%s10415_s2 + $0x70] sm:$0xff] }
  0xf8   : > { %941 = vmatprep.subr.mxu1 %v5843_v23  ;;  %1012 = vmatprep.subr.mxu0 %v5848_v31  ;;  %10981 = vst [vmem:[#allocation114_spill] sm:$0xff] %v5879_v27  ;;  %10982 = vst [vmem:[#allocation115_spill] sm:$0xff] %v5884_v20  ;;  %v5891_v23 = vld [vmem:[%s10415_s2 + $0x28] sm:$0xff]  ;;  %v5896_v31 = vld [vmem:[%s10415_s2 + $0x38] sm:$0xff] }
  0xf9   : > { %942 = vmatpush1.msra.mxu1 %v5855_v18  ;;  %1013 = vmatpush1.msra.mxu0 %v5860_v22  ;;  %10983 = vst [vmem:[#allocation116_spill] sm:$0xff] %v5891_v23  ;;  %10984 = vst [vmem:[#allocation117_spill] sm:$0xff] %v5896_v31  ;;  %v5903_v18 = vld [vmem:[%s10415_s2 + $0x20] sm:$0xff]  ;;  %v5908_v22 = vld [vmem:[%s10415_s2 + $0x30] sm:$0xff] }
  0xfa   : > { %943 = vmatprep.subr.mxu1 %v5867_v0  ;;  %1014 = vmatprep.subr.mxu0 %v5872_v28  ;;  %10985 = vst [vmem:[#allocation118_spill] sm:$0xff] %v5903_v18  ;;  %10986 = vst [vmem:[#allocation119_spill] sm:$0xff] %v5908_v22  ;;  %v5915_v0 = vld [vmem:[%s10415_s2 + $0x7e8] sm:$0xff]  ;;  %v5920_v28 = vld [vmem:[%s10415_s2 + $0x7f8] sm:$0xff] }
  0xfb   : > { %944 = vmatpush1.msra.mxu1 %v5879_v27  ;;  %1015 = vmatpush1.msra.mxu0 %v5884_v20  ;;  %10987 = vst [vmem:[#allocation120_spill] sm:$0xff] %v5915_v0  ;;  %10988 = vst [vmem:[#allocation121_spill] sm:$0xff] %v5920_v28  ;;  %v5927_v27 = vld [vmem:[%s10415_s2 + $0x7e0] sm:$0xff]  ;;  %v5932_v20 = vld [vmem:[%s10415_s2 + $0x7f0] sm:$0xff] }
  0xfc   : > { %945 = vmatprep.subr.mxu1 %v5891_v23  ;;  %1016 = vmatprep.subr.mxu0 %v5896_v31  ;;  %10989 = vst [vmem:[#allocation122_spill] sm:$0xff] %v5927_v27  ;;  %10990 = vst [vmem:[#allocation123_spill] sm:$0xff] %v5932_v20  ;;  %v5939_v23 = vld [vmem:[%s10415_s2 + $0x7a8] sm:$0xff]  ;;  %v5944_v31 = vld [vmem:[%s10415_s2 + $0x7b8] sm:$0xff] }
  0xfd   : > { %946 = vmatpush1.msra.mxu1 %v5903_v18  ;;  %1017 = vmatpush1.msra.mxu0 %v5908_v22  ;;  %10991 = vst [vmem:[#allocation124_spill] sm:$0xff] %v5939_v23  ;;  %10992 = vst [vmem:[#allocation125_spill] sm:$0xff] %v5944_v31  ;;  %v5951_v18 = vld [vmem:[%s10415_s2 + $0x7a0] sm:$0xff]  ;;  %v5956_v22 = vld [vmem:[%s10415_s2 + $0x7b0] sm:$0xff] }
  0xfe   : > { %947 = vmatprep.subr.mxu1 %v5915_v0  ;;  %1018 = vmatprep.subr.mxu0 %v5920_v28  ;;  %10993 = vst [vmem:[#allocation126_spill] sm:$0xff] %v5951_v18  ;;  %10994 = vst [vmem:[#allocation127_spill] sm:$0xff] %v5956_v22  ;;  %v5963_v0 = vld [vmem:[%s10415_s2 + $0x768] sm:$0xff]  ;;  %v5968_v28 = vld [vmem:[%s10415_s2 + $0x778] sm:$0xff] }
  0xff   : > { %948 = vmatpush2.msra.mxu1 %v5927_v27  ;;  %1019 = vmatpush2.msra.mxu0 %v5932_v20  ;;  %10995 = vst [vmem:[#allocation128_spill] sm:$0xff] %v5963_v0  ;;  %10996 = vst [vmem:[#allocation129_spill] sm:$0xff] %v5968_v28  ;;  %v5975_v27 = vld [vmem:[%s10415_s2 + $0x760] sm:$0xff]  ;;  %v5980_v20 = vld [vmem:[%s10415_s2 + $0x770] sm:$0xff] }
 0x100   : > { %949 = vmatprep.subr.mxu1 %v5939_v23  ;;  %1020 = vmatprep.subr.mxu0 %v5944_v31  ;;  %10997 = vst [vmem:[#allocation130_spill] sm:$0xff] %v5975_v27  ;;  %10998 = vst [vmem:[#allocation131_spill] sm:$0xff] %v5980_v20  ;;  %v5987_v23 = vld [vmem:[%s10415_s2 + $0x728] sm:$0xff]  ;;  %v5992_v31 = vld [vmem:[%s10415_s2 + $0x738] sm:$0xff] }
 0x101   : > { %950 = vmatpush2.msra.mxu1 %v5951_v18  ;;  %1021 = vmatpush2.msra.mxu0 %v5956_v22  ;;  %10999 = vst [vmem:[#allocation132_spill] sm:$0xff] %v5987_v23  ;;  %11000 = vst [vmem:[#allocation133_spill] sm:$0xff] %v5992_v31  ;;  %v5999_v18 = vld [vmem:[%s10415_s2 + $0x720] sm:$0xff]  ;;  %v6004_v22 = vld [vmem:[%s10415_s2 + $0x730] sm:$0xff] }
 0x102   : > { %951 = vmatprep.subr.mxu1 %v5963_v0  ;;  %1022 = vmatprep.subr.mxu0 %v5968_v28  ;;  %11001 = vst [vmem:[#allocation134_spill] sm:$0xff] %v5999_v18  ;;  %11002 = vst [vmem:[#allocation135_spill] sm:$0xff] %v6004_v22  ;;  %v6011_v0 = vld [vmem:[%s10415_s2 + $0x6e8] sm:$0xff]  ;;  %v6016_v28 = vld [vmem:[%s10415_s2 + $0x6f8] sm:$0xff] }
 0x103   : > { %952 = vmatpush2.msra.mxu1 %v5975_v27  ;;  %1023 = vmatpush2.msra.mxu0 %v5980_v20  ;;  %11003 = vst [vmem:[#allocation136_spill] sm:$0xff] %v6011_v0  ;;  %11004 = vst [vmem:[#allocation137_spill] sm:$0xff] %v6016_v28  ;;  %v6023_v27 = vld [vmem:[%s10415_s2 + $0x6e0] sm:$0xff]  ;;  %v6028_v20 = vld [vmem:[%s10415_s2 + $0x6f0] sm:$0xff] }
 0x104   : > { %953 = vmatprep.subr.mxu1 %v5987_v23  ;;  %1024 = vmatprep.subr.mxu0 %v5992_v31  ;;  %11005 = vst [vmem:[#allocation138_spill] sm:$0xff] %v6023_v27  ;;  %11006 = vst [vmem:[#allocation139_spill] sm:$0xff] %v6028_v20  ;;  %v6035_v23 = vld [vmem:[%s10415_s2 + $0x6a8] sm:$0xff]  ;;  %v6040_v31 = vld [vmem:[%s10415_s2 + $0x6b8] sm:$0xff] }
 0x105   : > { %954 = vmatpush2.msra.mxu1 %v5999_v18  ;;  %1025 = vmatpush2.msra.mxu0 %v6004_v22  ;;  %11007 = vst [vmem:[#allocation140_spill] sm:$0xff] %v6035_v23  ;;  %11008 = vst [vmem:[#allocation141_spill] sm:$0xff] %v6040_v31  ;;  %v6047_v18 = vld [vmem:[%s10415_s2 + $0x6a0] sm:$0xff]  ;;  %v6052_v22 = vld [vmem:[%s10415_s2 + $0x6b0] sm:$0xff] }
 0x106   : > { %955 = vmatprep.subr.mxu1 %v6011_v0  ;;  %1026 = vmatprep.subr.mxu0 %v6016_v28  ;;  %11009 = vst [vmem:[#allocation142_spill] sm:$0xff] %v6047_v18  ;;  %11010 = vst [vmem:[#allocation143_spill] sm:$0xff] %v6052_v22  ;;  %v6059_v0 = vld [vmem:[%s10415_s2 + $0x668] sm:$0xff]  ;;  %v6064_v28 = vld [vmem:[%s10415_s2 + $0x678] sm:$0xff] }
 0x107   : > { %956 = vmatpush2.msra.mxu1 %v6023_v27  ;;  %1027 = vmatpush2.msra.mxu0 %v6028_v20  ;;  %11011 = vst [vmem:[#allocation144_spill] sm:$0xff] %v6059_v0  ;;  %11012 = vst [vmem:[#allocation145_spill] sm:$0xff] %v6064_v28  ;;  %v6071_v27 = vld [vmem:[%s10415_s2 + $0x660] sm:$0xff]  ;;  %v6076_v20 = vld [vmem:[%s10415_s2 + $0x670] sm:$0xff] }
 0x108   : > { %957 = vmatprep.subr.mxu1 %v6035_v23  ;;  %1028 = vmatprep.subr.mxu0 %v6040_v31  ;;  %11013 = vst [vmem:[#allocation146_spill] sm:$0xff] %v6071_v27  ;;  %11014 = vst [vmem:[#allocation147_spill] sm:$0xff] %v6076_v20  ;;  %v6083_v23 = vld [vmem:[%s10415_s2 + $0x628] sm:$0xff]  ;;  %v6088_v31 = vld [vmem:[%s10415_s2 + $0x638] sm:$0xff] }
 0x109   : > { %958 = vmatpush2.msra.mxu1 %v6047_v18  ;;  %1029 = vmatpush2.msra.mxu0 %v6052_v22  ;;  %11015 = vst [vmem:[#allocation148_spill] sm:$0xff] %v6083_v23  ;;  %11016 = vst [vmem:[#allocation149_spill] sm:$0xff] %v6088_v31  ;;  %v6095_v18 = vld [vmem:[%s10415_s2 + $0x620] sm:$0xff]  ;;  %v6100_v22 = vld [vmem:[%s10415_s2 + $0x630] sm:$0xff] }
 0x10a   : > { %959 = vmatprep.subr.mxu1 %v6059_v0  ;;  %1030 = vmatprep.subr.mxu0 %v6064_v28  ;;  %11017 = vst [vmem:[#allocation150_spill] sm:$0xff] %v6095_v18  ;;  %11018 = vst [vmem:[#allocation151_spill] sm:$0xff] %v6100_v22  ;;  %v6107_v0 = vld [vmem:[%s10415_s2 + $0x5e8] sm:$0xff]  ;;  %v6112_v28 = vld [vmem:[%s10415_s2 + $0x5f8] sm:$0xff] }
 0x10b   : > { %960 = vmatpush2.msra.mxu1 %v6071_v27  ;;  %1031 = vmatpush2.msra.mxu0 %v6076_v20  ;;  %11019 = vst [vmem:[#allocation152_spill] sm:$0xff] %v6107_v0  ;;  %11020 = vst [vmem:[#allocation153_spill] sm:$0xff] %v6112_v28  ;;  %v6119_v27 = vld [vmem:[%s10415_s2 + $0x5e0] sm:$0xff]  ;;  %v6124_v20 = vld [vmem:[%s10415_s2 + $0x5f0] sm:$0xff] }
 0x10c   : > { %961 = vmatprep.subr.mxu1 %v6083_v23  ;;  %1032 = vmatprep.subr.mxu0 %v6088_v31  ;;  %11021 = vst [vmem:[#allocation154_spill] sm:$0xff] %v6119_v27  ;;  %11022 = vst [vmem:[#allocation155_spill] sm:$0xff] %v6124_v20  ;;  %v6131_v23 = vld [vmem:[%s10415_s2 + $0x5a8] sm:$0xff]  ;;  %v6136_v31 = vld [vmem:[%s10415_s2 + $0x5b8] sm:$0xff] }
 0x10d   : > { %962 = vmatpush2.msra.mxu1 %v6095_v18  ;;  %1033 = vmatpush2.msra.mxu0 %v6100_v22  ;;  %11023 = vst [vmem:[#allocation156_spill] sm:$0xff] %v6131_v23  ;;  %11024 = vst [vmem:[#allocation157_spill] sm:$0xff] %v6136_v31  ;;  %v6143_v18 = vld [vmem:[%s10415_s2 + $0x5a0] sm:$0xff]  ;;  %v6148_v22 = vld [vmem:[%s10415_s2 + $0x5b0] sm:$0xff] }
 0x10e   : > { %963 = vmatprep.subr.mxu1 %v6107_v0  ;;  %1034 = vmatprep.subr.mxu0 %v6112_v28  ;;  %11025 = vst [vmem:[#allocation158_spill] sm:$0xff] %v6143_v18  ;;  %11026 = vst [vmem:[#allocation159_spill] sm:$0xff] %v6148_v22  ;;  %v6155_v0 = vld [vmem:[%s10415_s2 + $0x568] sm:$0xff]  ;;  %v6160_v28 = vld [vmem:[%s10415_s2 + $0x578] sm:$0xff] }
 0x10f   : > { %964 = vmatpush2.msra.mxu1 %v6119_v27  ;;  %1035 = vmatpush2.msra.mxu0 %v6124_v20  ;;  %11027 = vst [vmem:[#allocation160_spill] sm:$0xff] %v6155_v0  ;;  %11028 = vst [vmem:[#allocation161_spill] sm:$0xff] %v6160_v28  ;;  %v6167_v27 = vld [vmem:[%s10415_s2 + $0x560] sm:$0xff]  ;;  %v6172_v20 = vld [vmem:[%s10415_s2 + $0x570] sm:$0xff] }
 0x110   : > { %965 = vmatprep.subr.mxu1 %v6131_v23  ;;  %1036 = vmatprep.subr.mxu0 %v6136_v31  ;;  %11029 = vst [vmem:[#allocation162_spill] sm:$0xff] %v6167_v27  ;;  %11030 = vst [vmem:[#allocation163_spill] sm:$0xff] %v6172_v20  ;;  %v6179_v23 = vld [vmem:[%s10415_s2 + $0x528] sm:$0xff]  ;;  %v6184_v31 = vld [vmem:[%s10415_s2 + $0x538] sm:$0xff] }
 0x111   : > { %966 = vmatpush2.msra.mxu1 %v6143_v18  ;;  %1037 = vmatpush2.msra.mxu0 %v6148_v22  ;;  %11031 = vst [vmem:[#allocation164_spill] sm:$0xff] %v6179_v23  ;;  %11032 = vst [vmem:[#allocation165_spill] sm:$0xff] %v6184_v31  ;;  %v6191_v18 = vld [vmem:[%s10415_s2 + $0x520] sm:$0xff]  ;;  %v6196_v22 = vld [vmem:[%s10415_s2 + $0x530] sm:$0xff] }
 0x112   : > { %967 = vmatprep.subr.mxu1 %v6155_v0  ;;  %1038 = vmatprep.subr.mxu0 %v6160_v28  ;;  %11033 = vst [vmem:[#allocation166_spill] sm:$0xff] %v6191_v18  ;;  %11034 = vst [vmem:[#allocation167_spill] sm:$0xff] %v6196_v22  ;;  %v6203_v0 = vld [vmem:[%s10415_s2 + $0x4e8] sm:$0xff]  ;;  %v6208_v28 = vld [vmem:[%s10415_s2 + $0x4f8] sm:$0xff] }
 0x113   : > { %968 = vmatpush2.msra.mxu1 %v6167_v27  ;;  %1039 = vmatpush2.msra.mxu0 %v6172_v20  ;;  %11035 = vst [vmem:[#allocation168_spill] sm:$0xff] %v6203_v0  ;;  %11036 = vst [vmem:[#allocation169_spill] sm:$0xff] %v6208_v28  ;;  %v6215_v27 = vld [vmem:[%s10415_s2 + $0x4e0] sm:$0xff]  ;;  %v6220_v20 = vld [vmem:[%s10415_s2 + $0x4f0] sm:$0xff] }
 0x114   : > { %969 = vmatprep.subr.mxu1 %v6179_v23  ;;  %1040 = vmatprep.subr.mxu0 %v6184_v31  ;;  %11037 = vst [vmem:[#allocation170_spill] sm:$0xff] %v6215_v27  ;;  %11038 = vst [vmem:[#allocation171_spill] sm:$0xff] %v6220_v20  ;;  %v6227_v23 = vld [vmem:[%s10415_s2 + $0x4a8] sm:$0xff]  ;;  %v6232_v31 = vld [vmem:[%s10415_s2 + $0x4b8] sm:$0xff] }
 0x115   : > { %970 = vmatpush2.msra.mxu1 %v6191_v18  ;;  %1041 = vmatpush2.msra.mxu0 %v6196_v22  ;;  %11039 = vst [vmem:[#allocation172_spill] sm:$0xff] %v6227_v23  ;;  %11040 = vst [vmem:[#allocation173_spill] sm:$0xff] %v6232_v31  ;;  %v6239_v18 = vld [vmem:[%s10415_s2 + $0x4a0] sm:$0xff]  ;;  %v6244_v22 = vld [vmem:[%s10415_s2 + $0x4b0] sm:$0xff] }
 0x116   : > { %971 = vmatprep.subr.mxu1 %v6203_v0  ;;  %1042 = vmatprep.subr.mxu0 %v6208_v28  ;;  %11041 = vst [vmem:[#allocation174_spill] sm:$0xff] %v6239_v18  ;;  %11042 = vst [vmem:[#allocation175_spill] sm:$0xff] %v6244_v22  ;;  %v6251_v0 = vld [vmem:[%s10415_s2 + $0x468] sm:$0xff]  ;;  %v6256_v28 = vld [vmem:[%s10415_s2 + $0x478] sm:$0xff] }
 0x117   : > { %972 = vmatpush2.msra.mxu1 %v6215_v27  ;;  %1043 = vmatpush2.msra.mxu0 %v6220_v20  ;;  %11043 = vst [vmem:[#allocation176_spill] sm:$0xff] %v6256_v28  ;;  %v6263_v27 = vld [vmem:[%s10415_s2 + $0x460] sm:$0xff]  ;;  %v6268_v20 = vld [vmem:[%s10415_s2 + $0x470] sm:$0xff] }
 0x118   : > { %973 = vmatprep.subr.mxu1 %v6227_v23  ;;  %1044 = vmatprep.subr.mxu0 %v6232_v31  ;;  %v6275_v23 = vld [vmem:[%s10415_s2 + $0x428] sm:$0xff]  ;;  %v6280_v31 = vld [vmem:[%s10415_s2 + $0x438] sm:$0xff] }
 0x119   : > { %974 = vmatpush2.msra.mxu1 %v6239_v18  ;;  %1045 = vmatpush2.msra.mxu0 %v6244_v22  ;;  %11044 = vst [vmem:[#allocation177_spill] sm:$0xff] %v6275_v23  ;;  %v6287_v18 = vld [vmem:[%s10415_s2 + $0x420] sm:$0xff]  ;;  %v6292_v22 = vld [vmem:[%s10415_s2 + $0x430] sm:$0xff] }
 0x11a   : > { %975 = vmatprep.subr.mxu1 %v6251_v0  ;;  %1046 = vmatprep.subr.mxu0 %v6256_v28  ;;  %11045 = vst [vmem:[#allocation178_spill] sm:$0xff] %v6292_v22  ;;  %v6305_v28 = vld [vmem:[%s10415_s2 + $0x3c8] sm:$0xff] }
 0x11b   : > { %976 = vmatpush2.msra.mxu1 %v6263_v27  ;;  %1047 = vmatpush2.msra.mxu0 %v6268_v20  ;;  %11046 = vst [vmem:[#allocation179_spill] sm:$0xff] %v6305_v28 }
 0x11c   : > { %977 = vmatprep.subr.mxu1 %v6275_v23  ;;  %1048 = vmatprep.subr.mxu0 %v6280_v31  ;;  %v6311_v23 = vld [vmem:[%s10415_s2 + $0x3d8] sm:$0xff] }
 0x11d   : > { %978 = vmatpush2.msra.mxu1 %v6287_v18  ;;  %1049 = vmatpush2.msra.mxu0 %v6292_v22  ;;  %11047 = vst [vmem:[#allocation180_spill] sm:$0xff] %v6311_v23  ;;  %v6317_v22 = vld [vmem:[%s10415_s2 + $0x3c0] sm:$0xff] }
 0x11e   : > { %980 = vmatmul.mubr.f32.vlgmr.msra.gmra.mxu1 %v5540_v25  ;;  %1051 = vmatmul.mubr.f32.vlgmr.msra.gmra.mxu0 %v5540_v25  ;;  %11048 = vst [vmem:[#allocation181_spill] sm:$0xff] %v6317_v22  ;;  %v6323_v25 = vld [vmem:[%s10415_s2 + $0x3d0] sm:$0xff] }
 0x11f   : > { %1084 = vmatprep.subr.mxu1 %v6305_v28  ;;  %1155 = vmatprep.subr.mxu0 %v6311_v23  ;;  %11049 = vst [vmem:[#allocation182_spill] sm:$0xff] %v6323_v25  ;;  %v6329_v28 = vld [vmem:[%s10415_s2 + $0x388] sm:$0xff]  ;;  %v6335_v23 = vld [vmem:[%s10415_s2 + $0x398] sm:$0xff] }
 0x120   : > { %1085 = vmatpush1.msra.mxu1 %v6317_v22  ;;  %1156 = vmatpush1.msra.mxu0 %v6323_v25  ;;  %11050 = vst [vmem:[#allocation183_spill] sm:$0xff] %v6329_v28  ;;  %11051 = vst [vmem:[#allocation184_spill] sm:$0xff] %v6335_v23  ;;  %v6341_v22 = vld [vmem:[%s10415_s2 + $0x380] sm:$0xff]  ;;  %v6347_v25 = vld [vmem:[%s10415_s2 + $0x390] sm:$0xff] }
 0x121   : > { %1086 = vmatprep.subr.mxu1 %v6329_v28  ;;  %1157 = vmatprep.subr.mxu0 %v6335_v23  ;;  %11052 = vst [vmem:[#allocation185_spill] sm:$0xff] %v6341_v22  ;;  %11053 = vst [vmem:[#allocation186_spill] sm:$0xff] %v6347_v25  ;;  %v6353_v28 = vld [vmem:[%s10415_s2 + $0x348] sm:$0xff]  ;;  %v6359_v23 = vld [vmem:[%s10415_s2 + $0x358] sm:$0xff] }
 0x122   : > { %1087 = vmatpush1.msra.mxu1 %v6341_v22  ;;  %1158 = vmatpush1.msra.mxu0 %v6347_v25  ;;  %11054 = vst [vmem:[#allocation187_spill] sm:$0xff] %v6353_v28  ;;  %11055 = vst [vmem:[#allocation188_spill] sm:$0xff] %v6359_v23  ;;  %v6365_v22 = vld [vmem:[%s10415_s2 + $0x340] sm:$0xff]  ;;  %v6371_v25 = vld [vmem:[%s10415_s2 + $0x350] sm:$0xff] }
 0x123   : > { %1088 = vmatprep.subr.mxu1 %v6353_v28  ;;  %1159 = vmatprep.subr.mxu0 %v6359_v23  ;;  %11056 = vst [vmem:[#allocation189_spill] sm:$0xff] %v6365_v22  ;;  %v6377_v28 = vld [vmem:[%s10415_s2 + $0x308] sm:$0xff]  ;;  %v6383_v23 = vld [vmem:[%s10415_s2 + $0x318] sm:$0xff] }
 0x124   : > { %1089 = vmatpush1.msra.mxu1 %v6365_v22  ;;  %1160 = vmatpush1.msra.mxu0 %v6371_v25  ;;  %11057 = vst [vmem:[#allocation190_spill] sm:$0xff] %v6377_v28  ;;  %11058 = vst [vmem:[#allocation191_spill] sm:$0xff] %v6383_v23  ;;  %v6389_v22 = vld [vmem:[%s10415_s2 + $0x300] sm:$0xff] }
 0x125   : > { %1090 = vmatprep.subr.mxu1 %v6377_v28  ;;  %1161 = vmatprep.subr.mxu0 %v6383_v23  ;;  %v6396_v28 = vld [vmem:[%s10415_s2 + $0x2c8] sm:$0xff]  ;;  %v6403_v23 = vld [vmem:[%s10415_s2 + $0x2c0] sm:$0xff] }
 0x126   : > { %1091 = vmatpush1.msra.mxu1 %v6389_v22  ;;  %1162 = vmatpush1.msra.mxu0 %v4869_v26  ;;  %v6410_v26 = vld [vmem:[%s10415_s2 + $0x288] sm:$0xff] }
 0x127   : > { %1092 = vmatprep.subr.mxu1 %v6396_v28  ;;  %1163 = vmatprep.subr.mxu0 %v4881_v29  ;;  %v6417_v29 = vld [vmem:[%s10415_s2 + $0x280] sm:$0xff] }
 0x128   : > { %1093 = vmatpush1.msra.mxu1 %v6403_v23  ;;  %1164 = vmatpush1.msra.mxu0 %v4886_v30  ;;  %v6424_v30 = vld [vmem:[%s10415_s2 + $0x248] sm:$0xff] }
 0x129   : > { %1094 = vmatprep.subr.mxu1 %v6410_v26  ;;  %1165 = vmatprep.subr.mxu0 %v4895_v32  ;;  %v6431_v32 = vld [vmem:[%s10415_s2 + $0x240] sm:$0xff] }
 0x12a   : > { %1095 = vmatpush1.msra.mxu1 %v6417_v29  ;;  %1166 = vmatpush1.msra.mxu0 %v4907_v34  ;;  %v11060_v34 = vld [vmem:[#allocation2_spill] sm:$0xff] }
 0x12b   : > { %1096 = vmatprep.subr.mxu1 %v6424_v30  ;;  %1167 = vmatprep.subr.mxu0 %v4918_v36  ;;  %v11062_v36 = vld [vmem:[#allocation3_spill] sm:$0xff] }
 0x12c   : > { %1097 = vmatpush1.msra.mxu1 %v6431_v32  ;;  %1168 = vmatpush1.msra.mxu0 %v4929_v38  ;;  %v11064_v38 = vld [vmem:[#allocation4_spill] sm:$0xff] }
 0x12d   : > { %1098 = vmatprep.subr.mxu1 %v4900_v33  ;;  %1169 = vmatprep.subr.mxu0 %v4941_v40  ;;  %v11059_v33 = vld [vmem:[#allocation5_spill] sm:$0xff]  ;;  %v11066_v40 = vld [vmem:[#allocation6_spill] sm:$0xff] }
 0x12e   : > { %1099 = vmatpush1.msra.mxu1 %v4912_v35  ;;  %1170 = vmatpush1.msra.mxu0 %v4953_v42  ;;  %v11061_v35 = vld [vmem:[#allocation7_spill] sm:$0xff]  ;;  %v11068_v42 = vld [vmem:[#allocation8_spill] sm:$0xff] }
 0x12f   : > { %1100 = vmatprep.subr.mxu1 %v4923_v37  ;;  %1171 = vmatprep.subr.mxu0 %v4965_v44  ;;  %v11063_v37 = vld [vmem:[#allocation9_spill] sm:$0xff]  ;;  %v11070_v44 = vld [vmem:[#allocation10_spill] sm:$0xff] }
 0x130   : > { %1101 = vmatpush1.msra.mxu1 %v4935_v39  ;;  %1172 = vmatpush1.msra.mxu0 %v4977_v46  ;;  %v11065_v39 = vld [vmem:[#allocation11_spill] sm:$0xff]  ;;  %v11072_v46 = vld [vmem:[#allocation12_spill] sm:$0xff] }
 0x131   : > { %1102 = vmatprep.subr.mxu1 %v4947_v41  ;;  %1173 = vmatprep.subr.mxu0 %v4989_v48  ;;  %v11067_v41 = vld [vmem:[#allocation13_spill] sm:$0xff]  ;;  %v11074_v48 = vld [vmem:[#allocation14_spill] sm:$0xff] }
 0x132   : > { %1103 = vmatpush1.msra.mxu1 %v4959_v43  ;;  %1174 = vmatpush1.msra.mxu0 %v5001_v50  ;;  %v11069_v43 = vld [vmem:[#allocation15_spill] sm:$0xff]  ;;  %v11076_v50 = vld [vmem:[#allocation16_spill] sm:$0xff] }
 0x133   : > { %1104 = vmatprep.subr.mxu1 %v4971_v45  ;;  %1175 = vmatprep.subr.mxu0 %v5013_v52  ;;  %v11071_v45 = vld [vmem:[#allocation17_spill] sm:$0xff]  ;;  %v11078_v52 = vld [vmem:[#allocation18_spill] sm:$0xff] }
 0x134   : > { %1105 = vmatpush1.msra.mxu1 %v4983_v47  ;;  %1176 = vmatpush1.msra.mxu0 %v5025_v54  ;;  %v11073_v47 = vld [vmem:[#allocation19_spill] sm:$0xff]  ;;  %v11080_v54 = vld [vmem:[#allocation20_spill] sm:$0xff] }
 0x135   : > { %1106 = vmatprep.subr.mxu1 %v4995_v49  ;;  %1177 = vmatprep.subr.mxu0 %v5037_v56  ;;  %v11075_v49 = vld [vmem:[#allocation21_spill] sm:$0xff]  ;;  %v11082_v56 = vld [vmem:[#allocation22_spill] sm:$0xff] }
 0x136   : > { %1107 = vmatpush1.msra.mxu1 %v5007_v51  ;;  %1178 = vmatpush1.msra.mxu0 %v5049_v58  ;;  %v11077_v51 = vld [vmem:[#allocation23_spill] sm:$0xff]  ;;  %v11084_v58 = vld [vmem:[#allocation24_spill] sm:$0xff] }
 0x137   : > { %1108 = vmatprep.subr.mxu1 %v5019_v53  ;;  %1179 = vmatprep.subr.mxu0 %v5061_v60  ;;  %v11079_v53 = vld [vmem:[#allocation25_spill] sm:$0xff]  ;;  %v11086_v60 = vld [vmem:[#allocation26_spill] sm:$0xff] }
 0x138   : > { %1109 = vmatpush1.msra.mxu1 %v5031_v55  ;;  %1180 = vmatpush1.msra.mxu0 %v5073_v62  ;;  %v11081_v55 = vld [vmem:[#allocation27_spill] sm:$0xff]  ;;  %v11088_v62 = vld [vmem:[#allocation28_spill] sm:$0xff] }
 0x139   : > { %1110 = vmatprep.subr.mxu1 %v5043_v57  ;;  %1181 = vmatprep.subr.mxu0 %v5085_v1  ;;  %v11083_v57 = vld [vmem:[#allocation29_spill] sm:$0xff]  ;;  %v11090_v1 = vld [vmem:[#allocation30_spill] sm:$0xff] }
 0x13a   : > { %1111 = vmatpush1.msra.mxu1 %v5055_v59  ;;  %1182 = vmatpush1.msra.mxu0 %v5097_v3  ;;  %v11085_v59 = vld [vmem:[#allocation31_spill] sm:$0xff]  ;;  %v11092_v3 = vld [vmem:[#allocation32_spill] sm:$0xff] }
 0x13b   : > { %1112 = vmatprep.subr.mxu1 %v5067_v61  ;;  %1183 = vmatprep.subr.mxu0 %v5109_v5  ;;  %v11087_v61 = vld [vmem:[#allocation33_spill] sm:$0xff]  ;;  %v11094_v5 = vld [vmem:[#allocation34_spill] sm:$0xff] }
 0x13c   : > { %1113 = vmatpush1.msra.mxu1 %v5079_v63  ;;  %1184 = vmatpush1.msra.mxu0 %v5121_v7  ;;  %v11089_v63 = vld [vmem:[#allocation35_spill] sm:$0xff]  ;;  %v6519_v7 = vpop.f32.mrf.mxu0 }
 0x13d   : > { %1114 = vmatprep.subr.mxu1 %v5091_v2  ;;  %1185 = vmatprep.subr.mxu0 %v5133_v9  ;;  %v11091_v2 = vld [vmem:[#allocation37_spill] sm:$0xff]  ;;  %v11097_v9 = vld [vmem:[#allocation40_spill] sm:$0xff] }
 0x13e   : > { %1115 = vmatpush1.msra.mxu1 %v5103_v4  ;;  %1186 = vmatpush1.msra.mxu0 %v5145_v11  ;;  %v11093_v4 = vld [vmem:[#allocation38_spill] sm:$0xff] }
 0x13f   : > { %1116 = vmatprep.subr.mxu1 %v5115_v6  ;;  %1187 = vmatprep.subr.mxu0 %v5157_v13  ;;  %v11095_v6 = vld [vmem:[#allocation39_spill] sm:$0xff]  ;;  %v11099_v11 = vld [vmem:[#allocation42_spill] sm:$0xff]  ;;  %v11101_v13 = vld [vmem:[#allocation44_spill] sm:$0xff] }
 0x140   : > { %1117 = vmatpush2.msra.mxu1 %v5127_v8  ;;  %1188 = vmatpush2.msra.mxu0 %v5169_v15  ;;  %v11096_v8 = vld [vmem:[#allocation36_spill] sm:$0xff]  ;;  %v11103_v15 = vld [vmem:[#allocation46_spill] sm:$0xff] }
 0x141   : > { %1118 = vmatprep.subr.mxu1 %v5139_v10  ;;  %1189 = vmatprep.subr.mxu0 %v5181_v17  ;;  %v11098_v10 = vld [vmem:[#allocation41_spill] sm:$0xff]  ;;  %v11104_v17 = vld [vmem:[#allocation47_spill] sm:$0xff] }
 0x142   : > { %1119 = vmatpush2.msra.mxu1 %v5151_v12  ;;  %1190 = vmatpush2.msra.mxu0 %v5193_v19  ;;  %v11100_v12 = vld [vmem:[#allocation43_spill] sm:$0xff]  ;;  %v11105_v19 = vld [vmem:[#allocation48_spill] sm:$0xff] }
 0x143   : > { %1120 = vmatprep.subr.mxu1 %v5163_v14  ;;  %1191 = vmatprep.subr.mxu0 %v5205_v21  ;;  %v11102_v14 = vld [vmem:[#allocation45_spill] sm:$0xff] }
 0x144   : > { %1121 = vmatpush2.msra.mxu1 %v5175_v16  ;;  %1192 = vmatpush2.msra.mxu0 %v11059_v33  ;;  %v508_v16 = vpop.f32.mrf.mxu0  ;;  %v11106_v21 = vld [vmem:[#allocation49_spill] sm:$0xff]  ;;  %v11107_v33 = vld [vmem:[#allocation50_spill] sm:$0xff] }
 0x145   : > { %1122 = vmatprep.subr.mxu1 %v11060_v34  ;;  %1193 = vmatprep.subr.mxu0 %v11061_v35  ;;  %v11108_v34 = vld [vmem:[#allocation51_spill] sm:$0xff]  ;;  %v11109_v35 = vld [vmem:[#allocation52_spill] sm:$0xff] }
 0x146   : > { %1123 = vmatpush2.msra.mxu1 %v11062_v36  ;;  %1194 = vmatpush2.msra.mxu0 %v11063_v37  ;;  %v11110_v36 = vld [vmem:[#allocation53_spill] sm:$0xff]  ;;  %v11111_v37 = vld [vmem:[#allocation54_spill] sm:$0xff] }
 0x147   : > { %1124 = vmatprep.subr.mxu1 %v11064_v38  ;;  %1195 = vmatprep.subr.mxu0 %v11065_v39  ;;  %v11112_v38 = vld [vmem:[#allocation55_spill] sm:$0xff]  ;;  %v11113_v39 = vld [vmem:[#allocation56_spill] sm:$0xff] }
 0x148   : > { %1125 = vmatpush2.msra.mxu1 %v11066_v40  ;;  %1196 = vmatpush2.msra.mxu0 %v11067_v41  ;;  %v11114_v40 = vld [vmem:[#allocation59_spill] sm:$0xff]  ;;  %v11115_v41 = vld [vmem:[#allocation60_spill] sm:$0xff] }
 0x149   : > { %1126 = vmatprep.subr.mxu1 %v11068_v42  ;;  %1197 = vmatprep.subr.mxu0 %v11069_v43  ;;  %v11116_v42 = vld [vmem:[#allocation61_spill] sm:$0xff]  ;;  %v11117_v43 = vld [vmem:[#allocation62_spill] sm:$0xff] }
 0x14a   : > { %1127 = vmatpush2.msra.mxu1 %v11070_v44  ;;  %1198 = vmatpush2.msra.mxu0 %v11071_v45  ;;  %v11118_v44 = vld [vmem:[#allocation63_spill] sm:$0xff]  ;;  %v11119_v45 = vld [vmem:[#allocation64_spill] sm:$0xff] }
 0x14b   : > { %1128 = vmatprep.subr.mxu1 %v11072_v46  ;;  %1199 = vmatprep.subr.mxu0 %v11073_v47  ;;  %v11120_v46 = vld [vmem:[#allocation65_spill] sm:$0xff]  ;;  %v11121_v47 = vld [vmem:[#allocation66_spill] sm:$0xff] }
 0x14c   : > { %1129 = vmatpush2.msra.mxu1 %v11074_v48  ;;  %1200 = vmatpush2.msra.mxu0 %v11075_v49  ;;  %v11122_v48 = vld [vmem:[#allocation67_spill] sm:$0xff]  ;;  %v11123_v49 = vld [vmem:[#allocation68_spill] sm:$0xff] }
 0x14d   : > { %1130 = vmatprep.subr.mxu1 %v11076_v50  ;;  %1201 = vmatprep.subr.mxu0 %v11077_v51  ;;  %v11124_v50 = vld [vmem:[#allocation69_spill] sm:$0xff]  ;;  %v11125_v51 = vld [vmem:[#allocation70_spill] sm:$0xff] }
 0x14e   : > { %1131 = vmatpush2.msra.mxu1 %v11078_v52  ;;  %1202 = vmatpush2.msra.mxu0 %v11079_v53  ;;  %v11126_v52 = vld [vmem:[#allocation71_spill] sm:$0xff]  ;;  %v11128_v53 = vld [vmem:[#allocation73_spill] sm:$0xff] }
 0x14f   : > { %1132 = vmatprep.subr.mxu1 %v11080_v54  ;;  %1203 = vmatprep.subr.mxu0 %v11081_v55  ;;  %v11129_v54 = vld [vmem:[#allocation74_spill] sm:$0xff]  ;;  %v11130_v55 = vld [vmem:[#allocation75_spill] sm:$0xff] }
 0x150   : > { %1133 = vmatpush2.msra.mxu1 %v11082_v56  ;;  %1204 = vmatpush2.msra.mxu0 %v11083_v57  ;;  %v11131_v56 = vld [vmem:[#allocation76_spill] sm:$0xff]  ;;  %v11132_v57 = vld [vmem:[#allocation77_spill] sm:$0xff] }
 0x151   : > { %1134 = vmatprep.subr.mxu1 %v11084_v58  ;;  %1205 = vmatprep.subr.mxu0 %v11085_v59  ;;  %v11133_v58 = vld [vmem:[#allocation78_spill] sm:$0xff]  ;;  %v11134_v59 = vld [vmem:[#allocation79_spill] sm:$0xff] }
 0x152   : > { %1135 = vmatpush2.msra.mxu1 %v11086_v60  ;;  %1206 = vmatpush2.msra.mxu0 %v11087_v61  ;;  %v11135_v60 = vld [vmem:[#allocation80_spill] sm:$0xff]  ;;  %v11136_v61 = vld [vmem:[#allocation81_spill] sm:$0xff] }
 0x153   : > { %1136 = vmatprep.subr.mxu1 %v11088_v62  ;;  %1207 = vmatprep.subr.mxu0 %v11089_v63  ;;  %v11137_v62 = vld [vmem:[#allocation82_spill] sm:$0xff]  ;;  %v11138_v63 = vld [vmem:[#allocation83_spill] sm:$0xff] }
 0x154   : > { %1137 = vmatpush2.msra.mxu1 %v11090_v1  ;;  %1208 = vmatpush2.msra.mxu0 %v11091_v2  ;;  %v11139_v1 = vld [vmem:[#allocation84_spill] sm:$0xff]  ;;  %v11140_v2 = vld [vmem:[#allocation85_spill] sm:$0xff] }
 0x155   : > { %1138 = vmatprep.subr.mxu1 %v11092_v3  ;;  %1209 = vmatprep.subr.mxu0 %v11093_v4  ;;  %v11141_v3 = vld [vmem:[#allocation86_spill] sm:$0xff]  ;;  %v11142_v4 = vld [vmem:[#allocation87_spill] sm:$0xff] }
 0x156   : > { %1139 = vmatpush2.msra.mxu1 %v11094_v5  ;;  %1210 = vmatpush2.msra.mxu0 %v11095_v6  ;;  %v11143_v5 = vld [vmem:[#allocation88_spill] sm:$0xff]  ;;  %v11144_v6 = vld [vmem:[#allocation89_spill] sm:$0xff] }
 0x157   : > { %1140 = vmatprep.subr.mxu1 %v11096_v8  ;;  %1211 = vmatprep.subr.mxu0 %v11097_v9  ;;  %v11145_v8 = vld [vmem:[#allocation90_spill] sm:$0xff]  ;;  %v11146_v9 = vld [vmem:[#allocation91_spill] sm:$0xff] }
 0x158   : > { %1141 = vmatpush2.msra.mxu1 %v11098_v10  ;;  %1212 = vmatpush2.msra.mxu0 %v11099_v11  ;;  %v11147_v10 = vld [vmem:[#allocation92_spill] sm:$0xff]  ;;  %v11148_v11 = vld [vmem:[#allocation93_spill] sm:$0xff] }
 0x159   : > { %1142 = vmatprep.subr.mxu1 %v11100_v12  ;;  %1213 = vmatprep.subr.mxu0 %v11101_v13  ;;  %v11149_v12 = vld [vmem:[#allocation94_spill] sm:$0xff]  ;;  %v11150_v13 = vld [vmem:[#allocation95_spill] sm:$0xff] }
 0x15a   : > { %1143 = vmatpush2.msra.mxu1 %v11102_v14  ;;  %1214 = vmatpush2.msra.mxu0 %v11103_v15  ;;  %v11151_v14 = vld [vmem:[#allocation96_spill] sm:$0xff]  ;;  %v11152_v15 = vld [vmem:[#allocation97_spill] sm:$0xff] }
 0x15b   : > { %1144 = vmatprep.subr.mxu1 %v11104_v17  ;;  %1215 = vmatprep.subr.mxu0 %v11105_v19  ;;  %v11154_v17 = vld [vmem:[#allocation99_spill] sm:$0xff]  ;;  %v11155_v19 = vld [vmem:[#allocation100_spill] sm:$0xff] }
 0x15c   : > { %1145 = vmatpush2.msra.mxu1 %v11106_v21  ;;  %1216 = vmatpush2.msra.mxu0 %v11107_v33  ;;  %v11156_v21 = vld [vmem:[#allocation101_spill] sm:$0xff]  ;;  %v11157_v33 = vld [vmem:[#allocation102_spill] sm:$0xff] }
 0x15d   : > { %1146 = vmatprep.subr.mxu1 %v11108_v34  ;;  %1148 = vmatprep.mubr.f32.mxu1 %v508_v16  ;;  %v11158_v34 = vld [vmem:[#allocation103_spill] sm:$0xff] }
 0x15e   : > { %1217 = vmatprep.subr.mxu0 %v11109_v35  ;;  %1219 = vmatprep.mubr.f32.mxu0 %v508_v16  ;;  %v11159_v35 = vld [vmem:[#allocation104_spill] sm:$0xff] }
 0x15f   : > { %1147 = vmatpush2.msra.mxu1 %v11110_v36  ;;  %1218 = vmatpush2.msra.mxu0 %v11111_v37  ;;  %v11160_v36 = vld [vmem:[#allocation105_spill] sm:$0xff]  ;;  %v11161_v37 = vld [vmem:[#allocation106_spill] sm:$0xff] }
 0x160   : > { %1149 = vmatmul.mubr.f32.vlgmr.msra.gmra.mxu1 %v6519_v7  ;;  %1220 = vmatmul.mubr.f32.vlgmr.msra.gmra.mxu0 %v6519_v7 }
 0x161   : > { %1226 = vmatprep.subr.mxu1 %v11112_v38  ;;  %1297 = vmatprep.subr.mxu0 %v11113_v39  ;;  %v11162_v38 = vld [vmem:[#allocation107_spill] sm:$0xff]  ;;  %v11163_v39 = vld [vmem:[#allocation108_spill] sm:$0xff] }
 0x162   : > { %1227 = vmatpush1.msra.mxu1 %v11114_v40  ;;  %1290 = vmatprep.mubr.f32.mxu1 %v508_v16  ;;  %v11164_v40 = vld [vmem:[#allocation109_spill] sm:$0xff] }
 0x163   : > { %1298 = vmatpush1.msra.mxu0 %v11115_v41  ;;  %1361 = vmatprep.mubr.f32.mxu0 %v508_v16  ;;  %v11153_v16 = vld [vmem:[#allocation98_spill] sm:$0xff] }
 0x164   : > { %1228 = vmatprep.subr.mxu1 %v11116_v42  ;;  %1299 = vmatprep.subr.mxu0 %v5562_v24  ;;  %v11127_v24 = vld [vmem:[#allocation72_spill] sm:$0xff]  ;;  %v11165_v41 = vld [vmem:[#allocation110_spill] sm:$0xff]  ;;  %v11166_v42 = vld [vmem:[#allocation111_spill] sm:$0xff] }
 0x165   : > { %1229 = vmatpush1.msra.mxu1 %v11117_v43  ;;  %1300 = vmatpush1.msra.mxu0 %v11118_v44  ;;  %v11167_v43 = vld [vmem:[#allocation112_spill] sm:$0xff]  ;;  %v11168_v44 = vld [vmem:[#allocation113_spill] sm:$0xff] }
 0x166   : > { %1230 = vmatprep.subr.mxu1 %v11119_v45  ;;  %1301 = vmatprep.subr.mxu0 %v11120_v46  ;;  %v11169_v45 = vld [vmem:[#allocation114_spill] sm:$0xff]  ;;  %v11170_v46 = vld [vmem:[#allocation115_spill] sm:$0xff] }
 0x167   : > { %1231 = vmatpush1.msra.mxu1 %v11121_v47  ;;  %1302 = vmatpush1.msra.mxu0 %v11122_v48  ;;  %v11171_v47 = vld [vmem:[#allocation116_spill] sm:$0xff]  ;;  %v11172_v48 = vld [vmem:[#allocation117_spill] sm:$0xff] }
 0x168   : > { %1232 = vmatprep.subr.mxu1 %v11123_v49  ;;  %1303 = vmatprep.subr.mxu0 %v11124_v50  ;;  %v11173_v49 = vld [vmem:[#allocation118_spill] sm:$0xff]  ;;  %v11174_v50 = vld [vmem:[#allocation119_spill] sm:$0xff] }
 0x169   : > { %1233 = vmatpush1.msra.mxu1 %v11125_v51  ;;  %1304 = vmatpush1.msra.mxu0 %v11126_v52  ;;  %v11175_v51 = vld [vmem:[#allocation120_spill] sm:$0xff]  ;;  %v11176_v52 = vld [vmem:[#allocation121_spill] sm:$0xff] }
 0x16a   : > { %1234 = vmatprep.subr.mxu1 %v11127_v24  ;;  %1305 = vmatprep.subr.mxu0 %v11128_v53  ;;  %v11177_v24 = vld [vmem:[#allocation122_spill] sm:$0xff]  ;;  %v11178_v53 = vld [vmem:[#allocation123_spill] sm:$0xff] }
 0x16b   : > { %1235 = vmatpush1.msra.mxu1 %v11129_v54  ;;  %1306 = vmatpush1.msra.mxu0 %v11130_v55  ;;  %v11179_v54 = vld [vmem:[#allocation124_spill] sm:$0xff]  ;;  %v11180_v55 = vld [vmem:[#allocation125_spill] sm:$0xff] }
 0x16c   : > { %1236 = vmatprep.subr.mxu1 %v11131_v56  ;;  %1307 = vmatprep.subr.mxu0 %v11132_v57  ;;  %v11181_v56 = vld [vmem:[#allocation126_spill] sm:$0xff]  ;;  %v11182_v57 = vld [vmem:[#allocation127_spill] sm:$0xff] }
 0x16d   : > { %1237 = vmatpush1.msra.mxu1 %v11133_v58  ;;  %1308 = vmatpush1.msra.mxu0 %v11134_v59  ;;  %v11183_v58 = vld [vmem:[#allocation128_spill] sm:$0xff]  ;;  %v11184_v59 = vld [vmem:[#allocation129_spill] sm:$0xff] }
 0x16e   : > { %1238 = vmatprep.subr.mxu1 %v11135_v60  ;;  %1309 = vmatprep.subr.mxu0 %v11136_v61  ;;  %v11185_v60 = vld [vmem:[#allocation130_spill] sm:$0xff]  ;;  %v11186_v61 = vld [vmem:[#allocation131_spill] sm:$0xff] }
 0x16f   : > { %1239 = vmatpush1.msra.mxu1 %v11137_v62  ;;  %1310 = vmatpush1.msra.mxu0 %v11138_v63  ;;  %v11187_v62 = vld [vmem:[#allocation132_spill] sm:$0xff]  ;;  %v11188_v63 = vld [vmem:[#allocation133_spill] sm:$0xff] }
 0x170   : > { %1240 = vmatprep.subr.mxu1 %v11139_v1  ;;  %1311 = vmatprep.subr.mxu0 %v11140_v2  ;;  %v11189_v1 = vld [vmem:[#allocation134_spill] sm:$0xff]  ;;  %v11190_v2 = vld [vmem:[#allocation135_spill] sm:$0xff] }
 0x171   : > { %1241 = vmatpush1.msra.mxu1 %v11141_v3  ;;  %1312 = vmatpush1.msra.mxu0 %v11142_v4  ;;  %v11191_v3 = vld [vmem:[#allocation136_spill] sm:$0xff]  ;;  %v11192_v4 = vld [vmem:[#allocation137_spill] sm:$0xff] }
 0x172   : > { %1242 = vmatprep.subr.mxu1 %v11143_v5  ;;  %1313 = vmatprep.subr.mxu0 %v11144_v6  ;;  %v11193_v5 = vld [vmem:[#allocation138_spill] sm:$0xff]  ;;  %v11194_v6 = vld [vmem:[#allocation139_spill] sm:$0xff] }
 0x173   : > { %1243 = vmatpush1.msra.mxu1 %v11145_v8  ;;  %1314 = vmatpush1.msra.mxu0 %v11146_v9  ;;  %v11195_v8 = vld [vmem:[#allocation140_spill] sm:$0xff]  ;;  %v11196_v9 = vld [vmem:[#allocation141_spill] sm:$0xff] }
 0x174   : > { %1244 = vmatprep.subr.mxu1 %v11147_v10  ;;  %1315 = vmatprep.subr.mxu0 %v11148_v11  ;;  %v11197_v10 = vld [vmem:[#allocation142_spill] sm:$0xff]  ;;  %v11198_v11 = vld [vmem:[#allocation143_spill] sm:$0xff] }
 0x175   : > { %1245 = vmatpush1.msra.mxu1 %v11149_v12  ;;  %1316 = vmatpush1.msra.mxu0 %v11150_v13  ;;  %v11199_v12 = vld [vmem:[#allocation144_spill] sm:$0xff]  ;;  %v11200_v13 = vld [vmem:[#allocation145_spill] sm:$0xff] }
 0x176   : > { %1246 = vmatprep.subr.mxu1 %v11151_v14  ;;  %1317 = vmatprep.subr.mxu0 %v11152_v15  ;;  %v11201_v14 = vld [vmem:[#allocation146_spill] sm:$0xff]  ;;  %v11202_v15 = vld [vmem:[#allocation147_spill] sm:$0xff] }
 0x177   : > { %1247 = vmatpush1.msra.mxu1 %v11153_v16  ;;  %1318 = vmatpush1.msra.mxu0 %v11154_v17  ;;  %v11203_v16 = vld [vmem:[#allocation148_spill] sm:$0xff]  ;;  %v11204_v17 = vld [vmem:[#allocation149_spill] sm:$0xff] }
 0x178   : > { %1248 = vmatprep.subr.mxu1 %v11155_v19  ;;  %1319 = vmatprep.subr.mxu0 %v11156_v21  ;;  %v11205_v19 = vld [vmem:[#allocation150_spill] sm:$0xff]  ;;  %v11206_v21 = vld [vmem:[#allocation151_spill] sm:$0xff] }
 0x179   : > { %1249 = vmatpush1.msra.mxu1 %v11157_v33  ;;  %1320 = vmatpush1.msra.mxu0 %v11158_v34  ;;  %v11207_v33 = vld [vmem:[#allocation152_spill] sm:$0xff]  ;;  %v11208_v34 = vld [vmem:[#allocation153_spill] sm:$0xff] }
 0x17a   : > { %1250 = vmatprep.subr.mxu1 %v11159_v35  ;;  %1321 = vmatprep.subr.mxu0 %v11160_v36  ;;  %v11209_v35 = vld [vmem:[#allocation154_spill] sm:$0xff]  ;;  %v11210_v36 = vld [vmem:[#allocation155_spill] sm:$0xff] }
 0x17b   : > { %1251 = vmatpush1.msra.mxu1 %v11161_v37  ;;  %1322 = vmatpush1.msra.mxu0 %v11162_v38  ;;  %v11211_v37 = vld [vmem:[#allocation156_spill] sm:$0xff]  ;;  %v11212_v38 = vld [vmem:[#allocation157_spill] sm:$0xff] }
 0x17c   : > { %1252 = vmatprep.subr.mxu1 %v11163_v39  ;;  %1323 = vmatprep.subr.mxu0 %v11164_v40  ;;  %v2002_v39 = vld [vmem:[%s10417_s4] sm:$0xff] }
 0x17d   : > { %1253 = vmatpush1.msra.mxu1 %v11165_v41  ;;  %1324 = vmatpush1.msra.mxu0 %v11166_v42  ;;  %v11213_v40 = vld [vmem:[#allocation158_spill] sm:$0xff]  ;;  %v11214_v41 = vld [vmem:[#allocation159_spill] sm:$0xff]  ;;  %v10617_v42 = vmov 0  }
 0x17e   : > { %1254 = vmatprep.subr.mxu1 %v11167_v43  ;;  %1325 = vmatprep.subr.mxu0 %v11168_v44  ;;  %v11215_v43 = vld [vmem:[#allocation160_spill] sm:$0xff]  ;;  %v11216_v44 = vld [vmem:[#allocation161_spill] sm:$0xff] }
 0x17f   : > { %1255 = vmatpush1.msra.mxu1 %v11169_v45  ;;  %1326 = vmatpush1.msra.mxu0 %v11170_v46  ;;  %v11217_v45 = vld [vmem:[#allocation162_spill] sm:$0xff]  ;;  %v11218_v46 = vld [vmem:[#allocation163_spill] sm:$0xff] }
 0x180   : > { %1256 = vmatprep.subr.mxu1 %v11171_v47  ;;  %1327 = vmatprep.subr.mxu0 %v11172_v48  ;;  %v11219_v47 = vld [vmem:[#allocation164_spill] sm:$0xff]  ;;  %v11220_v48 = vld [vmem:[#allocation165_spill] sm:$0xff] }
 0x181   : > { %1257 = vmatpush1.msra.mxu1 %v11173_v49  ;;  %1328 = vmatpush1.msra.mxu0 %v11174_v50  ;;  %v11221_v49 = vld [vmem:[#allocation166_spill] sm:$0xff]  ;;  %v11222_v50 = vld [vmem:[#allocation167_spill] sm:$0xff] }
 0x182   : > { %1258 = vmatprep.subr.mxu1 %v11175_v51  ;;  %1329 = vmatprep.subr.mxu0 %v11176_v52  ;;  %v11223_v51 = vld [vmem:[#allocation168_spill] sm:$0xff]  ;;  %v11224_v52 = vld [vmem:[#allocation169_spill] sm:$0xff] }
 0x183   : > { %1259 = vmatpush2.msra.mxu1 %v11177_v24  ;;  %1330 = vmatpush2.msra.mxu0 %v11178_v53  ;;  %v11225_v24 = vld [vmem:[#allocation170_spill] sm:$0xff]  ;;  %v11226_v53 = vld [vmem:[#allocation171_spill] sm:$0xff] }
 0x184   : > { %1260 = vmatprep.subr.mxu1 %v11179_v54  ;;  %1331 = vmatprep.subr.mxu0 %v11180_v55  ;;  %v6659_v54 = vpop.f32.mrf.mxu0  ;;  %v11227_v55 = vld [vmem:[#allocation172_spill] sm:$0xff] }
 0x185   : > { %1261 = vmatpush2.msra.mxu1 %v11181_v56  ;;  %1332 = vmatpush2.msra.mxu0 %v11182_v57  ;;  %v11228_v56 = vld [vmem:[#allocation173_spill] sm:$0xff]  ;;  %v11229_v57 = vld [vmem:[#allocation174_spill] sm:$0xff] }
 0x186   : > { %1262 = vmatprep.subr.mxu1 %v11183_v58  ;;  %1333 = vmatprep.subr.mxu0 %v11184_v59  ;;  %v11230_v58 = vld [vmem:[#allocation175_spill] sm:$0xff]  ;;  %v11231_v59 = vld [vmem:[#allocation176_spill] sm:$0xff] }
 0x187   : > { %1263 = vmatpush2.msra.mxu1 %v11185_v60  ;;  %1334 = vmatpush2.msra.mxu0 %v11186_v61  ;;  %v6669_v60 = vpop.f32.mrf.mxu0  ;;  %v11232_v61 = vld [vmem:[#allocation177_spill] sm:$0xff] }
 0x188   : > { %1264 = vmatprep.subr.mxu1 %v11187_v62  ;;  %1335 = vmatprep.subr.mxu0 %v11188_v63  ;;  %v11233_v62 = vld [vmem:[#allocation178_spill] sm:$0xff]  ;;  %v11234_v63 = vld [vmem:[#allocation179_spill] sm:$0xff] }
 0x189   : > { %1265 = vmatpush2.msra.mxu1 %v11189_v1  ;;  %1336 = vmatpush2.msra.mxu0 %v11190_v2  ;;  %v11236_v1 = vld [vmem:[#allocation181_spill] sm:$0xff]  ;;  %v11237_v2 = vld [vmem:[#allocation182_spill] sm:$0xff] }
 0x18a   : > { %1266 = vmatprep.subr.mxu1 %v11191_v3  ;;  %1337 = vmatprep.subr.mxu0 %v11192_v4  ;;  %v11241_v3 = vld [vmem:[#allocation186_spill] sm:$0xff]  ;;  %v11242_v4 = vld [vmem:[#allocation187_spill] sm:$0xff] }
 0x18b   : > { %1267 = vmatpush2.msra.mxu1 %v11193_v5  ;;  %1338 = vmatpush2.msra.mxu0 %v11194_v6  ;;  %v11243_v5 = vld [vmem:[#allocation188_spill] sm:$0xff] }
 0x18c   : > { %1268 = vmatprep.subr.mxu1 %v11195_v8  ;;  %1339 = vmatprep.subr.mxu0 %v11196_v9  ;;  %v11244_v8 = vld [vmem:[#allocation189_spill] sm:$0xff]  ;;  %v11245_v9 = vld [vmem:[#allocation190_spill] sm:$0xff] }
 0x18d   : > { %1269 = vmatpush2.msra.mxu1 %v11197_v10  ;;  %1340 = vmatpush2.msra.mxu0 %v11198_v11  ;;  %v11246_v10 = vld [vmem:[#allocation191_spill] sm:$0xff]  ;;  %v6698_v11 = vld [vmem:[%s10415_s2 + $0x310] sm:$0xff] }
 0x18e   : > { %1270 = vmatprep.subr.mxu1 %v11199_v12  ;;  %1341 = vmatprep.subr.mxu0 %v11200_v13  ;;  %v6753_v13 = vld [vmem:[%s10415_s2 + $0x218] sm:$0xff] }
 0x18f   : > { %1271 = vmatpush2.msra.mxu1 %v11201_v14  ;;  %1342 = vmatpush2.msra.mxu0 %v11202_v15  ;;  %v6765_v14 = vld [vmem:[%s10415_s2 + $0x210] sm:$0xff]  ;;  %v6771_v15 = vld [vmem:[%s10415_s2 + $0x1c8] sm:$0xff] }
 0x190   : > { %1272 = vmatprep.subr.mxu1 %v11203_v16  ;;  %1343 = vmatprep.subr.mxu0 %v11204_v17  ;;  %v6777_v16 = vld [vmem:[%s10415_s2 + $0x1d8] sm:$0xff]  ;;  %v6783_v17 = vld [vmem:[%s10415_s2 + $0x1c0] sm:$0xff] }
 0x191   : > { %1273 = vmatpush2.msra.mxu1 %v11205_v19  ;;  %1344 = vmatpush2.msra.mxu0 %v11206_v21  ;;  %v6789_v19 = vld [vmem:[%s10415_s2 + $0x1d0] sm:$0xff]  ;;  %v6795_v21 = vld [vmem:[%s10415_s2 + $0x188] sm:$0xff] }
 0x192   : > { %1274 = vmatprep.subr.mxu1 %v11207_v33  ;;  %1345 = vmatprep.subr.mxu0 %v11208_v34  ;;  %v6801_v33 = vld [vmem:[%s10415_s2 + $0x198] sm:$0xff]  ;;  %v6807_v34 = vld [vmem:[%s10415_s2 + $0x180] sm:$0xff] }
 0x193   : > { %1275 = vmatpush2.msra.mxu1 %v11209_v35  ;;  %1346 = vmatpush2.msra.mxu0 %v11210_v36  ;;  %v6813_v35 = vld [vmem:[%s10415_s2 + $0x190] sm:$0xff]  ;;  %v6819_v36 = vld [vmem:[%s10415_s2 + $0x148] sm:$0xff] }
 0x194   : > { %1276 = vmatprep.subr.mxu1 %v11211_v37  ;;  %1347 = vmatprep.subr.mxu0 %v11212_v38  ;;  %v6825_v37 = vld [vmem:[%s10415_s2 + $0x158] sm:$0xff]  ;;  %v6831_v38 = vld [vmem:[%s10415_s2 + $0x140] sm:$0xff] }
 0x195   : > { %1277 = vmatpush2.msra.mxu1 %v11213_v40  ;;  %1348 = vmatpush2.msra.mxu0 %v11214_v41  ;;  %v6843_v40 = vld [vmem:[%s10415_s2 + $0x108] sm:$0xff]  ;;  %v6849_v41 = vld [vmem:[%s10415_s2 + $0x118] sm:$0xff] }
 0x196   : > { %4414 = vset.pattern.permute.xlu1 %v10617_v42  ;;  %1278 = vmatprep.subr.mxu1 %v11215_v43  ;;  %v6855_v43 = vld [vmem:[%s10415_s2 + $0x100] sm:$0xff] }
 0x197   : > { %1349 = vmatprep.subr.mxu0 %v11216_v44  ;;  %2005 = vperm.xlu1 %4414, %v2002_v39   ;;  %v6837_v39 = vld [vmem:[%s10415_s2 + $0x150] sm:$0xff]  ;;  %v7071_v42 = vld [vmem:[%s10415_s2 + $0x6c0] sm:$0xff] }
 0x198   : > { %1279 = vmatpush2.msra.mxu1 %v11217_v45  ;;  %1350 = vmatpush2.msra.mxu0 %v11218_v46  ;;  %v6861_v44 = vld [vmem:[%s10415_s2 + $0x110] sm:$0xff]  ;;  %v6867_v45 = vld [vmem:[%s10415_s2 + $0xc8] sm:$0xff]  ;;  %v6873_v46 = vld [vmem:[%s10415_s2 + $0xd8] sm:$0xff]  ;;  %11251 = vst [vmem:[#allocation9_spill] sm:$0xff] %v7071_v42 }
 0x199   : > { %1280 = vmatprep.subr.mxu1 %v11219_v47  ;;  %1351 = vmatprep.subr.mxu0 %v11220_v48  ;;  %v6879_v47 = vld [vmem:[%s10415_s2 + $0xc0] sm:$0xff]  ;;  %v6885_v48 = vld [vmem:[%s10415_s2 + $0xd0] sm:$0xff] }
 0x19a   : > { %1281 = vmatpush2.msra.mxu1 %v11221_v49  ;;  %1352 = vmatpush2.msra.mxu0 %v11222_v50  ;;  %v6891_v49 = vld [vmem:[%s10415_s2 + $0x88] sm:$0xff]  ;;  %v6897_v50 = vld [vmem:[%s10415_s2 + $0x98] sm:$0xff] }
 0x19b   : > { %1282 = vmatprep.subr.mxu1 %v11223_v51  ;;  %1353 = vmatprep.subr.mxu0 %v11224_v52  ;;  %v6903_v51 = vld [vmem:[%s10415_s2 + $0x80] sm:$0xff]  ;;  %v6909_v52 = vld [vmem:[%s10415_s2 + $0x90] sm:$0xff] }
 0x19c   : > { %1283 = vmatpush2.msra.mxu1 %v11225_v24  ;;  %1354 = vmatpush2.msra.mxu0 %v11226_v53  ;;  %v6915_v24 = vld [vmem:[%s10415_s2 + $0x48] sm:$0xff]  ;;  %v6921_v53 = vld [vmem:[%s10415_s2 + $0x58] sm:$0xff] }
 0x19d   : > { %1284 = vmatprep.subr.mxu1 %v11227_v55  ;;  %1355 = vmatprep.subr.mxu0 %v11228_v56  ;;  %v6927_v55 = vld [vmem:[%s10415_s2 + $0x40] sm:$0xff]  ;;  %v6933_v56 = vld [vmem:[%s10415_s2 + $0x50] sm:$0xff] }
 0x19e   : > { %1285 = vmatpush2.msra.mxu1 %v11229_v57  ;;  %1356 = vmatpush2.msra.mxu0 %v11230_v58  ;;  %v6939_v57 = vld [vmem:[%s10415_s2 + $0x8] sm:$0xff]  ;;  %v6945_v58 = vld [vmem:[%s10415_s2 + $0x18] sm:$0xff] }
 0x19f   : > { %1286 = vmatprep.subr.mxu1 %v6251_v0  ;;  %1357 = vmatprep.subr.mxu0 %v11231_v59  ;;  %v839_v0 = vpop.f32.mrf.mxu1  ;;  %v6951_v59 = vld [vmem:[%s10415_s2] sm:$0xff] }
 0x1a0   : > { %1287 = vmatpush2.msra.mxu1 %v6263_v27  ;;  %1358 = vmatpush2.msra.mxu0 %v6268_v20  ;;  %v11235_v27 = vld [vmem:[#allocation180_spill] sm:$0xff]  ;;  %v910_v20 = vpop.f32.mrf.mxu0 }
 0x1a1   : > { %1288 = vmatprep.subr.mxu1 %v11232_v61  ;;  %1359 = vmatprep.subr.mxu0 %v6280_v31  ;;  %v11239_v31 = vld [vmem:[#allocation184_spill] sm:$0xff]  ;;  %v841_v6 = vpop.f32.mrf.mxu1 }
 0x1a2   : > { %1289 = vmatpush2.msra.mxu1 %v6287_v18  ;;  %1360 = vmatpush2.msra.mxu0 %v11233_v62  ;;  %v11238_v18 = vld [vmem:[#allocation183_spill] sm:$0xff]  ;;  %v912_v12 = vpop.f32.mrf.mxu0  ;;  %v6957_v61 = vld [vmem:[%s10415_s2 + $0x10] sm:$0xff] }
 0x1a3   : > { %1291 = vmatmul.mubr.f32.vlgmr.msra.gmra.mxu1 %v6519_v7  ;;  %1362 = vmatmul.mubr.f32.vlgmr.msra.gmra.mxu0 %v6519_v7  ;;  %v11240_v7 = vld [vmem:[#allocation185_spill] sm:$0xff]  ;;  %v6963_v62 = vld [vmem:[%s10415_s2 + $0x7c8] sm:$0xff] }
 0x1a4   : > { %1393 = vmatprep.subr.mxu1 %v11234_v63  ;;  %1464 = vmatprep.subr.mxu0 %v11235_v27  ;;  %v6975_v63 = vld [vmem:[%s10415_s2 + $0x7c0] sm:$0xff]  ;;  %v6981_v27 = vld [vmem:[%s10415_s2 + $0x7d0] sm:$0xff] }
 0x1a5   : > { %1394 = vmatpush1.msra.mxu1 %v11236_v1  ;;  %1465 = vmatpush1.msra.mxu0 %v11237_v2  ;;  %v6993_v1 = vld [vmem:[%s10415_s2 + $0x798] sm:$0xff]  ;;  %v6999_v2 = vld [vmem:[%s10415_s2 + $0x780] sm:$0xff] }
 0x1a6   : > { %1057 = vrot.lane.b32.xlu0 %v839_v0, %s4717_s26  ;;  %1395 = vmatprep.subr.mxu1 %v11238_v18  ;;  %v6969_v0 = vld [vmem:[%s10415_s2 + $0x7d8] sm:$0xff]  ;;  %v7005_v18 = vld [vmem:[%s10415_s2 + $0x790] sm:$0xff] }
 0x1a7   : > { %1466 = vmatprep.subr.mxu0 %v11239_v31  ;;  %1061 = vrot.lane.b32.xlu1 %v910_v20, %s4717_s26  ;;  %v6987_v20 = vld [vmem:[%s10415_s2 + $0x788] sm:$0xff] }
 0x1a8   : > { %1396 = vmatpush1.msra.mxu1 %v11240_v7  ;;  %1467 = vmatpush1.msra.mxu0 %v11241_v3  ;;  %v7011_v31 = vld [vmem:[%s10415_s2 + $0x748] sm:$0xff]  ;;  %v7017_v7 = vld [vmem:[%s10415_s2 + $0x758] sm:$0xff]  ;;  %v7023_v3 = vld [vmem:[%s10415_s2 + $0x740] sm:$0xff] }
 0x1a9   : > { %1397 = vmatprep.subr.mxu1 %v11242_v4  ;;  %1468 = vmatprep.subr.mxu0 %v11243_v5  ;;  %v7029_v4 = vld [vmem:[%s10415_s2 + $0x750] sm:$0xff]  ;;  %v7035_v5 = vld [vmem:[%s10415_s2 + $0x708] sm:$0xff] }
 0x1aa   : > { %1398 = vmatpush1.msra.mxu1 %v11244_v8  ;;  %1469 = vmatpush1.msra.mxu0 %v6371_v25  ;;  %v6705_v25 = vld [vmem:[%s10415_s2 + $0x2d8] sm:$0xff]  ;;  %v7047_v8 = vld [vmem:[%s10415_s2 + $0x700] sm:$0xff] }
 0x1ab   : > { %1059 = vrot.lane.b32.xlu0 %v841_v6, %s4717_s26  ;;  %1399 = vmatprep.subr.mxu1 %v11245_v9  ;;  %v7041_v6 = vld [vmem:[%s10415_s2 + $0x718] sm:$0xff]  ;;  %11247 = vst [vmem:[#allocation5_spill] sm:$0xff] %v7047_v8  ;;  %v7053_v9 = vld [vmem:[%s10415_s2 + $0x710] sm:$0xff] }
 0x1ac   : > { %1470 = vmatprep.subr.mxu0 %v11246_v10  ;;  %1400 = vmatpush1.msra.mxu1 %v6389_v22  ;;  %v6712_v22 = vld [vmem:[%s10415_s2 + $0x2d0] sm:$0xff]  ;;  %11248 = vst [vmem:[#allocation2_spill] sm:$0xff] %v7053_v9  ;;  %v7059_v10 = vld [vmem:[%s10415_s2 + $0x6c8] sm:$0xff] }
 0x1ad   : > { %1471 = vmatpush1.msra.mxu0 %v6698_v11  ;;  %1401 = vmatprep.subr.mxu1 %v6396_v28  ;;  %v6719_v28 = vld [vmem:[%s10415_s2 + $0x298] sm:$0xff]  ;;  %11249 = vst [vmem:[#allocation7_spill] sm:$0xff] %v7059_v10 }
 0x1ae   : > { %1472 = vmatprep.subr.mxu0 %v6705_v25  ;;  %1402 = vmatpush1.msra.mxu1 %v6403_v23  ;;  %v6727_v23 = vld [vmem:[%s10415_s2 + $0x290] sm:$0xff] }
 0x1af   : > { %1473 = vmatpush1.msra.mxu0 %v6712_v22  ;;  %1403 = vmatprep.subr.mxu1 %v6410_v26  ;;  %v6734_v26 = vld [vmem:[%s10415_s2 + $0x258] sm:$0xff] }
 0x1b0   : > { %1474 = vmatprep.subr.mxu0 %v6719_v28  ;;  %1063 = vrot.lane.b32.xlu0 %v912_v12, %s4717_s26  ;;  %v7065_v12 = vld [vmem:[%s10415_s2 + $0x6d8] sm:$0xff] }
 0x1b1   : > { %1404 = vmatpush1.msra.mxu1 %v6417_v29  ;;  %1475 = vmatpush1.msra.mxu0 %v6727_v23  ;;  %v6741_v29 = vld [vmem:[%s10415_s2 + $0x250] sm:$0xff]  ;;  %11250 = vst [vmem:[#allocation3_spill] sm:$0xff] %v7065_v12 }
 0x1b2   : > { %1405 = vmatprep.subr.mxu1 %v6424_v30  ;;  %1476 = vmatprep.subr.mxu0 %v6734_v26  ;;  %v6747_v30 = vld [vmem:[%s10415_s2 + $0x208] sm:$0xff] }
 0x1b3   : > { %1406 = vmatpush1.msra.mxu1 %v6431_v32  ;;  %1477 = vmatpush1.msra.mxu0 %v6741_v29  ;;  %v6759_v32 = vld [vmem:[%s10415_s2 + $0x200] sm:$0xff] }
 0x1b4   : > { %1407 = vmatprep.subr.mxu1 %v6747_v30  ;;  %1478 = vmatprep.subr.mxu0 %v6753_v13 }
 0x1b5   : > { %1408 = vmatpush1.msra.mxu1 %v6759_v32  ;;  %1479 = vmatpush1.msra.mxu0 %v6765_v14 }
 0x1b6   : > { %1409 = vmatprep.subr.mxu1 %v6771_v15  ;;  %1480 = vmatprep.subr.mxu0 %v6777_v16 }
 0x1b7   : > { %1410 = vmatpush1.msra.mxu1 %v6783_v17  ;;  %1481 = vmatpush1.msra.mxu0 %v6789_v19 }
 0x1b8   : > { %1411 = vmatprep.subr.mxu1 %v6795_v21  ;;  %1482 = vmatprep.subr.mxu0 %v6801_v33 }
 0x1b9   : > { %1412 = vmatpush1.msra.mxu1 %v6807_v34  ;;  %1483 = vmatpush1.msra.mxu0 %v6813_v35 }
 0x1ba   : > { %1413 = vmatprep.subr.mxu1 %v6819_v36  ;;  %1484 = vmatprep.subr.mxu0 %v6825_v37 }
 0x1bb   : > { %1414 = vmatpush1.msra.mxu1 %v6831_v38  ;;  %1485 = vmatpush1.msra.mxu0 %v6837_v39 }
 0x1bc   : > { %1415 = vmatprep.subr.mxu1 %v6843_v40  ;;  %1486 = vmatprep.subr.mxu0 %v6849_v41 }
 0x1bd   : > { %1416 = vmatpush1.msra.mxu1 %v6855_v43  ;;  %1487 = vmatpush1.msra.mxu0 %v6861_v44 }
 0x1be   : > { %1417 = vmatprep.subr.mxu1 %v6867_v45  ;;  %1488 = vmatprep.subr.mxu0 %v6873_v46 }
 0x1bf   : > { %1418 = vmatpush1.msra.mxu1 %v6879_v47  ;;  %1489 = vmatpush1.msra.mxu0 %v6885_v48 }
 0x1c0   : > { %1419 = vmatprep.subr.mxu1 %v6891_v49  ;;  %1490 = vmatprep.subr.mxu0 %v6897_v50 }
 0x1c1   : > { %1420 = vmatpush1.msra.mxu1 %v6903_v51  ;;  %1491 = vmatpush1.msra.mxu0 %v6909_v52 }
 0x1c2   : > { %1421 = vmatprep.subr.mxu1 %v6915_v24  ;;  %1492 = vmatprep.subr.mxu0 %v6921_v53 }
 0x1c3   : > { %1422 = vmatpush1.msra.mxu1 %v6927_v55  ;;  %1493 = vmatpush1.msra.mxu0 %v6933_v56 }
 0x1c4   : > { %1423 = vmatprep.subr.mxu1 %v6939_v57  ;;  %1494 = vmatprep.subr.mxu0 %v6945_v58 }
 0x1c5   : > { %1424 = vmatpush1.msra.mxu1 %v6951_v59  ;;  %1495 = vmatpush1.msra.mxu0 %v6957_v61 }
 0x1c6   : > { %1425 = vmatprep.subr.mxu1 %v6963_v62  ;;  %1496 = vmatprep.subr.mxu0 %v6969_v0 }
 0x1c7   : > { %1426 = vmatpush2.msra.mxu1 %v6975_v63  ;;  %1497 = vmatpush2.msra.mxu0 %v6981_v27 }
 0x1c8   : > { %1427 = vmatprep.subr.mxu1 %v6987_v20  ;;  %1498 = vmatprep.subr.mxu0 %v6993_v1 }
 0x1c9   : > { %1428 = vmatpush2.msra.mxu1 %v6999_v2  ;;  %1499 = vmatpush2.msra.mxu0 %v7005_v18 }
 0x1ca   : > { %1429 = vmatprep.subr.mxu1 %v7011_v31  ;;  %1500 = vmatprep.subr.mxu0 %v7017_v7 }
 0x1cb   : > { %1430 = vmatpush2.msra.mxu1 %v7023_v3  ;;  %1501 = vmatpush2.msra.mxu0 %v7029_v4 }
 0x1cc   : > { %1431 = vmatprep.subr.mxu1 %v7035_v5  ;;  %1502 = vmatprep.subr.mxu0 %v7041_v6 }
 0x1cd   : > { %1432 = vmatpush2.msra.mxu1 %v7047_v8  ;;  %1503 = vmatpush2.msra.mxu0 %v7053_v9  ;;  %v7077_v9 = vld [vmem:[%s10415_s2 + $0x6d0] sm:$0xff] }
 0x1ce   : > { %1433 = vmatprep.subr.mxu1 %v7059_v10  ;;  %1504 = vmatprep.subr.mxu0 %v7065_v12  ;;  %11252 = vst [vmem:[#allocation4_spill] sm:$0xff] %v7077_v9  ;;  %v7083_v10 = vld [vmem:[%s10415_s2 + $0x688] sm:$0xff]  ;;  %v7089_v12 = vld [vmem:[%s10415_s2 + $0x698] sm:$0xff] }
 0x1cf   : > { %1434 = vmatpush2.msra.mxu1 %v7071_v42  ;;  %1505 = vmatpush2.msra.mxu0 %v7077_v9  ;;  %11253 = vst [vmem:[#allocation11_spill] sm:$0xff] %v7083_v10  ;;  %11254 = vst [vmem:[#allocation6_spill] sm:$0xff] %v7089_v12  ;;  %v7095_v42 = vld [vmem:[%s10415_s2 + $0x680] sm:$0xff]  ;;  %v7101_v9 = vld [vmem:[%s10415_s2 + $0x690] sm:$0xff] }
 0x1d0   : > { %1435 = vmatprep.subr.mxu1 %v7083_v10  ;;  %1506 = vmatprep.subr.mxu0 %v7089_v12  ;;  %11255 = vst [vmem:[#allocation13_spill] sm:$0xff] %v7095_v42  ;;  %11256 = vst [vmem:[#allocation8_spill] sm:$0xff] %v7101_v9  ;;  %v7107_v10 = vld [vmem:[%s10415_s2 + $0x648] sm:$0xff]  ;;  %v7113_v12 = vld [vmem:[%s10415_s2 + $0x658] sm:$0xff] }
 0x1d1   : > { %1436 = vmatpush2.msra.mxu1 %v7095_v42  ;;  %1507 = vmatpush2.msra.mxu0 %v7101_v9  ;;  %11257 = vst [vmem:[#allocation15_spill] sm:$0xff] %v7107_v10  ;;  %11258 = vst [vmem:[#allocation10_spill] sm:$0xff] %v7113_v12  ;;  %v7119_v42 = vld [vmem:[%s10415_s2 + $0x640] sm:$0xff]  ;;  %v7125_v9 = vld [vmem:[%s10415_s2 + $0x650] sm:$0xff] }
 0x1d2   : > { %1437 = vmatprep.subr.mxu1 %v7107_v10  ;;  %1508 = vmatprep.subr.mxu0 %v7113_v12  ;;  %11259 = vst [vmem:[#allocation17_spill] sm:$0xff] %v7119_v42  ;;  %11260 = vst [vmem:[#allocation12_spill] sm:$0xff] %v7125_v9  ;;  %v7131_v10 = vld [vmem:[%s10415_s2 + $0x608] sm:$0xff]  ;;  %v7137_v12 = vld [vmem:[%s10415_s2 + $0x618] sm:$0xff] }
 0x1d3   : > { %1438 = vmatpush2.msra.mxu1 %v7119_v42  ;;  %1509 = vmatpush2.msra.mxu0 %v7125_v9  ;;  %11261 = vst [vmem:[#allocation19_spill] sm:$0xff] %v7131_v10  ;;  %11262 = vst [vmem:[#allocation14_spill] sm:$0xff] %v7137_v12  ;;  %v7143_v42 = vld [vmem:[%s10415_s2 + $0x600] sm:$0xff]  ;;  %v7149_v9 = vld [vmem:[%s10415_s2 + $0x610] sm:$0xff] }
 0x1d4   : > { %1439 = vmatprep.subr.mxu1 %v7131_v10  ;;  %1510 = vmatprep.subr.mxu0 %v7137_v12  ;;  %11263 = vst [vmem:[#allocation21_spill] sm:$0xff] %v7143_v42  ;;  %11264 = vst [vmem:[#allocation16_spill] sm:$0xff] %v7149_v9  ;;  %v7155_v10 = vld [vmem:[%s10415_s2 + $0x5c8] sm:$0xff]  ;;  %v7161_v12 = vld [vmem:[%s10415_s2 + $0x5d8] sm:$0xff] }
 0x1d5   : > { %1440 = vmatpush2.msra.mxu1 %v7143_v42  ;;  %1511 = vmatpush2.msra.mxu0 %v7149_v9  ;;  %11265 = vst [vmem:[#allocation23_spill] sm:$0xff] %v7155_v10  ;;  %11266 = vst [vmem:[#allocation18_spill] sm:$0xff] %v7161_v12  ;;  %v7167_v42 = vld [vmem:[%s10415_s2 + $0x5c0] sm:$0xff]  ;;  %v7173_v9 = vld [vmem:[%s10415_s2 + $0x5d0] sm:$0xff] }
 0x1d6   : > { %1441 = vmatprep.subr.mxu1 %v7155_v10  ;;  %1512 = vmatprep.subr.mxu0 %v7161_v12  ;;  %11267 = vst [vmem:[#allocation25_spill] sm:$0xff] %v7167_v42  ;;  %11268 = vst [vmem:[#allocation20_spill] sm:$0xff] %v7173_v9  ;;  %v7179_v10 = vld [vmem:[%s10415_s2 + $0x588] sm:$0xff]  ;;  %v7185_v12 = vld [vmem:[%s10415_s2 + $0x598] sm:$0xff] }
 0x1d7   : > { %1442 = vmatpush2.msra.mxu1 %v7167_v42  ;;  %1513 = vmatpush2.msra.mxu0 %v7173_v9  ;;  %11269 = vst [vmem:[#allocation27_spill] sm:$0xff] %v7179_v10  ;;  %11270 = vst [vmem:[#allocation22_spill] sm:$0xff] %v7185_v12  ;;  %v7191_v42 = vld [vmem:[%s10415_s2 + $0x580] sm:$0xff]  ;;  %v7197_v9 = vld [vmem:[%s10415_s2 + $0x590] sm:$0xff] }
 0x1d8   : > { %1443 = vmatprep.subr.mxu1 %v7179_v10  ;;  %1514 = vmatprep.subr.mxu0 %v7185_v12  ;;  %11271 = vst [vmem:[#allocation29_spill] sm:$0xff] %v7191_v42  ;;  %11272 = vst [vmem:[#allocation24_spill] sm:$0xff] %v7197_v9  ;;  %v7203_v10 = vld [vmem:[%s10415_s2 + $0x548] sm:$0xff]  ;;  %v7209_v12 = vld [vmem:[%s10415_s2 + $0x558] sm:$0xff] }
 0x1d9   : > { %1444 = vmatpush2.msra.mxu1 %v7191_v42  ;;  %1515 = vmatpush2.msra.mxu0 %v7197_v9  ;;  %11273 = vst [vmem:[#allocation31_spill] sm:$0xff] %v7203_v10  ;;  %11274 = vst [vmem:[#allocation26_spill] sm:$0xff] %v7209_v12  ;;  %v7215_v42 = vld [vmem:[%s10415_s2 + $0x540] sm:$0xff]  ;;  %v7221_v9 = vld [vmem:[%s10415_s2 + $0x550] sm:$0xff] }
 0x1da   : > { %1445 = vmatprep.subr.mxu1 %v7203_v10  ;;  %1516 = vmatprep.subr.mxu0 %v7209_v12  ;;  %11275 = vst [vmem:[#allocation33_spill] sm:$0xff] %v7215_v42  ;;  %11276 = vst [vmem:[#allocation28_spill] sm:$0xff] %v7221_v9  ;;  %v7227_v10 = vld [vmem:[%s10415_s2 + $0x508] sm:$0xff]  ;;  %v7259_v12 = vld [vmem:[%s10415_s2 + $0x4d8] sm:$0xff] }
 0x1db   : > { %1446 = vmatpush2.msra.mxu1 %v7215_v42  ;;  %1517 = vmatpush2.msra.mxu0 %v7221_v9  ;;  %11277 = vst [vmem:[#allocation35_spill] sm:$0xff] %v7227_v10  ;;  %v7234_v42 = vld [vmem:[%s10415_s2 + $0x518] sm:$0xff]  ;;  %v7241_v9 = vld [vmem:[%s10415_s2 + $0x500] sm:$0xff]  ;;  %11282 = vst [vmem:[#allocation34_spill] sm:$0xff] %v7259_v12 }
 0x1dc   : > { %1447 = vmatprep.subr.mxu1 %v7227_v10  ;;  %1457 = vmatprep.mubr.f32.mxu1 %v6669_v60  ;;  %11278 = vst [vmem:[#allocation30_spill] sm:$0xff] %v7234_v42  ;;  %11279 = vst [vmem:[#allocation37_spill] sm:$0xff] %v7241_v9  ;;  %v7247_v10 = vld [vmem:[%s10415_s2 + $0x510] sm:$0xff] }
 0x1dd   : > { %1518 = vmatprep.subr.mxu0 %v7234_v42  ;;  %1528 = vmatprep.mubr.f32.mxu0 %v6669_v60  ;;  %11280 = vst [vmem:[#allocation32_spill] sm:$0xff] %v7247_v10  ;;  %v7253_v42 = vld [vmem:[%s10415_s2 + $0x4c8] sm:$0xff] }
 0x1de   : > { %1448 = vmatpush2.msra.mxu1 %v7241_v9  ;;  %1519 = vmatpush2.msra.mxu0 %v7247_v10  ;;  %11281 = vst [vmem:[#allocation38_spill] sm:$0xff] %v7253_v42  ;;  %v7265_v9 = vld [vmem:[%s10415_s2 + $0x4c0] sm:$0xff]  ;;  %v7271_v10 = vld [vmem:[%s10415_s2 + $0x4d0] sm:$0xff] }
 0x1df   : > { %1449 = vmatprep.subr.mxu1 %v7253_v42  ;;  %1520 = vmatprep.subr.mxu0 %v7259_v12  ;;  %11283 = vst [vmem:[#allocation39_spill] sm:$0xff] %v7265_v9  ;;  %11284 = vst [vmem:[#allocation36_spill] sm:$0xff] %v7271_v10  ;;  %v7277_v42 = vld [vmem:[%s10415_s2 + $0x488] sm:$0xff]  ;;  %v7283_v12 = vld [vmem:[%s10415_s2 + $0x498] sm:$0xff] }
 0x1e0   : > { %1450 = vmatpush2.msra.mxu1 %v7265_v9  ;;  %1521 = vmatpush2.msra.mxu0 %v7271_v10  ;;  %11285 = vst [vmem:[#allocation40_spill] sm:$0xff] %v7277_v42  ;;  %11286 = vst [vmem:[#allocation41_spill] sm:$0xff] %v7283_v12  ;;  %v7289_v9 = vld [vmem:[%s10415_s2 + $0x480] sm:$0xff]  ;;  %v7295_v10 = vld [vmem:[%s10415_s2 + $0x490] sm:$0xff] }
 0x1e1   : > { %1451 = vmatprep.subr.mxu1 %v7277_v42  ;;  %1522 = vmatprep.subr.mxu0 %v7283_v12  ;;  %11287 = vst [vmem:[#allocation42_spill] sm:$0xff] %v7289_v9  ;;  %11288 = vst [vmem:[#allocation43_spill] sm:$0xff] %v7295_v10  ;;  %v7301_v42 = vld [vmem:[%s10415_s2 + $0x448] sm:$0xff]  ;;  %v7307_v12 = vld [vmem:[%s10415_s2 + $0x458] sm:$0xff] }
 0x1e2   : > { %1452 = vmatpush2.msra.mxu1 %v7289_v9  ;;  %1523 = vmatpush2.msra.mxu0 %v7295_v10  ;;  %11289 = vst [vmem:[#allocation44_spill] sm:$0xff] %v7301_v42  ;;  %11290 = vst [vmem:[#allocation45_spill] sm:$0xff] %v7307_v12  ;;  %v7313_v9 = vld [vmem:[%s10415_s2 + $0x440] sm:$0xff]  ;;  %v7319_v10 = vld [vmem:[%s10415_s2 + $0x450] sm:$0xff] }
 0x1e3   : > { %1453 = vmatprep.subr.mxu1 %v7301_v42  ;;  %1524 = vmatprep.subr.mxu0 %v7307_v12  ;;  %11291 = vst [vmem:[#allocation46_spill] sm:$0xff] %v7313_v9  ;;  %11292 = vst [vmem:[#allocation47_spill] sm:$0xff] %v7319_v10  ;;  %v7325_v42 = vld [vmem:[%s10415_s2 + $0x408] sm:$0xff]  ;;  %v7331_v12 = vld [vmem:[%s10415_s2 + $0x418] sm:$0xff] }
 0x1e4   : > { %1454 = vmatpush2.msra.mxu1 %v7313_v9  ;;  %1525 = vmatpush2.msra.mxu0 %v7319_v10  ;;  %11293 = vst [vmem:[#allocation48_spill] sm:$0xff] %v7325_v42  ;;  %11294 = vst [vmem:[#allocation49_spill] sm:$0xff] %v7331_v12  ;;  %v7337_v9 = vld [vmem:[%s10415_s2 + $0x400] sm:$0xff]  ;;  %v7343_v10 = vld [vmem:[%s10415_s2 + $0x410] sm:$0xff] }
 0x1e5   : > { %1455 = vmatprep.subr.mxu1 %v7325_v42  ;;  %1526 = vmatprep.subr.mxu0 %v7331_v12  ;;  %11295 = vst [vmem:[#allocation50_spill] sm:$0xff] %v7337_v9  ;;  %11296 = vst [vmem:[#allocation51_spill] sm:$0xff] %v7343_v10  ;;  %v981_v42 = vpop.f32.mrf.mxu1  ;;  %v7351_v12 = vld [vmem:[%s10415_s2 + $0x3e8] sm:$0xff] }
 0x1e6   : > { %1456 = vmatpush2.msra.mxu1 %v7337_v9  ;;  %1527 = vmatpush2.msra.mxu0 %v7343_v10  ;;  %11297 = vst [vmem:[#allocation52_spill] sm:$0xff] %v7351_v12  ;;  %v7357_v9 = vld [vmem:[%s10415_s2 + $0x3f8] sm:$0xff]  ;;  %v7363_v10 = vld [vmem:[%s10415_s2 + $0x3e0] sm:$0xff] }
 0x1e7   : > { %1458 = vmatmul.mubr.f32.vlgmr.msra.gmra.mxu1 %v6659_v54  ;;  %1529 = vmatmul.mubr.f32.vlgmr.msra.gmra.mxu0 %v6659_v54  ;;  %11298 = vst [vmem:[#allocation53_spill] sm:$0xff] %v7357_v9  ;;  %11299 = vst [vmem:[#allocation54_spill] sm:$0xff] %v7363_v10  ;;  %v983_v8 = vpop.f32.mrf.mxu1 }
 0x1e8   : > { %1535 = vmatprep.subr.mxu1 %v7351_v12  ;;  %1606 = vmatprep.subr.mxu0 %v7357_v9  ;;  %v7370_v12 = vld [vmem:[%s10415_s2 + $0x3f0] sm:$0xff]  ;;  %v7378_v9 = vld [vmem:[%s10415_s2 + $0x3a8] sm:$0xff] }
 0x1e9   : > { %1536 = vmatpush1.msra.mxu1 %v7363_v10  ;;  %1599 = vmatprep.mubr.f32.mxu1 %v6669_v60  ;;  %11300 = vst [vmem:[#allocation55_spill] sm:$0xff] %v7370_v12  ;;  %11301 = vst [vmem:[#allocation56_spill] sm:$0xff] %v7378_v9  ;;  %v7384_v10 = vld [vmem:[%s10415_s2 + $0x3b8] sm:$0xff] }
 0x1ea   : > { %1607 = vmatpush1.msra.mxu0 %v7370_v12  ;;  %1670 = vmatprep.mubr.f32.mxu0 %v6669_v60  ;;  %11302 = vst [vmem:[#allocation59_spill] sm:$0xff] %v7384_v10  ;;  %v7390_v60 = vld [vmem:[%s10415_s2 + $0x3a0] sm:$0xff] }
 0x1eb   : > { %1065 = vrot.lane.b32.xlu1 %v981_v42, %s4717_s26  ;;  %1537 = vmatprep.subr.mxu1 %v7378_v9  ;;  %11303 = vst [vmem:[#allocation60_spill] sm:$0xff] %v7390_v60  ;;  %v7396_v42 = vld [vmem:[%s10415_s2 + $0x3b0] sm:$0xff]  ;;  %v1052_v9 = vpop.f32.mrf.mxu0  ;;  %v11425_v12 = vld [vmem:[#allocation58_spill] sm:$0xff] }
 0x1ec   : > { %1608 = vmatprep.subr.mxu0 %v7384_v10  ;;  %1538 = vmatpush1.msra.mxu1 %v7390_v60  ;;  %11304 = vst [vmem:[#allocation61_spill] sm:$0xff] %v7396_v42  ;;  %v7403_v10 = vld [vmem:[%s10415_s2 + $0x368] sm:$0xff]  ;;  %v7409_v60 = vld [vmem:[%s10415_s2 + $0x378] sm:$0xff] }
 0x1ed   : > { %1609 = vmatpush1.msra.mxu0 %v7396_v42  ;;  %1067 = vrot.lane.b32.xlu0 %v983_v8, %s4717_s26  ;;  %11305 = vst [vmem:[#allocation62_spill] sm:$0xff] %v7403_v10  ;;  %11306 = vst [vmem:[#allocation63_spill] sm:$0xff] %v7409_v60  ;;  %v7415_v42 = vld [vmem:[%s10415_s2 + $0x360] sm:$0xff]  ;;  %v7421_v8 = vld [vmem:[%s10415_s2 + $0x370] sm:$0xff] }
 0x1ee   : > { %1539 = vmatprep.subr.mxu1 %v7403_v10  ;;  %1610 = vmatprep.subr.mxu0 %v7409_v60  ;;  %11307 = vst [vmem:[#allocation64_spill] sm:$0xff] %v7415_v42  ;;  %11308 = vst [vmem:[#allocation65_spill] sm:$0xff] %v7421_v8  ;;  %v7428_v60 = vld [vmem:[%s10415_s2 + $0x328] sm:$0xff]  ;;  %v7458_v10 = vld [vmem:[%s10415_s2 + $0x2f8] sm:$0xff] }
 0x1ef   : > { %1540 = vmatpush1.msra.mxu1 %v7415_v42  ;;  %1611 = vmatpush1.msra.mxu0 %v7421_v8  ;;  %11309 = vst [vmem:[#allocation66_spill] sm:$0xff] %v7428_v60  ;;  %v7434_v42 = vld [vmem:[%s10415_s2 + $0x338] sm:$0xff]  ;;  %v7440_v8 = vld [vmem:[%s10415_s2 + $0x320] sm:$0xff]  ;;  %11314 = vst [vmem:[#allocation71_spill] sm:$0xff] %v7458_v10 }
 0x1f0   : > { %1069 = vrot.lane.b32.xlu1 %v1052_v9, %s4717_s26  ;;  %1541 = vmatprep.subr.mxu1 %v7428_v60  ;;  %11310 = vst [vmem:[#allocation67_spill] sm:$0xff] %v7434_v42  ;;  %11311 = vst [vmem:[#allocation68_spill] sm:$0xff] %v7440_v8  ;;  %v7446_v9 = vld [vmem:[%s10415_s2 + $0x330] sm:$0xff]  ;;  %v7452_v60 = vld [vmem:[%s10415_s2 + $0x2e8] sm:$0xff] }
 0x1f1   : > { %1612 = vmatprep.subr.mxu0 %v7434_v42  ;;  %1542 = vmatpush1.msra.mxu1 %v7440_v8  ;;  %11312 = vst [vmem:[#allocation69_spill] sm:$0xff] %v7446_v9  ;;  %11313 = vst [vmem:[#allocation70_spill] sm:$0xff] %v7452_v60  ;;  %v1054_v42 = vpop.f32.mrf.mxu0  ;;  %v7464_v8 = vld [vmem:[%s10415_s2 + $0x2e0] sm:$0xff] }
 0x1f2   : > { %1613 = vmatpush1.msra.mxu0 %v7446_v9  ;;  %1543 = vmatprep.subr.mxu1 %v7452_v60  ;;  %11315 = vst [vmem:[#allocation72_spill] sm:$0xff] %v7464_v8  ;;  %v7470_v9 = vld [vmem:[%s10415_s2 + $0x2f0] sm:$0xff]  ;;  %v4678_v60 = vld [vmem:[%s10415_s2 + $0x3c8] sm:$0xff] }
 0x1f3   : > { %1614 = vmatprep.subr.mxu0 %v7458_v10  ;;  %1544 = vmatpush1.msra.mxu1 %v7464_v8  ;;  %11316 = vst [vmem:[#allocation73_spill] sm:$0xff] %v7470_v9  ;;  %v7477_v10 = vld [vmem:[%s10415_s2 + $0x2a8] sm:$0xff]  ;;  %v7483_v8 = vld [vmem:[%s10415_s2 + $0x2b8] sm:$0xff] }
 0x1f4   : > { %1615 = vmatpush1.msra.mxu0 %v7470_v9  ;;  %1071 = vrot.lane.b32.xlu1 %v1054_v42, %s4717_s26  ;;  %11317 = vst [vmem:[#allocation74_spill] sm:$0xff] %v7477_v10  ;;  %11318 = vst [vmem:[#allocation75_spill] sm:$0xff] %v7483_v8  ;;  %v7489_v9 = vld [vmem:[%s10415_s2 + $0x2a0] sm:$0xff]  ;;  %v7495_v42 = vld [vmem:[%s10415_s2 + $0x2b0] sm:$0xff] }
 0x1f5   : > { %1545 = vmatprep.subr.mxu1 %v7477_v10  ;;  %1616 = vmatprep.subr.mxu0 %v7483_v8  ;;  %11319 = vst [vmem:[#allocation76_spill] sm:$0xff] %v7489_v9  ;;  %11320 = vst [vmem:[#allocation77_spill] sm:$0xff] %v7495_v42  ;;  %v7501_v10 = vld [vmem:[%s10415_s2 + $0x268] sm:$0xff]  ;;  %v7507_v8 = vld [vmem:[%s10415_s2 + $0x278] sm:$0xff] }
 0x1f6   : > { %1546 = vmatpush1.msra.mxu1 %v7489_v9  ;;  %1617 = vmatpush1.msra.mxu0 %v7495_v42  ;;  %11321 = vst [vmem:[#allocation78_spill] sm:$0xff] %v7501_v10  ;;  %11322 = vst [vmem:[#allocation79_spill] sm:$0xff] %v7507_v8  ;;  %v7513_v9 = vld [vmem:[%s10415_s2 + $0x260] sm:$0xff]  ;;  %v7519_v42 = vld [vmem:[%s10415_s2 + $0x270] sm:$0xff] }
 0x1f7   : > { %1547 = vmatprep.subr.mxu1 %v7501_v10  ;;  %1618 = vmatprep.subr.mxu0 %v7507_v8  ;;  %11323 = vst [vmem:[#allocation80_spill] sm:$0xff] %v7513_v9  ;;  %11324 = vst [vmem:[#allocation81_spill] sm:$0xff] %v7519_v42  ;;  %v7525_v10 = vld [vmem:[%s10415_s2 + $0x228] sm:$0xff]  ;;  %v7531_v8 = vld [vmem:[%s10415_s2 + $0x238] sm:$0xff] }
 0x1f8   : > { %1548 = vmatpush1.msra.mxu1 %v7513_v9  ;;  %1619 = vmatpush1.msra.mxu0 %v7519_v42  ;;  %11325 = vst [vmem:[#allocation82_spill] sm:$0xff] %v7525_v10  ;;  %11326 = vst [vmem:[#allocation83_spill] sm:$0xff] %v7531_v8  ;;  %v7537_v9 = vld [vmem:[%s10415_s2 + $0x220] sm:$0xff]  ;;  %v7543_v42 = vld [vmem:[%s10415_s2 + $0x230] sm:$0xff] }
 0x1f9   : > { %1549 = vmatprep.subr.mxu1 %v7525_v10  ;;  %1620 = vmatprep.subr.mxu0 %v7531_v8  ;;  %11327 = vst [vmem:[#allocation84_spill] sm:$0xff] %v7537_v9  ;;  %11328 = vst [vmem:[#allocation85_spill] sm:$0xff] %v7543_v42  ;;  %v7549_v10 = vld [vmem:[%s10415_s2 + $0x1e8] sm:$0xff]  ;;  %v7555_v8 = vld [vmem:[%s10415_s2 + $0x1f8] sm:$0xff] }
 0x1fa   : > { %1550 = vmatpush1.msra.mxu1 %v7537_v9  ;;  %1621 = vmatpush1.msra.mxu0 %v7543_v42  ;;  %11329 = vst [vmem:[#allocation86_spill] sm:$0xff] %v7549_v10  ;;  %11330 = vst [vmem:[#allocation87_spill] sm:$0xff] %v7555_v8  ;;  %v7561_v9 = vld [vmem:[%s10415_s2 + $0x1e0] sm:$0xff]  ;;  %v7567_v42 = vld [vmem:[%s10415_s2 + $0x1f0] sm:$0xff] }
 0x1fb   : > { %1551 = vmatprep.subr.mxu1 %v7549_v10  ;;  %1622 = vmatprep.subr.mxu0 %v7555_v8  ;;  %11331 = vst [vmem:[#allocation88_spill] sm:$0xff] %v7561_v9  ;;  %11332 = vst [vmem:[#allocation89_spill] sm:$0xff] %v7567_v42  ;;  %v7573_v10 = vld [vmem:[%s10415_s2 + $0x1a8] sm:$0xff]  ;;  %v7579_v8 = vld [vmem:[%s10415_s2 + $0x1b8] sm:$0xff] }
 0x1fc   : > { %1552 = vmatpush1.msra.mxu1 %v7561_v9  ;;  %1623 = vmatpush1.msra.mxu0 %v7567_v42  ;;  %11333 = vst [vmem:[#allocation90_spill] sm:$0xff] %v7573_v10  ;;  %11334 = vst [vmem:[#allocation91_spill] sm:$0xff] %v7579_v8  ;;  %v7585_v9 = vld [vmem:[%s10415_s2 + $0x1a0] sm:$0xff]  ;;  %v7591_v42 = vld [vmem:[%s10415_s2 + $0x1b0] sm:$0xff] }
 0x1fd   : > { %1553 = vmatprep.subr.mxu1 %v7573_v10  ;;  %1624 = vmatprep.subr.mxu0 %v7579_v8  ;;  %11335 = vst [vmem:[#allocation92_spill] sm:$0xff] %v7585_v9  ;;  %11336 = vst [vmem:[#allocation93_spill] sm:$0xff] %v7591_v42  ;;  %v7597_v10 = vld [vmem:[%s10415_s2 + $0x168] sm:$0xff]  ;;  %v7603_v8 = vld [vmem:[%s10415_s2 + $0x178] sm:$0xff] }
 0x1fe   : > { %1554 = vmatpush1.msra.mxu1 %v7585_v9  ;;  %1625 = vmatpush1.msra.mxu0 %v7591_v42  ;;  %11337 = vst [vmem:[#allocation94_spill] sm:$0xff] %v7597_v10  ;;  %11338 = vst [vmem:[#allocation95_spill] sm:$0xff] %v7603_v8  ;;  %v7609_v9 = vld [vmem:[%s10415_s2 + $0x160] sm:$0xff]  ;;  %v7615_v42 = vld [vmem:[%s10415_s2 + $0x170] sm:$0xff] }
 0x1ff   : > { %1555 = vmatprep.subr.mxu1 %v7597_v10  ;;  %1626 = vmatprep.subr.mxu0 %v7603_v8  ;;  %11339 = vst [vmem:[#allocation96_spill] sm:$0xff] %v7609_v9  ;;  %11340 = vst [vmem:[#allocation97_spill] sm:$0xff] %v7615_v42  ;;  %v7621_v10 = vld [vmem:[%s10415_s2 + $0x128] sm:$0xff]  ;;  %v7627_v8 = vld [vmem:[%s10415_s2 + $0x138] sm:$0xff] }
 0x200   : > { %1556 = vmatpush1.msra.mxu1 %v7609_v9  ;;  %1627 = vmatpush1.msra.mxu0 %v7615_v42  ;;  %11341 = vst [vmem:[#allocation98_spill] sm:$0xff] %v7621_v10  ;;  %11342 = vst [vmem:[#allocation99_spill] sm:$0xff] %v7627_v8  ;;  %v7633_v9 = vld [vmem:[%s10415_s2 + $0x120] sm:$0xff]  ;;  %v7639_v42 = vld [vmem:[%s10415_s2 + $0x130] sm:$0xff] }
 0x201   : > { %1557 = vmatprep.subr.mxu1 %v7621_v10  ;;  %1628 = vmatprep.subr.mxu0 %v7627_v8  ;;  %11343 = vst [vmem:[#allocation100_spill] sm:$0xff] %v7633_v9  ;;  %11344 = vst [vmem:[#allocation101_spill] sm:$0xff] %v7639_v42  ;;  %v7645_v10 = vld [vmem:[%s10415_s2 + $0xe8] sm:$0xff]  ;;  %v7651_v8 = vld [vmem:[%s10415_s2 + $0xf8] sm:$0xff] }
 0x202   : > { %1558 = vmatpush1.msra.mxu1 %v7633_v9  ;;  %1629 = vmatpush1.msra.mxu0 %v7639_v42  ;;  %11345 = vst [vmem:[#allocation102_spill] sm:$0xff] %v7645_v10  ;;  %11346 = vst [vmem:[#allocation103_spill] sm:$0xff] %v7651_v8  ;;  %v7657_v9 = vld [vmem:[%s10415_s2 + $0xe0] sm:$0xff]  ;;  %v7663_v42 = vld [vmem:[%s10415_s2 + $0xf0] sm:$0xff] }
 0x203   : > { %1559 = vmatprep.subr.mxu1 %v7645_v10  ;;  %1630 = vmatprep.subr.mxu0 %v7651_v8  ;;  %11347 = vst [vmem:[#allocation104_spill] sm:$0xff] %v7657_v9  ;;  %11348 = vst [vmem:[#allocation105_spill] sm:$0xff] %v7663_v42  ;;  %v7669_v10 = vld [vmem:[%s10415_s2 + $0xa8] sm:$0xff]  ;;  %v7675_v8 = vld [vmem:[%s10415_s2 + $0xb8] sm:$0xff] }
 0x204   : > { %1560 = vmatpush1.msra.mxu1 %v7657_v9  ;;  %1631 = vmatpush1.msra.mxu0 %v7663_v42  ;;  %11349 = vst [vmem:[#allocation106_spill] sm:$0xff] %v7669_v10  ;;  %11350 = vst [vmem:[#allocation107_spill] sm:$0xff] %v7675_v8  ;;  %v7681_v9 = vld [vmem:[%s10415_s2 + $0xa0] sm:$0xff]  ;;  %v7687_v42 = vld [vmem:[%s10415_s2 + $0xb0] sm:$0xff] }
 0x205   : > { %1561 = vmatprep.subr.mxu1 %v7669_v10  ;;  %1632 = vmatprep.subr.mxu0 %v7675_v8  ;;  %11351 = vst [vmem:[#allocation108_spill] sm:$0xff] %v7681_v9  ;;  %11352 = vst [vmem:[#allocation109_spill] sm:$0xff] %v7687_v42  ;;  %v7693_v10 = vld [vmem:[%s10415_s2 + $0x68] sm:$0xff]  ;;  %v7699_v8 = vld [vmem:[%s10415_s2 + $0x78] sm:$0xff] }
 0x206   : > { %1562 = vmatpush1.msra.mxu1 %v7681_v9  ;;  %1633 = vmatpush1.msra.mxu0 %v7687_v42  ;;  %11353 = vst [vmem:[#allocation110_spill] sm:$0xff] %v7693_v10  ;;  %11354 = vst [vmem:[#allocation111_spill] sm:$0xff] %v7699_v8  ;;  %v7705_v9 = vld [vmem:[%s10415_s2 + $0x60] sm:$0xff]  ;;  %v7711_v42 = vld [vmem:[%s10415_s2 + $0x70] sm:$0xff] }
 0x207   : > { %1563 = vmatprep.subr.mxu1 %v7693_v10  ;;  %1634 = vmatprep.subr.mxu0 %v7699_v8  ;;  %11355 = vst [vmem:[#allocation112_spill] sm:$0xff] %v7705_v9  ;;  %11356 = vst [vmem:[#allocation113_spill] sm:$0xff] %v7711_v42  ;;  %v7717_v10 = vld [vmem:[%s10415_s2 + $0x28] sm:$0xff]  ;;  %v7723_v8 = vld [vmem:[%s10415_s2 + $0x38] sm:$0xff] }
 0x208   : > { %1564 = vmatpush1.msra.mxu1 %v7705_v9  ;;  %1635 = vmatpush1.msra.mxu0 %v7711_v42  ;;  %11357 = vst [vmem:[#allocation114_spill] sm:$0xff] %v7717_v10  ;;  %11358 = vst [vmem:[#allocation115_spill] sm:$0xff] %v7723_v8  ;;  %v7729_v9 = vld [vmem:[%s10415_s2 + $0x20] sm:$0xff]  ;;  %v7735_v42 = vld [vmem:[%s10415_s2 + $0x30] sm:$0xff] }
 0x209   : > { %1565 = vmatprep.subr.mxu1 %v7717_v10  ;;  %1636 = vmatprep.subr.mxu0 %v7723_v8  ;;  %11359 = vst [vmem:[#allocation116_spill] sm:$0xff] %v7729_v9  ;;  %11360 = vst [vmem:[#allocation117_spill] sm:$0xff] %v7735_v42  ;;  %v7741_v10 = vld [vmem:[%s10415_s2 + $0x7e8] sm:$0xff]  ;;  %v7747_v8 = vld [vmem:[%s10415_s2 + $0x7f8] sm:$0xff] }
 0x20a   : > { %1566 = vmatpush1.msra.mxu1 %v7729_v9  ;;  %1637 = vmatpush1.msra.mxu0 %v7735_v42  ;;  %11361 = vst [vmem:[#allocation118_spill] sm:$0xff] %v7741_v10  ;;  %11362 = vst [vmem:[#allocation119_spill] sm:$0xff] %v7747_v8  ;;  %v7753_v9 = vld [vmem:[%s10415_s2 + $0x7e0] sm:$0xff]  ;;  %v7759_v42 = vld [vmem:[%s10415_s2 + $0x7f0] sm:$0xff] }
 0x20b   : > { %1567 = vmatprep.subr.mxu1 %v7741_v10  ;;  %1638 = vmatprep.subr.mxu0 %v7747_v8  ;;  %11363 = vst [vmem:[#allocation120_spill] sm:$0xff] %v7753_v9  ;;  %11364 = vst [vmem:[#allocation121_spill] sm:$0xff] %v7759_v42  ;;  %v7765_v10 = vld [vmem:[%s10415_s2 + $0x7a8] sm:$0xff]  ;;  %v7771_v8 = vld [vmem:[%s10415_s2 + $0x7b8] sm:$0xff] }
 0x20c   : > { %1568 = vmatpush2.msra.mxu1 %v7753_v9  ;;  %1639 = vmatpush2.msra.mxu0 %v7759_v42  ;;  %11365 = vst [vmem:[#allocation122_spill] sm:$0xff] %v7765_v10  ;;  %11366 = vst [vmem:[#allocation123_spill] sm:$0xff] %v7771_v8  ;;  %v7777_v9 = vld [vmem:[%s10415_s2 + $0x7a0] sm:$0xff]  ;;  %v7783_v42 = vld [vmem:[%s10415_s2 + $0x7b0] sm:$0xff] }
 0x20d   : > { %1569 = vmatprep.subr.mxu1 %v7765_v10  ;;  %1640 = vmatprep.subr.mxu0 %v7771_v8  ;;  %11367 = vst [vmem:[#allocation124_spill] sm:$0xff] %v7777_v9  ;;  %11368 = vst [vmem:[#allocation125_spill] sm:$0xff] %v7783_v42  ;;  %v7789_v10 = vld [vmem:[%s10415_s2 + $0x768] sm:$0xff]  ;;  %v7795_v8 = vld [vmem:[%s10415_s2 + $0x778] sm:$0xff] }
 0x20e   : > { %1570 = vmatpush2.msra.mxu1 %v7777_v9  ;;  %1641 = vmatpush2.msra.mxu0 %v7783_v42  ;;  %11369 = vst [vmem:[#allocation126_spill] sm:$0xff] %v7789_v10  ;;  %11370 = vst [vmem:[#allocation127_spill] sm:$0xff] %v7795_v8  ;;  %v7801_v9 = vld [vmem:[%s10415_s2 + $0x760] sm:$0xff]  ;;  %v7807_v42 = vld [vmem:[%s10415_s2 + $0x770] sm:$0xff] }
 0x20f   : > { %1571 = vmatprep.subr.mxu1 %v7789_v10  ;;  %1642 = vmatprep.subr.mxu0 %v7795_v8  ;;  %11371 = vst [vmem:[#allocation128_spill] sm:$0xff] %v7801_v9  ;;  %11372 = vst [vmem:[#allocation129_spill] sm:$0xff] %v7807_v42  ;;  %v7813_v10 = vld [vmem:[%s10415_s2 + $0x728] sm:$0xff]  ;;  %v7819_v8 = vld [vmem:[%s10415_s2 + $0x738] sm:$0xff] }
 0x210   : > { %1572 = vmatpush2.msra.mxu1 %v7801_v9  ;;  %1643 = vmatpush2.msra.mxu0 %v7807_v42  ;;  %11373 = vst [vmem:[#allocation130_spill] sm:$0xff] %v7813_v10  ;;  %11374 = vst [vmem:[#allocation131_spill] sm:$0xff] %v7819_v8  ;;  %v7825_v9 = vld [vmem:[%s10415_s2 + $0x720] sm:$0xff]  ;;  %v7831_v42 = vld [vmem:[%s10415_s2 + $0x730] sm:$0xff] }
 0x211   : > { %1573 = vmatprep.subr.mxu1 %v7813_v10  ;;  %1644 = vmatprep.subr.mxu0 %v7819_v8  ;;  %11375 = vst [vmem:[#allocation132_spill] sm:$0xff] %v7825_v9  ;;  %11376 = vst [vmem:[#allocation133_spill] sm:$0xff] %v7831_v42  ;;  %v7837_v10 = vld [vmem:[%s10415_s2 + $0x6e8] sm:$0xff]  ;;  %v7843_v8 = vld [vmem:[%s10415_s2 + $0x6f8] sm:$0xff] }
 0x212   : > { %1574 = vmatpush2.msra.mxu1 %v7825_v9  ;;  %1645 = vmatpush2.msra.mxu0 %v7831_v42  ;;  %11377 = vst [vmem:[#allocation134_spill] sm:$0xff] %v7837_v10  ;;  %11378 = vst [vmem:[#allocation135_spill] sm:$0xff] %v7843_v8  ;;  %v7849_v9 = vld [vmem:[%s10415_s2 + $0x6e0] sm:$0xff]  ;;  %v7855_v42 = vld [vmem:[%s10415_s2 + $0x6f0] sm:$0xff] }
 0x213   : > { %1575 = vmatprep.subr.mxu1 %v7837_v10  ;;  %1646 = vmatprep.subr.mxu0 %v7843_v8  ;;  %11379 = vst [vmem:[#allocation136_spill] sm:$0xff] %v7849_v9  ;;  %11380 = vst [vmem:[#allocation137_spill] sm:$0xff] %v7855_v42  ;;  %v7861_v10 = vld [vmem:[%s10415_s2 + $0x6a8] sm:$0xff]  ;;  %v7867_v8 = vld [vmem:[%s10415_s2 + $0x6b8] sm:$0xff] }
 0x214   : > { %1576 = vmatpush2.msra.mxu1 %v7849_v9  ;;  %1647 = vmatpush2.msra.mxu0 %v7855_v42  ;;  %11381 = vst [vmem:[#allocation138_spill] sm:$0xff] %v7861_v10  ;;  %11382 = vst [vmem:[#allocation139_spill] sm:$0xff] %v7867_v8  ;;  %v7873_v9 = vld [vmem:[%s10415_s2 + $0x6a0] sm:$0xff]  ;;  %v7879_v42 = vld [vmem:[%s10415_s2 + $0x6b0] sm:$0xff] }
 0x215   : > { %1577 = vmatprep.subr.mxu1 %v7861_v10  ;;  %1648 = vmatprep.subr.mxu0 %v7867_v8  ;;  %11383 = vst [vmem:[#allocation140_spill] sm:$0xff] %v7873_v9  ;;  %11384 = vst [vmem:[#allocation141_spill] sm:$0xff] %v7879_v42  ;;  %v7885_v10 = vld [vmem:[%s10415_s2 + $0x668] sm:$0xff]  ;;  %v7891_v8 = vld [vmem:[%s10415_s2 + $0x678] sm:$0xff] }
 0x216   : > { %1578 = vmatpush2.msra.mxu1 %v7873_v9  ;;  %1649 = vmatpush2.msra.mxu0 %v7879_v42  ;;  %11385 = vst [vmem:[#allocation142_spill] sm:$0xff] %v7885_v10  ;;  %11386 = vst [vmem:[#allocation143_spill] sm:$0xff] %v7891_v8  ;;  %v7897_v9 = vld [vmem:[%s10415_s2 + $0x660] sm:$0xff]  ;;  %v7903_v42 = vld [vmem:[%s10415_s2 + $0x670] sm:$0xff] }
 0x217   : > { %1579 = vmatprep.subr.mxu1 %v7885_v10  ;;  %1650 = vmatprep.subr.mxu0 %v7891_v8  ;;  %11387 = vst [vmem:[#allocation144_spill] sm:$0xff] %v7897_v9  ;;  %11388 = vst [vmem:[#allocation145_spill] sm:$0xff] %v7903_v42  ;;  %v7909_v10 = vld [vmem:[%s10415_s2 + $0x628] sm:$0xff]  ;;  %v7915_v8 = vld [vmem:[%s10415_s2 + $0x638] sm:$0xff] }
 0x218   : > { %1580 = vmatpush2.msra.mxu1 %v7897_v9  ;;  %1651 = vmatpush2.msra.mxu0 %v7903_v42  ;;  %11389 = vst [vmem:[#allocation146_spill] sm:$0xff] %v7909_v10  ;;  %11390 = vst [vmem:[#allocation147_spill] sm:$0xff] %v7915_v8  ;;  %v7921_v9 = vld [vmem:[%s10415_s2 + $0x620] sm:$0xff]  ;;  %v7927_v42 = vld [vmem:[%s10415_s2 + $0x630] sm:$0xff] }
 0x219   : > { %1581 = vmatprep.subr.mxu1 %v7909_v10  ;;  %1652 = vmatprep.subr.mxu0 %v7915_v8  ;;  %11391 = vst [vmem:[#allocation148_spill] sm:$0xff] %v7921_v9  ;;  %11392 = vst [vmem:[#allocation149_spill] sm:$0xff] %v7927_v42  ;;  %v7933_v10 = vld [vmem:[%s10415_s2 + $0x5e8] sm:$0xff]  ;;  %v7939_v8 = vld [vmem:[%s10415_s2 + $0x5f8] sm:$0xff] }
 0x21a   : > { %1582 = vmatpush2.msra.mxu1 %v7921_v9  ;;  %1653 = vmatpush2.msra.mxu0 %v7927_v42  ;;  %11393 = vst [vmem:[#allocation150_spill] sm:$0xff] %v7933_v10  ;;  %11394 = vst [vmem:[#allocation151_spill] sm:$0xff] %v7939_v8  ;;  %v7945_v9 = vld [vmem:[%s10415_s2 + $0x5e0] sm:$0xff]  ;;  %v7951_v42 = vld [vmem:[%s10415_s2 + $0x5f0] sm:$0xff] }
 0x21b   : > { %1583 = vmatprep.subr.mxu1 %v7933_v10  ;;  %1654 = vmatprep.subr.mxu0 %v7939_v8  ;;  %11395 = vst [vmem:[#allocation152_spill] sm:$0xff] %v7945_v9  ;;  %11396 = vst [vmem:[#allocation153_spill] sm:$0xff] %v7951_v42  ;;  %v7957_v10 = vld [vmem:[%s10415_s2 + $0x5a8] sm:$0xff]  ;;  %v7963_v8 = vld [vmem:[%s10415_s2 + $0x5b8] sm:$0xff] }
 0x21c   : > { %1584 = vmatpush2.msra.mxu1 %v7945_v9  ;;  %1655 = vmatpush2.msra.mxu0 %v7951_v42  ;;  %11397 = vst [vmem:[#allocation154_spill] sm:$0xff] %v7957_v10  ;;  %11398 = vst [vmem:[#allocation155_spill] sm:$0xff] %v7963_v8  ;;  %v7969_v9 = vld [vmem:[%s10415_s2 + $0x5a0] sm:$0xff]  ;;  %v7975_v42 = vld [vmem:[%s10415_s2 + $0x5b0] sm:$0xff] }
 0x21d   : > { %1585 = vmatprep.subr.mxu1 %v7957_v10  ;;  %1656 = vmatprep.subr.mxu0 %v7963_v8  ;;  %11399 = vst [vmem:[#allocation156_spill] sm:$0xff] %v7969_v9  ;;  %11400 = vst [vmem:[#allocation157_spill] sm:$0xff] %v7975_v42  ;;  %v7981_v10 = vld [vmem:[%s10415_s2 + $0x568] sm:$0xff]  ;;  %v7987_v8 = vld [vmem:[%s10415_s2 + $0x578] sm:$0xff] }
 0x21e   : > { %1586 = vmatpush2.msra.mxu1 %v7969_v9  ;;  %1657 = vmatpush2.msra.mxu0 %v7975_v42  ;;  %11401 = vst [vmem:[#allocation158_spill] sm:$0xff] %v7981_v10  ;;  %11402 = vst [vmem:[#allocation159_spill] sm:$0xff] %v7987_v8  ;;  %v7993_v9 = vld [vmem:[%s10415_s2 + $0x560] sm:$0xff]  ;;  %v7999_v42 = vld [vmem:[%s10415_s2 + $0x570] sm:$0xff] }
 0x21f   : > { %1587 = vmatprep.subr.mxu1 %v7981_v10  ;;  %1658 = vmatprep.subr.mxu0 %v7987_v8  ;;  %11403 = vst [vmem:[#allocation160_spill] sm:$0xff] %v7993_v9  ;;  %11404 = vst [vmem:[#allocation161_spill] sm:$0xff] %v7999_v42  ;;  %v8005_v10 = vld [vmem:[%s10415_s2 + $0x528] sm:$0xff]  ;;  %v8011_v8 = vld [vmem:[%s10415_s2 + $0x538] sm:$0xff] }
 0x220   : > { %1588 = vmatpush2.msra.mxu1 %v7993_v9  ;;  %1659 = vmatpush2.msra.mxu0 %v7999_v42  ;;  %11405 = vst [vmem:[#allocation162_spill] sm:$0xff] %v8005_v10  ;;  %11406 = vst [vmem:[#allocation163_spill] sm:$0xff] %v8011_v8  ;;  %v8017_v9 = vld [vmem:[%s10415_s2 + $0x520] sm:$0xff]  ;;  %v8023_v42 = vld [vmem:[%s10415_s2 + $0x530] sm:$0xff] }
 0x221   : > { %1589 = vmatprep.subr.mxu1 %v8005_v10  ;;  %1660 = vmatprep.subr.mxu0 %v8011_v8  ;;  %11407 = vst [vmem:[#allocation164_spill] sm:$0xff] %v8017_v9  ;;  %11408 = vst [vmem:[#allocation165_spill] sm:$0xff] %v8023_v42  ;;  %v8029_v10 = vld [vmem:[%s10415_s2 + $0x4e8] sm:$0xff]  ;;  %v8035_v8 = vld [vmem:[%s10415_s2 + $0x4f8] sm:$0xff] }
 0x222   : > { %1590 = vmatpush2.msra.mxu1 %v8017_v9  ;;  %1661 = vmatpush2.msra.mxu0 %v8023_v42  ;;  %11409 = vst [vmem:[#allocation166_spill] sm:$0xff] %v8029_v10  ;;  %11410 = vst [vmem:[#allocation167_spill] sm:$0xff] %v8035_v8  ;;  %v8041_v9 = vld [vmem:[%s10415_s2 + $0x4e0] sm:$0xff]  ;;  %v8047_v42 = vld [vmem:[%s10415_s2 + $0x4f0] sm:$0xff] }
 0x223   : > { %1591 = vmatprep.subr.mxu1 %v8029_v10  ;;  %1662 = vmatprep.subr.mxu0 %v8035_v8  ;;  %11411 = vst [vmem:[#allocation168_spill] sm:$0xff] %v8041_v9  ;;  %11412 = vst [vmem:[#allocation169_spill] sm:$0xff] %v8047_v42  ;;  %v8053_v10 = vld [vmem:[%s10415_s2 + $0x4a8] sm:$0xff]  ;;  %v8059_v8 = vld [vmem:[%s10415_s2 + $0x4b8] sm:$0xff] }
 0x224   : > { %1592 = vmatpush2.msra.mxu1 %v8041_v9  ;;  %1663 = vmatpush2.msra.mxu0 %v8047_v42  ;;  %11413 = vst [vmem:[#allocation170_spill] sm:$0xff] %v8053_v10  ;;  %11414 = vst [vmem:[#allocation171_spill] sm:$0xff] %v8059_v8  ;;  %v8065_v9 = vld [vmem:[%s10415_s2 + $0x4a0] sm:$0xff]  ;;  %v8071_v42 = vld [vmem:[%s10415_s2 + $0x4b0] sm:$0xff] }
 0x225   : > { %1593 = vmatprep.subr.mxu1 %v8053_v10  ;;  %1664 = vmatprep.subr.mxu0 %v8059_v8  ;;  %11415 = vst [vmem:[#allocation172_spill] sm:$0xff] %v8065_v9  ;;  %11416 = vst [vmem:[#allocation173_spill] sm:$0xff] %v8071_v42  ;;  %v8077_v10 = vld [vmem:[%s10415_s2 + $0x468] sm:$0xff]  ;;  %v8083_v8 = vld [vmem:[%s10415_s2 + $0x478] sm:$0xff] }
 0x226   : > { %1594 = vmatpush2.msra.mxu1 %v8065_v9  ;;  %1665 = vmatpush2.msra.mxu0 %v8071_v42  ;;  %11417 = vst [vmem:[#allocation174_spill] sm:$0xff] %v8077_v10  ;;  %11418 = vst [vmem:[#allocation175_spill] sm:$0xff] %v8083_v8  ;;  %v8089_v9 = vld [vmem:[%s10415_s2 + $0x460] sm:$0xff]  ;;  %v8095_v42 = vld [vmem:[%s10415_s2 + $0x470] sm:$0xff] }
 0x227   : > { %1595 = vmatprep.subr.mxu1 %v8077_v10  ;;  %1666 = vmatprep.subr.mxu0 %v8083_v8  ;;  %11419 = vst [vmem:[#allocation176_spill] sm:$0xff] %v8089_v9  ;;  %11420 = vst [vmem:[#allocation177_spill] sm:$0xff] %v8095_v42  ;;  %v8101_v10 = vld [vmem:[%s10415_s2 + $0x428] sm:$0xff]  ;;  %v8107_v8 = vld [vmem:[%s10415_s2 + $0x438] sm:$0xff] }
 0x228   : > { %1596 = vmatpush2.msra.mxu1 %v8089_v9  ;;  %1667 = vmatpush2.msra.mxu0 %v8095_v42  ;;  %11421 = vst [vmem:[#allocation178_spill] sm:$0xff] %v8101_v10  ;;  %11422 = vst [vmem:[#allocation179_spill] sm:$0xff] %v8107_v8  ;;  %v8113_v9 = vld [vmem:[%s10415_s2 + $0x420] sm:$0xff]  ;;  %v8119_v42 = vld [vmem:[%s10415_s2 + $0x430] sm:$0xff] }
 0x229   : > { %1597 = vmatprep.subr.mxu1 %v8101_v10  ;;  %1668 = vmatprep.subr.mxu0 %v8107_v8  ;;  %11423 = vst [vmem:[#allocation180_spill] sm:$0xff] %v8113_v9  ;;  %11424 = vst [vmem:[#allocation181_spill] sm:$0xff] %v8119_v42  ;;  %v1150_v10 = vpop.f32.mrf.mxu1  ;;  %v1221_v8 = vpop.f32.mrf.mxu0 }
 0x22a   : > { %1598 = vmatpush2.msra.mxu1 %v8113_v9  ;;  %1669 = vmatpush2.msra.mxu0 %v8119_v42  ;;  %v4679_v9 = vld [vmem:[%s10415_s2 + $0x3d8] sm:$0xff]  ;;  %v4680_v42 = vld [vmem:[%s10415_s2 + $0x3c0] sm:$0xff] }
 0x22b   : > { %1600 = vmatmul.mubr.f32.vlgmr.msra.gmra.mxu1 %v6659_v54  ;;  %1671 = vmatmul.mubr.f32.vlgmr.msra.gmra.mxu0 %v6659_v54  ;;  %v4681_v54 = vld [vmem:[%s10415_s2 + $0x3d0] sm:$0xff] }
 0x22c   : > { %1702 = vmatprep.subr.mxu1 %v4678_v60  ;;  %1773 = vmatprep.subr.mxu0 %v4679_v9  ;;  %v4682_v60 = vld [vmem:[%s10415_s2 + $0x388] sm:$0xff]  ;;  %v4683_v9 = vld [vmem:[%s10415_s2 + $0x398] sm:$0xff] }
 0x22d   : > { %1703 = vmatpush1.msra.mxu1 %v4680_v42  ;;  %1766 = vmatprep.mubr.f32.mxu1 %v11425_v12  ;;  %v4684_v42 = vld [vmem:[%s10415_s2 + $0x380] sm:$0xff] }
 0x22e   : > { %1774 = vmatpush1.msra.mxu0 %v4681_v54  ;;  %1837 = vmatprep.mubr.f32.mxu0 %v11425_v12  ;;  %v4687_v54 = vld [vmem:[%s10415_s2 + $0x358] sm:$0xff] }
 0x22f   : > { %1368 = vrot.lane.b32.xlu0 %v1150_v10, %s4718_s24  ;;  %1372 = vrot.lane.b32.xlu1 %v1221_v8, %s4718_s24  ;;  %v4685_v10 = vld [vmem:[%s10415_s2 + $0x390] sm:$0xff]  ;;  %v4686_v8 = vld [vmem:[%s10415_s2 + $0x348] sm:$0xff] }
 0x230   : > { %1704 = vmatprep.subr.mxu1 %v4682_v60  ;;  %1775 = vmatprep.subr.mxu0 %v4683_v9  ;;  %v1152_v60 = vpop.f32.mrf.mxu1  ;;  %v1223_v9 = vpop.f32.mrf.mxu0 }
 0x231   : > { %1705 = vmatpush1.msra.mxu1 %v4684_v42  ;;  %1776 = vmatpush1.msra.mxu0 %v4685_v10  ;;  %v4688_v42 = vld [vmem:[%s10415_s2 + $0x340] sm:$0xff]  ;;  %v4689_v10 = vld [vmem:[%s10415_s2 + $0x350] sm:$0xff] }
 0x232   : > { %1706 = vmatprep.subr.mxu1 %v4686_v8  ;;  %1777 = vmatprep.subr.mxu0 %v4687_v54  ;;  %v4690_v8 = vld [vmem:[%s10415_s2 + $0x308] sm:$0xff]  ;;  %v4691_v54 = vld [vmem:[%s10415_s2 + $0x318] sm:$0xff] }
 0x233   : > { %1707 = vmatpush1.msra.mxu1 %v4688_v42  ;;  %1778 = vmatpush1.msra.mxu0 %v4689_v10  ;;  %v4692_v42 = vld [vmem:[%s10415_s2 + $0x300] sm:$0xff]  ;;  %v4695_v10 = vld [vmem:[%s10415_s2 + $0x288] sm:$0xff] }
 0x234   : > { %1370 = vrot.lane.b32.xlu1 %v1152_v60, %s4718_s24  ;;  %1374 = vrot.lane.b32.xlu0 %v1223_v9, %s4718_s24  ;;  %v4693_v60 = vld [vmem:[%s10415_s2 + $0x2c8] sm:$0xff]  ;;  %v4694_v9 = vld [vmem:[%s10415_s2 + $0x2c0] sm:$0xff] }
 0x235   : > { %1708 = vmatprep.subr.mxu1 %v4690_v8  ;;  %1779 = vmatprep.subr.mxu0 %v4691_v54  ;;  %v11478_v8 = vld [vmem:[#allocation53_spill] sm:$0xff]  ;;  %v11479_v54 = vld [vmem:[#allocation54_spill] sm:$0xff] }
 0x236   : > { %1709 = vmatpush1.msra.mxu1 %v4692_v42  ;;  %1780 = vmatpush1.msra.mxu0 %v6698_v11  ;;  %v4696_v11 = vld [vmem:[%s10415_s2 + $0x280] sm:$0xff]  ;;  %v11480_v42 = vld [vmem:[#allocation55_spill] sm:$0xff] }
 0x237   : > { %1710 = vmatprep.subr.mxu1 %v4693_v60  ;;  %1781 = vmatprep.subr.mxu0 %v6705_v25  ;;  %v4697_v25 = vld [vmem:[%s10415_s2 + $0x248] sm:$0xff]  ;;  %v11481_v60 = vld [vmem:[#allocation56_spill] sm:$0xff] }
 0x238   : > { %1711 = vmatpush1.msra.mxu1 %v4694_v9  ;;  %1782 = vmatpush1.msra.mxu0 %v6712_v22  ;;  %v4698_v22 = vld [vmem:[%s10415_s2 + $0x240] sm:$0xff]  ;;  %v11482_v9 = vld [vmem:[#allocation59_spill] sm:$0xff] }
 0x239   : > { %1712 = vmatprep.subr.mxu1 %v4695_v10  ;;  %1783 = vmatprep.subr.mxu0 %v6719_v28  ;;  %v11426_v28 = vld [vmem:[#allocation5_spill] sm:$0xff]  ;;  %v11483_v10 = vld [vmem:[#allocation60_spill] sm:$0xff] }
 0x23a   : > { %1713 = vmatpush1.msra.mxu1 %v4696_v11  ;;  %1784 = vmatpush1.msra.mxu0 %v6727_v23  ;;  %v11427_v23 = vld [vmem:[#allocation2_spill] sm:$0xff]  ;;  %v11484_v11 = vld [vmem:[#allocation61_spill] sm:$0xff] }
 0x23b   : > { %1714 = vmatprep.subr.mxu1 %v4697_v25  ;;  %1785 = vmatprep.subr.mxu0 %v6734_v26  ;;  %v11428_v26 = vld [vmem:[#allocation7_spill] sm:$0xff]  ;;  %v11485_v25 = vld [vmem:[#allocation62_spill] sm:$0xff] }
 0x23c   : > { %1715 = vmatpush1.msra.mxu1 %v4698_v22  ;;  %1786 = vmatpush1.msra.mxu0 %v6741_v29  ;;  %v11429_v29 = vld [vmem:[#allocation3_spill] sm:$0xff] }
 0x23d   : > { %1716 = vmatprep.subr.mxu1 %v6747_v30  ;;  %1787 = vmatprep.subr.mxu0 %v6753_v13  ;;  %v11430_v30 = vld [vmem:[#allocation9_spill] sm:$0xff]  ;;  %v11431_v13 = vld [vmem:[#allocation4_spill] sm:$0xff]  ;;  %v11486_v22 = vld [vmem:[#allocation63_spill] sm:$0xff] }
 0x23e   : > { %1717 = vmatpush1.msra.mxu1 %v6759_v32  ;;  %1788 = vmatpush1.msra.mxu0 %v6765_v14  ;;  %v11432_v32 = vld [vmem:[#allocation11_spill] sm:$0xff]  ;;  %v11433_v14 = vld [vmem:[#allocation6_spill] sm:$0xff] }
 0x23f   : > { %1718 = vmatprep.subr.mxu1 %v6771_v15  ;;  %1789 = vmatprep.subr.mxu0 %v6777_v16  ;;  %v11434_v15 = vld [vmem:[#allocation13_spill] sm:$0xff]  ;;  %v11435_v16 = vld [vmem:[#allocation8_spill] sm:$0xff] }
 0x240   : > { %1719 = vmatpush1.msra.mxu1 %v6783_v17  ;;  %1790 = vmatpush1.msra.mxu0 %v6789_v19  ;;  %v11436_v17 = vld [vmem:[#allocation15_spill] sm:$0xff]  ;;  %v11437_v19 = vld [vmem:[#allocation10_spill] sm:$0xff] }
 0x241   : > { %1720 = vmatprep.subr.mxu1 %v6795_v21  ;;  %1791 = vmatprep.subr.mxu0 %v6801_v33  ;;  %v11438_v21 = vld [vmem:[#allocation17_spill] sm:$0xff]  ;;  %v11439_v33 = vld [vmem:[#allocation12_spill] sm:$0xff] }
 0x242   : > { %1721 = vmatpush1.msra.mxu1 %v6807_v34  ;;  %1792 = vmatpush1.msra.mxu0 %v6813_v35  ;;  %v11440_v34 = vld [vmem:[#allocation19_spill] sm:$0xff]  ;;  %v11441_v35 = vld [vmem:[#allocation14_spill] sm:$0xff] }
 0x243   : > { %1722 = vmatprep.subr.mxu1 %v6819_v36  ;;  %1793 = vmatprep.subr.mxu0 %v6825_v37  ;;  %v11442_v36 = vld [vmem:[#allocation21_spill] sm:$0xff]  ;;  %v11443_v37 = vld [vmem:[#allocation16_spill] sm:$0xff] }
 0x244   : > { %1723 = vmatpush1.msra.mxu1 %v6831_v38  ;;  %1794 = vmatpush1.msra.mxu0 %v6837_v39  ;;  %v11444_v38 = vld [vmem:[#allocation23_spill] sm:$0xff]  ;;  %v11445_v39 = vld [vmem:[#allocation18_spill] sm:$0xff] }
 0x245   : > { %1724 = vmatprep.subr.mxu1 %v6843_v40  ;;  %1795 = vmatprep.subr.mxu0 %v6849_v41  ;;  %v11446_v40 = vld [vmem:[#allocation25_spill] sm:$0xff]  ;;  %v11447_v41 = vld [vmem:[#allocation20_spill] sm:$0xff] }
 0x246   : > { %1725 = vmatpush1.msra.mxu1 %v6855_v43  ;;  %1796 = vmatpush1.msra.mxu0 %v6861_v44  ;;  %v11448_v43 = vld [vmem:[#allocation27_spill] sm:$0xff]  ;;  %v11449_v44 = vld [vmem:[#allocation22_spill] sm:$0xff] }
 0x247   : > { %1726 = vmatprep.subr.mxu1 %v6867_v45  ;;  %1797 = vmatprep.subr.mxu0 %v6873_v46  ;;  %v11450_v45 = vld [vmem:[#allocation29_spill] sm:$0xff]  ;;  %v11451_v46 = vld [vmem:[#allocation24_spill] sm:$0xff] }
 0x248   : > { %1727 = vmatpush1.msra.mxu1 %v6879_v47  ;;  %1798 = vmatpush1.msra.mxu0 %v6885_v48  ;;  %v11452_v47 = vld [vmem:[#allocation31_spill] sm:$0xff]  ;;  %v11453_v48 = vld [vmem:[#allocation26_spill] sm:$0xff] }
 0x249   : > { %1728 = vmatprep.subr.mxu1 %v6891_v49  ;;  %1799 = vmatprep.subr.mxu0 %v6897_v50  ;;  %v11454_v49 = vld [vmem:[#allocation33_spill] sm:$0xff]  ;;  %v11455_v50 = vld [vmem:[#allocation28_spill] sm:$0xff] }
 0x24a   : > { %1729 = vmatpush1.msra.mxu1 %v6903_v51  ;;  %1800 = vmatpush1.msra.mxu0 %v6909_v52  ;;  %v11456_v51 = vld [vmem:[#allocation35_spill] sm:$0xff]  ;;  %v11457_v52 = vld [vmem:[#allocation30_spill] sm:$0xff] }
 0x24b   : > { %1730 = vmatprep.subr.mxu1 %v6915_v24  ;;  %1801 = vmatprep.subr.mxu0 %v6921_v53  ;;  %v11458_v24 = vld [vmem:[#allocation37_spill] sm:$0xff]  ;;  %v11459_v53 = vld [vmem:[#allocation32_spill] sm:$0xff] }
 0x24c   : > { %1731 = vmatpush1.msra.mxu1 %v6927_v55  ;;  %1802 = vmatpush1.msra.mxu0 %v6933_v56  ;;  %v11460_v55 = vld [vmem:[#allocation38_spill] sm:$0xff] }
 0x24d   : > { %1732 = vmatprep.subr.mxu1 %v6939_v57  ;;  %1803 = vmatprep.subr.mxu0 %v6945_v58  ;;  %v11461_v56 = vld [vmem:[#allocation34_spill] sm:$0xff]  ;;  %v11462_v57 = vld [vmem:[#allocation39_spill] sm:$0xff]  ;;  %v11463_v58 = vld [vmem:[#allocation36_spill] sm:$0xff] }
 0x24e   : > { %1733 = vmatpush1.msra.mxu1 %v6951_v59  ;;  %1804 = vmatpush1.msra.mxu0 %v6957_v61  ;;  %v11464_v59 = vld [vmem:[#allocation40_spill] sm:$0xff]  ;;  %v11465_v61 = vld [vmem:[#allocation41_spill] sm:$0xff] }
 0x24f   : > { %1734 = vmatprep.subr.mxu1 %v6963_v62  ;;  %1805 = vmatprep.subr.mxu0 %v6969_v0  ;;  %v11466_v62 = vld [vmem:[#allocation42_spill] sm:$0xff]  ;;  %v11467_v0 = vld [vmem:[#allocation43_spill] sm:$0xff] }
 0x250   : > { %1735 = vmatpush2.msra.mxu1 %v6975_v63  ;;  %1806 = vmatpush2.msra.mxu0 %v6981_v27  ;;  %v11468_v63 = vld [vmem:[#allocation44_spill] sm:$0xff]  ;;  %v11469_v27 = vld [vmem:[#allocation45_spill] sm:$0xff] }
 0x251   : > { %1736 = vmatprep.subr.mxu1 %v6987_v20  ;;  %1807 = vmatprep.subr.mxu0 %v6993_v1  ;;  %v11470_v20 = vld [vmem:[#allocation46_spill] sm:$0xff]  ;;  %v11471_v1 = vld [vmem:[#allocation47_spill] sm:$0xff] }
 0x252   : > { %1737 = vmatpush2.msra.mxu1 %v6999_v2  ;;  %1808 = vmatpush2.msra.mxu0 %v7005_v18  ;;  %v11472_v2 = vld [vmem:[#allocation48_spill] sm:$0xff]  ;;  %v11473_v18 = vld [vmem:[#allocation49_spill] sm:$0xff] }
 0x253   : > { %1738 = vmatprep.subr.mxu1 %v7011_v31  ;;  %1809 = vmatprep.subr.mxu0 %v7017_v7  ;;  %v11474_v31 = vld [vmem:[#allocation50_spill] sm:$0xff]  ;;  %v11475_v7 = vld [vmem:[#allocation51_spill] sm:$0xff] }
 0x254   : > { %1739 = vmatpush2.msra.mxu1 %v7023_v3  ;;  %1810 = vmatpush2.msra.mxu0 %v7029_v4  ;;  %v11476_v3 = vld [vmem:[#allocation57_spill] sm:$0xff] }
 0x255   : > { %1740 = vmatprep.subr.mxu1 %v7035_v5  ;;  %1811 = vmatprep.subr.mxu0 %v7041_v6  ;;  %v11477_v6 = vld [vmem:[#allocation52_spill] sm:$0xff] }
 0x256   : > { %1741 = vmatpush2.msra.mxu1 %v11426_v28  ;;  %1812 = vmatpush2.msra.mxu0 %v11427_v23  ;;  %v11487_v23 = vld [vmem:[#allocation64_spill] sm:$0xff] }
 0x257   : > { %1742 = vmatprep.subr.mxu1 %v11428_v26  ;;  %1813 = vmatprep.subr.mxu0 %v11429_v29  ;;  %v11489_v26 = vld [vmem:[#allocation66_spill] sm:$0xff]  ;;  %v11490_v29 = vld [vmem:[#allocation67_spill] sm:$0xff] }
 0x258   : > { %1743 = vmatpush2.msra.mxu1 %v11430_v30  ;;  %1814 = vmatpush2.msra.mxu0 %v11431_v13  ;;  %v11491_v30 = vld [vmem:[#allocation68_spill] sm:$0xff]  ;;  %v11492_v13 = vld [vmem:[#allocation69_spill] sm:$0xff] }
 0x259   : > { %1744 = vmatprep.subr.mxu1 %v11432_v32  ;;  %1815 = vmatprep.subr.mxu0 %v11433_v14  ;;  %v11493_v32 = vld [vmem:[#allocation70_spill] sm:$0xff] }
 0x25a   : > { %1745 = vmatpush2.msra.mxu1 %v11434_v15  ;;  %1816 = vmatpush2.msra.mxu0 %v11435_v16  ;;  %v11494_v15 = vld [vmem:[#allocation71_spill] sm:$0xff]  ;;  %v11495_v16 = vld [vmem:[#allocation72_spill] sm:$0xff] }
 0x25b   : > { %1746 = vmatprep.subr.mxu1 %v11436_v17  ;;  %1817 = vmatprep.subr.mxu0 %v11437_v19  ;;  %v11496_v17 = vld [vmem:[#allocation73_spill] sm:$0xff]  ;;  %v11497_v19 = vld [vmem:[#allocation74_spill] sm:$0xff] }
 0x25c   : > { %1747 = vmatpush2.msra.mxu1 %v11438_v21  ;;  %1818 = vmatpush2.msra.mxu0 %v11439_v33  ;;  %v11498_v21 = vld [vmem:[#allocation75_spill] sm:$0xff]  ;;  %v11499_v33 = vld [vmem:[#allocation76_spill] sm:$0xff] }
 0x25d   : > { %1748 = vmatprep.subr.mxu1 %v11440_v34  ;;  %1819 = vmatprep.subr.mxu0 %v11441_v35  ;;  %v11500_v34 = vld [vmem:[#allocation77_spill] sm:$0xff]  ;;  %v11501_v35 = vld [vmem:[#allocation78_spill] sm:$0xff] }
 0x25e   : > { %1749 = vmatpush2.msra.mxu1 %v11442_v36  ;;  %1820 = vmatpush2.msra.mxu0 %v11443_v37  ;;  %v11502_v36 = vld [vmem:[#allocation79_spill] sm:$0xff]  ;;  %v11503_v37 = vld [vmem:[#allocation80_spill] sm:$0xff] }
 0x25f   : > { %1750 = vmatprep.subr.mxu1 %v11444_v38  ;;  %1821 = vmatprep.subr.mxu0 %v11445_v39  ;;  %v11504_v38 = vld [vmem:[#allocation81_spill] sm:$0xff]  ;;  %v11505_v39 = vld [vmem:[#allocation82_spill] sm:$0xff] }
 0x260   : > { %1751 = vmatpush2.msra.mxu1 %v11446_v40  ;;  %1822 = vmatpush2.msra.mxu0 %v11447_v41  ;;  %v11506_v40 = vld [vmem:[#allocation83_spill] sm:$0xff]  ;;  %v11507_v41 = vld [vmem:[#allocation84_spill] sm:$0xff] }
 0x261   : > { %1752 = vmatprep.subr.mxu1 %v11448_v43  ;;  %1823 = vmatprep.subr.mxu0 %v11449_v44  ;;  %v11508_v43 = vld [vmem:[#allocation85_spill] sm:$0xff]  ;;  %v11509_v44 = vld [vmem:[#allocation86_spill] sm:$0xff] }
 0x262   : > { %1753 = vmatpush2.msra.mxu1 %v11450_v45  ;;  %1824 = vmatpush2.msra.mxu0 %v11451_v46  ;;  %v11510_v45 = vld [vmem:[#allocation87_spill] sm:$0xff]  ;;  %v11511_v46 = vld [vmem:[#allocation88_spill] sm:$0xff] }
 0x263   : > { %1754 = vmatprep.subr.mxu1 %v11452_v47  ;;  %1825 = vmatprep.subr.mxu0 %v11453_v48  ;;  %v1292_v4 = vpop.f32.mrf.mxu1  ;;  %v1363_v5 = vpop.f32.mrf.mxu0  ;;  %v11512_v47 = vld [vmem:[#allocation89_spill] sm:$0xff]  ;;  %v11513_v48 = vld [vmem:[#allocation90_spill] sm:$0xff] }
 0x264   : > { %1755 = vmatpush2.msra.mxu1 %v11454_v49  ;;  %1826 = vmatpush2.msra.mxu0 %v11455_v50  ;;  %v11514_v49 = vld [vmem:[#allocation91_spill] sm:$0xff]  ;;  %v11515_v50 = vld [vmem:[#allocation92_spill] sm:$0xff] }
 0x265   : > { %1756 = vmatprep.subr.mxu1 %v11456_v51  ;;  %1827 = vmatprep.subr.mxu0 %v11457_v52  ;;  %v1365_v28 = vpop.f32.mrf.mxu0  ;;  %v1294_v14 = vpop.f32.mrf.mxu1  ;;  %v11516_v51 = vld [vmem:[#allocation93_spill] sm:$0xff]  ;;  %v11517_v52 = vld [vmem:[#allocation94_spill] sm:$0xff] }
 0x266   : > { %1757 = vmatpush2.msra.mxu1 %v11458_v24  ;;  %1828 = vmatpush2.msra.mxu0 %v11459_v53  ;;  %v11518_v24 = vld [vmem:[#allocation95_spill] sm:$0xff]  ;;  %v11519_v53 = vld [vmem:[#allocation96_spill] sm:$0xff] }
 0x267   : > { %1758 = vmatprep.subr.mxu1 %v11460_v55  ;;  %1829 = vmatprep.subr.mxu0 %v11461_v56  ;;  %v11520_v55 = vld [vmem:[#allocation97_spill] sm:$0xff]  ;;  %v11521_v56 = vld [vmem:[#allocation98_spill] sm:$0xff] }
 0x268   : > { %1759 = vmatpush2.msra.mxu1 %v11462_v57  ;;  %1830 = vmatpush2.msra.mxu0 %v11463_v58  ;;  %v11522_v57 = vld [vmem:[#allocation99_spill] sm:$0xff]  ;;  %v11523_v58 = vld [vmem:[#allocation100_spill] sm:$0xff] }
 0x269   : > { %1760 = vmatprep.subr.mxu1 %v11464_v59  ;;  %1831 = vmatprep.subr.mxu0 %v11465_v61  ;;  %v11524_v59 = vld [vmem:[#allocation101_spill] sm:$0xff]  ;;  %v11525_v61 = vld [vmem:[#allocation102_spill] sm:$0xff] }
 0x26a   : > { %1761 = vmatpush2.msra.mxu1 %v11466_v62  ;;  %1832 = vmatpush2.msra.mxu0 %v11467_v0  ;;  %v11526_v62 = vld [vmem:[#allocation103_spill] sm:$0xff]  ;;  %v11527_v0 = vld [vmem:[#allocation104_spill] sm:$0xff] }
 0x26b   : > { %1762 = vmatprep.subr.mxu1 %v11468_v63  ;;  %1833 = vmatprep.subr.mxu0 %v11469_v27  ;;  %v11528_v63 = vld [vmem:[#allocation105_spill] sm:$0xff]  ;;  %v11529_v27 = vld [vmem:[#allocation106_spill] sm:$0xff] }
 0x26c   : > { %1763 = vmatpush2.msra.mxu1 %v11470_v20  ;;  %1834 = vmatpush2.msra.mxu0 %v11471_v1  ;;  %v11530_v20 = vld [vmem:[#allocation107_spill] sm:$0xff]  ;;  %v11531_v1 = vld [vmem:[#allocation108_spill] sm:$0xff] }
 0x26d   : > { %1764 = vmatprep.subr.mxu1 %v11472_v2  ;;  %1835 = vmatprep.subr.mxu0 %v11473_v18  ;;  %v11532_v2 = vld [vmem:[#allocation109_spill] sm:$0xff]  ;;  %v11533_v18 = vld [vmem:[#allocation110_spill] sm:$0xff] }
 0x26e   : > { %1765 = vmatpush2.msra.mxu1 %v11474_v31  ;;  %1836 = vmatpush2.msra.mxu0 %v11475_v7  ;;  %v11534_v31 = vld [vmem:[#allocation111_spill] sm:$0xff]  ;;  %v11535_v7 = vld [vmem:[#allocation112_spill] sm:$0xff] }
 0x26f   : > { %1767 = vmatmul.mubr.f32.vlgmr.msra.gmra.mxu1 %v11476_v3  ;;  %1838 = vmatmul.mubr.f32.vlgmr.msra.gmra.mxu0 %v11476_v3 }
 0x270   : > { %1844 = vmatprep.subr.mxu1 %v11477_v6  ;;  %1915 = vmatprep.subr.mxu0 %v11478_v8  ;;  %v11538_v6 = vld [vmem:[#allocation115_spill] sm:$0xff]  ;;  %v11539_v8 = vld [vmem:[#allocation116_spill] sm:$0xff] }
 0x271   : > { %1845 = vmatpush1.msra.mxu1 %v11479_v54  ;;  %1908 = vmatprep.mubr.f32.mxu1 %v11425_v12  ;;  %v11540_v54 = vld [vmem:[#allocation117_spill] sm:$0xff] }
 0x272   : > { %1916 = vmatpush1.msra.mxu0 %v11480_v42  ;;  %1979 = vmatprep.mubr.f32.mxu0 %v11425_v12  ;;  %v11488_v12 = vld [vmem:[#allocation65_spill] sm:$0xff]  ;;  %v11541_v42 = vld [vmem:[#allocation118_spill] sm:$0xff] }
 0x273   : > { %1376 = vrot.lane.b32.xlu1 %v1292_v4, %s4718_s24  ;;  %1380 = vrot.lane.b32.xlu0 %v1363_v5, %s4718_s24  ;;  %v11536_v4 = vld [vmem:[#allocation113_spill] sm:$0xff]  ;;  %v11537_v5 = vld [vmem:[#allocation114_spill] sm:$0xff] }
 0x274   : > { %1846 = vmatprep.subr.mxu1 %v11481_v60  ;;  %1917 = vmatprep.subr.mxu0 %v11482_v9  ;;  %v11542_v60 = vld [vmem:[#allocation119_spill] sm:$0xff]  ;;  %v11543_v9 = vld [vmem:[#allocation120_spill] sm:$0xff] }
 0x275   : > { %1847 = vmatpush1.msra.mxu1 %v11483_v10  ;;  %1918 = vmatpush1.msra.mxu0 %v11484_v11  ;;  %v11544_v10 = vld [vmem:[#allocation121_spill] sm:$0xff]  ;;  %v11545_v11 = vld [vmem:[#allocation122_spill] sm:$0xff] }
 0x276   : > { %1848 = vmatprep.subr.mxu1 %v11485_v25  ;;  %1919 = vmatprep.subr.mxu0 %v11486_v22  ;;  %v11546_v25 = vld [vmem:[#allocation123_spill] sm:$0xff]  ;;  %v11547_v22 = vld [vmem:[#allocation124_spill] sm:$0xff] }
 0x277   : > { %1849 = vmatpush1.msra.mxu1 %v11487_v23  ;;  %1920 = vmatpush1.msra.mxu0 %v11488_v12  ;;  %v11549_v23 = vld [vmem:[#allocation126_spill] sm:$0xff]  ;;  %v11550_v12 = vld [vmem:[#allocation127_spill] sm:$0xff] }
 0x278   : > { %1382 = vrot.lane.b32.xlu0 %v1365_v28, %s4718_s24  ;;  %1850 = vmatprep.subr.mxu1 %v11489_v26  ;;  %v11548_v28 = vld [vmem:[#allocation125_spill] sm:$0xff]  ;;  %v11551_v26 = vld [vmem:[#allocation128_spill] sm:$0xff] }
 0x279   : > { %1921 = vmatprep.subr.mxu0 %v11490_v29  ;;  %1851 = vmatpush1.msra.mxu1 %v11491_v30  ;;  %v11552_v29 = vld [vmem:[#allocation129_spill] sm:$0xff]  ;;  %v11553_v30 = vld [vmem:[#allocation130_spill] sm:$0xff] }
 0x27a   : > { %1922 = vmatpush1.msra.mxu0 %v11492_v13  ;;  %1852 = vmatprep.subr.mxu1 %v11493_v32  ;;  %v11554_v13 = vld [vmem:[#allocation131_spill] sm:$0xff]  ;;  %v11555_v32 = vld [vmem:[#allocation132_spill] sm:$0xff] }
 0x27b   : > { %1923 = vmatprep.subr.mxu0 %v11494_v15  ;;  %1853 = vmatpush1.msra.mxu1 %v11495_v16  ;;  %v11557_v15 = vld [vmem:[#allocation134_spill] sm:$0xff]  ;;  %v11558_v16 = vld [vmem:[#allocation135_spill] sm:$0xff] }
 0x27c   : > { %1924 = vmatpush1.msra.mxu0 %v11496_v17  ;;  %1378 = vrot.lane.b32.xlu0 %v1294_v14, %s4718_s24  ;;  %v11556_v14 = vld [vmem:[#allocation133_spill] sm:$0xff]  ;;  %v11559_v17 = vld [vmem:[#allocation136_spill] sm:$0xff] }
 0x27d   : > { %1854 = vmatprep.subr.mxu1 %v11497_v19  ;;  %1925 = vmatprep.subr.mxu0 %v11498_v21  ;;  %v11560_v19 = vld [vmem:[#allocation137_spill] sm:$0xff]  ;;  %v11561_v21 = vld [vmem:[#allocation138_spill] sm:$0xff] }
 0x27e   : > { %1855 = vmatpush1.msra.mxu1 %v11499_v33  ;;  %1926 = vmatpush1.msra.mxu0 %v11500_v34  ;;  %v11562_v33 = vld [vmem:[#allocation139_spill] sm:$0xff]  ;;  %v11563_v34 = vld [vmem:[#allocation140_spill] sm:$0xff] }
 0x27f   : > { %1856 = vmatprep.subr.mxu1 %v11501_v35  ;;  %1927 = vmatprep.subr.mxu0 %v11502_v36  ;;  %v11564_v35 = vld [vmem:[#allocation141_spill] sm:$0xff]  ;;  %v11565_v36 = vld [vmem:[#allocation142_spill] sm:$0xff] }
 0x280   : > { %1857 = vmatpush1.msra.mxu1 %v11503_v37  ;;  %1928 = vmatpush1.msra.mxu0 %v11504_v38  ;;  %v11566_v37 = vld [vmem:[#allocation143_spill] sm:$0xff]  ;;  %v11567_v38 = vld [vmem:[#allocation144_spill] sm:$0xff] }
 0x281   : > { %1858 = vmatprep.subr.mxu1 %v11505_v39  ;;  %1929 = vmatprep.subr.mxu0 %v11506_v40  ;;  %v11568_v39 = vld [vmem:[#allocation145_spill] sm:$0xff]  ;;  %v11569_v40 = vld [vmem:[#allocation146_spill] sm:$0xff] }
 0x282   : > { %1859 = vmatpush1.msra.mxu1 %v11507_v41  ;;  %1930 = vmatpush1.msra.mxu0 %v11508_v43  ;;  %v11570_v41 = vld [vmem:[#allocation147_spill] sm:$0xff]  ;;  %v11571_v43 = vld [vmem:[#allocation148_spill] sm:$0xff] }
 0x283   : > { %1860 = vmatprep.subr.mxu1 %v11509_v44  ;;  %1931 = vmatprep.subr.mxu0 %v11510_v45  ;;  %v11572_v44 = vld [vmem:[#allocation149_spill] sm:$0xff]  ;;  %v11573_v45 = vld [vmem:[#allocation150_spill] sm:$0xff] }
 0x284   : > { %1861 = vmatpush1.msra.mxu1 %v11511_v46  ;;  %1932 = vmatpush1.msra.mxu0 %v11512_v47  ;;  %v11574_v46 = vld [vmem:[#allocation151_spill] sm:$0xff]  ;;  %v11575_v47 = vld [vmem:[#allocation152_spill] sm:$0xff] }
 0x285   : > { %1862 = vmatprep.subr.mxu1 %v11513_v48  ;;  %1933 = vmatprep.subr.mxu0 %v11514_v49  ;;  %v11576_v48 = vld [vmem:[#allocation153_spill] sm:$0xff]  ;;  %v11577_v49 = vld [vmem:[#allocation154_spill] sm:$0xff] }
 0x286   : > { %1863 = vmatpush1.msra.mxu1 %v11515_v50  ;;  %1934 = vmatpush1.msra.mxu0 %v11516_v51  ;;  %v11578_v50 = vld [vmem:[#allocation155_spill] sm:$0xff]  ;;  %v11579_v51 = vld [vmem:[#allocation156_spill] sm:$0xff] }
 0x287   : > { %1864 = vmatprep.subr.mxu1 %v11517_v52  ;;  %1935 = vmatprep.subr.mxu0 %v11518_v24  ;;  %v11580_v52 = vld [vmem:[#allocation157_spill] sm:$0xff]  ;;  %v11581_v24 = vld [vmem:[#allocation158_spill] sm:$0xff] }
 0x288   : > { %1865 = vmatpush1.msra.mxu1 %v11519_v53  ;;  %1936 = vmatpush1.msra.mxu0 %v11520_v55  ;;  %v11582_v53 = vld [vmem:[#allocation159_spill] sm:$0xff]  ;;  %v11583_v55 = vld [vmem:[#allocation160_spill] sm:$0xff] }
 0x289   : > { %1866 = vmatprep.subr.mxu1 %v11521_v56  ;;  %1937 = vmatprep.subr.mxu0 %v11522_v57  ;;  %v11584_v56 = vld [vmem:[#allocation161_spill] sm:$0xff]  ;;  %v11585_v57 = vld [vmem:[#allocation162_spill] sm:$0xff] }
 0x28a   : > { %1867 = vmatpush1.msra.mxu1 %v11523_v58  ;;  %1938 = vmatpush1.msra.mxu0 %v11524_v59  ;;  %v11586_v58 = vld [vmem:[#allocation163_spill] sm:$0xff]  ;;  %v11587_v59 = vld [vmem:[#allocation164_spill] sm:$0xff] }
 0x28b   : > { %1868 = vmatprep.subr.mxu1 %v11525_v61  ;;  %1939 = vmatprep.subr.mxu0 %v11526_v62  ;;  %v11588_v61 = vld [vmem:[#allocation165_spill] sm:$0xff]  ;;  %v11589_v62 = vld [vmem:[#allocation166_spill] sm:$0xff] }
 0x28c   : > { %1869 = vmatpush1.msra.mxu1 %v11527_v0  ;;  %1940 = vmatpush1.msra.mxu0 %v11528_v63  ;;  %v11590_v0 = vld [vmem:[#allocation167_spill] sm:$0xff]  ;;  %v11591_v63 = vld [vmem:[#allocation168_spill] sm:$0xff] }
 0x28d   : > { %1870 = vmatprep.subr.mxu1 %v11529_v27  ;;  %1941 = vmatprep.subr.mxu0 %v11530_v20  ;;  %v11592_v27 = vld [vmem:[#allocation169_spill] sm:$0xff]  ;;  %v11593_v20 = vld [vmem:[#allocation170_spill] sm:$0xff] }
 0x28e   : > { %1871 = vmatpush1.msra.mxu1 %v11531_v1  ;;  %1942 = vmatpush1.msra.mxu0 %v11532_v2  ;;  %v11594_v1 = vld [vmem:[#allocation171_spill] sm:$0xff]  ;;  %v11595_v2 = vld [vmem:[#allocation172_spill] sm:$0xff] }
 0x28f   : > { %1872 = vmatprep.subr.mxu1 %v11533_v18  ;;  %1943 = vmatprep.subr.mxu0 %v11534_v31  ;;  %v11596_v18 = vld [vmem:[#allocation173_spill] sm:$0xff]  ;;  %v11597_v31 = vld [vmem:[#allocation174_spill] sm:$0xff] }
 0x290   : > { %1873 = vmatpush1.msra.mxu1 %v11535_v7  ;;  %1944 = vmatpush1.msra.mxu0 %v11536_v4  ;;  %v11598_v7 = vld [vmem:[#allocation175_spill] sm:$0xff]  ;;  %v11599_v4 = vld [vmem:[#allocation176_spill] sm:$0xff] }
 0x291   : > { %1874 = vmatprep.subr.mxu1 %v11537_v5  ;;  %1945 = vmatprep.subr.mxu0 %v11538_v6  ;;  %v11600_v5 = vld [vmem:[#allocation177_spill] sm:$0xff]  ;;  %v11601_v6 = vld [vmem:[#allocation178_spill] sm:$0xff] }
 0x292   : > { %1875 = vmatpush1.msra.mxu1 %v11539_v8  ;;  %1946 = vmatpush1.msra.mxu0 %v11540_v54  ;;  %v11602_v8 = vld [vmem:[#allocation179_spill] sm:$0xff] }
 0x293   : > { %1876 = vmatprep.subr.mxu1 %v11541_v42  ;;  %1947 = vmatprep.subr.mxu0 %v11542_v60  ;;  %v11603_v60 = vld [vmem:[#allocation180_spill] sm:$0xff] }
 0x294   : > { %1877 = vmatpush2.msra.mxu1 %v11543_v9  ;;  %1948 = vmatpush2.msra.mxu0 %v11544_v10  ;;  %v11604_v9 = vld [vmem:[#allocation181_spill] sm:$0xff]  ;;  %v11605_v10 = vmov 0  }
 0x295   : > { %1878 = vmatprep.subr.mxu1 %v11545_v11  ;;  %1949 = vmatprep.subr.mxu0 %v11546_v25 }
 0x296   : > { %1879 = vmatpush2.msra.mxu1 %v11547_v22  ;;  %1950 = vmatpush2.msra.mxu0 %v11548_v28 }
 0x297   : > { %1880 = vmatprep.subr.mxu1 %v11549_v23  ;;  %1951 = vmatprep.subr.mxu0 %v11550_v12  ;;  %v2016_v12 = vld [vmem:[%s8453_s15] sm:$0xff] }
 0x298   : > { %1881 = vmatpush2.msra.mxu1 %v11551_v26  ;;  %1952 = vmatpush2.msra.mxu0 %v11552_v29  ;;  %v2017_v26 = vld [vmem:[%s8453_s15 + $0x8] sm:$0xff] }
 0x299   : > { %1882 = vmatprep.subr.mxu1 %v11553_v30  ;;  %1953 = vmatprep.subr.mxu0 %v11554_v13  ;;  %v2202_v29 = vadd.f32 %v2017_v26, %v2016_v12  ;;  %v2018_v30 = vld [vmem:[%s8453_s15 + $0x10] sm:$0xff] }
 0x29a   : > { %1883 = vmatpush2.msra.mxu1 %v11555_v32  ;;  %1954 = vmatpush2.msra.mxu0 %v11556_v14  ;;  %v2019_v32 = vld [vmem:[%s8453_s15 + $0x18] sm:$0xff] }
 0x29b   : > { %1884 = vmatprep.subr.mxu1 %v11557_v15  ;;  %1955 = vmatprep.subr.mxu0 %v11558_v16  ;;  %v2203_v13 = vadd.f32 %v2202_v29, %v2018_v30  ;;  %v2020_v15 = vld [vmem:[%s8453_s15 + $0x20] sm:$0xff] }
 0x29c   : > { %1885 = vmatpush2.msra.mxu1 %v11559_v17  ;;  %1956 = vmatpush2.msra.mxu0 %v11560_v19  ;;  %v2021_v17 = vld [vmem:[%s8453_s15 + $0x28] sm:$0xff] }
 0x29d   : > { %1886 = vmatprep.subr.mxu1 %v11561_v21  ;;  %1957 = vmatprep.subr.mxu0 %v11562_v33  ;;  %v2204_v14 = vadd.f32 %v2203_v13, %v2019_v32  ;;  %v2022_v21 = vld [vmem:[%s8453_s15 + $0x30] sm:$0xff] }
 0x29e   : > { %1887 = vmatpush2.msra.mxu1 %v11563_v34  ;;  %1958 = vmatpush2.msra.mxu0 %v11564_v35  ;;  %v2023_v34 = vld [vmem:[%s8453_s15 + $0x38] sm:$0xff] }
 0x29f   : > { %1888 = vmatprep.subr.mxu1 %v11565_v36  ;;  %1959 = vmatprep.subr.mxu0 %v11566_v37  ;;  %v2205_v16 = vadd.f32 %v2204_v14, %v2020_v15  ;;  %v8463_v36 = vpop.permute.xlu1 %2005 }
 0x2a0   : > { %1889 = vmatpush2.msra.mxu1 %v11567_v38  ;;  %1960 = vmatpush2.msra.mxu0 %v11568_v39 }
 0x2a1   : > { %1890 = vmatprep.subr.mxu1 %v11569_v40  ;;  %1961 = vmatprep.subr.mxu0 %v11570_v41  ;;  %v2206_v19 = vadd.f32 %v2205_v16, %v2021_v17  ;;  %v1073_v16 = vlaneseq }
 0x2a2   : > { %1891 = vmatpush2.msra.mxu1 %v11571_v43  ;;  %1962 = vmatpush2.msra.mxu0 %v11572_v44 }
 0x2a3   : > { %1892 = vmatprep.subr.mxu1 %v11573_v45  ;;  %1963 = vmatprep.subr.mxu0 %v11574_v46  ;;  %v2207_v33 = vadd.f32 %v2206_v19, %v2022_v21  ;;  %v8465_v37 = vpop.permute.xlu1 %1061  ;;  %v8543_v19 = vand.u32 127, %v1073_v16 }
 0x2a4   : > { %1893 = vmatpush2.msra.mxu1 %v11575_v47  ;;  %1964 = vmatpush2.msra.mxu0 %v11576_v48 }
 0x2a5   : > { %1894 = vmatprep.subr.mxu1 %v11577_v49  ;;  %1965 = vmatprep.subr.mxu0 %v11578_v50  ;;  %v2208_v35 = vadd.f32 %v2207_v33, %v2023_v34  ;;  %vm10842_vm1 = vcmp.lt.s32.totalorder %v8543_v19, 1  ;;  %vm10841_vm2 = vcmp.lt.s32.totalorder %v8543_v19, 32  ;;  %vm10840_vm3 = vcmp.lt.s32.totalorder %v8543_v19, 33 }
 0x2a6   : > { %1895 = vmatpush2.msra.mxu1 %v11579_v51  ;;  %1966 = vmatpush2.msra.mxu0 %v11580_v52  ;;  %vm10844_vm4 = vcmp.lt.s32.totalorder %v8543_v19, 96  ;;  %vm10837_vm5 = vcmp.lt.s32.totalorder %v8543_v19, 97  ;;  %vm10836_vm10 = vcmp.lt.s32.totalorder %v8543_v19, 127  ;;  %vm10839_vm15 = vcmp.ge.s32.totalorder %v8543_v19, 32 }
 0x2a7   : > { %1896 = vmatprep.subr.mxu1 %v11581_v24  ;;  %1967 = vmatprep.subr.mxu0 %v11582_v53  ;;  %v1459_v54 = vpop.f32.mrf.mxu1  ;;  %v1530_v42 = vpop.f32.mrf.mxu0 }
 0x2a8   : > { %1897 = vmatpush2.msra.mxu1 %v11583_v55  ;;  %1968 = vmatpush2.msra.mxu0 %v11584_v56  ;;  %v8467_v38 = vpop.permute.xlu1 %1065 }
 0x2a9   : > { %1898 = vmatprep.subr.mxu1 %v11585_v57  ;;  %1969 = vmatprep.subr.mxu0 %v11586_v58  ;;  %v1461_v11 = vpop.f32.mrf.mxu1  ;;  %v1532_v25 = vpop.f32.mrf.mxu0 }
 0x2aa   : > { %1899 = vmatpush2.msra.mxu1 %v11587_v59  ;;  %1970 = vmatpush2.msra.mxu0 %v11588_v61 }
 0x2ab   : > { %1900 = vmatprep.subr.mxu1 %v11589_v62  ;;  %1971 = vmatprep.subr.mxu0 %v11590_v0 }
 0x2ac   : > { %1901 = vmatpush2.msra.mxu1 %v11591_v63  ;;  %1972 = vmatpush2.msra.mxu0 %v11592_v27  ;;  %v8469_v39 = vpop.permute.xlu1 %1069 }
 0x2ad   : > { %1902 = vmatprep.subr.mxu1 %v11593_v20  ;;  %1973 = vmatprep.subr.mxu0 %v11594_v1 }
 0x2ae   : > { %1903 = vmatpush2.msra.mxu1 %v11595_v2  ;;  %1974 = vmatpush2.msra.mxu0 %v11596_v18 }
 0x2af   : > { %1904 = vmatprep.subr.mxu1 %v11597_v31  ;;  %1975 = vmatprep.subr.mxu0 %v11598_v7 }
 0x2b0   : > { %1905 = vmatpush2.msra.mxu1 %v11599_v4  ;;  %1976 = vmatpush2.msra.mxu0 %v11600_v5  ;;  %v8471_v40 = vpop.permute.xlu1 %1071 }
 0x2b1   : > { %1906 = vmatprep.subr.mxu1 %v11601_v6  ;;  %1977 = vmatprep.subr.mxu0 %v11602_v8  ;;  %v1058_v8 = vpop.permute.xlu0 %1057 }
 0x2b2   : > { %1907 = vmatpush2.msra.mxu1 %v11603_v60  ;;  %1978 = vmatpush2.msra.mxu0 %v11604_v9 }
 0x2b3   : > { %1909 = vmatmul.mubr.f32.vlgmr.msra.gmra.mxu1 %v11476_v3  ;;  %1980 = vmatmul.mubr.f32.vlgmr.msra.gmra.mxu0 %v11476_v3 }
 0x2b4   : > { %1677 = vrot.lane.b32.xlu0 %v1459_v54, %s4719_s30  ;;  %1681 = vrot.lane.b32.xlu1 %v1530_v42, %s4719_s30  ;;  %v8473_v41 = vpop.permute.xlu1 %1372 }
 0x2b5   : > { %4415 = vset.pattern.permute.xlu0 %v11605_v10  ;;  %v1060_v54 = vpop.permute.xlu0 %1059 }
 0x2b8   : > { %1679 = vrot.lane.b32.xlu1 %v1461_v11, %s4719_s30  ;;  %1683 = vrot.lane.b32.xlu0 %v1532_v25, %s4719_s30  ;;  %v8475_v43 = vpop.permute.xlu1 %1370 }
 0x2b9   : > { %v8499_v42 = vpop.permute.xlu0 %1063 }
 0x2bd   : > { %v8501_v60 = vpop.permute.xlu0 %1067 }
 0x2c1   : > { %v1369_v9 = vpop.permute.xlu0 %1368 }
 0x2c5   : > { %v8503_v10 = vpop.permute.xlu0 %1374 }
 0x2e5   : > { %v8477_v44 = vpop.permute.xlu1 %1376  ;;  %v8505_v11 = vpop.permute.xlu0 %1380 }
 0x2ea   : > { %v8507_v25 = vpop.permute.xlu0 %1382 }
 0x2eb   : > { %v1601_v22 = vpop.f32.mrf.mxu1  ;;  %v1672_v28 = vpop.f32.mrf.mxu0 }
 0x2ec   : > { %1685 = vrot.lane.b32.xlu1 %v1601_v22, %s4719_s30  ;;  %1689 = vrot.lane.b32.xlu0 %v1672_v28, %s4719_s30 }
 0x2ed   : > { %v1603_v3 = vpop.f32.mrf.mxu1  ;;  %v1674_v23 = vpop.f32.mrf.mxu0 }
 0x2ee   : > { %v8509_v22 = vpop.permute.xlu0 %1378 }
 0x2f0   : > { %1687 = vrot.lane.b32.xlu1 %v1603_v3, %s4719_s30  ;;  %1691 = vrot.lane.b32.xlu0 %v1674_v23, %s4719_s30 }
 0x314   : > { %2209 = vadd.xlane.f32.xlu1 %v2208_v35  ;;  %v1083_v35 = vsel %vm10842_vm1, %v8471_v40, %v1058_v8 }
 0x326   : > { %v8479_v45 = vpop.permute.xlu1 %1681  ;;  %v1678_v28 = vpop.permute.xlu0 %1677 }
 0x32a   : > { %v8481_v46 = vpop.permute.xlu1 %1679  ;;  %v8511_v3 = vpop.permute.xlu0 %1683 }
 0x35e   : > { %v8483_v47 = vpop.permute.xlu1 %1685  ;;  %v8513_v23 = vpop.permute.xlu0 %1689 }
 0x362   : > { %v8485_v48 = vpop.permute.xlu1 %1687 }
 0x39d   : > { %v2210_v49 = vpop.xlane.xlu1 %2209 }
 0x39e   : > { %v2213_v50 = vmul.f32 0.0009765625, %v2210_v49  ;;  %v1082_v49 = vsel %vm10842_vm1, %v1058_v8, %v1060_v54 }
 0x3a0   : > { %v2222_v51 = vsub.f32 %v2016_v12, %v2213_v50  ;;  %v2223_v52 = vsub.f32 %v2017_v26, %v2213_v50  ;;  %v2224_v24 = vsub.f32 %v2018_v30, %v2213_v50  ;;  %v2225_v53 = vsub.f32 %v2019_v32, %v2213_v50  ;;  %v8515_v12 = vpop.permute.xlu0 %1691 }
 0x3a1   : > { %v2226_v57 = vsub.f32 %v2020_v15, %v2213_v50  ;;  %v8487_v61 = vsub.f32 %v2021_v17, %v2213_v50  ;;  %v8489_v63 = vsub.f32 %v2022_v21, %v2213_v50  ;;  %v8491_v1 = vsub.f32 %v2023_v34, %v2213_v50  ;;  %v1768_v21 = vpop.f32.mrf.mxu1 }
 0x3a2   : > { %v2238_v55 = vmul.f32 %v2222_v51, %v2222_v51  ;;  %v2239_v56 = vmul.f32 %v2223_v52, %v2223_v52  ;;  %v2240_v58 = vmul.f32 %v2224_v24, %v2224_v24  ;;  %v2241_v62 = vmul.f32 %v2225_v53, %v2225_v53 }
 0x3a3   : > { %v2242_v27 = vmul.f32 %v2226_v57, %v2226_v57  ;;  %v2243_v2 = vmul.f32 %v8487_v61, %v8487_v61  ;;  %v2244_v31 = vmul.f32 %v8489_v63, %v8489_v63  ;;  %v2245_v4 = vmul.f32 %v8491_v1, %v8491_v1  ;;  %v1770_v34 = vpop.f32.mrf.mxu1 }
 0x3a4   : > { %v2255_v59 = vadd.f32 %v2239_v56, %v2238_v55  ;;  %v1769_v50 = vadd.f32 %v1768_v21, %v1083_v35  ;;  %v1392_v55 = vsel %vm10841_vm2, %v8507_v25, %v1369_v9  ;;  %v1387_v21 = vsel %vm10841_vm2, %v8477_v44, %v8509_v22 }
 0x3a6   : > { %v2256_v0 = vadd.f32 %v2255_v59, %v2240_v58  ;;  %v1986_v58 = vadd.f32 %v1769_v50, %v1392_v55 }
 0x3a8   : > { %v2257_v20 = vadd.f32 %v2256_v0, %v2241_v62  ;;  %v1910_v0 = vpop.f32.mrf.mxu1 }
 0x3aa   : > { %v2258_v18 = vadd.f32 %v2257_v20, %v2242_v27  ;;  %v1390_v27 = vsel %vm10841_vm2, %v8475_v43, %v8473_v41  ;;  %v1080_v20 = vsel %vm10842_vm1, %v8465_v37, %v8499_v42 }
 0x3ac   : > { %v2259_v7 = vadd.f32 %v2258_v18, %v2243_v2  ;;  %v1700_v18 = vsel %vm10840_vm3, %v1678_v28, %v8481_v46 }
 0x3ae   : > { %v2260_v5 = vadd.f32 %v2259_v7, %v2244_v31  ;;  %v1079_v7 = vsel %vm10842_vm1, %v8499_v42, %v8467_v38  ;;  %v1389_v42 = vsel %vm10841_vm2, %v8473_v41, %v8503_v10 }
 0x3b0   : > { %v2261_v6 = vadd.f32 %v2260_v5, %v2245_v4  ;;  %v1912_v5 = vpop.f32.mrf.mxu1 }
 0x3b2   : > { %2262 = vadd.xlane.f32.xlu0 %v2261_v6  ;;  %v1699_v6 = vsel %vm10840_vm3, %v8481_v46, %v8479_v45 }
 0x43b   : > { %v2263_v26 = vpop.xlane.xlu0 %2262 }
 0x43c   : > { %v2265_v29 = vmul.f32 0.0009765625, %v2263_v26 }
 0x43e   : > { %v2267_v30 = vadd.f32 1e-05, %v2265_v29 }
 0x440   : > { %4416 = vrsqrt.f32 %v2267_v30 }
 0x44d   : > { %v8517_v13 = vpop.eup %4416 }
 0x44e   : > { %v8520_v32 = vmul.f32 %v8517_v13, %v2224_v24  ;;  %v8523_v14 = vmul.f32 %v8517_v13, %v2223_v52  ;;  %v8530_v15 = vmul.f32 %v8517_v13, %v2222_v51  ;;  %v8537_v17 = vmul.f32 %v8517_v13, %v2226_v57  ;;  %v1839_v51 = vpop.f32.mrf.mxu0 }
 0x44f   : > { %v8546_v33 = vmul.f32 %v8517_v13, %v2225_v53  ;;  %v1771_v52 = vadd.f32 %v1770_v34, %v1082_v49  ;;  %v1081_v24 = vsel %vm10842_vm1, %v1060_v54, %v8465_v37  ;;  %v1391_v53 = vsel %vm10841_vm2, %v1369_v9, %v8475_v43 }
 0x450   : > { %2779 = vrot.lane.b32.xlu1 %v8520_v32, %s4720_s16  ;;  %2775 = vrot.lane.b32.xlu0 %v8523_v14, %s4720_s16  ;;  %11606 = vst [vmem:[#allocation182_spill] sm:$0xff] %v8537_v17  ;;  %v1840_v56 = vadd.f32 %v1839_v51, %v1081_v24  ;;  %v1701_v57 = vsel %vm10840_vm3, %v8515_v12, %v1678_v28  ;;  %v1841_v62 = vpop.f32.mrf.mxu0 }
 0x451   : > { %v1987_v59 = vadd.f32 %v1771_v52, %v1391_v53  ;;  %v1994_v2 = vadd.f32 %v1986_v58, %v1701_v57  ;;  %v1842_v4 = vadd.f32 %v1841_v62, %v1080_v20  ;;  %v1911_v37 = vadd.f32 %v1910_v0, %v1079_v7 }
 0x452   : > { %v1988_v31 = vadd.f32 %v1840_v56, %v1390_v27  ;;  %v1388_v9 = vsel %vm10841_vm2, %v8503_v10, %v8477_v44  ;;  %v1078_v28 = vsel %vm10842_vm1, %v8467_v38, %v8501_v60  ;;  %v1698_v10 = vsel %vm10840_vm3, %v8479_v45, %v8511_v3  ;;  %v1981_v16 = vpop.f32.mrf.mxu0 }
 0x453   : > { %v1995_v43 = vadd.f32 %v1987_v59, %v1700_v18  ;;  %v8604_v8 = vadd.f32 %v8463_v36, %v1994_v2  ;;  %v1989_v26 = vadd.f32 %v1842_v4, %v1389_v42  ;;  %v1990_v29 = vadd.f32 %v1911_v37, %v1388_v9 }
 0x454   : > { %2698 = vrot.lane.b32.xlu0 %v8520_v32, %s4721_s19  ;;  %2771 = vrot.lane.b32.xlu1 %v8530_v15, %s4720_s16  ;;  %v1996_v54 = vadd.f32 %v1988_v31, %v1699_v6  ;;  %v1913_v30 = vadd.f32 %v1912_v5, %v1078_v28  ;;  %v1697_v38 = vsel %vm10840_vm3, %v8511_v3, %v8483_v47  ;;  %v1983_v52 = vpop.f32.mrf.mxu0 }
 0x455   : > { %11607 = vst [vmem:[#allocation183_spill] sm:$0xff] %v8604_v8  ;;  %v8621_v46 = vadd.f32 %v8463_v36, %v1995_v43  ;;  %v1997_v35 = vadd.f32 %v1989_v26, %v1698_v10  ;;  %v1998_v49 = vadd.f32 %v1990_v29, %v1697_v38  ;;  %v1077_v3 = vsel %vm10842_vm1, %v8501_v60, %v8469_v39 }
 0x456   : > { %v8640_v34 = vadd.f32 %v8463_v36, %v1996_v54  ;;  %v1991_v45 = vadd.f32 %v1913_v30, %v1387_v21  ;;  %v1982_v50 = vadd.f32 %v1981_v16, %v1077_v3  ;;  %v1696_v44 = vsel %vm10840_vm3, %v8483_v47, %v8485_v48 }
 0x457   : > { %11608 = vst [vmem:[#allocation184_spill] sm:$0xff] %v8621_v46  ;;  %v2193_v41 = vadd.f32 %v8621_v46, %v8604_v8  ;;  %v8654_v24 = vadd.f32 %v8463_v36, %v1997_v35  ;;  %v8657_v53 = vadd.f32 %v8463_v36, %v1998_v49  ;;  %v1386_v60 = vsel %vm10841_vm2, %v8509_v22, %v8505_v11 }
 0x458   : > { %2787 = vrot.lane.b32.xlu0 %v8537_v17, %s4720_s16  ;;  %2694 = vrot.lane.b32.xlu1 %v8523_v14, %s4721_s19  ;;  %11609 = vst [vmem:[#allocation185_spill] sm:$0xff] %v8640_v34  ;;  %v1999_v55 = vadd.f32 %v1991_v45, %v1696_v44  ;;  %v1076_v47 = vsel %vm10842_vm1, %v8469_v39, %v8471_v40 }
 0x459   : > { %v2194_v51 = vadd.f32 %v2193_v41, %v8640_v34  ;;  %11610 = vst [vmem:[#allocation186_spill] sm:$0xff] %v8654_v24  ;;  %11611 = vst [vmem:[#allocation187_spill] sm:$0xff] %v8657_v53  ;;  %v8669_v56 = vmul.f32 %v8517_v13, %v8491_v1  ;;  %v1992_v57 = vadd.f32 %v1982_v50, %v1386_v60 }
 0x45a   : > { %v1984_v58 = vadd.f32 %v1983_v52, %v1076_v47  ;;  %v8675_v62 = vadd.f32 %v8463_v36, %v1999_v55  ;;  %v1695_v39 = vsel %vm10840_vm3, %v8485_v48, %v8513_v23  ;;  %v1385_v40 = vsel %vm10841_vm2, %v8505_v11, %v8507_v25 }
 0x45b   : > { %11612 = vst [vmem:[#allocation188_spill] sm:$0xff] %v8669_v56  ;;  %v2195_v59 = vadd.f32 %v2194_v51, %v8654_v24  ;;  %v2000_v1 = vadd.f32 %v1992_v57, %v1695_v39  ;;  %v1694_v20 = vsel %vm10840_vm3, %v8513_v23, %v8515_v12 }
 0x45c   : > { %2617 = vrot.lane.b32.xlu0 %v8520_v32, %s4722_s20  ;;  %2783 = vrot.lane.b32.xlu1 %v8546_v33, %s4720_s16  ;;  %11613 = vst [vmem:[#allocation189_spill] sm:$0xff] %v8675_v62  ;;  %v1993_v0 = vadd.f32 %v1984_v58, %v1385_v40 }
 0x45d   : > { %v2196_v22 = vadd.f32 %v2195_v59, %v8657_v53  ;;  %v8694_v48 = vadd.f32 %v8463_v36, %v2000_v1 }
 0x45e   : > { %v2001_v2 = vadd.f32 %v1993_v0, %v1694_v20 }
 0x45f   : > { %v2197_v27 = vadd.f32 %v2196_v22, %v8675_v62  ;;  %11614 = vst [vmem:[#allocation190_spill] sm:$0xff] %v8694_v48 }
 0x460   : > { %2706 = vrot.lane.b32.xlu0 %v8537_v17, %s4721_s19  ;;  %2690 = vrot.lane.b32.xlu1 %v8530_v15, %s4721_s19  ;;  %v8700_v25 = vadd.f32 %v8463_v36, %v2001_v2  ;;  %v8733_v36 = vmul.f32 %v8517_v13, %v8487_v61  ;;  %v8753_v61 = vmul.f32 %v8517_v13, %v8489_v63 }
 0x461   : > { %v2198_v11 = vadd.f32 %v2197_v27, %v8694_v48 }
 0x462   : > { %11615 = vst [vmem:[#allocation191_spill] sm:$0xff] %v8700_v25  ;;  %11616 = vst [vmem:[#allocation58_spill] sm:$0xff] %v8733_v36 }
 0x463   : > { %v2199_v18 = vadd.f32 %v2198_v11, %v8700_v25  ;;  %11617 = vst [vmem:[#allocation5_spill] sm:$0xff] %v8753_v61 }
 0x464   : > { %2625 = vrot.lane.b32.xlu0 %v8537_v17, %s4722_s20  ;;  %2613 = vrot.lane.b32.xlu1 %v8523_v14, %s4722_s20 }
 0x468   : > { %2533 = vrot.lane.b32.xlu0 %v8523_v14, %s4717_s26  ;;  %2702 = vrot.lane.b32.xlu1 %v8546_v33, %s4721_s19 }
 0x46c   : > { %2609 = vrot.lane.b32.xlu1 %v8530_v15, %s4722_s20 }
 0x470   : > { %2621 = vrot.lane.b32.xlu1 %v8546_v33, %s4722_s20 }
 0x474   : > { %2529 = vrot.lane.b32.xlu1 %v8530_v15, %s4717_s26 }
 0x478   : > { %2557 = vrot.lane.b32.xlu1 %v8669_v56, %s4717_s26 }
 0x47c   : > { %2448 = vrot.lane.b32.xlu1 %v8530_v15, %s4723_s21 }
 0x480   : > { %2537 = vrot.lane.b32.xlu1 %v8520_v32, %s4717_s26 }
 0x484   : > { %2476 = vrot.lane.b32.xlu1 %v8669_v56, %s4723_s21 }
 0x487   : > { %2200 = vadd.xlane.f32.xlu0 %v2199_v18 }
 0x488   : > { %2368 = vrot.lane.b32.xlu1 %v8530_v15, %s4718_s24 }
 0x48c   : > { %2456 = vrot.lane.b32.xlu1 %v8520_v32, %s4723_s21 }
 0x490   : > { %2396 = vrot.lane.b32.xlu1 %v8669_v56, %s4718_s24 }
 0x494   : > { %2288 = vrot.lane.b32.xlu1 %v8530_v15, %s4719_s30 }
 0x498   : > { %2376 = vrot.lane.b32.xlu1 %v8520_v32, %s4718_s24 }
 0x49c   : > { %2316 = vrot.lane.b32.xlu1 %v8669_v56, %s4719_s30 }
 0x49d   : > { %2452 = vrot.lane.b32.xlu0 %v8523_v14, %s4723_s21 }
 0x4a0   : > { %2296 = vrot.lane.b32.xlu1 %v8520_v32, %s4719_s30 }
 0x4a1   : > { %2541 = vrot.lane.b32.xlu0 %v8546_v33, %s4717_s26 }
 0x4a4   : > { %2856 = vrot.lane.b32.xlu1 %v8523_v14, %s4724_s22 }
 0x4a5   : > { %2372 = vrot.lane.b32.xlu0 %v8523_v14, %s4718_s24 }
 0x4a8   : > { %2852 = vrot.lane.b32.xlu1 %v8530_v15, %s4724_s22 }
 0x4a9   : > { %2460 = vrot.lane.b32.xlu0 %v8546_v33, %s4723_s21 }
 0x4ac   : > { %2791 = vrot.lane.b32.xlu1 %v8733_v36, %s4720_s16 }
 0x4ad   : > { %2292 = vrot.lane.b32.xlu0 %v8523_v14, %s4719_s30 }
 0x4b0   : > { %2864 = vrot.lane.b32.xlu1 %v8546_v33, %s4724_s22 }
 0x4b1   : > { %2380 = vrot.lane.b32.xlu0 %v8546_v33, %s4718_s24 }
 0x4b4   : > { %2710 = vrot.lane.b32.xlu1 %v8733_v36, %s4721_s19 }
 0x4b5   : > { %2300 = vrot.lane.b32.xlu0 %v8546_v33, %s4719_s30 }
 0x4b8   : > { %2799 = vrot.lane.b32.xlu1 %v8669_v56, %s4720_s16 }
 0x4b9   : > { %2860 = vrot.lane.b32.xlu0 %v8520_v32, %s4724_s22 }
 0x4bc   : > { %2629 = vrot.lane.b32.xlu1 %v8733_v36, %s4722_s20 }
 0x4bd   : > { %2795 = vrot.lane.b32.xlu0 %v8753_v61, %s4720_s16 }
 0x4c0   : > { %2718 = vrot.lane.b32.xlu1 %v8669_v56, %s4721_s19 }
 0x4c1   : > { %2868 = vrot.lane.b32.xlu0 %v8537_v17, %s4724_s22 }
 0x4c2   : > { %v2780_v23 = vpop.permute.xlu1 %2779  ;;  %v2776_v12 = vpop.permute.xlu0 %2775 }
 0x4c3   : > { %v2813_v63 = vsel %vm10844_vm4, %v2776_v12, %v2780_v23 }
 0x4c4   : > { %2940 = vmatprep.subr.mxu1 %v2813_v63  ;;  %2637 = vrot.lane.b32.xlu1 %v8669_v56, %s4722_s20 }
 0x4c5   : > { %2714 = vrot.lane.b32.xlu0 %v8753_v61, %s4721_s19 }
 0x4c6   : > { %v8770_v13 = vpop.permute.xlu1 %2771  ;;  %v8775_v7 = vpop.permute.xlu0 %2698 }
 0x4c7   : > { %11618 = vst [vmem:[#allocation2_spill] sm:$0xff] %v8770_v13  ;;  %v2815_v31 = vsel %vm10844_vm4, %v8770_v13, %v2776_v12  ;;  %v11647_v13 = vmov 0 }
 0x4c8   : > { %2545 = vrot.lane.b32.xlu1 %v8537_v17, %s4717_s26  ;;  %2941 = vmatpush1.msra.mxu1 %v2815_v31 }
 0x4c9   : > { %2633 = vrot.lane.b32.xlu0 %v8753_v61, %s4722_s20 }
 0x4ca   : > { %v8781_v43 = vpop.permute.xlu1 %2694  ;;  %v8787_v4 = vpop.permute.xlu0 %2787 }
 0x4cb   : > { %11619 = vst [vmem:[#allocation7_spill] sm:$0xff] %v8787_v4 }
 0x4cc   : > { %2464 = vrot.lane.b32.xlu1 %v8537_v17, %s4723_s21 }
 0x4cd   : > { %2549 = vrot.lane.b32.xlu0 %v8733_v36, %s4717_s26 }
 0x4ce   : > { %v2784_v37 = vpop.permute.xlu1 %2783  ;;  %v8802_v54 = vpop.permute.xlu0 %2617 }
 0x4cf   : > { %v2809_v5 = vsel %vm10844_vm4, %v2784_v37, %v8787_v4  ;;  %v2811_v6 = vsel %vm10844_vm4, %v2780_v23, %v2784_v37  ;;  %v11649_v4 = vmov 0 }
 0x4d0   : > { %3011 = vmatprep.subr.mxu0 %v2809_v5 }
 0x4d1   : > { %3012 = vmatpush1.msra.mxu0 %v2811_v6  ;;  %2468 = vrot.lane.b32.xlu0 %v8733_v36, %s4723_s21 }
 0x4d2   : > { %v8804_v42 = vpop.permute.xlu0 %2706  ;;  %v8808_v28 = vpop.permute.xlu1 %2690 }
 0x4d3   : > { %11620 = vst [vmem:[#allocation3_spill] sm:$0xff] %v8804_v42  ;;  %11621 = vst [vmem:[#allocation9_spill] sm:$0xff] %v8808_v28 }
 0x4d5   : > { %2388 = vrot.lane.b32.xlu0 %v8733_v36, %s4718_s24 }
 0x4d6   : > { %v8806_v9 = vpop.permute.xlu0 %2625  ;;  %v8812_v29 = vpop.permute.xlu1 %2613 }
 0x4d9   : > { %2308 = vrot.lane.b32.xlu0 %v8733_v36, %s4719_s30 }
 0x4da   : > { %v8810_v26 = vpop.permute.xlu0 %2533  ;;  %v8819_v21 = vpop.permute.xlu1 %2702 }
 0x4dd   : > { %2872 = vrot.lane.b32.xlu0 %v8733_v36, %s4724_s22 }
 0x4de   : > { %v8832_v60 = vpop.permute.xlu1 %2609 }
 0x4e2   : > { %v8844_v0 = vpop.permute.xlu1 %2621 }
 0x4e6   : > { %v8848_v11 = vpop.permute.xlu1 %2529 }
 0x4ea   : > { %v8850_v18 = vpop.permute.xlu1 %2557 }
 0x4ee   : > { %v8852_v23 = vpop.permute.xlu1 %2448 }
 0x4f2   : > { %v8856_v12 = vpop.permute.xlu1 %2537 }
 0x4f6   : > { %v8860_v63 = vpop.permute.xlu1 %2476 }
 0x4fa   : > { %v8866_v31 = vpop.permute.xlu1 %2368 }
 0x4fe   : > { %v8870_v37 = vpop.permute.xlu1 %2456 }
 0x502   : > { %v8874_v5 = vpop.permute.xlu1 %2396 }
 0x506   : > { %v8876_v6 = vpop.permute.xlu1 %2288 }
 0x510   : > { %v2201_v30 = vpop.xlane.xlu0 %2200 }
 0x511   : > { %v2212_v41 = vmul.f32 0.0009765625, %v2201_v30  ;;  %v8878_v30 = vpop.permute.xlu1 %2376 }
 0x513   : > { %v8815_v10 = vsub.f32 %v8604_v8, %v2212_v41  ;;  %v2215_v38 = vsub.f32 %v8621_v46, %v2212_v41  ;;  %v2216_v16 = vsub.f32 %v8640_v34, %v2212_v41  ;;  %v8822_v35 = vsub.f32 %v8654_v24, %v2212_v41 }
 0x514   : > { %v2218_v3 = vsub.f32 %v8657_v53, %v2212_v41  ;;  %v8828_v44 = vsub.f32 %v8675_v62, %v2212_v41  ;;  %v8835_v47 = vsub.f32 %v8694_v48, %v2212_v41  ;;  %v8838_v59 = vsub.f32 %v8700_v25, %v2212_v41 }
 0x515   : > { %v2230_v49 = vmul.f32 %v8815_v10, %v8815_v10  ;;  %v2231_v45 = vmul.f32 %v2215_v38, %v2215_v38  ;;  %v2232_v50 = vmul.f32 %v2216_v16, %v2216_v16  ;;  %v2233_v52 = vmul.f32 %v8822_v35, %v8822_v35  ;;  %v8880_v41 = vpop.permute.xlu1 %2316 }
 0x516   : > { %v2234_v57 = vmul.f32 %v2218_v3, %v2218_v3  ;;  %v2235_v22 = vmul.f32 %v8828_v44, %v8828_v44  ;;  %v2236_v40 = vmul.f32 %v8835_v47, %v8835_v47  ;;  %v2237_v27 = vmul.f32 %v8838_v59, %v8838_v59 }
 0x517   : > { %v2246_v51 = vadd.f32 %v2231_v45, %v2230_v49 }
 0x519   : > { %v2247_v55 = vadd.f32 %v2246_v51, %v2232_v50  ;;  %v8882_v49 = vpop.permute.xlu1 %2296 }
 0x51b   : > { %v2248_v58 = vadd.f32 %v2247_v55, %v2233_v52 }
 0x51d   : > { %v2249_v39 = vadd.f32 %v2248_v58, %v2234_v57  ;;  %v8884_v45 = vpop.permute.xlu1 %2856 }
 0x51f   : > { %v2250_v1 = vadd.f32 %v2249_v39, %v2235_v22 }
 0x521   : > { %v2251_v20 = vadd.f32 %v2250_v1, %v2236_v40  ;;  %v8886_v50 = vpop.permute.xlu1 %2852 }
 0x523   : > { %v2252_v2 = vadd.f32 %v2251_v20, %v2237_v27 }
 0x525   : > { %2253 = vadd.xlane.f32.xlu1 %v2252_v2  ;;  %v8888_v51 = vpop.permute.xlu1 %2791 }
 0x529   : > { %v8890_v52 = vpop.permute.xlu1 %2864 }
 0x52d   : > { %v8892_v55 = vpop.permute.xlu1 %2710 }
 0x52e   : > { %11622 = vst [vmem:[#allocation4_spill] sm:$0xff] %v8892_v55  ;;  %v2026_v55 = vadd.s32 384, %v8543_v19 }
 0x531   : > { %v8894_v57 = vpop.permute.xlu1 %2799 }
 0x532   : > { %11623 = vst [vmem:[#allocation11_spill] sm:$0xff] %v8894_v57  ;;  %v11645_v57 = vmov 0 }
 0x535   : > { %v8896_v58 = vpop.permute.xlu1 %2629 }
 0x536   : > { %2553 = vrot.lane.b32.xlu1 %v8753_v61, %s4717_s26  ;;  %11624 = vst [vmem:[#allocation6_spill] sm:$0xff] %v8896_v58 }
 0x539   : > { %v8898_v22 = vpop.permute.xlu1 %2718 }
 0x53a   : > { %2384 = vrot.lane.b32.xlu1 %v8537_v17, %s4718_s24  ;;  %11625 = vst [vmem:[#allocation13_spill] sm:$0xff] %v8898_v22 }
 0x53d   : > { %v8900_v39 = vpop.permute.xlu1 %2637 }
 0x53e   : > { %2472 = vrot.lane.b32.xlu1 %v8753_v61, %s4723_s21  ;;  %11626 = vst [vmem:[#allocation8_spill] sm:$0xff] %v8900_v39 }
 0x541   : > { %v8902_v40 = vpop.permute.xlu1 %2545 }
 0x542   : > { %2304 = vrot.lane.b32.xlu1 %v8537_v17, %s4719_s30  ;;  %11627 = vst [vmem:[#allocation15_spill] sm:$0xff] %v8902_v40 }
 0x545   : > { %v8904_v1 = vpop.permute.xlu1 %2464 }
 0x546   : > { %2392 = vrot.lane.b32.xlu1 %v8753_v61, %s4718_s24  ;;  %11628 = vst [vmem:[#allocation10_spill] sm:$0xff] %v8904_v1 }
 0x54a   : > { %2312 = vrot.lane.b32.xlu1 %v8753_v61, %s4719_s30 }
 0x5ae   : > { %v2254_v27 = vpop.xlane.xlu1 %2253 }
 0x5af   : > { %v2264_v20 = vmul.f32 0.0009765625, %v2254_v27 }
 0x5b1   : > { %v2266_v2 = vadd.f32 1e-05, %v2264_v20 }
 0x5b2   : > { %v9040_v40 = vpop.permute.xlu1 %2553 }
 0x5b3   : > { %4418 = vrsqrt.f32 %v2266_v2  ;;  %11633 = vst [vmem:[#allocation21_spill] sm:$0xff] %v9040_v40 }
 0x5b6   : > { %v9052_v17 = vpop.permute.xlu1 %2384 }
 0x5b7   : > { %11635 = vst [vmem:[#allocation23_spill] sm:$0xff] %v9052_v17 }
 0x5ba   : > { %v9060_v36 = vpop.permute.xlu1 %2472 }
 0x5bb   : > { %11637 = vst [vmem:[#allocation25_spill] sm:$0xff] %v9060_v36  ;;  %v2931_v36 = vld [vmem:[%s10419_s6] sm:$0xff] }
 0x5c0   : > { %v4419_v48 = vpop.eup %4418 }
 0x5c1   : > { %v8906_v53 = vmul.f32 %v4419_v48, %v2216_v16  ;;  %v8908_v25 = vmul.f32 %v4419_v48, %v2215_v38  ;;  %v8915_v62 = vmul.f32 %v4419_v48, %v8815_v10  ;;  %v8921_v27 = vmul.f32 %v4419_v48, %v2218_v3  ;;  %v8934_v10 = vpop.permute.xlu0 %2452 }
 0x5c2   : > { %v8928_v38 = vmul.f32 %v4419_v48, %v8822_v35  ;;  %v8969_v2 = vmul.f32 %v4419_v48, %v8838_v59  ;;  %v8998_v24 = vmul.f32 %v4419_v48, %v8828_v44  ;;  %v9011_v1 = vmul.f32 %v4419_v48, %v8835_v47  ;;  %v9032_v48 = vld [vmem:[%s10418_s5 + $0x8] sm:$0xff] }
 0x5c3   : > { %2777 = vrot.lane.b32.xlu1 %v8906_v53, %s4720_s16  ;;  %2773 = vrot.lane.b32.xlu0 %v8908_v25, %s4720_s16  ;;  %11631 = vst [vmem:[#allocation19_spill] sm:$0xff] %v9032_v48 }
 0x5c4   : > { %11629 = vst [vmem:[#allocation17_spill] sm:$0xff] %v8998_v24  ;;  %4255 = vmatprep.mubr.msk.f32.mxu1 %vm10843_vm0, %v9032_v48  ;;  %4280 = vmatprep.mubr.msk.f32.mxu0 %vm10843_vm0, %v9032_v48 }
 0x5c5   : > { %v8940_v16 = vpop.permute.xlu0 %2541 }
 0x5c7   : > { %2696 = vrot.lane.b32.xlu1 %v8906_v53, %s4721_s19  ;;  %2769 = vrot.lane.b32.xlu0 %v8915_v62, %s4720_s16 }
 0x5c9   : > { %v8950_v35 = vpop.permute.xlu0 %2372 }
 0x5cb   : > { %2785 = vrot.lane.b32.xlu1 %v8921_v27, %s4720_s16  ;;  %2692 = vrot.lane.b32.xlu0 %v8908_v25, %s4721_s19 }
 0x5cd   : > { %v8956_v3 = vpop.permute.xlu0 %2460 }
 0x5cf   : > { %2615 = vrot.lane.b32.xlu1 %v8906_v53, %s4722_s20  ;;  %2781 = vrot.lane.b32.xlu0 %v8928_v38, %s4720_s16 }
 0x5d1   : > { %v8966_v20 = vpop.permute.xlu0 %2292 }
 0x5d3   : > { %2704 = vrot.lane.b32.xlu1 %v8921_v27, %s4721_s19  ;;  %2688 = vrot.lane.b32.xlu0 %v8915_v62, %s4721_s19 }
 0x5d5   : > { %v8975_v34 = vpop.permute.xlu0 %2380 }
 0x5d7   : > { %2619 = vrot.lane.b32.xlu1 %v8928_v38, %s4722_s20  ;;  %2611 = vrot.lane.b32.xlu0 %v8908_v25, %s4722_s20 }
 0x5d9   : > { %v8985_v59 = vpop.permute.xlu0 %2300 }
 0x5db   : > { %2531 = vrot.lane.b32.xlu1 %v8908_v25, %s4717_s26  ;;  %2700 = vrot.lane.b32.xlu0 %v8928_v38, %s4721_s19 }
 0x5dd   : > { %v8991_v8 = vpop.permute.xlu0 %2860 }
 0x5df   : > { %2450 = vrot.lane.b32.xlu1 %v8908_v25, %s4723_s21  ;;  %2607 = vrot.lane.b32.xlu0 %v8915_v62, %s4722_s20 }
 0x5e1   : > { %v9004_v46 = vpop.permute.xlu0 %2795 }
 0x5e3   : > { %2539 = vrot.lane.b32.xlu1 %v8928_v38, %s4717_s26  ;;  %2623 = vrot.lane.b32.xlu0 %v8921_v27, %s4722_s20 }
 0x5e5   : > { %v9013_v39 = vpop.permute.xlu0 %2868 }
 0x5e7   : > { %2370 = vrot.lane.b32.xlu1 %v8908_v25, %s4718_s24  ;;  %2527 = vrot.lane.b32.xlu0 %v8915_v62, %s4717_s26 }
 0x5e9   : > { %v9023_v44 = vpop.permute.xlu0 %2714 }
 0x5ea   : > { %11630 = vst [vmem:[#allocation12_spill] sm:$0xff] %v9023_v44  ;;  %v2025_v44 = vadd.s32 256, %v8543_v19 }
 0x5eb   : > { %2458 = vrot.lane.b32.xlu1 %v8928_v38, %s4723_s21  ;;  %2555 = vrot.lane.b32.xlu0 %v8969_v2, %s4717_s26 }
 0x5ed   : > { %v9038_v47 = vpop.permute.xlu0 %2633 }
 0x5ee   : > { %11632 = vst [vmem:[#allocation14_spill] sm:$0xff] %v9038_v47 }
 0x5ef   : > { %2290 = vrot.lane.b32.xlu1 %v8908_v25, %s4719_s30  ;;  %2446 = vrot.lane.b32.xlu0 %v8915_v62, %s4723_s21 }
 0x5f3   : > { %2378 = vrot.lane.b32.xlu1 %v8928_v38, %s4718_s24  ;;  %2535 = vrot.lane.b32.xlu0 %v8906_v53, %s4717_s26 }
 0x5f7   : > { %2298 = vrot.lane.b32.xlu1 %v8928_v38, %s4719_s30  ;;  %2474 = vrot.lane.b32.xlu0 %v8969_v2, %s4723_s21 }
 0x5fb   : > { %2858 = vrot.lane.b32.xlu1 %v8906_v53, %s4724_s22  ;;  %2366 = vrot.lane.b32.xlu0 %v8915_v62, %s4718_s24 }
 0x5ff   : > { %2789 = vrot.lane.b32.xlu1 %v8998_v24, %s4720_s16  ;;  %2454 = vrot.lane.b32.xlu0 %v8906_v53, %s4723_s21 }
 0x603   : > { %2862 = vrot.lane.b32.xlu1 %v8928_v38, %s4724_s22  ;;  %2394 = vrot.lane.b32.xlu0 %v8969_v2, %s4718_s24 }
 0x607   : > { %2712 = vrot.lane.b32.xlu1 %v9011_v1, %s4721_s19  ;;  %2286 = vrot.lane.b32.xlu0 %v8915_v62, %s4719_s30 }
 0x60b   : > { %2631 = vrot.lane.b32.xlu1 %v9011_v1, %s4722_s20  ;;  %2374 = vrot.lane.b32.xlu0 %v8906_v53, %s4718_s24 }
 0x60f   : > { %2876 = vrot.lane.b32.xlu1 %v8753_v61, %s4724_s22  ;;  %2314 = vrot.lane.b32.xlu0 %v8969_v2, %s4719_s30  ;;  %v9050_v61 = vpop.permute.xlu0 %2549 }
 0x610   : > { %11634 = vst [vmem:[#allocation16_spill] sm:$0xff] %v9050_v61  ;;  %v9072_v61 = vpop.permute.xlu1 %2304 }
 0x611   : > { %11639 = vst [vmem:[#allocation27_spill] sm:$0xff] %v9072_v61 }
 0x613   : > { %2543 = vrot.lane.b32.xlu1 %v8921_v27, %s4717_s26  ;;  %2294 = vrot.lane.b32.xlu0 %v8906_v53, %s4719_s30  ;;  %v9058_v40 = vpop.permute.xlu0 %2468 }
 0x614   : > { %11636 = vst [vmem:[#allocation18_spill] sm:$0xff] %v9058_v40  ;;  %v9083_v22 = vpop.permute.xlu1 %2392 }
 0x615   : > { %11641 = vst [vmem:[#allocation29_spill] sm:$0xff] %v9083_v22  ;;  %v2035_v22 = vand.u32 31, %v8543_v19 }
 0x617   : > { %2466 = vrot.lane.b32.xlu1 %v8998_v24, %s4723_s21  ;;  %2854 = vrot.lane.b32.xlu0 %v8908_v25, %s4724_s22  ;;  %v9070_v17 = vpop.permute.xlu0 %2388  ;;  %vm9111_vm7 = vcmp.ge.s32.totalorder %v2035_v22, 1  ;;  %vm9176_vm12 = vcmp.le.s32.totalorder %v2035_v22, 30 }
 0x618   : > { %11638 = vst [vmem:[#allocation20_spill] sm:$0xff] %v9070_v17  ;;  %v9091_v17 = vpop.permute.xlu1 %2312  ;;  %v11648_v13 = vsel %vm9111_vm7, 4294967295, %v11647_v13 }
 0x619   : > { %11643 = vst [vmem:[#allocation31_spill] sm:$0xff] %v9091_v17 }
 0x61b   : > { %2386 = vrot.lane.b32.xlu1 %v8998_v24, %s4718_s24  ;;  %2850 = vrot.lane.b32.xlu0 %v8915_v62, %s4724_s22  ;;  %v9081_v40 = vpop.permute.xlu0 %2308 }
 0x61c   : > { %11640 = vst [vmem:[#allocation22_spill] sm:$0xff] %v9081_v40 }
 0x61f   : > { %2306 = vrot.lane.b32.xlu1 %v8998_v24, %s4719_s30  ;;  %2793 = vrot.lane.b32.xlu0 %v9011_v1, %s4720_s16  ;;  %v9089_v61 = vpop.permute.xlu0 %2872 }
 0x620   : > { %11642 = vst [vmem:[#allocation24_spill] sm:$0xff] %v9089_v61 }
 0x623   : > { %2870 = vrot.lane.b32.xlu1 %v8998_v24, %s4724_s22  ;;  %2866 = vrot.lane.b32.xlu0 %v8921_v27, %s4724_s22 }
 0x627   : > { %2880 = vrot.lane.b32.xlu1 %v8669_v56, %s4724_s22  ;;  %2708 = vrot.lane.b32.xlu0 %v8998_v24, %s4721_s19  ;;  %v2024_v56 = vadd.s32 128, %v8543_v19 }
 0x629   : > { %v2042_v47 = vand.u32 31, %v2024_v56 }
 0x62b   : > { %2934 = vperm.xlu1 %4414, %v2931_v36   ;;  %2797 = vrot.lane.b32.xlu0 %v8969_v2, %s4720_s16  ;;  %vm9104_vm6 = vcmp.ge.s32.totalorder %v2042_v47, 1  ;;  %vm9167_vm11 = vcmp.le.s32.totalorder %v2042_v47, 30 }
 0x62c   : > { %v11646_v57 = vsel %vm9104_vm6, 4294967295, %v11645_v57 }
 0x62f   : > { %2627 = vrot.lane.b32.xlu0 %v8998_v24, %s4722_s20 }
 0x633   : > { %2716 = vrot.lane.b32.xlu0 %v8969_v2, %s4721_s19 }
 0x635   : > { %v2778_v58 = vpop.permute.xlu1 %2777  ;;  %v2774_v40 = vpop.permute.xlu0 %2773 }
 0x636   : > { %v2812_v36 = vsel %vm10844_vm4, %v2774_v40, %v2778_v58 }
 0x637   : > { %2635 = vrot.lane.b32.xlu0 %v8969_v2, %s4722_s20  ;;  %2942 = vmatprep.subr.mxu1 %v2812_v36  ;;  %v2732_v36 = vsel %vm10837_vm5, %v8781_v43, %v8775_v7 }
 0x639   : > { %v2697_v17 = vpop.permute.xlu1 %2696  ;;  %v9102_v61 = vpop.permute.xlu0 %2769 }
 0x63a   : > { %11644 = vst [vmem:[#allocation26_spill] sm:$0xff] %v9102_v61  ;;  %v2814_v56 = vsel %vm10844_vm4, %v9102_v61, %v2774_v40  ;;  %v2734_v40 = vsel %vm10837_vm5, %v8808_v28, %v8781_v43  ;;  %v2056_v61 = vand.u32 31, %v2026_v55  ;;  %v2049_v43 = vand.u32 31, %v2025_v44 }
 0x63b   : > { %2547 = vrot.lane.b32.xlu0 %v8998_v24, %s4717_s26  ;;  %2943 = vmatpush1.msra.mxu1 %v2814_v56  ;;  %v11651_v55 = vmov 0 }
 0x63c   : > { %4229 = vmatprep.subr.msk.mxu1 %vm9104_vm6, %v2732_v36  ;;  %vm9144_vm8 = vcmp.ge.s32.totalorder %v2056_v61, 1  ;;  %vm9150_vm9 = vcmp.ge.s32.totalorder %v2049_v43, 1  ;;  %vm9209_vm13 = vcmp.le.s32.totalorder %v2056_v61, 30  ;;  %vm9217_vm14 = vcmp.le.s32.totalorder %v2049_v43, 30 }
 0x63d   : > { %4230 = vmatpush1.msk.msra.mxu1 %vm9111_vm7, %v2734_v40  ;;  %v2693_v24 = vpop.permute.xlu0 %2692  ;;  %v9133_v48 = vpop.permute.xlu1 %2785  ;;  %v11650_v4 = vsel %vm9144_vm8, 4294967295, %v11649_v4  ;;  %v11652_v55 = vsel %vm9150_vm9, 4294967295, %v11651_v55  ;;  %v2649_v61 = vsel %vm10836_vm10, %v8802_v54, %v8844_v0 }
 0x63e   : > { %v2731_v56 = vsel %vm10837_vm5, %v2693_v24, %v2697_v17 }
 0x63f   : > { %2462 = vrot.lane.b32.xlu0 %v8921_v27, %s4723_s21  ;;  %4231 = vmatprep.subr.msk.mxu1 %vm9104_vm6, %v2731_v56 }
 0x641   : > { %v2782_v28 = vpop.permute.xlu0 %2781  ;;  %v2616_v44 = vpop.permute.xlu1 %2615 }
 0x642   : > { %v2808_v36 = vsel %vm10844_vm4, %v2782_v28, %v9133_v48  ;;  %v2810_v40 = vsel %vm10844_vm4, %v2778_v58, %v2782_v28  ;;  %v2728_v28 = vsel %vm10837_vm5, %v8819_v21, %v8804_v42  ;;  %v2730_v58 = vsel %vm10837_vm5, %v8775_v7, %v8819_v21 }
 0x643   : > { %2551 = vrot.lane.b32.xlu0 %v9011_v1, %s4717_s26  ;;  %3013 = vmatprep.subr.mxu0 %v2808_v36  ;;  %v2651_v7 = vsel %vm10836_vm10, %v8812_v29, %v8802_v54 }
 0x644   : > { %3014 = vmatpush1.msra.mxu0 %v2810_v40 }
 0x645   : > { %4256 = vmatprep.subr.msk.mxu0 %vm9144_vm8, %v2728_v28  ;;  %v9165_v56 = vpop.permute.xlu0 %2688  ;;  %v9198_v47 = vpop.permute.xlu1 %2704 }
 0x646   : > { %v2733_v40 = vsel %vm10837_vm5, %v9165_v56, %v2693_v24  ;;  %4257 = vmatpush1.msk.msra.mxu0 %vm9150_vm9, %v2730_v58  ;;  %v2653_v24 = vsel %vm10836_vm10, %v8832_v60, %v8812_v29 }
 0x647   : > { %2382 = vrot.lane.b32.xlu0 %v8921_v27, %s4718_s24  ;;  %4232 = vmatpush1.msk.msra.mxu1 %vm9111_vm7, %v2733_v40 }
 0x648   : > { %4233 = vmatprep.subr.msk.mxu1 %vm9167_vm11, %v2651_v7 }
 0x649   : > { %4234 = vmatpush1.msk.msra.mxu1 %vm9176_vm12, %v2653_v24  ;;  %v2612_v21 = vpop.permute.xlu0 %2611  ;;  %v2620_v24 = vpop.permute.xlu1 %2619 }
 0x64a   : > { %v2650_v22 = vsel %vm10836_vm10, %v2612_v21, %v2616_v44 }
 0x64b   : > { %2470 = vrot.lane.b32.xlu0 %v9011_v1, %s4723_s21  ;;  %4235 = vmatprep.subr.msk.mxu1 %vm9167_vm11, %v2650_v22 }
 0x64d   : > { %v2701_v28 = vpop.permute.xlu0 %2700 }
 0x64e   : > { %v2729_v29 = vsel %vm10837_vm5, %v2697_v17, %v2701_v28  ;;  %v2727_v58 = vsel %vm10837_vm5, %v2701_v28, %v9198_v47  ;;  %v2647_v17 = vsel %vm10836_vm10, %v8844_v0, %v8806_v9  ;;  %vm9308_vm5 = vmand %vm10839_vm15, %vm9176_vm12 }
 0x64f   : > { %2302 = vrot.lane.b32.xlu0 %v8921_v27, %s4719_s30  ;;  %4258 = vmatprep.subr.msk.mxu0 %vm9144_vm8, %v2727_v58 }
 0x650   : > { %4259 = vmatpush1.msk.msra.mxu0 %vm9150_vm9, %v2729_v29 }
 0x651   : > { %4260 = vmatprep.subr.msk.mxu0 %vm9209_vm13, %v2647_v17  ;;  %v9233_v43 = vpop.permute.xlu0 %2607 }
 0x652   : > { %v2652_v22 = vsel %vm10836_vm10, %v9233_v43, %v2612_v21  ;;  %4261 = vmatpush1.msk.msra.mxu0 %vm9217_vm14, %v2649_v61  ;;  %v2532_v21 = vpop.permute.xlu1 %2531 }
 0x653   : > { %2390 = vrot.lane.b32.xlu0 %v9011_v1, %s4718_s24  ;;  %4236 = vmatpush1.msk.msra.mxu1 %vm9176_vm12, %v2652_v22 }
 0x654   : > { %2952 = vmatprep.subr.mxu1 %v8523_v14  ;;  %v2572_v14 = vsel %vm10842_vm1, %v8848_v11, %v8810_v26 }
 0x655   : > { %2953 = vmatpush1.msra.mxu1 %v8530_v15  ;;  %v9246_v54 = vpop.permute.xlu0 %2623  ;;  %v2574_v15 = vsel %vm10842_vm1, %v8850_v18, %v8848_v11 }
 0x656   : > { %2954 = vmatprep.subr.mxu1 %v8908_v25  ;;  %v2646_v0 = vsel %vm10836_vm10, %v2620_v24, %v9246_v54  ;;  %v2648_v25 = vsel %vm10836_vm10, %v2616_v44, %v2620_v24  ;;  %v2451_v44 = vpop.permute.xlu1 %2450  ;;  %vm10838_vm10 = vcmp.lt.s32.totalorder %v8543_v19, 31 }
 0x657   : > { %2310 = vrot.lane.b32.xlu0 %v9011_v1, %s4719_s30  ;;  %2955 = vmatpush1.msra.mxu1 %v8915_v62  ;;  %v2488_v22 = vsel %vm10838_vm10, %v8870_v37, %v8956_v3 }
 0x658   : > { %4262 = vmatprep.subr.msk.mxu0 %vm9209_vm13, %v2646_v0  ;;  %4237 = vmatprep.subr.msk.mxu1 %vm9104_vm6, %v2572_v14  ;;  %v2490_v0 = vsel %vm10838_vm10, %v8934_v10, %v8870_v37  ;;  %v2411_v37 = vsel %vm10841_vm2, %v8866_v31, %v8950_v35 }
 0x659   : > { %4263 = vmatpush1.msk.msra.mxu0 %vm9217_vm14, %v2648_v25  ;;  %4238 = vmatpush1.msk.msra.mxu1 %vm9111_vm7, %v2574_v15  ;;  %v2528_v62 = vpop.permute.xlu0 %2527 }
 0x65a   : > { %3023 = vmatprep.subr.mxu0 %v8546_v33  ;;  %v2571_v11 = vsel %vm10842_vm1, %v2528_v62, %v2532_v21  ;;  %v2568_v33 = vsel %vm10842_vm1, %v8856_v12, %v8940_v16  ;;  %v9328_v17 = vpop.permute.xlu1 %2539 }
 0x65b   : > { %3024 = vmatpush1.msra.mxu0 %v8520_v32  ;;  %2874 = vrot.lane.b32.xlu0 %v9011_v1, %s4724_s22  ;;  %v2570_v32 = vsel %vm10842_vm1, %v8810_v26, %v8856_v12  ;;  %v11661_v26 = vmov 0  ;;  %v2492_v12 = vsel %vm10838_vm10, %v8852_v23, %v8934_v10  ;;  %v2413_v10 = vsel %vm10841_vm2, %v8874_v5, %v8866_v31 }
 0x65c   : > { %4239 = vmatprep.subr.msk.mxu1 %vm9104_vm6, %v2571_v11  ;;  %3025 = vmatprep.subr.mxu0 %v8928_v38  ;;  %v11662_v26 = vsel %vm9308_vm5, 4294967295, %v11661_v26  ;;  %v2494_v38 = vsel %vm10838_vm10, %v8860_v63, %v8852_v23  ;;  %v2407_v31 = vsel %vm10841_vm2, %v8878_v30, %v8975_v34 }
 0x65d   : > { %3026 = vmatpush1.msra.mxu0 %v8906_v53  ;;  %v9288_v28 = vpop.permute.xlu0 %2555 }
 0x65e   : > { %4264 = vmatprep.subr.msk.mxu0 %vm9144_vm8, %v2568_v33  ;;  %v2573_v53 = vsel %vm10842_vm1, %v9288_v28, %v2528_v62 }
 0x65f   : > { %4265 = vmatpush1.msk.msra.mxu0 %vm9150_vm9, %v2570_v32  ;;  %2878 = vrot.lane.b32.xlu0 %v8969_v2, %s4724_s22 }
 0x660   : > { %4240 = vmatpush1.msk.msra.mxu1 %vm9111_vm7, %v2573_v53 }
 0x661   : > { %4241 = vmatprep.subr.msk.mxu1 %vm9167_vm11, %v2492_v12  ;;  %v2447_v29 = vpop.permute.xlu0 %2446 }
 0x662   : > { %4242 = vmatpush1.msk.msra.mxu1 %vm9308_vm5, %v2494_v38  ;;  %v2491_v58 = vsel %vm10838_vm10, %v2447_v29, %v2451_v44 }
 0x663   : > { %4243 = vmatprep.subr.msk.mxu1 %vm9167_vm11, %v2491_v58  ;;  %v11663_v58 = vmov 0 }
 0x665   : > { %v2536_v61 = vpop.permute.xlu0 %2535 }
 0x666   : > { %v2569_v24 = vsel %vm10842_vm1, %v2532_v21, %v2536_v61  ;;  %v2567_v23 = vsel %vm10842_vm1, %v2536_v61, %v9328_v17  ;;  %v2371_v21 = vpop.permute.xlu1 %2370  ;;  %vm11673_vm1 = vcmp.lt.s32.totalorder %v8543_v19, 97 }
 0x667   : > { %4266 = vmatprep.subr.msk.mxu0 %vm9144_vm8, %v2567_v23 }
 0x668   : > { %4267 = vmatpush1.msk.msra.mxu0 %vm9150_vm9, %v2569_v24 }
 0x669   : > { %4268 = vmatprep.subr.msk.mxu0 %vm9209_vm13, %v2488_v22  ;;  %v9351_v14 = vpop.permute.xlu0 %2474 }
 0x66a   : > { %v2493_v15 = vsel %vm10838_vm10, %v9351_v14, %v2447_v29  ;;  %4269 = vmatpush1.msk.msra.mxu0 %vm9217_vm14, %v2490_v0  ;;  %v9372_v11 = vpop.permute.xlu1 %2458 }
 0x66b   : > { %4244 = vmatpush1.msk.msra.mxu1 %vm9308_vm5, %v2493_v15  ;;  %v2327_v15 = vsel %vm10840_vm3, %v8882_v49, %v8985_v59 }
 0x66c   : > { %2964 = vmatprep.subr.mxu1 %v2411_v37  ;;  %v2329_v37 = vsel %vm10840_vm3, %v8966_v20, %v8882_v49 }
 0x66d   : > { %4245 = vmatpush1.msk.msra.mxu1 %vm10839_vm15, %v2413_v10  ;;  %v2367_v25 = vpop.permute.xlu0 %2366 }
 0x66e   : > { %v2410_v62 = vsel %vm10841_vm2, %v2367_v25, %v2371_v21  ;;  %v2291_v12 = vpop.permute.xlu1 %2290 }
 0x66f   : > { %2966 = vmatprep.subr.mxu1 %v2410_v62 }
 0x671   : > { %v2455_v33 = vpop.permute.xlu0 %2454 }
 0x672   : > { %v2489_v32 = vsel %vm10838_vm10, %v2451_v44, %v2455_v33  ;;  %v2487_v53 = vsel %vm10838_vm10, %v2455_v33, %v9372_v11  ;;  %v2409_v44 = vsel %vm10841_vm2, %v8950_v35, %v8878_v30  ;;  %vm9400_vm10 = vmand %vm10839_vm15, %vm9111_vm7  ;;  %v2331_v30 = vsel %vm10840_vm3, %v8876_v6, %v8966_v20  ;;  %v9420_v23 = vpop.permute.xlu1 %2378 }
 0x673   : > { %4270 = vmatprep.subr.msk.mxu0 %vm9209_vm13, %v2487_v53  ;;  %v11664_v58 = vsel %vm9400_vm10, 4294967295, %v11663_v58  ;;  %v2333_v35 = vsel %vm10840_vm3, %v8880_v41, %v8876_v6  ;;  %vm11693_vm7 = vcmp.lt.s32.totalorder %v8543_v19, 96 }
 0x674   : > { %4271 = vmatpush1.msk.msra.mxu0 %vm9217_vm14, %v2489_v32 }
 0x675   : > { %3035 = vmatprep.subr.mxu0 %v2407_v31  ;;  %v9387_v38 = vpop.permute.xlu0 %2394 }
 0x676   : > { %v2412_v29 = vsel %vm10841_vm2, %v9387_v38, %v2367_v25  ;;  %3036 = vmatpush1.msra.mxu0 %v2409_v44  ;;  %v9438_v10 = vpop.permute.xlu1 %2298 }
 0x677   : > { %4246 = vmatpush1.msk.msra.mxu1 %vm10839_vm15, %v2412_v29  ;;  %vm10845_vm15 = vcmp.lt.s32.totalorder %v8543_v19, 95  ;;  %v2028_v29 = vadd.s32 640, %v8543_v19 }
 0x678   : > { %4247 = vmatprep.subr.msk.mxu1 %vm9104_vm6, %v2331_v30  ;;  %v2894_v49 = vsel %vm10845_vm15, %v8884_v45, %v8991_v8  ;;  %v2896_v20 = vsel %vm10845_vm15, %v8886_v50, %v8884_v45  ;;  %v2890_v45 = vsel %vm10845_vm15, %v8890_v52, %v9013_v39  ;;  %v2892_v31 = vsel %vm10845_vm15, %v8991_v8, %v8890_v52  ;;  %v9495_v8 = vld [vmem:[%s10418_s5] sm:$0xff] }
 0x679   : > { %4248 = vmatpush1.msk.msra.mxu1 %vm9400_vm10, %v2333_v35  ;;  %v2287_v61 = vpop.permute.xlu0 %2286  ;;  %v2027_v30 = vadd.s32 512, %v8543_v19 }
 0x67a   : > { %v2330_v24 = vsel %vm10840_vm3, %v2287_v61, %v2291_v12  ;;  %v2859_v53 = vpop.permute.xlu1 %2858 }
 0x67b   : > { %4249 = vmatprep.subr.msk.mxu1 %vm9104_vm6, %v2330_v24  ;;  %v2070_v24 = vand.u32 31, %v2028_v29 }
 0x67d   : > { %v2375_v22 = vpop.permute.xlu0 %2374 }
 0x67e   : > { %v2406_v6 = vsel %vm10841_vm2, %v2375_v22, %v9420_v23  ;;  %v2408_v0 = vsel %vm10841_vm2, %v2371_v21, %v2375_v22  ;;  %v2790_v35 = vpop.permute.xlu1 %2789  ;;  %v2805_v22 = vsel %vm10844_vm4, %v8888_v51, %v9004_v46 }
 0x67f   : > { %3037 = vmatprep.subr.mxu0 %v2406_v6  ;;  %v2063_v6 = vand.u32 31, %v2027_v30 }
 0x680   : > { %3038 = vmatpush1.msra.mxu0 %v2408_v0  ;;  %v11665_v0 = vld [vmem:[#allocation7_spill] sm:$0xff] }
 0x681   : > { %4272 = vmatprep.subr.msk.mxu0 %vm9144_vm8, %v2327_v15  ;;  %v9442_v21 = vpop.permute.xlu0 %2314  ;;  %v2807_v15 = vsel %vm10844_vm4, %v11665_v0, %v8888_v51  ;;  %vm9525_vm2 = vcmp.ge.s32.totalorder %v2063_v6, 1  ;;  %v11676_v0 = vld [vmem:[#allocation2_spill] sm:$0xff] }
 0x682   : > { %v2332_v25 = vsel %vm10840_vm3, %v9442_v21, %v2287_v61  ;;  %4273 = vmatpush1.msk.msra.mxu0 %vm9150_vm9, %v2329_v37  ;;  %v2863_v51 = vpop.permute.xlu1 %2862 }
 0x683   : > { %4250 = vmatpush1.msk.msra.mxu1 %vm9400_vm10, %v2332_v25  ;;  %v11666_v25 = vld [vmem:[#allocation19_spill] sm:$0xff] }
 0x684   : > { %4251 = vmatprep.subr.msk.mxu1 %vm9167_vm11, %v2894_v49 }
 0x685   : > { %4252 = vmatpush2.msk.msra.mxu1 %vm9176_vm12, %v2896_v20  ;;  %v2295_v62 = vpop.permute.xlu0 %2294  ;;  %v11667_v20 = vmov 0 }
 0x686   : > { %v2328_v33 = vsel %vm10840_vm3, %v2291_v12, %v2295_v62  ;;  %v2326_v32 = vsel %vm10840_vm3, %v2295_v62, %v9438_v10  ;;  %vm9515_vm3 = vcmp.ge.s32.totalorder %v2070_v24, 1  ;;  %v9520_v62 = vadd.s32 896, %v8543_v19 }
 0x687   : > { %4274 = vmatprep.subr.msk.mxu0 %vm9144_vm8, %v2326_v32  ;;  %v11668_v20 = vsel %vm9515_vm3, 4294967295, %v11667_v20  ;;  %v11669_v32 = vmov 0 }
 0x688   : > { %4275 = vmatpush1.msk.msra.mxu0 %vm9150_vm9, %v2328_v33  ;;  %v2806_v33 = vsel %vm10844_vm4, %v9133_v48, %v2790_v35  ;;  %v11670_v32 = vsel %vm9525_vm2, 4294967295, %v11669_v32 }
 0x689   : > { %4276 = vmatprep.subr.msk.mxu0 %vm9209_vm13, %v2890_v45  ;;  %v2855_v12 = vpop.permute.xlu0 %2854  ;;  %v11671_v45 = vld [vmem:[#allocation12_spill] sm:$0xff] }
 0x68a   : > { %4277 = vmatpush2.msk.msra.mxu0 %vm9217_vm14, %v2892_v31  ;;  %v2893_v44 = vsel %vm10845_vm15, %v2855_v12, %v2859_v53  ;;  %v11672_v31 = vld [vmem:[#allocation4_spill] sm:$0xff] }
 0x68b   : > { %4253 = vmatprep.subr.msk.mxu1 %vm9167_vm11, %v2893_v44  ;;  %v11674_v44 = vld [vmem:[#allocation3_spill] sm:$0xff] }
 0x68d   : > { %v9490_v61 = vpop.permute.xlu0 %2850 }
 0x68e   : > { %v2895_v52 = vsel %vm10845_vm15, %v9490_v61, %v2855_v12  ;;  %v2724_v12 = vsel %vm11673_vm1, %v11672_v31, %v11671_v45 }
 0x68f   : > { %4254 = vmatpush2.msk.msra.mxu1 %vm9176_vm12, %v2895_v52  ;;  %v2084_v52 = vand.u32 31, %v9520_v62 }
 0x690   : > { %3005 = vmatmul.mubr.f32.vlgmr.msra.gmra.mxu1 %v9495_v8  ;;  %3082 = vmatprep.subr.mxu1 %v2805_v22  ;;  %v2029_v22 = vadd.s32 768, %v8543_v19 }
 0x691   : > { %3083 = vmatpush1.msra.mxu1 %v2807_v15  ;;  %v2794_v37 = vpop.permute.xlu0 %2793  ;;  %4305 = vmatprep.mubr.msk.f32.mxu1 %vm10843_vm0, %v11666_v25  ;;  %vm11675_vm0 = vmmov %vm11673_vm1  ;;  %v11677_v15 = vld [vmem:[#allocation11_spill] sm:$0xff]  ;;  %vm9575_vm5 = vcmp.ge.s32.totalorder %v2084_v52, 1 }
 0x692   : > { %v2804_v49 = vsel %vm10844_vm4, %v2790_v35, %v2794_v37  ;;  %v2726_v29 = vsel %vm11675_vm0, %v11674_v44, %v11672_v31  ;;  %vm10848_vm4 = vcmp.lt.s32.totalorder %v9520_v62, 992  ;;  %v2891_v35 = vsel %vm10845_vm15, %v2859_v53, %v2863_v51 }
 0x693   : > { %3084 = vmatprep.subr.mxu1 %v2804_v49  ;;  %vm11678_vm0 = vcmp.lt.s32.totalorder %v8543_v19, 96 }
 0x694   : > { %3085 = vmatpush1.msra.mxu1 %v2806_v33  ;;  %v2817_v49 = vsel %vm11678_vm0, %v11677_v15, %v11676_v0  ;;  %v2713_v33 = vpop.permute.xlu1 %2712  ;;  %vm11679_vm1 = vmmov %vm11678_vm0  ;;  %vm9571_vm0 = vcmp.le.s32.totalorder %v2070_v24, 30  ;;  %v11690_v24 = vld [vmem:[#allocation6_spill] sm:$0xff] }
 0x695   : > { %4281 = vmatprep.subr.msk.mxu1 %vm9515_vm3, %v2724_v12  ;;  %v9539_v48 = vpop.permute.xlu0 %2866  ;;  %v11694_v0 = vld [vmem:[#allocation26_spill] sm:$0xff] }
 0x696   : > { %4282 = vmatpush1.msk.msra.mxu1 %vm9525_vm2, %v2726_v29  ;;  %v2889_v30 = vsel %vm10845_vm15, %v2863_v51, %v9539_v48  ;;  %v2803_v51 = vsel %vm11679_vm1, %v9004_v46, %v11677_v15  ;;  %vm11680_vm15 = vcmp.lt.s32.totalorder %v8543_v19, 97  ;;  %v11684_v29 = vmov 0 }
 0x697   : > { %4278 = vmatprep.subr.msk.mxu0 %vm9209_vm13, %v2889_v30  ;;  %vm11681_vm10 = vmmov %vm11680_vm15  ;;  %v11685_v29 = vsel %vm9575_vm5, 4294967295, %v11684_v29  ;;  %vm9581_vm1 = vcmp.le.s32.totalorder %v2063_v6, 30  ;;  %v2077_v30 = vand.u32 31, %v2029_v22 }
 0x698   : > { %4279 = vmatpush2.msk.msra.mxu0 %vm9217_vm14, %v2891_v35 }
 0x699   : > { %3076 = vmatmul.mubr.f32.vlgmr.msra.gmra.mxu0 %v9495_v8  ;;  %4306 = vmatprep.subr.msk.mxu0 %vm10848_vm4, %v2817_v49  ;;  %v2709_v53 = vpop.permute.xlu0 %2708  ;;  %v2632_v49 = vpop.permute.xlu1 %2631 }
 0x69a   : > { %v2723_v31 = vsel %vm11680_vm15, %v2709_v53, %v2713_v33  ;;  %v2725_v12 = vsel %vm11681_vm10, %v9198_v47, %v2709_v53  ;;  %3154 = vmatpush1.msra.mxu0 %v2803_v51  ;;  %vm11688_vm15 = vcmask 130048   ;;  %v11689_v47 = vld [vmem:[#allocation14_spill] sm:$0xff]  ;;  %vm11691_vm10 = vcmp.lt.s32.totalorder %v8543_v19, 127  ;;  %v11702_v53 = vld [vmem:[#allocation9_spill] sm:$0xff] }
 0x69b   : > { %4283 = vmatprep.subr.msk.mxu1 %vm9515_vm3, %v2723_v31  ;;  %4332 = vmatprep.mubr.msk.f32.mxu0 %vm11688_vm15, %v11666_v25  ;;  %v2643_v35 = vsel %vm11691_vm10, %v11690_v24, %v11689_v47  ;;  %vm11692_vm4 = vmmov %vm11691_vm10  ;;  %vm11696_vm10 = vcmp.lt.s32.totalorder %v9520_v62, 992  ;;  %v11703_v51 = vld [vmem:[#allocation13_spill] sm:$0xff] }
 0x69c   : > { %4284 = vmatpush1.msk.msra.mxu1 %vm9525_vm2, %v2725_v12  ;;  %v2645_v6 = vsel %vm11692_vm4, %v8806_v9, %v11690_v24  ;;  %vm11695_vm15 = vmmov %vm11693_vm7  ;;  %v11697_v9 = vmov 0 }
 0x69d   : > { %4285 = vmatprep.subr.msk.mxu1 %vm9571_vm0, %v2643_v35  ;;  %v2798_v22 = vpop.permute.xlu0 %2797  ;;  %vm9610_vm9 = vmand %vm11696_vm10, %vm9575_vm5 }
 0x69e   : > { %v2802_v25 = vsel %vm11693_vm7, %v2794_v37, %v2798_v22  ;;  %v2816_v15 = vsel %vm11695_vm15, %v2798_v22, %v11694_v0  ;;  %4286 = vmatpush1.msk.msra.mxu1 %vm9581_vm1, %v2645_v6  ;;  %v11698_v9 = vsel %vm9610_vm9, 4294967295, %v11697_v9  ;;  %vm11699_vm4 = vmmov %vm11696_vm10  ;;  %vm9616_vm7 = vcmp.ge.s32.totalorder %v2077_v30, 1  ;;  %v11708_v22 = vld [vmem:[#allocation58_spill] sm:$0xff] }
 0x69f   : > { %4307 = vmatprep.subr.msk.mxu0 %vm11699_vm4, %v2816_v15  ;;  %v11700_v37 = vmov 0  ;;  %vm11704_vm15 = vcmp.lt.s32.totalorder %v8543_v19, 97  ;;  %vm11706_vm4 = vcmp.lt.s32.totalorder %v8543_v19, 127  ;;  %v11711_v15 = vld [vmem:[#allocation182_spill] sm:$0xff] }
 0x6a0   : > { %v11701_v37 = vsel %vm9616_vm7, 4294967295, %v11700_v37  ;;  %3156 = vmatpush1.msra.mxu0 %v2802_v25  ;;  %v2736_v31 = vsel %vm11704_vm15, %v11703_v51, %v11702_v53  ;;  %vm11705_vm10 = vmmov %vm11704_vm15  ;;  %v11712_v53 = vmov 0 }
 0x6a1   : > { %v2722_v12 = vsel %vm11705_vm10, %v11671_v45, %v11703_v51  ;;  %4308 = vmatprep.subr.msk.mxu0 %vm9610_vm9, %v2736_v31  ;;  %v2628_v24 = vpop.permute.xlu0 %2627  ;;  %vm11707_vm8 = vmmov %vm11706_vm4  ;;  %v9641_v45 = vpop.permute.xlu1 %2876  ;;  %v11714_v51 = vld [vmem:[#allocation17_spill] sm:$0xff] }
 0x6a2   : > { %v2642_v35 = vsel %vm11706_vm4, %v2628_v24, %v2632_v49  ;;  %v2644_v6 = vsel %vm11707_vm8, %v9246_v54, %v2628_v24  ;;  %4309 = vmatpush1.msk.msra.mxu0 %vm9616_vm7, %v2722_v12  ;;  %vm11709_vm15 = vmmov %vm11705_vm10  ;;  %vm9657_vm4 = vcmp.le.s32.totalorder %v2077_v30, 30  ;;  %v11720_v12 = vld [vmem:[#allocation8_spill] sm:$0xff] }
 0x6a3   : > { %4287 = vmatprep.subr.msk.mxu1 %vm9571_vm0, %v2642_v35  ;;  %vm11710_vm8 = vmmov %vm11705_vm10  ;;  %vm9650_vm10 = vcmp.le.s32.totalorder %v2084_v52, 30 }
 0x6a4   : > { %4288 = vmatpush1.msk.msra.mxu1 %vm9581_vm1, %v2644_v6  ;;  %v11713_v53 = vsel %vm9650_vm10, 4294967295, %v11712_v53 }
 0x6a5   : > { %3094 = vmatprep.subr.mxu1 %v11708_v22  ;;  %v2717_v25 = vpop.permute.xlu0 %2716 }
 0x6a6   : > { %v2721_v0 = vsel %vm11709_vm15, %v2713_v33, %v2717_v25  ;;  %v2735_v54 = vsel %vm11710_vm8, %v2717_v25, %v9165_v56  ;;  %3095 = vmatpush1.msra.mxu1 %v11711_v15  ;;  %v11717_v56 = vld [vmem:[#allocation16_spill] sm:$0xff]  ;;  %v11718_v33 = vld [vmem:[#allocation15_spill] sm:$0xff]  ;;  %vm11719_vm15 = vcmp.lt.s32.totalorder %v8543_v19, 1  ;;  %vm11721_vm8 = vcmp.lt.s32.totalorder %v8543_v19, 127 }
 0x6a7   : > { %3096 = vmatprep.subr.mxu1 %v11714_v51  ;;  %4310 = vmatprep.subr.msk.mxu0 %vm9610_vm9, %v2735_v54  ;;  %v2564_v52 = vsel %vm11719_vm15, %v11718_v33, %v11717_v56  ;;  %v2655_v24 = vsel %vm11721_vm8, %v11720_v12, %v8832_v60  ;;  %vm11722_vm9 = vmmov %vm11719_vm15  ;;  %v11731_v54 = vld [vmem:[#allocation10_spill] sm:$0xff]  ;;  %v11733_v51 = vld [vmem:[#allocation21_spill] sm:$0xff] }
 0x6a8   : > { %3097 = vmatpush1.msra.mxu1 %v8921_v27  ;;  %4311 = vmatpush1.msk.msra.mxu0 %vm9616_vm7, %v2721_v0  ;;  %v2566_v30 = vsel %vm11722_vm9, %v8940_v16, %v11718_v33  ;;  %vm11723_vm6 = vmmov %vm11721_vm8  ;;  %v2544_v16 = vpop.permute.xlu1 %2543  ;;  %v11730_v0 = vld [vmem:[#allocation18_spill] sm:$0xff] }
 0x6a9   : > { %v2641_v27 = vsel %vm11723_vm6, %v11689_v47, %v11720_v12  ;;  %4289 = vmatprep.subr.msk.mxu1 %vm9515_vm3, %v2564_v52  ;;  %4312 = vmatprep.subr.msk.mxu0 %vm9650_vm10, %v2655_v24  ;;  %v2636_v35 = vpop.permute.xlu0 %2635  ;;  %vm11724_vm15 = vmmov %vm11723_vm6  ;;  %v11726_v47 = vld [vmem:[#allocation188_spill] sm:$0xff]  ;;  %v11740_v12 = vld [vmem:[#allocation23_spill] sm:$0xff] }
 0x6aa   : > { %v2640_v60 = vsel %vm11724_vm15, %v2632_v49, %v2636_v35  ;;  %vm11725_vm8 = vmmov %vm11723_vm6  ;;  %4290 = vmatpush1.msk.msra.mxu1 %vm9525_vm2, %v2566_v30  ;;  %4313 = vmatpush1.msk.msra.mxu0 %vm9657_vm4, %v2641_v27  ;;  %vm11732_vm15 = vcmp.lt.s32.totalorder %v8543_v19, 31 }
 0x6ab   : > { %v2654_v6 = vsel %vm11725_vm8, %v2636_v35, %v9233_v43  ;;  %vm11727_vm6 = vmmov %vm11722_vm9  ;;  %v11728_v43 = vld [vmem:[#allocation5_spill] sm:$0xff]  ;;  %v2484_v15 = vsel %vm11732_vm15, %v11731_v54, %v11730_v0 }
 0x6ac   : > { %4314 = vmatprep.subr.msk.mxu0 %vm9650_vm10, %v2654_v6  ;;  %vm11729_vm9 = vmmov %vm11727_vm6  ;;  %v2467_v33 = vpop.permute.xlu1 %2466  ;;  %v11745_v6 = vld [vmem:[#allocation25_spill] sm:$0xff] }
 0x6ad   : > { %4315 = vmatpush1.msk.msra.mxu0 %vm9657_vm4, %v2640_v60  ;;  %v2548_v49 = vpop.permute.xlu0 %2547  ;;  %v2565_v25 = vsel %vm11729_vm9, %v9328_v17, %v2544_v16  ;;  %vm11734_vm8 = vmmov %vm11727_vm6 }
 0x6ae   : > { %3165 = vmatprep.subr.mxu0 %v11726_v47  ;;  %v2563_v22 = vsel %vm11727_vm6, %v2544_v16, %v2548_v49  ;;  %v2560_v17 = vsel %vm11734_vm8, %v11733_v51, %v8850_v18  ;;  %vm11735_vm6 = vmmov %vm11732_vm15 }
 0x6af   : > { %3166 = vmatpush1.msra.mxu0 %v11728_v43  ;;  %4291 = vmatprep.subr.msk.mxu1 %vm9515_vm3, %v2563_v22  ;;  %vm11736_vm9 = vmmov %vm11734_vm8  ;;  %v11751_v22 = vld [vmem:[#allocation27_spill] sm:$0xff] }
 0x6b0   : > { %3167 = vmatprep.subr.mxu0 %v8969_v2  ;;  %4292 = vmatpush1.msk.msra.mxu1 %vm9525_vm2, %v2565_v25  ;;  %v2486_v2 = vsel %vm11735_vm6, %v8956_v3, %v11731_v54  ;;  %vm11737_vm15 = vmmov %vm11735_vm6  ;;  %v2387_v60 = vpop.permute.xlu1 %2386 }
 0x6b1   : > { %3168 = vmatpush1.msra.mxu0 %v9011_v1  ;;  %v2562_v1 = vsel %vm11736_vm9, %v11717_v56, %v11733_v51  ;;  %4293 = vmatprep.subr.msk.mxu1 %vm9571_vm0, %v2484_v15  ;;  %v2463_v52 = vpop.permute.xlu0 %2462  ;;  %vm11738_vm8 = vmmov %vm11735_vm6  ;;  %v11739_v56 = vld [vmem:[#allocation20_spill] sm:$0xff]  ;;  %vm11741_vm6 = vcmp.lt.s32.totalorder %v8543_v19, 32 }
 0x6b2   : > { %4316 = vmatprep.subr.msk.mxu0 %vm9575_vm5, %v2560_v17  ;;  %v2483_v18 = vsel %vm11737_vm15, %v2463_v52, %v2467_v33  ;;  %v2485_v3 = vsel %vm11738_vm8, %v9372_v11, %v2463_v52  ;;  %4294 = vmatpush1.msk.msra.mxu1 %vm9581_vm1, %v2486_v2  ;;  %v2403_v24 = vsel %vm11741_vm6, %v11740_v12, %v11739_v56  ;;  %vm11742_vm9 = vmmov %vm11741_vm6  ;;  %vm11743_vm15 = vcmp.lt.s32.totalorder %v8543_v19, 1 }
 0x6b3   : > { %4317 = vmatpush1.msk.msra.mxu0 %vm9616_vm7, %v2562_v1  ;;  %4295 = vmatprep.subr.msk.mxu1 %vm9571_vm0, %v2483_v18  ;;  %v2405_v11 = vsel %vm11742_vm9, %v8975_v34, %v11740_v12  ;;  %vm11744_vm8 = vmmov %vm11743_vm15  ;;  %vm11746_vm6 = vcmp.lt.s32.totalorder %v8543_v19, 31  ;;  %v11766_v12 = vld [vmem:[#allocation31_spill] sm:$0xff] }
 0x6b4   : > { %4296 = vmatpush1.msk.msra.mxu1 %vm9581_vm1, %v2485_v3  ;;  %v2480_v34 = vsel %vm11746_vm6, %v11745_v6, %v8860_v63  ;;  %vm11747_vm9 = vmmov %vm11746_vm6  ;;  %v11750_v63 = vld [vmem:[#allocation22_spill] sm:$0xff]  ;;  %vm11752_vm6 = vcmp.lt.s32.totalorder %v8543_v19, 33 }
 0x6b5   : > { %3106 = vmatprep.subr.mxu1 %v2403_v24  ;;  %v2552_v30 = vpop.permute.xlu0 %2551  ;;  %v2323_v43 = vsel %vm11752_vm6, %v11751_v22, %v11750_v63 }
 0x6b6   : > { %v2559_v27 = vsel %vm11743_vm15, %v2552_v30, %v9288_v28  ;;  %v2561_v35 = vsel %vm11744_vm8, %v2548_v49, %v2552_v30  ;;  %3107 = vmatpush1.msra.mxu1 %v2405_v11  ;;  %v2482_v28 = vsel %vm11747_vm9, %v11730_v0, %v11745_v6  ;;  %vm11748_vm15 = vcmp.lt.s32.totalorder %v8543_v19, 32  ;;  %vm11753_vm9 = vmmov %vm11752_vm6  ;;  %v2307_v0 = vpop.permute.xlu1 %2306 }
 0x6b7   : > { %4318 = vmatprep.subr.msk.mxu0 %vm9575_vm5, %v2559_v27  ;;  %vm11749_vm8 = vmmov %vm11748_vm15  ;;  %v2325_v25 = vsel %vm11753_vm9, %v8985_v59, %v11751_v22  ;;  %v11756_v59 = vld [vmem:[#allocation29_spill] sm:$0xff]  ;;  %vm11757_vm6 = vcmp.lt.s32.totalorder %v8543_v19, 32 }
 0x6b8   : > { %4319 = vmatpush1.msk.msra.mxu0 %vm9616_vm7, %v2561_v35  ;;  %v2399_v51 = vsel %vm11757_vm6, %v11756_v59, %v8874_v5  ;;  %vm11758_vm9 = vmmov %vm11757_vm6  ;;  %v11761_v5 = vld [vmem:[#allocation24_spill] sm:$0xff]  ;;  %vm11762_vm6 = vcmp.lt.s32.totalorder %v8543_v19, 95 }
 0x6b9   : > { %4320 = vmatprep.subr.msk.mxu0 %vm9650_vm10, %v2480_v34  ;;  %v2383_v16 = vpop.permute.xlu0 %2382  ;;  %v2886_v52 = vsel %vm11762_vm6, %v11761_v5, %v9641_v45 }
 0x6ba   : > { %v2404_v47 = vsel %vm11748_vm15, %v9420_v23, %v2383_v16  ;;  %4321 = vmatpush1.msk.msra.mxu0 %vm9657_vm4, %v2482_v28  ;;  %v2402_v49 = vsel %vm11749_vm8, %v2383_v16, %v2387_v60  ;;  %vm11754_vm15 = vcmp.lt.s32.totalorder %v8543_v19, 31  ;;  %v11779_v16 = vmov 0.0  }
 0x6bb   : > { %3108 = vmatprep.subr.mxu1 %v2402_v49  ;;  %vm11755_vm8 = vmmov %vm11754_vm15 }
 0x6bc   : > { %3109 = vmatpush1.msra.mxu1 %v2404_v47 }
 0x6bd   : > { %4297 = vmatprep.subr.msk.mxu1 %vm9515_vm3, %v2323_v43  ;;  %v2471_v23 = vpop.permute.xlu0 %2470 }
 0x6be   : > { %v2479_v54 = vsel %vm11754_vm15, %v2471_v23, %v9351_v14  ;;  %v2481_v15 = vsel %vm11755_vm8, %v2467_v33, %v2471_v23  ;;  %4298 = vmatpush1.msk.msra.mxu1 %vm9525_vm2, %v2325_v25  ;;  %v2401_v14 = vsel %vm11758_vm9, %v11739_v56, %v11756_v59  ;;  %vm11759_vm15 = vcmp.lt.s32.totalorder %v8543_v19, 33  ;;  %v2871_v33 = vpop.permute.xlu1 %2870  ;;  %vm11763_vm9 = vmmov %vm11762_vm6 }
 0x6bf   : > { %4322 = vmatprep.subr.msk.mxu0 %vm9650_vm10, %v2479_v54  ;;  %vm11760_vm8 = vmmov %vm11759_vm15  ;;  %v2888_v18 = vsel %vm11763_vm9, %v9013_v39, %v11761_v5  ;;  %vm11767_vm6 = vcmp.lt.s32.totalorder %v8543_v19, 33 }
 0x6c0   : > { %4323 = vmatpush1.msk.msra.mxu0 %vm9657_vm4, %v2481_v15  ;;  %v2319_v39 = vsel %vm11767_vm6, %v11766_v12, %v8880_v41  ;;  %vm11768_vm9 = vmmov %vm11767_vm6 }
 0x6c1   : > { %3177 = vmatprep.subr.mxu0 %v2399_v51  ;;  %v2303_v17 = vpop.permute.xlu0 %2302  ;;  %v2321_v24 = vsel %vm11768_vm9, %v11750_v63, %v11766_v12 }
 0x6c2   : > { %v2322_v2 = vsel %vm11759_vm15, %v2303_v17, %v2307_v0  ;;  %v2324_v1 = vsel %vm11760_vm8, %v9438_v10, %v2303_v17  ;;  %3178 = vmatpush1.msra.mxu0 %v2401_v14  ;;  %vm11764_vm15 = vcmp.lt.s32.totalorder %v8543_v19, 32  ;;  %v2881_v30 = vpop.permute.xlu1 %2880 }
 0x6c3   : > { %4299 = vmatprep.subr.msk.mxu1 %vm9515_vm3, %v2322_v2  ;;  %vm11765_vm8 = vmmov %vm11764_vm15 }
 0x6c4   : > { %4300 = vmatpush1.msk.msra.mxu1 %vm9525_vm2, %v2324_v1  ;;  %vm11793_vm2 = vnez %v11648_v13 }
 0x6c5   : > { %4301 = vmatprep.subr.msk.mxu1 %vm9571_vm0, %v2886_v52  ;;  %v2391_v10 = vpop.permute.xlu0 %2390 }
 0x6c6   : > { %v2400_v3 = vsel %vm11764_vm15, %v2387_v60, %v2391_v10  ;;  %4302 = vmatpush2.msk.msra.mxu1 %vm9581_vm1, %v2888_v18  ;;  %v2398_v56 = vsel %vm11765_vm8, %v2391_v10, %v9387_v38  ;;  %vm11769_vm15 = vmmov %vm11767_vm6  ;;  %v2935_v49 = vpop.permute.xlu1 %2934 }
 0x6c7   : > { %3179 = vmatprep.subr.mxu0 %v2398_v56  ;;  %vm11770_vm8 = vmmov %vm11767_vm6  ;;  %vm11771_vm6 = vcmp.lt.s32.totalorder %v9520_v62, 992 }
 0x6c8   : > { %3180 = vmatpush1.msra.mxu0 %v2400_v3  ;;  %vm9853_vm9 = vmand %vm11771_vm6, %vm9650_vm10  ;;  %vm11788_vm10 = vnez %v11646_v57 }
 0x6c9   : > { %4324 = vmatprep.subr.msk.mxu0 %vm9575_vm5, %v2319_v39  ;;  %v2311_v11 = vpop.permute.xlu0 %2310 }
 0x6ca   : > { %v2318_v38 = vsel %vm11769_vm15, %v2311_v11, %v9442_v21  ;;  %v2320_v27 = vsel %vm11770_vm8, %v2307_v0, %v2311_v11  ;;  %4325 = vmatpush1.msk.msra.mxu0 %vm9616_vm7, %v2321_v24  ;;  %vm11774_vm15 = vcmp.lt.s32.totalorder %v8543_v19, 95 }
 0x6cb   : > { %4326 = vmatprep.subr.msk.mxu0 %vm9575_vm5, %v2318_v38  ;;  %v2898_v21 = vsel %vm11774_vm15, %v2881_v30, %v8886_v50  ;;  %vm11775_vm8 = vmmov %vm11774_vm15  ;;  %vm11787_vm5 = vcmp.lt.s32.totalorder %v8543_v19, 97 }
 0x6cc   : > { %4327 = vmatpush1.msk.msra.mxu0 %vm9616_vm7, %v2320_v27  ;;  %v2884_v35 = vsel %vm11775_vm8, %v9641_v45, %v2881_v30  ;;  %vm11776_vm6 = vmmov %vm11775_vm8  ;;  %vm11792_vm7 = vnez %v11652_v55 }
 0x6cd   : > { %4328 = vmatprep.subr.msk.mxu0 %vm9853_vm9, %v2898_v21  ;;  %v2875_v60 = vpop.permute.xlu0 %2874  ;;  %vm11777_vm15 = vmmov %vm11776_vm6 }
 0x6ce   : > { %v2885_v6 = vsel %vm11776_vm6, %v2871_v33, %v2875_v60  ;;  %4329 = vmatpush2.msk.msra.mxu0 %vm9657_vm4, %v2884_v35  ;;  %v2887_v50 = vsel %vm11777_vm15, %v9539_v48, %v2871_v33  ;;  %vm11778_vm8 = vmmov %vm11776_vm6 }
 0x6cf   : > { %4303 = vmatprep.subr.msk.mxu1 %vm9571_vm0, %v2885_v6  ;;  %vm11780_vm15 = vmmov %vm11776_vm6 }
 0x6d0   : > { %4304 = vmatpush2.msk.msra.mxu1 %vm9581_vm1, %v2887_v50 }
 0x6d1   : > { %3147 = vmatmul.mubr.f32.vlgmr.msra.gmra.mxu1 %v9495_v8  ;;  %v2879_v45 = vpop.permute.xlu0 %2878 }
 0x6d2   : > { %v2883_v34 = vsel %vm11778_vm8, %v2875_v60, %v2879_v45  ;;  %v2897_v28 = vsel %vm11776_vm6, %v2879_v45, %v9490_v61  ;;  %3609 = vmatprep.mubr.f32.mxu1 %v11779_v16  ;;  %vm11781_vm8 = vmmov %vm11776_vm6 }
 0x6d3   : > { %4330 = vmatprep.subr.msk.mxu0 %vm9853_vm9, %v2897_v28 }
 0x6d4   : > { %4331 = vmatpush2.msk.msra.mxu0 %vm9657_vm4, %v2883_v34 }
 0x6d5   : > { %3218 = vmatmul.mubr.f32.vlgmr.msra.gmra.mxu0 %v9495_v8 }
 0x6d6   : > { %3680 = vmatprep.mubr.f32.mxu0 %v11779_v16 }
 0x750   : > { %v3006_v48 = vpop.f32.mrf.mxu1 }
 0x751   : > { %v3007_v43 = vadd.f32 %v3006_v48, %v2935_v49 }
 0x752   : > { %v3008_v47 = vpop.f32.mrf.mxu1 }
 0x753   : > { %v3009_v22 = vadd.f32 %v3008_v47, %v2935_v49  ;;  %v3224_v23 = vmax.f32 %v3007_v43, 0.0 }
 0x755   : > { %v3225_v0 = vmax.f32 %v3009_v22, 0.0 }
 0x757   : > { %v3233_v59 = vadd.f32 %v3225_v0, %v3224_v23 }
 0x759   : > { %v3077_v63 = vpop.f32.mrf.mxu0 }
 0x75a   : > { %v3078_v25 = vadd.f32 %v3077_v63, %v2935_v49 }
 0x75b   : > { %v3079_v61 = vpop.f32.mrf.mxu0 }
 0x75c   : > { %v3226_v54 = vmax.f32 %v3078_v25, 0.0  ;;  %v3080_v15 = vadd.f32 %v3079_v61, %v2935_v49 }
 0x75e   : > { %v3234_v51 = vadd.f32 %v3233_v59, %v3226_v54  ;;  %v3227_v17 = vmax.f32 %v3080_v15, 0.0 }
 0x760   : > { %v3235_v1 = vadd.f32 %v3234_v51, %v3227_v17 }
 0x791   : > { %v3148_v14 = vpop.f32.mrf.mxu1 }
 0x792   : > { %v3149_v2 = vadd.f32 %v3148_v14, %v2935_v49 }
 0x793   : > { %v3150_v8 = vpop.f32.mrf.mxu1 }
 0x794   : > { %v3228_v33 = vmax.f32 %v3149_v2, 0.0  ;;  %v3151_v5 = vadd.f32 %v3150_v8, %v2935_v49 }
 0x795   : > { %v3219_v52 = vpop.f32.mrf.mxu0 }
 0x796   : > { %v3236_v18 = vadd.f32 %v3235_v1, %v3228_v33  ;;  %v3229_v10 = vmax.f32 %v3151_v5, 0.0  ;;  %v3220_v3 = vadd.f32 %v3219_v52, %v2935_v49 }
 0x797   : > { %v3221_v56 = vpop.f32.mrf.mxu0 }
 0x798   : > { %v3237_v12 = vadd.f32 %v3236_v18, %v3229_v10  ;;  %v3230_v39 = vmax.f32 %v3220_v3, 0.0  ;;  %v3222_v24 = vadd.f32 %v3221_v56, %v2935_v49 }
 0x79a   : > { %v3238_v30 = vadd.f32 %v3237_v12, %v3230_v39  ;;  %v3231_v11 = vmax.f32 %v3222_v24, 0.0 }
 0x79c   : > { %v3239_v38 = vadd.f32 %v3238_v30, %v3231_v11 }
 0x79e   : > { %3240 = vadd.xlane.f32.xlu0 %v3239_v38 }
 0x827   : > { %v3241_v27 = vpop.xlane.xlu0 %3240 }
 0x828   : > { %v3242_v21 = vmul.f32 0.0009765625, %v3241_v27 }
 0x82a   : > { %v3243_v35 = vsub.f32 %v3224_v23, %v3242_v21  ;;  %v3244_v60 = vsub.f32 %v3225_v0, %v3242_v21  ;;  %v3245_v6 = vsub.f32 %v3226_v54, %v3242_v21  ;;  %v3246_v50 = vsub.f32 %v3227_v17, %v3242_v21 }
 0x82b   : > { %v3247_v28 = vsub.f32 %v3228_v33, %v3242_v21  ;;  %v9893_v63 = vsub.f32 %v3229_v10, %v3242_v21  ;;  %v9895_v49 = vsub.f32 %v3230_v39, %v3242_v21  ;;  %v3250_v15 = vsub.f32 %v3231_v11, %v3242_v21 }
 0x82c   : > { %v3251_v45 = vmul.f32 %v3243_v35, %v3243_v35  ;;  %v3252_v34 = vmul.f32 %v3244_v60, %v3244_v60  ;;  %v3253_v48 = vmul.f32 %v3245_v6, %v3245_v6  ;;  %v3254_v22 = vmul.f32 %v3246_v50, %v3246_v50 }
 0x82d   : > { %v3255_v25 = vmul.f32 %v3247_v28, %v3247_v28  ;;  %v3256_v23 = vmul.f32 %v9893_v63, %v9893_v63  ;;  %v3257_v54 = vmul.f32 %v9895_v49, %v9895_v49  ;;  %v3258_v51 = vmul.f32 %v3250_v15, %v3250_v15 }
 0x82e   : > { %v3259_v47 = vadd.f32 %v3252_v34, %v3251_v45  ;;  %v3830_v45 = vld [vmem:[%s10423_s10] sm:$0xff] }
 0x830   : > { %v3260_v43 = vadd.f32 %v3259_v47, %v3253_v48  ;;  %v3535_v47 = vld [vmem:[%s10421_s8] sm:$0xff] }
 0x832   : > { %v3261_v61 = vadd.f32 %v3260_v43, %v3254_v22 }
 0x834   : > { %v3262_v0 = vadd.f32 %v3261_v61, %v3255_v25 }
 0x836   : > { %v3263_v59 = vadd.f32 %v3262_v0, %v3256_v23 }
 0x838   : > { %v3264_v17 = vadd.f32 %v3263_v59, %v3257_v54 }
 0x83a   : > { %v3265_v14 = vadd.f32 %v3264_v17, %v3258_v51 }
 0x83c   : > { %3266 = vadd.xlane.f32.xlu1 %v3265_v14 }
 0x8c5   : > { %v3267_v2 = vpop.xlane.xlu1 %3266 }
 0x8c6   : > { %v3268_v8 = vmul.f32 0.0009765625, %v3267_v2 }
 0x8c8   : > { %v3269_v1 = vadd.f32 1e-05, %v3268_v8 }
 0x8ca   : > { %4420 = vrsqrt.f32 %v3269_v1 }
 0x8d7   : > { %v4421_v33 = vpop.eup %4420 }
 0x8d8   : > { %v9901_v5 = vmul.f32 %v4421_v33, %v3245_v6  ;;  %v9903_v52 = vmul.f32 %v4421_v33, %v3244_v60  ;;  %v9909_v18 = vmul.f32 %v4421_v33, %v3247_v28  ;;  %v9911_v10 = vmul.f32 %v4421_v33, %v3246_v50 }
 0x8d9   : > { %v9917_v3 = vmul.f32 %v4421_v33, %v3243_v35  ;;  %v9959_v56 = vmul.f32 %v4421_v33, %v3250_v15  ;;  %v9994_v12 = vmul.f32 %v4421_v33, %v9895_v49  ;;  %v9997_v39 = vmul.f32 %v4421_v33, %v9893_v63 }
 0x8da   : > { %3507 = vrot.lane.b32.xlu1 %v9901_v5, %s4724_s22  ;;  %3505 = vrot.lane.b32.xlu0 %v9903_v52, %s4724_s22 }
 0x8de   : > { %3511 = vrot.lane.b32.xlu1 %v9909_v18, %s4724_s22  ;;  %3509 = vrot.lane.b32.xlu0 %v9911_v10, %s4724_s22 }
 0x8e2   : > { %3473 = vrot.lane.b32.xlu1 %v9903_v52, %s4720_s16  ;;  %3503 = vrot.lane.b32.xlu0 %v9917_v3, %s4724_s22 }
 0x8e6   : > { %3477 = vrot.lane.b32.xlu1 %v9911_v10, %s4720_s16  ;;  %3475 = vrot.lane.b32.xlu0 %v9901_v5, %s4720_s16 }
 0x8ea   : > { %3471 = vrot.lane.b32.xlu1 %v9917_v3, %s4720_s16  ;;  %3479 = vrot.lane.b32.xlu0 %v9909_v18, %s4720_s16 }
 0x8ee   : > { %3443 = vrot.lane.b32.xlu1 %v9901_v5, %s4721_s19  ;;  %3441 = vrot.lane.b32.xlu0 %v9903_v52, %s4721_s19 }
 0x8f2   : > { %3447 = vrot.lane.b32.xlu1 %v9909_v18, %s4721_s19  ;;  %3445 = vrot.lane.b32.xlu0 %v9911_v10, %s4721_s19 }
 0x8f6   : > { %3409 = vrot.lane.b32.xlu1 %v9903_v52, %s4722_s20  ;;  %3439 = vrot.lane.b32.xlu0 %v9917_v3, %s4721_s19 }
 0x8fa   : > { %3413 = vrot.lane.b32.xlu1 %v9911_v10, %s4722_s20  ;;  %3411 = vrot.lane.b32.xlu0 %v9901_v5, %s4722_s20 }
 0x8fe   : > { %3407 = vrot.lane.b32.xlu1 %v9917_v3, %s4722_s20  ;;  %3415 = vrot.lane.b32.xlu0 %v9909_v18, %s4722_s20 }
 0x902   : > { %3377 = vrot.lane.b32.xlu1 %v9903_v52, %s4717_s26  ;;  %3375 = vrot.lane.b32.xlu0 %v9917_v3, %s4717_s26 }
 0x906   : > { %3381 = vrot.lane.b32.xlu1 %v9911_v10, %s4717_s26  ;;  %3379 = vrot.lane.b32.xlu0 %v9901_v5, %s4717_s26 }
 0x90a   : > { %3343 = vrot.lane.b32.xlu1 %v9917_v3, %s4723_s21  ;;  %3389 = vrot.lane.b32.xlu0 %v9959_v56, %s4717_s26 }
 0x90e   : > { %3347 = vrot.lane.b32.xlu1 %v9901_v5, %s4723_s21  ;;  %3345 = vrot.lane.b32.xlu0 %v9903_v52, %s4723_s21 }
 0x912   : > { %3357 = vrot.lane.b32.xlu1 %v9959_v56, %s4723_s21  ;;  %3349 = vrot.lane.b32.xlu0 %v9911_v10, %s4723_s21 }
 0x916   : > { %3313 = vrot.lane.b32.xlu1 %v9903_v52, %s4718_s24  ;;  %3311 = vrot.lane.b32.xlu0 %v9917_v3, %s4718_s24 }
 0x91a   : > { %3317 = vrot.lane.b32.xlu1 %v9911_v10, %s4718_s24  ;;  %3315 = vrot.lane.b32.xlu0 %v9901_v5, %s4718_s24 }
 0x91e   : > { %3279 = vrot.lane.b32.xlu1 %v9917_v3, %s4719_s30  ;;  %3325 = vrot.lane.b32.xlu0 %v9959_v56, %s4718_s24 }
 0x922   : > { %3283 = vrot.lane.b32.xlu1 %v9901_v5, %s4719_s30  ;;  %3281 = vrot.lane.b32.xlu0 %v9903_v52, %s4719_s30 }
 0x926   : > { %3293 = vrot.lane.b32.xlu1 %v9959_v56, %s4719_s30  ;;  %3285 = vrot.lane.b32.xlu0 %v9911_v10, %s4719_s30 }
 0x92a   : > { %3515 = vrot.lane.b32.xlu1 %v9994_v12, %s4724_s22  ;;  %3513 = vrot.lane.b32.xlu0 %v9997_v39, %s4724_s22 }
 0x92e   : > { %3481 = vrot.lane.b32.xlu1 %v9997_v39, %s4720_s16  ;;  %3517 = vrot.lane.b32.xlu0 %v9959_v56, %s4724_s22 }
 0x932   : > { %3485 = vrot.lane.b32.xlu1 %v9959_v56, %s4720_s16  ;;  %3483 = vrot.lane.b32.xlu0 %v9994_v12, %s4720_s16 }
 0x936   : > { %3451 = vrot.lane.b32.xlu1 %v9994_v12, %s4721_s19  ;;  %3449 = vrot.lane.b32.xlu0 %v9997_v39, %s4721_s19 }
 0x93a   : > { %3417 = vrot.lane.b32.xlu1 %v9997_v39, %s4722_s20  ;;  %3453 = vrot.lane.b32.xlu0 %v9959_v56, %s4721_s19 }
 0x93e   : > { %3421 = vrot.lane.b32.xlu1 %v9959_v56, %s4722_s20  ;;  %3419 = vrot.lane.b32.xlu0 %v9994_v12, %s4722_s20 }
 0x942   : > { %3385 = vrot.lane.b32.xlu1 %v9997_v39, %s4717_s26  ;;  %3383 = vrot.lane.b32.xlu0 %v9909_v18, %s4717_s26 }
 0x946   : > { %3351 = vrot.lane.b32.xlu1 %v9909_v18, %s4723_s21  ;;  %3387 = vrot.lane.b32.xlu0 %v9994_v12, %s4717_s26 }
 0x94a   : > { %3355 = vrot.lane.b32.xlu1 %v9994_v12, %s4723_s21  ;;  %3353 = vrot.lane.b32.xlu0 %v9997_v39, %s4723_s21 }
 0x94c   : > { %v3508_v24 = vpop.permute.xlu1 %3507  ;;  %v3506_v30 = vpop.permute.xlu0 %3505 }
 0x94d   : > { %v3524_v11 = vsel %vm11780_vm15, %v3506_v30, %v3508_v24  ;;  %vm11782_vm15 = vmmov %vm11776_vm6 }
 0x94e   : > { %4333 = vmatprep.subr.msk.mxu1 %vm9167_vm11, %v3524_v11  ;;  %3321 = vrot.lane.b32.xlu1 %v9997_v39, %s4718_s24 }
 0x94f   : > { %3319 = vrot.lane.b32.xlu0 %v9909_v18, %s4718_s24 }
 0x950   : > { %v10043_v38 = vpop.permute.xlu1 %3511  ;;  %v3510_v27 = vpop.permute.xlu0 %3509 }
 0x951   : > { %v3522_v21 = vsel %vm11781_vm8, %v3510_v27, %v10043_v38  ;;  %v3523_v35 = vsel %vm11776_vm6, %v3508_v24, %v3510_v27  ;;  %vm11783_vm8 = vcmp.lt.s32.totalorder %v8543_v19, 96 }
 0x952   : > { %4347 = vmatprep.subr.msk.mxu0 %vm9209_vm13, %v3522_v21  ;;  %3287 = vrot.lane.b32.xlu1 %v9909_v18, %s4719_s30  ;;  %vm11784_vm6 = vmmov %vm11783_vm8 }
 0x953   : > { %3323 = vrot.lane.b32.xlu0 %v9994_v12, %s4718_s24  ;;  %4348 = vmatpush1.msk.msra.mxu0 %vm9217_vm14, %v3523_v35 }
 0x954   : > { %v3474_v60 = vpop.permute.xlu1 %3473  ;;  %v10058_v6 = vpop.permute.xlu0 %3503 }
 0x955   : > { %v3525_v50 = vsel %vm11782_vm15, %v10058_v6, %v3506_v30  ;;  %vm11785_vm15 = vmmov %vm11784_vm6 }
 0x956   : > { %3291 = vrot.lane.b32.xlu1 %v9994_v12, %s4719_s30  ;;  %4334 = vmatpush1.msk.msra.mxu1 %vm9176_vm12, %v3525_v50 }
 0x957   : > { %3289 = vrot.lane.b32.xlu0 %v9997_v39, %s4719_s30 }
 0x958   : > { %v3478_v34 = vpop.permute.xlu1 %3477  ;;  %v3476_v28 = vpop.permute.xlu0 %3475 }
 0x959   : > { %v3492_v48 = vsel %vm11783_vm8, %v3474_v60, %v3476_v28  ;;  %vm11786_vm8 = vmmov %vm11784_vm6 }
 0x95a   : > { %3833 = vperm.xlu1 %4414, %v3830_v45   ;;  %3561 = vmatprep.subr.mxu1 %v3492_v48  ;;  %v3491_v25 = vsel %vm11786_vm8, %v3476_v28, %v3478_v34  ;;  %vm11791_vm8 = vnez %v11650_v4 }
 0x95b   : > { %3538 = vperm.xlu0 %4415, %v3535_v47  }
 0x95c   : > { %v10077_v63 = vpop.permute.xlu1 %3471  ;;  %v10079_v22 = vpop.permute.xlu0 %3479 }
 0x95d   : > { %v3493_v43 = vsel %vm11784_vm6, %v10077_v63, %v3474_v60  ;;  %v3490_v49 = vsel %vm11785_vm15, %v3478_v34, %v10079_v22  ;;  %vm11789_vm6 = vmmov %vm11787_vm5 }
 0x95e   : > { %3562 = vmatpush1.msra.mxu1 %v3493_v43  ;;  %3632 = vmatprep.subr.mxu0 %v3490_v49  ;;  %vm11790_vm15 = vmmov %vm11787_vm5 }
 0x95f   : > { %3633 = vmatpush1.msra.mxu0 %v3491_v25 }
 0x960   : > { %v3444_v61 = vpop.permute.xlu1 %3443  ;;  %v3442_v15 = vpop.permute.xlu0 %3441 }
 0x961   : > { %v3460_v23 = vsel %vm11787_vm5, %v3442_v15, %v3444_v61 }
 0x962   : > { %4335 = vmatprep.subr.msk.mxu1 %vm11788_vm10, %v3460_v23 }
 0x964   : > { %v10093_v0 = vpop.permute.xlu1 %3447  ;;  %v3446_v54 = vpop.permute.xlu0 %3445 }
 0x965   : > { %v3458_v59 = vsel %vm11789_vm6, %v3446_v54, %v10093_v0  ;;  %v3459_v51 = vsel %vm11790_vm15, %v3444_v61, %v3446_v54  ;;  %vm11794_vm6 = vcmp.lt.s32.totalorder %v8543_v19, 127 }
 0x966   : > { %4349 = vmatprep.subr.msk.mxu0 %vm11791_vm8, %v3458_v59  ;;  %vm11795_vm15 = vmmov %vm11794_vm6 }
 0x967   : > { %4350 = vmatpush1.msk.msra.mxu0 %vm11792_vm7, %v3459_v51 }
 0x968   : > { %v3410_v17 = vpop.permute.xlu1 %3409  ;;  %v10104_v14 = vpop.permute.xlu0 %3439 }
 0x969   : > { %v3461_v2 = vsel %vm11787_vm5, %v10104_v14, %v3442_v15  ;;  %vm11796_vm5 = vmmov %vm11794_vm6 }
 0x96a   : > { %4336 = vmatpush1.msk.msra.mxu1 %vm11793_vm2, %v3461_v2  ;;  %vm11797_vm3 = vmmov %vm11796_vm5 }
 0x96c   : > { %v3414_v8 = vpop.permute.xlu1 %3413  ;;  %v3412_v1 = vpop.permute.xlu0 %3411 }
 0x96d   : > { %v3428_v33 = vsel %vm11794_vm6, %v3410_v17, %v3412_v1  ;;  %v3427_v21 = vsel %vm11797_vm3, %v3412_v1, %v3414_v8  ;;  %vm11798_vm6 = vcmp.lt.s32.totalorder %v8543_v19, 1 }
 0x96e   : > { %4337 = vmatprep.subr.msk.mxu1 %vm9167_vm11, %v3428_v33  ;;  %vm11799_vm3 = vmmov %vm11798_vm6 }
 0x970   : > { %v10115_v24 = vpop.permute.xlu1 %3407  ;;  %v10117_v30 = vpop.permute.xlu0 %3415 }
 0x971   : > { %v3429_v11 = vsel %vm11795_vm15, %v10115_v24, %v3410_v17  ;;  %v3426_v27 = vsel %vm11796_vm5, %v3414_v8, %v10117_v30  ;;  %vm11801_vm15 = vmmov %vm11799_vm3  ;;  %vm11802_vm5 = vcmp.lt.s32.totalorder %v8543_v19, 31 }
 0x972   : > { %4338 = vmatpush1.msk.msra.mxu1 %vm9176_vm12, %v3429_v11  ;;  %4351 = vmatprep.subr.msk.mxu0 %vm9209_vm13, %v3426_v27  ;;  %vm11800_vm12 = vmmov %vm11799_vm3  ;;  %v10208_v27 = vld [vmem:[%s10420_s7] sm:$0xff] }
 0x973   : > { %3567 = vmatprep.subr.mxu1 %v9903_v52  ;;  %4352 = vmatpush1.msk.msra.mxu0 %vm9217_vm14, %v3427_v21 }
 0x974   : > { %v3378_v35 = vpop.permute.xlu1 %3377  ;;  %3568 = vmatpush1.msra.mxu1 %v9917_v3  ;;  %3638 = vmatprep.subr.mxu0 %v9911_v10  ;;  %v3376_v60 = vpop.permute.xlu0 %3375 }
 0x975   : > { %v3397_v50 = vsel %vm11798_vm6, %v3376_v60, %v3378_v35  ;;  %3639 = vmatpush1.msra.mxu0 %v9901_v5  ;;  %vm11803_vm6 = vmmov %vm11802_vm5 }
 0x976   : > { %4339 = vmatprep.subr.msk.mxu1 %vm11788_vm10, %v3397_v50 }
 0x978   : > { %v10141_v42 = vpop.permute.xlu1 %3381  ;;  %v3380_v52 = vpop.permute.xlu0 %3379 }
 0x979   : > { %v3395_v45 = vsel %vm11799_vm3, %v3380_v52, %v10141_v42  ;;  %v3396_v3 = vsel %vm11800_vm12, %v3378_v35, %v3380_v52  ;;  %vm11804_vm3 = vmmov %vm11802_vm5  ;;  %vm11806_vm12 = vnez %v11662_v26 }
 0x97a   : > { %4353 = vmatprep.subr.msk.mxu0 %vm11791_vm8, %v3395_v45 }
 0x97b   : > { %4354 = vmatpush1.msk.msra.mxu0 %vm11792_vm7, %v3396_v3 }
 0x97c   : > { %v3344_v5 = vpop.permute.xlu1 %3343  ;;  %v10152_v10 = vpop.permute.xlu0 %3389 }
 0x97d   : > { %v3398_v34 = vsel %vm11801_vm15, %v10152_v10, %v3376_v60 }
 0x97e   : > { %4340 = vmatpush1.msk.msra.mxu1 %vm11793_vm2, %v3398_v34  ;;  %vm11805_vm2 = vmmov %vm11804_vm3 }
 0x980   : > { %v3348_v28 = vpop.permute.xlu1 %3347  ;;  %v3346_v48 = vpop.permute.xlu0 %3345 }
 0x981   : > { %v3365_v47 = vsel %vm11802_vm5, %v3344_v5, %v3346_v48  ;;  %v3364_v61 = vsel %vm11805_vm2, %v3346_v48, %v3348_v28 }
 0x982   : > { %4341 = vmatprep.subr.msk.mxu1 %vm9167_vm11, %v3365_v47  ;;  %vm11807_vm11 = vcmp.lt.s32.totalorder %v8543_v19, 32 }
 0x983   : > { %vm11808_vm15 = vmmov %vm11807_vm11 }
 0x984   : > { %v10163_v43 = vpop.permute.xlu1 %3357  ;;  %v10165_v49 = vpop.permute.xlu0 %3349  ;;  %vm11809_vm5 = vmmov %vm11807_vm11 }
 0x985   : > { %v3366_v25 = vsel %vm11803_vm6, %v10163_v43, %v3344_v5  ;;  %v3363_v13 = vsel %vm11804_vm3, %v3348_v28, %v10165_v49  ;;  %vm11812_vm6 = vcmp.lt.s32.totalorder %v8543_v19, 33  ;;  %vm3541_vm3 = vcmask 588800  }
 0x986   : > { %4342 = vmatpush1.msk.msra.mxu1 %vm11806_vm12, %v3366_v25  ;;  %4355 = vmatprep.subr.msk.mxu0 %vm9209_vm13, %v3363_v13  ;;  %vm11810_vm13 = vmmov %vm11809_vm5 }
 0x987   : > { %4356 = vmatpush1.msk.msra.mxu0 %vm9217_vm14, %v3364_v61  ;;  %vm11811_vm14 = vcmp.ge.s32.totalorder %v8543_v19, 32  ;;  %vm11813_vm2 = vmmov %vm11812_vm6 }
 0x988   : > { %v3314_v36 = vpop.permute.xlu1 %3313  ;;  %v3312_v15 = vpop.permute.xlu0 %3311  ;;  %vm11814_vm12 = vmmov %vm11813_vm2 }
 0x989   : > { %v3333_v23 = vsel %vm11807_vm11, %v3312_v15, %v3314_v36  ;;  %vm11816_vm11 = vnez %v11664_v58 }
 0x98a   : > { %3573 = vmatprep.subr.mxu1 %v3333_v23 }
 0x98c   : > { %v10183_v54 = vpop.permute.xlu1 %3317  ;;  %v3316_v59 = vpop.permute.xlu0 %3315 }
 0x98d   : > { %v3332_v51 = vsel %vm11808_vm15, %v3314_v36, %v3316_v59  ;;  %v3331_v40 = vsel %vm11809_vm5, %v3316_v59, %v10183_v54  ;;  %vm11817_vm15 = vcmp.lt.s32.totalorder %v8543_v19, 95 }
 0x98e   : > { %3644 = vmatprep.subr.mxu0 %v3331_v40  ;;  %vm11818_vm5 = vmmov %vm11817_vm15 }
 0x98f   : > { %3645 = vmatpush1.msra.mxu0 %v3332_v51 }
 0x990   : > { %v3280_v7 = vpop.permute.xlu1 %3279  ;;  %v10190_v26 = vpop.permute.xlu0 %3325 }
 0x991   : > { %v3334_v17 = vsel %vm11810_vm13, %v10190_v26, %v3312_v15  ;;  %vm11821_vm13 = vcmp.lt.s32.totalorder %v8543_v19, 96 }
 0x992   : > { %4343 = vmatpush1.msk.msra.mxu1 %vm11811_vm14, %v3334_v17  ;;  %vm11822_vm14 = vmmov %vm11821_vm13 }
 0x994   : > { %v3284_v2 = vpop.permute.xlu1 %3283  ;;  %v3282_v8 = vpop.permute.xlu0 %3281 }
 0x995   : > { %v3301_v1 = vsel %vm11812_vm6, %v3280_v7, %v3282_v8  ;;  %vm11823_vm6 = vmmov %vm11821_vm13 }
 0x996   : > { %4344 = vmatprep.subr.msk.mxu1 %vm11788_vm10, %v3301_v1  ;;  %vm11815_vm10 = vmmov %vm11813_vm2 }
 0x997   : > { %v3300_v57 = vsel %vm11815_vm10, %v3282_v8, %v3284_v2 }
 0x998   : > { %v10201_v33 = vpop.permute.xlu1 %3293  ;;  %v10203_v11 = vpop.permute.xlu0 %3285 }
 0x999   : > { %v3302_v21 = vsel %vm11813_vm2, %v10201_v33, %v3280_v7  ;;  %v3299_v35 = vsel %vm11814_vm12, %v3284_v2, %v10203_v11  ;;  %vm11824_vm2 = vmmov %vm11823_vm6  ;;  %vm11826_vm12 = vcmp.lt.s32.totalorder %v8543_v19, 97 }
 0x99a   : > { %4345 = vmatpush1.msk.msra.mxu1 %vm11816_vm11, %v3302_v21  ;;  %4357 = vmatprep.subr.msk.mxu0 %vm11791_vm8, %v3299_v35  ;;  %vm11820_vm8 = vmmov %vm11818_vm5  ;;  %vm11828_vm11 = vnez %v11668_v20  ;;  %v4701_v20 = vld [vmem:[%s8453_s15] sm:$0xff] }
 0x99b   : > { %4358 = vmatpush1.msk.msra.mxu0 %vm11792_vm7, %v3300_v57  ;;  %4346 = vmatmul.mubr.msk.f32.vlgmr.msra.gmra.mxu1 %vm3541_vm3, %v10208_v27  ;;  %vm11819_vm7 = vmmov %vm11818_vm5 }
 0x99c   : > { %v3516_v60 = vpop.permute.xlu1 %3515  ;;  %v3514_v50 = vpop.permute.xlu0 %3513  ;;  %4359 = vmatmul.mubr.msk.f32.vlgmr.msra.gmra.mxu0 %vm3541_vm3, %v10208_v27  ;;  %3751 = vmatprep.mubr.f32.mxu1 %v11779_v16  ;;  %vm11827_vm10 = vmmov %vm11826_vm12 }
 0x99d   : > { %v3520_v58 = vsel %vm11817_vm15, %v3514_v50, %v3516_v60  ;;  %v3521_v4 = vsel %vm11818_vm5, %v10043_v38, %v3514_v50  ;;  %3822 = vmatprep.mubr.f32.mxu0 %v11779_v16  ;;  %vm11829_vm15 = vnez %v11670_v32  ;;  %vm11830_vm5 = vmmov %vm11827_vm10  ;;  %v3829_v32 = vld [vmem:[%s10422_s9] sm:$0xff]  ;;  %v11859_v50 = vld [vmem:[#allocation185_spill] sm:$0xff] }
 0x99e   : > { %4360 = vmatprep.subr.msk.mxu1 %vm9571_vm0, %v3520_v58  ;;  %v4703_v58 = vld [vmem:[%s8453_s15 + $0x28] sm:$0xff] }
 0x99f   : > { %4361 = vmatpush1.msk.msra.mxu1 %vm9581_vm1, %v3521_v4  ;;  %v4704_v4 = vld [vmem:[%s8453_s15 + $0x38] sm:$0xff] }
 0x9a0   : > { %v3482_v55 = vpop.permute.xlu1 %3481  ;;  %v3518_v52 = vpop.permute.xlu0 %3517 }
 0x9a1   : > { %v3519_v45 = vsel %vm11819_vm7, %v3516_v60, %v3518_v52  ;;  %v3526_v3 = vsel %vm11820_vm8, %v3518_v52, %v10058_v6  ;;  %v3489_v41 = vsel %vm11824_vm2, %v10079_v22, %v3482_v55  ;;  %vm11831_vm7 = vmmov %vm11830_vm5  ;;  %vm11832_vm8 = vnez %v11698_v9  ;;  %v4706_v52 = vld [vmem:[%s8453_s15 + $0x30] sm:$0xff] }
 0x9a2   : > { %4373 = vmatprep.subr.msk.mxu0 %vm9853_vm9, %v3526_v3  ;;  %vm11825_vm9 = vcmp.lt.s32.totalorder %v9520_v62, 992  ;;  %v11863_v3 = vld [vmem:[#allocation191_spill] sm:$0xff] }
 0x9a3   : > { %4374 = vmatpush1.msk.msra.mxu0 %vm9657_vm4, %v3519_v45  ;;  %v11862_v45 = vld [vmem:[#allocation189_spill] sm:$0xff] }
 0x9a4   : > { %v3486_v38 = vpop.permute.xlu1 %3485  ;;  %v3484_v5 = vpop.permute.xlu0 %3483 }
 0x9a5   : > { %v3494_v34 = vsel %vm11821_vm13, %v3486_v38, %v10077_v63  ;;  %v3487_v28 = vsel %vm11822_vm14, %v3484_v5, %v3486_v38  ;;  %v3488_v48 = vsel %vm11823_vm6, %v3482_v55, %v3484_v5  ;;  %vm11833_vm13 = vnez %v11701_v37  ;;  %v4702_v37 = vld [vmem:[%s8453_s15 + $0x10] sm:$0xff]  ;;  %v4705_v55 = vld [vmem:[%s8453_s15 + $0x20] sm:$0xff]  ;;  %v11864_v38 = vld [vmem:[#allocation187_spill] sm:$0xff] }
 0x9a6   : > { %3703 = vmatprep.subr.mxu1 %v3488_v48  ;;  %4375 = vmatprep.subr.msk.mxu0 %vm11825_vm9, %v3494_v34  ;;  %vm11834_vm14 = vcmp.lt.s32.totalorder %v8543_v19, 127  ;;  %v11865_v5 = vld [vmem:[#allocation190_spill] sm:$0xff] }
 0x9a7   : > { %3704 = vmatpush1.msra.mxu1 %v3489_v41  ;;  %3775 = vmatpush1.msra.mxu0 %v3487_v28  ;;  %vm11835_vm6 = vmmov %vm11834_vm14 }
 0x9a8   : > { %v3452_v6 = vpop.permute.xlu1 %3451  ;;  %v3450_v47 = vpop.permute.xlu0 %3449  ;;  %vm11836_vm2 = vmmov %vm11835_vm6 }
 0x9a9   : > { %v3456_v63 = vsel %vm11826_vm12, %v3450_v47, %v3452_v6  ;;  %v3457_v25 = vsel %vm11827_vm10, %v10093_v0, %v3450_v47  ;;  %vm11837_vm9 = vmmov %vm11836_vm2  ;;  %vm11838_vm12 = vnez %v11713_v53  ;;  %vm11839_vm10 = vcmp.lt.s32.totalorder %v8543_v19, 1 }
 0x9aa   : > { %4362 = vmatprep.subr.msk.mxu1 %vm11828_vm11, %v3456_v63 }
 0x9ab   : > { %4363 = vmatpush1.msk.msra.mxu1 %vm11829_vm15, %v3457_v25 }
 0x9ac   : > { %v3418_v22 = vpop.permute.xlu1 %3417  ;;  %v3454_v62 = vpop.permute.xlu0 %3453 }
 0x9ad   : > { %v3455_v13 = vsel %vm11830_vm5, %v3452_v6, %v3454_v62  ;;  %v3462_v61 = vsel %vm11831_vm7, %v3454_v62, %v10104_v14  ;;  %v3425_v9 = vsel %vm11837_vm9, %v10117_v30, %v3418_v22  ;;  %vm11840_vm5 = vmmov %vm11839_vm10 }
 0x9ae   : > { %4376 = vmatprep.subr.msk.mxu0 %vm11832_vm8, %v3462_v61  ;;  %vm11841_vm7 = vmmov %vm11840_vm5 }
 0x9af   : > { %4377 = vmatpush1.msk.msra.mxu0 %vm11833_vm13, %v3455_v13  ;;  %vm11842_vm8 = vmmov %vm11840_vm5 }
 0x9b0   : > { %v3422_v0 = vpop.permute.xlu1 %3421  ;;  %v3420_v36 = vpop.permute.xlu0 %3419 }
 0x9b1   : > { %v3430_v15 = vsel %vm11834_vm14, %v3422_v0, %v10115_v24  ;;  %v3423_v23 = vsel %vm11835_vm6, %v3420_v36, %v3422_v0  ;;  %v3424_v59 = vsel %vm11836_vm2, %v3418_v22, %v3420_v36  ;;  %vm11843_vm14 = vnez %v11685_v29  ;;  %v4699_v29 = vld [vmem:[%s8453_s15 + $0x8] sm:$0xff] }
 0x9b2   : > { %4364 = vmatprep.subr.msk.mxu1 %vm9571_vm0, %v3424_v59  ;;  %4378 = vmatprep.subr.msk.mxu0 %vm11838_vm12, %v3430_v15  ;;  %vm11844_vm6 = vcmp.lt.s32.totalorder %v8543_v19, 31 }
 0x9b3   : > { %4365 = vmatpush1.msk.msra.mxu1 %vm9581_vm1, %v3425_v9  ;;  %4379 = vmatpush1.msk.msra.mxu0 %vm9657_vm4, %v3423_v23  ;;  %vm11845_vm2 = vmmov %vm11844_vm6 }
 0x9b4   : > { %v3386_v14 = vpop.permute.xlu1 %3385  ;;  %3709 = vmatprep.subr.mxu1 %v9997_v39  ;;  %3780 = vmatprep.subr.mxu0 %v9959_v56  ;;  %v3384_v24 = vpop.permute.xlu0 %3383  ;;  %vm11846_vm9 = vmmov %vm11845_vm2 }
 0x9b5   : > { %v3393_v30 = vsel %vm11839_vm10, %v3384_v24, %v3386_v14  ;;  %v3394_v51 = vsel %vm11840_vm5, %v10141_v42, %v3384_v24  ;;  %3710 = vmatpush1.msra.mxu1 %v9909_v18  ;;  %3781 = vmatpush1.msra.mxu0 %v9994_v12  ;;  %vm11847_vm10 = vmmov %vm11845_vm2  ;;  %vm11848_vm5 = vcmp.lt.s32.totalorder %v8543_v19, 32 }
 0x9b6   : > { %4366 = vmatprep.subr.msk.mxu1 %vm11828_vm11, %v3393_v30 }
 0x9b7   : > { %4367 = vmatpush1.msk.msra.mxu1 %vm11829_vm15, %v3394_v51 }
 0x9b8   : > { %v3352_v39 = vpop.permute.xlu1 %3351  ;;  %v3388_v56 = vpop.permute.xlu0 %3387 }
 0x9b9   : > { %v3391_v40 = vsel %vm11841_vm7, %v3388_v56, %v10152_v10  ;;  %v3392_v7 = vsel %vm11842_vm8, %v3386_v14, %v3388_v56  ;;  %v3362_v2 = vsel %vm11847_vm10, %v10165_v49, %v3352_v39  ;;  %vm11849_vm7 = vmmov %vm11848_vm5 }
 0x9ba   : > { %4380 = vmatprep.subr.msk.mxu0 %vm11843_vm14, %v3391_v40 }
 0x9bb   : > { %4381 = vmatpush1.msk.msra.mxu0 %vm11833_vm13, %v3392_v7 }
 0x9bc   : > { %v3356_v18 = vpop.permute.xlu1 %3355  ;;  %v3354_v12 = vpop.permute.xlu0 %3353 }
 0x9bd   : > { %v3359_v42 = vsel %vm11844_vm6, %v3356_v18, %v10163_v43  ;;  %v3360_v17 = vsel %vm11845_vm2, %v3354_v12, %v3356_v18  ;;  %v3361_v10 = vsel %vm11846_vm9, %v3352_v39, %v3354_v12 }
 0x9be   : > { %4368 = vmatprep.subr.msk.mxu1 %vm9571_vm0, %v3361_v10  ;;  %4382 = vmatprep.subr.msk.mxu0 %vm11838_vm12, %v3359_v42  ;;  %vm11850_vm0 = vmmov %vm11848_vm5 }
 0x9bf   : > { %4369 = vmatpush1.msk.msra.mxu1 %vm9581_vm1, %v3362_v2  ;;  %4383 = vmatpush1.msk.msra.mxu0 %vm9657_vm4, %v3360_v17  ;;  %vm11851_vm1 = vmmov %vm11850_vm0  ;;  %vm11852_vm4 = vcmp.lt.s32.totalorder %v8543_v19, 33  ;;  %v4700_v19 = vld [vmem:[%s8453_s15 + $0x18] sm:$0xff] }
 0x9c0   : > { %v3322_v43 = vpop.permute.xlu1 %3321  ;;  %vm11853_vm12 = vmmov %vm11852_vm4 }
 0x9c1   : > { %v3320_v8 = vpop.permute.xlu0 %3319  ;;  %vm11854_vm8 = vmmov %vm11852_vm4 }
 0x9c2   : > { %v3330_v1 = vsel %vm11848_vm5, %v10183_v54, %v3320_v8  ;;  %v3329_v49 = vsel %vm11849_vm7, %v3320_v8, %v3322_v43  ;;  %vm11855_vm6 = vmmov %vm11852_vm4 }
 0x9c3   : > { %3715 = vmatprep.subr.mxu1 %v3329_v49 }
 0x9c4   : > { %3716 = vmatpush1.msra.mxu1 %v3330_v1  ;;  %v3288_v44 = vpop.permute.xlu1 %3287 }
 0x9c5   : > { %v3324_v53 = vpop.permute.xlu0 %3323 }
 0x9c6   : > { %v3328_v46 = vsel %vm11850_vm0, %v3322_v43, %v3324_v53  ;;  %v3327_v31 = vsel %vm11851_vm1, %v3324_v53, %v10190_v26  ;;  %v3298_v26 = vsel %vm11855_vm6, %v10203_v11, %v3288_v44  ;;  %v11857_v11 = vld [vmem:[#allocation186_spill] sm:$0xff] }
 0x9c7   : > { %3786 = vmatprep.subr.mxu0 %v3327_v31 }
 0x9c8   : > { %3787 = vmatpush1.msra.mxu0 %v3328_v46  ;;  %v3292_v21 = vpop.permute.xlu1 %3291 }
 0x9c9   : > { %v3295_v54 = vsel %vm11852_vm4, %v3292_v21, %v10201_v33  ;;  %v3290_v35 = vpop.permute.xlu0 %3289  ;;  %v11856_v33 = vld [vmem:[#allocation184_spill] sm:$0xff] }
 0x9ca   : > { %v3296_v57 = vsel %vm11853_vm12, %v3290_v35, %v3292_v21  ;;  %v3297_v60 = vsel %vm11854_vm8, %v3288_v44, %v3290_v35  ;;  %4384 = vmatprep.subr.msk.mxu0 %vm11843_vm14, %v3295_v54 }
 0x9cb   : > { %4370 = vmatprep.subr.msk.mxu1 %vm11828_vm11, %v3297_v60  ;;  %4385 = vmatpush1.msk.msra.mxu0 %vm11833_vm13, %v3296_v57 }
 0x9cc   : > { %4371 = vmatpush1.msk.msra.mxu1 %vm11829_vm15, %v3298_v26  ;;  %4386 = vmatmul.mubr.msk.f32.vlgmr.msra.gmra.mxu0 %vm3541_vm3, %v10208_v27 }
 0x9cd   : > { %4372 = vmatmul.mubr.msk.f32.vlgmr.msra.gmra.mxu1 %vm3541_vm3, %v10208_v27  ;;  %3867 = vmatprep.subr.mxu1 %v4699_v29  ;;  %v11858_v27 = vld [vmem:[#allocation183_spill] sm:$0xff]  ;;  %vm11860_vm3 = vcmask 130048  }
 0x9ce   : > { %3938 = vmatprep.subr.mxu0 %v4700_v19  ;;  %3868 = vmatpush1.msra.mxu1 %v4701_v20  ;;  %vm11861_vm11 = vmmov %vm11860_vm3 }
 0x9cf   : > { %3939 = vmatpush1.msra.mxu0 %v4702_v37  ;;  %3869 = vmatprep.subr.mxu1 %v11856_v33  ;;  %vm11866_vm15 = vmmov %vm11860_vm3 }
 0x9d0   : > { %3940 = vmatprep.subr.mxu0 %v11857_v11  ;;  %3870 = vmatpush1.msra.mxu1 %v11858_v27  ;;  %vm11867_vm13 = vmmov %vm11860_vm3 }
 0x9d1   : > { %3903 = vmatprep.mubr.f32.mxu1 %v11779_v16  ;;  %3941 = vmatpush1.msra.mxu0 %v11859_v50 }
 0x9d2   : > { %3974 = vmatprep.mubr.f32.mxu0 %v11779_v16  ;;  %4387 = vmatmul.mubr.msk.f32.vlgmr.msra.gmra.mxu1 %vm11860_vm3, %v3829_v32 }
 0x9d3   : > { %4388 = vmatmul.mubr.msk.f32.vlgmr.msra.gmra.mxu0 %vm11861_vm11, %v3829_v32  ;;  %4009 = vmatprep.subr.mxu1 %v4703_v58 }
 0x9d4   : > { %4080 = vmatprep.subr.mxu0 %v4704_v4  ;;  %4010 = vmatpush1.msra.mxu1 %v4705_v55 }
 0x9d5   : > { %4081 = vmatpush1.msra.mxu0 %v4706_v52  ;;  %4011 = vmatprep.subr.mxu1 %v11862_v45  ;;  %v3834_v62 = vpop.permute.xlu1 %3833 }
 0x9d6   : > { %4082 = vmatprep.subr.mxu0 %v11863_v3  ;;  %4012 = vmatpush1.msra.mxu1 %v11864_v38  ;;  %v3539_v22 = vpop.permute.xlu0 %3538 }
 0x9d7   : > { %4045 = vmatprep.mubr.f32.mxu1 %v11779_v16  ;;  %4083 = vmatpush1.msra.mxu0 %v11865_v5 }
 0x9d8   : > { %4116 = vmatprep.mubr.f32.mxu0 %v11779_v16  ;;  %4389 = vmatmul.mubr.msk.f32.vlgmr.msra.gmra.mxu1 %vm11866_vm15, %v3829_v32 }
 0x9d9   : > { %4390 = vmatmul.mubr.msk.f32.vlgmr.msra.gmra.mxu0 %vm11867_vm13, %v3829_v32 }
 0xa5b   : > { %v3611_v28 = vpop.f32.mrf.mxu1 }
 0xa5c   : > { %v3682_v34 = vpop.f32.mrf.mxu0  ;;  %v3612_v61 = vadd.f32 %v3611_v28, %v3539_v22 }
 0xa5d   : > { %v3613_v41 = vpop.f32.mrf.mxu1  ;;  %v3683_v16 = vadd.f32 %v3682_v34, %v3539_v22 }
 0xa5e   : > { %v3684_v48 = vpop.f32.mrf.mxu0  ;;  %v3614_v9 = vadd.f32 %v3613_v41, %v3539_v22 }
 0xa5f   : > { %v3685_v51 = vadd.f32 %v3684_v48, %v3539_v22 }
 0xa8c   : > { %v3824_v6 = vpop.f32.mrf.mxu0 }
 0xa8d   : > { %v3753_v47 = vpop.f32.mrf.mxu1  ;;  %v3825_v43 = vadd.f32 %v3824_v6, %v3539_v22 }
 0xa8e   : > { %v3826_v25 = vpop.f32.mrf.mxu0  ;;  %v3754_v42 = vadd.f32 %v3753_v47, %v3539_v22 }
 0xa8f   : > { %v3755_v63 = vpop.f32.mrf.mxu1  ;;  %v3827_v21 = vadd.f32 %v3826_v25, %v3539_v22 }
 0xa90   : > { %v3756_v44 = vadd.f32 %v3755_v63, %v3539_v22 }
 0xa92   : > { %v3905_v13 = vpop.f32.mrf.mxu1 }
 0xa93   : > { %v3906_v0 = vadd.f32 %v3905_v13, %v3834_v62  ;;  %v3976_v36 = vpop.f32.mrf.mxu0 }
 0xa94   : > { %v3977_v15 = vadd.f32 %v3976_v36, %v3834_v62  ;;  %v3907_v23 = vpop.f32.mrf.mxu1 }
 0xa95   : > { %v4123_v59 = vadd.f32 %v3906_v0, %v3612_v61  ;;  %v3908_v14 = vadd.f32 %v3907_v23, %v3834_v62  ;;  %v3978_v24 = vpop.f32.mrf.mxu0 }
 0xa96   : > { %v4125_v30 = vadd.f32 %v3977_v15, %v3683_v16  ;;  %v3979_v39 = vadd.f32 %v3978_v24, %v3834_v62 }
 0xa97   : > { %v4131_v56 = vmax.f32 %v4123_v59, 0.0  ;;  %v4124_v40 = vadd.f32 %v3908_v14, %v3614_v9 }
 0xa98   : > { %v4133_v7 = vmax.f32 %v4125_v30, 0.0  ;;  %v4126_v18 = vadd.f32 %v3979_v39, %v3685_v51  ;;  %v4047_v12 = vpop.f32.mrf.mxu1 }
 0xa99   : > { %4139 = vst [vmem:[%s10400_s23] sm:$0xff] %v4131_v56  ;;  %v4132_v17 = vmax.f32 %v4124_v40, 0.0  ;;  %v4048_v10 = vadd.f32 %v4047_v12, %v3834_v62  ;;  %v4118_v2 = vpop.f32.mrf.mxu0 }
 0xa9a   : > { %4141 = vst [vmem:[%s10400_s23 + $0x10] sm:$0xff] %v4133_v7  ;;  %v4134_v8 = vmax.f32 %v4126_v18, 0.0  ;;  %v4119_v1 = vadd.f32 %v4118_v2, %v3834_v62  ;;  %v4049_v49 = vpop.f32.mrf.mxu1 }
 0xa9b   : > { %4140 = vst [vmem:[%s10400_s23 + $0x8] sm:$0xff] %v4132_v17  ;;  %v4127_v53 = vadd.f32 %v4048_v10, %v3754_v42  ;;  %v4050_v46 = vadd.f32 %v4049_v49, %v3834_v62  ;;  %v4120_v31 = vpop.f32.mrf.mxu0 }
 0xa9c   : > { %4142 = vst [vmem:[%s10400_s23 + $0x18] sm:$0xff] %v4134_v8  ;;  %v4129_v54 = vadd.f32 %v4119_v1, %v3825_v43  ;;  %v4121_v35 = vadd.f32 %v4120_v31, %v3834_v62 }
 0xa9d   : > { %v4135_v57 = vmax.f32 %v4127_v53, 0.0  ;;  %v4128_v60 = vadd.f32 %v4050_v46, %v3756_v44 }
 0xa9e   : > { %v4137_v26 = vmax.f32 %v4129_v54, 0.0  ;;  %v4130_v29 = vadd.f32 %v4121_v35, %v3827_v21 }
 0xa9f   : > { %4143 = vst [vmem:[%s10400_s23 + $0x20] sm:$0xff] %v4135_v57  ;;  %v4136_v19 = vmax.f32 %v4128_v60, 0.0 }
 0xaa0   : > { %4145 = vst [vmem:[%s10400_s23 + $0x30] sm:$0xff] %v4137_v26  ;;  %v4138_v20 = vmax.f32 %v4130_v29, 0.0 }
 0xaa1   : > { %4144 = vst [vmem:[%s10400_s23 + $0x28] sm:$0xff] %v4136_v19 }
 0xaa2   : > { %4146 = vst [vmem:[%s10400_s23 + $0x38] sm:$0xff] %v4138_v20 }
 0xaa3 PF: > { %s21_s17 = sadd.s32 1, %s4713_s17  }
 0xaa4   : > { %p18_p4 = scmp.ge.s32.totalorder %s21_s17, 4  }
 0xaa6   :  { %20 = sbr.rel (!%p18_p4) target bundleno = 1 (0x1), region = 97 }

</bundles_post_ra>
